<compile_context>
chip_gen: v5e
topology: v5e:2x2
jax: 0.10.0
libtpu: 0.0.40
codegen_flags: <defaults>
</compile_context>

<pallas_src>
import functools
import math

import numpy as np
import jax
import jax.numpy as jnp
from jax.experimental import pallas as pl
from jax.experimental.pallas import tpu as pltpu


# ----------------------------------------------------------------------------
# In-kernel helpers (pure functions on values)
# ----------------------------------------------------------------------------
def _ln(x, g, b):
    mu = jnp.mean(x, axis=-1, keepdims=True)
    xc = x - mu
    var = jnp.mean(xc * xc, axis=-1, keepdims=True)
    return xc * jax.lax.rsqrt(var + 1e-5) * g + b


def _mha(q, k, v, nheads):
    """Multi-head attention on (Lq, D) / (Lk, D) values, heads handled in-kernel."""
    D = q.shape[-1]
    dh = D // nheads
    scale = 1.0 / math.sqrt(dh)
    outs = []
    for h in range(nheads):
        sl = slice(h * dh, (h + 1) * dh)
        # q @ k^T via dot_general (MXU transposed operand; no explicit XLU transpose)
        s = jax.lax.dot_general(q[:, sl], k[:, sl], (((1,), (1,)), ((), ())),
                                preferred_element_type=jnp.float32) * scale
        s = s - jnp.max(s, axis=-1, keepdims=True)
        p = jnp.exp(s)
        p = p * pl.reciprocal(jnp.sum(p, axis=-1, keepdims=True), approx=True)
        outs.append(jnp.dot(p, v[:, sl], preferred_element_type=jnp.float32))
    return jnp.concatenate(outs, axis=-1)


def _enc_layer(x, wqkv, qkv_bias, wo, bo, n1g, n1b, w1, b1, w2, b2, n2g, n2b, nheads):
    """One post-norm transformer encoder layer on (L, D) values.

    q = k = x + pos, v = x; the pos contribution and biases are already folded
    into qkv_bias (precomputed outside the kernel, batch-invariant)."""
    D = x.shape[-1]
    qkv = jnp.dot(x, wqkv, preferred_element_type=jnp.float32) + qkv_bias
    attn = _mha(qkv[:, :D], qkv[:, D:2 * D], qkv[:, 2 * D:], nheads)
    attn = jnp.dot(attn, wo, preferred_element_type=jnp.float32) + bo
    x1 = _ln(x + attn, n1g, n1b)
    ff = jnp.maximum(jnp.dot(x1, w1, preferred_element_type=jnp.float32) + b1, 0.0)
    ff = jnp.dot(ff, w2, preferred_element_type=jnp.float32) + b2
    return _ln(x1 + ff, n2g, n2b)


# ----------------------------------------------------------------------------
# BlockSpec helpers for the layer-stacked grids
# ----------------------------------------------------------------------------
def _per_layer(shape):
    n = len(shape)
    return pl.BlockSpec(shape, lambda l, _n=n: (l,) + (0,) * (_n - 1))


def _const(shape):
    n = len(shape)
    return pl.BlockSpec(shape, lambda l, _n=n: (0,) * _n)


# ----------------------------------------------------------------------------
# Fused Pallas kernels
# ----------------------------------------------------------------------------
def _backbone_kernel(x_ref, pool_ref, bw_ref, bb_ref, pw_ref, pb_ref, out_ref):
    """All images in one call; per image x is (C, H*W) (spatial on lanes)."""
    nimg = x_ref.shape[0]
    for i in range(nimg):
        xi = x_ref[i]                                                   # (C, HW)
        feats = jnp.maximum(
            jnp.dot(bw_ref[...], xi, preferred_element_type=jnp.float32) + bb_ref[...],
            0.0)                                                        # (Cb, HW)
        pooled = jnp.dot(feats, pool_ref[...],
                         preferred_element_type=jnp.float32)            # (Cb, MM)
        out_ref[i] = (jnp.dot(pw_ref[...], pooled,
                              preferred_element_type=jnp.float32) + pb_ref[...])  # (hid, MM)


def _encoder_stack_kernel(src_ref, wqkv_ref, bias_ref, wo_ref, bo_ref,
                          n1g_ref, n1b_ref, w1_ref, b1_ref, w2_ref, b2_ref,
                          n2g_ref, n2b_ref, out_ref, *, nheads, nbatch):
    """Transformer encoder stack; grid over layers, batch inside the body.

    out_ref has a constant index_map, so it stays resident in VMEM across the
    whole layer grid and is written back to HBM only once."""
    layer = pl.program_id(0)

    @pl.when(layer == 0)
    def _():
        out_ref[...] = src_ref[...]

    for b in range(nbatch):
        out_ref[b] = _enc_layer(out_ref[b], wqkv_ref[0], bias_ref[0], wo_ref[0],
                                bo_ref[0], n1g_ref[0], n1b_ref[0], w1_ref[0],
                                b1_ref[0], w2_ref[0], b2_ref[0], n2g_ref[0],
                                n2b_ref[0], nheads)


def _cvae_encoder_stack_kernel(src_ref, eps_ref, wqkv_ref, bias_ref, wo_ref, bo_ref,
                               n1g_ref, n1b_ref, w1_ref, b1_ref, w2_ref, b2_ref,
                               n2g_ref, n2b_ref,
                               lpw_ref, lpb_ref, low_ref, lob_ref,
                               latent_ref, mu_ref, lv_ref, state_ref,
                               *, nheads, nbatch, latent_dim):
    """CVAE encoder stack with the latent head (latent_proj -> reparametrize ->
    latent_out_proj) fused into the last layer's grid step."""
    layer = pl.program_id(0)

    @pl.when(layer == 0)
    def _():
        state_ref[...] = src_ref[...]

    for b in range(nbatch):
        state_ref[b] = _enc_layer(state_ref[b], wqkv_ref[0], bias_ref[0], wo_ref[0],
                                  bo_ref[0], n1g_ref[0], n1b_ref[0], w1_ref[0],
                                  b1_ref[0], w2_ref[0], b2_ref[0], n2g_ref[0],
                                  n2b_ref[0], nheads)

    @pl.when(layer == pl.num_programs(0) - 1)
    def _():
        cls = jnp.concatenate([state_ref[b][0:1, :] for b in range(nbatch)], axis=0)
        info = jnp.dot(cls, lpw_ref[...], preferred_element_type=jnp.float32) + lpb_ref[...]
        mu = info[:, :latent_dim]
        logvar = info[:, latent_dim:]
        z = mu + jnp.exp(0.5 * logvar) * eps_ref[...]
        latent_ref[...] = (jnp.dot(z, low_ref[...], preferred_element_type=jnp.float32)
                           + lob_ref[...])
        mu_ref[...] = mu
        lv_ref[...] = logvar


def _decoder_stack_kernel(mem_ref, wqkv_ref, sa_bias_ref, wo_ref, bo_ref,
                          n1g_ref, n1b_ref,
                          cwq_ref, cq_bias_ref, cwkv_ref, ckv_bias_ref, cwo_ref, cbo_ref,
                          n2g_ref, n2b_ref,
                          w1_ref, b1_ref, w2_ref, b2_ref, n3g_ref, n3b_ref,
                          dng_ref, dnb_ref, ahw_ref, ahb_ref,
                          act_ref, state_ref, *, nheads, nbatch):
    """Transformer decoder stack with the final LayerNorm + action head fused
    into the last layer's grid step.  tgt (action_query) starts at zeros."""
    layer = pl.program_id(0)
    last = pl.num_programs(0) - 1
    D = mem_ref.shape[-1]

    @pl.when(layer == 0)
    def _():
        state_ref[...] = jnp.zeros_like(state_ref)

    for b in range(nbatch):
        t = state_ref[b]                                               # (T, D)
        mem = mem_ref[b]                                               # (Lm, D)

        # self attention: q = k = tgt + qpos, v = tgt (pos terms precomputed in sa_bias)
        qkv = jnp.dot(t, wqkv_ref[0], preferred_element_type=jnp.float32) + sa_bias_ref[0]
        sa = _mha(qkv[:, :D], qkv[:, D:2 * D], qkv[:, 2 * D:], nheads)
        sa = jnp.dot(sa, wo_ref[0], preferred_element_type=jnp.float32) + bo_ref[0]
        t1 = _ln(t + sa, n1g_ref[0], n1b_ref[0])

        # cross attention: q = t1 + qpos, k = mem + pos, v = mem
        q = jnp.dot(t1, cwq_ref[0], preferred_element_type=jnp.float32) + cq_bias_ref[0]
        kv = jnp.dot(mem, cwkv_ref[0], preferred_element_type=jnp.float32) + ckv_bias_ref[0]
        ca = _mha(q, kv[:, :D], kv[:, D:], nheads)
        ca = jnp.dot(ca, cwo_ref[0], preferred_element_type=jnp.float32) + cbo_ref[0]
        t2 = _ln(t1 + ca, n2g_ref[0], n2b_ref[0])

        ff = jnp.maximum(
            jnp.dot(t2, w1_ref[0], preferred_element_type=jnp.float32) + b1_ref[0], 0.0)
        ff = jnp.dot(ff, w2_ref[0], preferred_element_type=jnp.float32) + b2_ref[0]
        t3 = _ln(t2 + ff, n3g_ref[0], n3b_ref[0])
        state_ref[b] = t3

        @pl.when(layer == last)
        def _():
            h = _ln(t3, dng_ref[...], dnb_ref[...])
            act_ref[b] = (jnp.dot(h, ahw_ref[...], preferred_element_type=jnp.float32)
                          + ahb_ref[...])


# ----------------------------------------------------------------------------
# Batch-invariant per-layer bias precomputation (plain jnp, runs in XLA)
# ----------------------------------------------------------------------------
def make_enc_qkv_bias(stack, pos):
    """pos: (L, D).  Returns (nl, L, 3D) = [pos@Wq + bq | pos@Wk + bk | bv]."""
    D = pos.shape[-1]
    wq = stack["wqkv"][:, :, :D]
    wk = stack["wqkv"][:, :, D:2 * D]
    pq = jnp.einsum('ld,nde->nle', pos, wq)
    pk = jnp.einsum('ld,nde->nle', pos, wk)
    pv = jnp.zeros_like(pq)
    return jnp.concatenate([pq, pk, pv], axis=-1) + stack["bqkv"]


def make_dec_biases(stack, qpos, mem_pos):
    """Per-layer additive bias tables for the decoder stack (batch-invariant)."""
    D = qpos.shape[-1]
    nl = stack["wqkv"].shape[0]
    wq = stack["wqkv"][:, :, :D]
    wk = stack["wqkv"][:, :, D:2 * D]
    sa_bias = jnp.concatenate(
        [jnp.einsum('ld,nde->nle', qpos, wq),
         jnp.einsum('ld,nde->nle', qpos, wk),
         jnp.zeros((nl, qpos.shape[0], D), jnp.float32)], axis=-1) + stack["bqkv"]
    cq_bias = jnp.einsum('ld,nde->nle', qpos, stack["ca_wq"]) + stack["ca_bq"]
    cwk = stack["ca_wkv"][:, :, :D]
    ck = jnp.einsum('ld,nde->nle', mem_pos, cwk)
    ckv_bias = jnp.concatenate([ck, jnp.zeros_like(ck)], axis=-1) + stack["ca_bkv"]
    return sa_bias, cq_bias, ckv_bias


# ----------------------------------------------------------------------------
# Kernel wrappers
# ----------------------------------------------------------------------------
def forward_backbone(params, cfg, image):
    bs, N, num_cam, C, H, W = image.shape
    M, hid = cfg["M"], cfg["hidden"]
    Nimg = bs * N * num_cam
    x = image.reshape(Nimg, C, H * W)                       # no transpose needed
    out = pl.pallas_call(
        _backbone_kernel,
        out_shape=jax.ShapeDtypeStruct((Nimg, hid, M * M), jnp.float32),
    )(x, params["pool_mat"], params["backbone_w"], params["backbone_b"],
      params["input_proj_w"], params["input_proj_b"])
    # (Nimg, hid, MM) -> (bs, N, MM, num_cam, hid) spatial-major / camera-minor tokens
    feats = out.reshape(bs, N, num_cam, hid, M * M).transpose(0, 1, 4, 2, 3)
    vision_input = feats.reshape(bs, N, M * M * num_cam, hid)
    vision_pos = params["vision_pos_tokens"][None, None]    # (1, 1, MM*num_cam, hid)
    return vision_input, vision_pos


def cvae_encoder_forward(enc_in, pos, eps, stack, params, nheads):
    """enc_in: (B, Le, D); pos: (Le, D) batch-invariant; eps: (B, latent_dim)."""
    B, Le, D = enc_in.shape
    nl = stack["wqkv"].shape[0]
    Fd = stack["w1"].shape[2]
    Ld = eps.shape[1]
    qkv_bias = make_enc_qkv_bias(stack, pos)
    latent, mu, lv = pl.pallas_call(
        functools.partial(_cvae_encoder_stack_kernel, nheads=nheads, nbatch=B,
                          latent_dim=Ld),
        grid=(nl,),
        in_specs=[
            _const((B, Le, D)), _const((B, Ld)),
            _per_layer((1, D, 3 * D)), _per_layer((1, Le, 3 * D)),
            _per_layer((1, D, D)), _per_layer((1, 1, D)),
            _per_layer((1, 1, D)), _per_layer((1, 1, D)),
            _per_layer((1, D, Fd)), _per_layer((1, 1, Fd)),
            _per_layer((1, Fd, D)), _per_layer((1, 1, D)),
            _per_layer((1, 1, D)), _per_layer((1, 1, D)),
            _const((D, 2 * Ld)), _const((1, 2 * Ld)),
            _const((Ld, D)), _const((1, D)),
        ],
        out_specs=(_const((B, D)), _const((B, Ld)), _const((B, Ld))),
        out_shape=(jax.ShapeDtypeStruct((B, D), jnp.float32),
                   jax.ShapeDtypeStruct((B, Ld), jnp.float32),
                   jax.ShapeDtypeStruct((B, Ld), jnp.float32)),
        scratch_shapes=[pltpu.VMEM((B, Le, D), jnp.float32)],
        compiler_params=pltpu.CompilerParams(dimension_semantics=("arbitrary",)),
    )(enc_in, eps, stack["wqkv"], qkv_bias, stack["wo"], stack["bo"],
      stack["n1g"], stack["n1b"], stack["w1"], stack["b1"], stack["w2"], stack["b2"],
      stack["n2g"], stack["n2b"],
      params["latent_proj_w"], params["latent_proj_b"],
      params["latent_out_proj_w"], params["latent_out_proj_b"])
    return latent, mu, lv


def encoder_stack_forward(src, pos, stack, nheads):
    """src: (B, L, D); pos: (L, D).  One pallas_call for the whole encoder stack."""
    B, L, D = src.shape
    nl = stack["wqkv"].shape[0]
    Fd = stack["w1"].shape[2]
    qkv_bias = make_enc_qkv_bias(stack, pos)
    return pl.pallas_call(
        functools.partial(_encoder_stack_kernel, nheads=nheads, nbatch=B),
        grid=(nl,),
        in_specs=[
            _const((B, L, D)),
            _per_layer((1, D, 3 * D)), _per_layer((1, L, 3 * D)),
            _per_layer((1, D, D)), _per_layer((1, 1, D)),
            _per_layer((1, 1, D)), _per_layer((1, 1, D)),
            _per_layer((1, D, Fd)), _per_layer((1, 1, Fd)),
            _per_layer((1, Fd, D)), _per_layer((1, 1, D)),
            _per_layer((1, 1, D)), _per_layer((1, 1, D)),
        ],
        out_specs=_const((B, L, D)),
        out_shape=jax.ShapeDtypeStruct((B, L, D), jnp.float32),
        compiler_params=pltpu.CompilerParams(dimension_semantics=("arbitrary",)),
    )(src, stack["wqkv"], qkv_bias, stack["wo"], stack["bo"],
      stack["n1g"], stack["n1b"], stack["w1"], stack["b1"], stack["w2"], stack["b2"],
      stack["n2g"], stack["n2b"])


def decoder_stack_forward(memory, mem_pos, qpos, stack, dng, dnb, ahw, ahb, nheads):
    """memory: (B, Lm, D); mem_pos: (Lm, D); qpos: (T, D).  Returns actions (B, T, A)."""
    B, Lm, D = memory.shape
    T = qpos.shape[0]
    nl = stack["wqkv"].shape[0]
    Fd = stack["w1"].shape[2]
    A = ahw.shape[1]
    sa_bias, cq_bias, ckv_bias = make_dec_biases(stack, qpos, mem_pos)
    return pl.pallas_call(
        functools.partial(_decoder_stack_kernel, nheads=nheads, nbatch=B),
        grid=(nl,),
        in_specs=[
            _const((B, Lm, D)),
            _per_layer((1, D, 3 * D)), _per_layer((1, T, 3 * D)),
            _per_layer((1, D, D)), _per_layer((1, 1, D)),
            _per_layer((1, 1, D)), _per_layer((1, 1, D)),
            _per_layer((1, D, D)), _per_layer((1, T, D)),
            _per_layer((1, D, 2 * D)), _per_layer((1, Lm, 2 * D)),
            _per_layer((1, D, D)), _per_layer((1, 1, D)),
            _per_layer((1, 1, D)), _per_layer((1, 1, D)),
            _per_layer((1, D, Fd)), _per_layer((1, 1, Fd)),
            _per_layer((1, Fd, D)), _per_layer((1, 1, D)),
            _per_layer((1, 1, D)), _per_layer((1, 1, D)),
            _const((1, D)), _const((1, D)), _const((D, A)), _const((1, A)),
        ],
        out_specs=_const((B, T, A)),
        out_shape=jax.ShapeDtypeStruct((B, T, A), jnp.float32),
        scratch_shapes=[pltpu.VMEM((B, T, D), jnp.float32)],
        compiler_params=pltpu.CompilerParams(dimension_semantics=("arbitrary",)),
    )(memory,
      stack["wqkv"], sa_bias, stack["wo"], stack["bo"], stack["n1g"], stack["n1b"],
      stack["ca_wq"], cq_bias, stack["ca_wkv"], ckv_bias, stack["ca_wo"], stack["ca_bo"],
      stack["n2g"], stack["n2b"],
      stack["w1"], stack["b1"], stack["w2"], stack["b2"], stack["n3g"], stack["n3b"],
      dng, dnb, ahw, ahb)


# ----------------------------------------------------------------------------
# Model pieces (small glue in plain jnp)
# ----------------------------------------------------------------------------
def forward_encoder(params, cfg, robot_state_last, actions, eps_key):
    bs = robot_state_last.shape[0]
    hid, latent_dim, nheads = cfg["hidden"], cfg["latent_dim"], cfg["nheads"]
    # tiny projections in plain jnp (XLA fuses them)
    act_emb = jnp.dot(actions, params["encoder_action_proj_w"]) + params["encoder_action_proj_b"]
    rs = (jnp.dot(robot_state_last, params["encoder_robot_state_proj_w"])
          + params["encoder_robot_state_proj_b"])[:, None, :]
    cls = jnp.broadcast_to(params["cls_pos_embed"][None], (bs, 1, hid))
    enc_in = jnp.concatenate([cls, rs, act_emb], axis=1)           # (bs, 2+T, hid)
    pos = params["encoder_pos_embed"][0]                           # (2+T, hid)
    eps = jax.random.normal(eps_key, (bs, latent_dim), dtype=jnp.float32)
    return cvae_encoder_forward(enc_in, pos, eps, params["cvae_encoder"], params, nheads)


def get_trust_level(trust_value):
    tv = jnp.clip(trust_value, 0.0, 1.0)
    level = jnp.zeros(tv.shape, dtype=jnp.int32)
    level = jnp.where(tv > 0.33, 1, level)
    level = jnp.where(tv > 0.66, 2, level)
    return level


def prepare_inputs(vision_input, robot_state_input, latent_input, trust_input):
    rs = robot_state_input[:, :, None, :]                          # (bs, N, 1, hid)
    tr = trust_input[:, None, None, :]                             # (bs, 1, 1, hid) (N == 1)
    tokens = jnp.concatenate([vision_input, rs, tr], axis=2)
    inputs = tokens.reshape(tokens.shape[0], -1, tokens.shape[-1])
    inputs = jnp.concatenate([inputs, latent_input[:, None, :]], axis=1)
    return inputs                                                  # (bs, L, hid) batch-first


def prepare_input_pos_embeds(params, vision_pos_embed, N):
    hid = params["robot_pos_embed"].shape[-1]
    robot_pe = params["robot_pos_embed"][None, None]               # (1, 1, 1, hid)
    trust_pe = params["trust_pos_embed"][None, None]
    per_t = jnp.concatenate([vision_pos_embed, robot_pe, trust_pe], axis=2)
    pe = jnp.broadcast_to(per_t, (1, N) + per_t.shape[2:]).reshape(-1, hid)
    pe = jnp.concatenate([pe, params["latent_pos_embed"]], axis=0)
    return pe                                                      # (L, hid) batch-invariant


def cvae_forward(params, cfg, robot_state, image, actions, trust, eps_key):
    """Training-mode forward: returns (predicted_actions, latent_mu, latent_logvar)."""
    N, nheads = cfg["N"], cfg["nheads"]

    vision_input, vision_pos_embed = forward_backbone(params, cfg, image)
    latent_input, mu, logvar = forward_encoder(params, cfg, robot_state[:, -1], actions, eps_key)

    robot_state_input = (jnp.dot(robot_state, params["input_proj_robot_state_w"])
                         + params["input_proj_robot_state_b"])               # (bs, N, hid)

    trust_level = get_trust_level(jnp.mean(trust, axis=1))
    trust_input = params["decoder_trust_embeddings"][trust_level]            # (bs, hid)

    inputs = prepare_inputs(vision_input, robot_state_input, latent_input, trust_input)
    input_pos = prepare_input_pos_embeds(params, vision_pos_embed, N)        # (L, hid)
    query_pos = params["action_steps_pos_embed"]                             # (T, hid)

    tp = params["transformer"]
    memory = encoder_stack_forward(inputs, input_pos, tp["enc"], nheads)
    predicted_actions = decoder_stack_forward(
        memory, input_pos, query_pos, tp["dec"],
        tp["dec_norm_g"], tp["dec_norm_b"],
        params["action_head_w"], params["action_head_b"], nheads)
    return predicted_actions, mu, logvar


# ----------------------------------------------------------------------------
# Constant tables / deterministic parameter initialization (all float32 once)
# ----------------------------------------------------------------------------
def get_sinusoid_encoding_table(n_position, d_hid):
    def angle_vec(pos):
        return [pos / np.power(10000, 2 * (j // 2) / d_hid) for j in range(d_hid)]

    tab = np.array([angle_vec(p) for p in range(n_position)])
    tab[:, 0::2] = np.sin(tab[:, 0::2])
    tab[:, 1::2] = np.cos(tab[:, 1::2])
    return jnp.asarray(tab, dtype=jnp.float32)[None]               # (1, n, d)


def position_embedding_sine_np(M, d_model, temperature=10000.0):
    num_pos_feats = d_model // 2
    scale = 2 * math.pi
    y_embed = np.arange(1, M + 1, dtype=np.float32)[:, None] * np.ones((1, M), np.float32)
    x_embed = np.arange(1, M + 1, dtype=np.float32)[None, :] * np.ones((M, 1), np.float32)
    eps = 1e-6
    y_embed = y_embed / (y_embed[-1:, :] + eps) * scale
    x_embed = x_embed / (x_embed[:, -1:] + eps) * scale
    dim_t = temperature ** (2 * (np.arange(num_pos_feats) // 2) / num_pos_feats)
    pos_x = x_embed[:, :, None] / dim_t
    pos_y = y_embed[:, :, None] / dim_t
    pos_x = np.stack([np.sin(pos_x[:, :, 0::2]), np.cos(pos_x[:, :, 1::2])], axis=3).reshape(M, M, -1)
    pos_y = np.stack([np.sin(pos_y[:, :, 0::2]), np.cos(pos_y[:, :, 1::2])], axis=3).reshape(M, M, -1)
    pos = np.concatenate([pos_y, pos_x], axis=2).transpose(2, 0, 1)          # (d_model, M, M)
    return pos.astype(np.float32)


def make_vision_pos_tokens(M, hid, num_cam):
    pe = position_embedding_sine_np(M, hid)                        # (hid, M, M)
    tok = pe.transpose(1, 2, 0).reshape(M * M, hid)                # spatial-major tokens
    tok = np.repeat(tok[:, None, :], num_cam, axis=1).reshape(M * M * num_cam, hid)
    return jnp.asarray(tok, dtype=jnp.float32)


def make_pool_matrix(H, W, M):
    kh, kw = H // M, W // M
    mat = np.zeros((H * W, M * M), np.float32)
    for h in range(H):
        for w in range(W):
            m = (h // kh) * M + (w // kw)
            mat[h * W + w, m] = 1.0 / (kh * kw)
    return jnp.asarray(mat)


class KeyGen:
    def __init__(self, key):
        self.key = key

    def __call__(self):
        self.key, k = jax.random.split(self.key)
        return k


def _dense(key, shape, scale=0.02):
    return scale * jax.random.normal(key, shape, dtype=jnp.float32)


def init_enc_stack(kg, nl, D, Fd):
    return dict(
        wqkv=jnp.stack([jnp.concatenate([_dense(kg(), (D, D)) for _ in range(3)], axis=1)
                        for _ in range(nl)]),
        bqkv=jnp.zeros((nl, 1, 3 * D), jnp.float32),
        wo=jnp.stack([_dense(kg(), (D, D)) for _ in range(nl)]),
        bo=jnp.zeros((nl, 1, D), jnp.float32),
        n1g=jnp.ones((nl, 1, D), jnp.float32), n1b=jnp.zeros((nl, 1, D), jnp.float32),
        w1=jnp.stack([_dense(kg(), (D, Fd)) for _ in range(nl)]),
        b1=jnp.zeros((nl, 1, Fd), jnp.float32),
        w2=jnp.stack([_dense(kg(), (Fd, D)) for _ in range(nl)]),
        b2=jnp.zeros((nl, 1, D), jnp.float32),
        n2g=jnp.ones((nl, 1, D), jnp.float32), n2b=jnp.zeros((nl, 1, D), jnp.float32),
    )


def init_dec_stack(kg, nl, D, Fd):
    p = init_enc_stack(kg, nl, D, Fd)
    p.update(
        ca_wq=jnp.stack([_dense(kg(), (D, D)) for _ in range(nl)]),
        ca_bq=jnp.zeros((nl, 1, D), jnp.float32),
        ca_wkv=jnp.stack([jnp.concatenate([_dense(kg(), (D, D)) for _ in range(2)], axis=1)
                          for _ in range(nl)]),
        ca_bkv=jnp.zeros((nl, 1, 2 * D), jnp.float32),
        ca_wo=jnp.stack([_dense(kg(), (D, D)) for _ in range(nl)]),
        ca_bo=jnp.zeros((nl, 1, D), jnp.float32),
        n3g=jnp.ones((nl, 1, D), jnp.float32), n3b=jnp.zeros((nl, 1, D), jnp.float32),
    )
    return p


def init_params(key, cfg):
    kg = KeyGen(key)
    hid, Fd = cfg["hidden"], cfg["dimff"]
    M, num_cam = cfg["M"], cfg["num_cam"]
    C, Cb = cfg["C"], cfg["backbone_channels"]
    p = dict(
        # synthetic backbone (1x1 conv stand-in, channels-on-sublanes layout) + input proj
        backbone_w=_dense(kg(), (Cb, C)),
        backbone_b=jnp.zeros((Cb, 1), jnp.float32),
        input_proj_w=_dense(kg(), (hid, Cb)),
        input_proj_b=jnp.zeros((hid, 1), jnp.float32),
        pool_mat=make_pool_matrix(cfg["H"], cfg["W"], M),          # (H*W, M*M)
        vision_pos_tokens=make_vision_pos_tokens(M, hid, num_cam),
        # small linear projections (done in plain jnp)
        input_proj_robot_state_w=_dense(kg(), (cfg["robot_state_dim"], hid)),
        input_proj_robot_state_b=jnp.zeros((1, hid), jnp.float32),
        encoder_robot_state_proj_w=_dense(kg(), (cfg["robot_state_dim"], hid)),
        encoder_robot_state_proj_b=jnp.zeros((1, hid), jnp.float32),
        encoder_action_proj_w=_dense(kg(), (cfg["action_dim"], hid)),
        encoder_action_proj_b=jnp.zeros((1, hid), jnp.float32),
        latent_proj_w=_dense(kg(), (hid, 2 * cfg["latent_dim"])),
        latent_proj_b=jnp.zeros((1, 2 * cfg["latent_dim"]), jnp.float32),
        latent_out_proj_w=_dense(kg(), (cfg["latent_dim"], hid)),
        latent_out_proj_b=jnp.zeros((1, hid), jnp.float32),
        action_head_w=_dense(kg(), (hid, cfg["action_dim"])),
        action_head_b=jnp.zeros((1, cfg["action_dim"]), jnp.float32),
        # embeddings
        action_steps_pos_embed=_dense(kg(), (cfg["T"], hid)),
        robot_pos_embed=_dense(kg(), (1, hid)),
        trust_pos_embed=_dense(kg(), (1, hid)),
        cls_pos_embed=_dense(kg(), (1, hid)),
        latent_pos_embed=_dense(kg(), (1, hid)),
        decoder_trust_embeddings=_dense(kg(), (3, hid)),
        # sinusoid buffer for the CVAE encoder: (1, 2 + T, hid) batch-first
        encoder_pos_embed=get_sinusoid_encoding_table(2 + cfg["T"], hid),
        # CVAE encoder and main DETR-style transformer (weights stacked per layer)
        cvae_encoder=init_enc_stack(kg, cfg["enc_layers"], hid, Fd),
        transformer=dict(
            enc=init_enc_stack(kg, cfg["enc_layers"], hid, Fd),
            dec=init_dec_stack(kg, cfg["dec_layers"], hid, Fd),
            dec_norm_g=jnp.ones((1, hid), jnp.float32),
            dec_norm_b=jnp.zeros((1, hid), jnp.float32),
        ),
    )
    return p


# ----------------------------------------------------------------------------
# Main
# ----------------------------------------------------------------------------
if __name__ == "__main__":
    cfg = dict(
        bs=2, N=1, num_cam=1, C=3, H=16, W=16, M=4,
        hidden=32, nheads=4, dimff=64, enc_layers=2, dec_layers=2,
        robot_state_dim=8, action_dim=8, T=8, latent_dim=16,
        backbone_channels=8,
    )

    key = jax.random.PRNGKey(0)
    kparams, kdata, keps = jax.random.split(key, 3)
    params = init_params(kparams, cfg)

    k1, k2, k3, k4 = jax.random.split(kdata, 4)
    robot_state = jax.random.normal(k1, (cfg["bs"], cfg["N"], cfg["robot_state_dim"]), jnp.float32)
    image = jax.random.normal(k2, (cfg["bs"], cfg["N"], cfg["num_cam"], cfg["C"], cfg["H"], cfg["W"]),
                              jnp.float32)
    actions = jax.random.normal(k3, (cfg["bs"], cfg["T"], cfg["action_dim"]), jnp.float32)
    trust = jax.random.uniform(k4, (cfg["bs"], cfg["T"]), jnp.float32)

    fwd = jax.jit(lambda rs, im, ac, tr, k: cvae_forward(params, cfg, rs, im, ac, tr, k))
    pred_actions, mu, logvar = fwd(robot_state, image, actions, trust, keps)
    jax.block_until_ready((pred_actions, mu, logvar))

    assert pred_actions.shape == (cfg["bs"], cfg["T"], cfg["action_dim"])
    assert mu.shape == (cfg["bs"], cfg["latent_dim"])
    assert logvar.shape == (cfg["bs"], cfg["latent_dim"])
    assert bool(jnp.all(jnp.isfinite(pred_actions)))
    assert bool(jnp.all(jnp.isfinite(mu))) and bool(jnp.all(jnp.isfinite(logvar)))
    print("KERNEL_OK")
</pallas_src>

<mosaic_0001>
module attributes {stable_mosaic.version = 11 : i64} {
  func.func @_cvae_encoder_stack_kernel(%arg0: i32, %arg1: memref<2x10x32xf32, #tpu.memory_space<vmem>>, %arg2: memref<2x16xf32, #tpu.memory_space<vmem>>, %arg3: memref<1x32x96xf32, #tpu.memory_space<vmem>>, %arg4: memref<1x10x96xf32, #tpu.memory_space<vmem>>, %arg5: memref<1x32x32xf32, #tpu.memory_space<vmem>>, %arg6: memref<1x1x32xf32, #tpu.memory_space<vmem>>, %arg7: memref<1x1x32xf32, #tpu.memory_space<vmem>>, %arg8: memref<1x1x32xf32, #tpu.memory_space<vmem>>, %arg9: memref<1x32x64xf32, #tpu.memory_space<vmem>>, %arg10: memref<1x1x64xf32, #tpu.memory_space<vmem>>, %arg11: memref<1x64x32xf32, #tpu.memory_space<vmem>>, %arg12: memref<1x1x32xf32, #tpu.memory_space<vmem>>, %arg13: memref<1x1x32xf32, #tpu.memory_space<vmem>>, %arg14: memref<1x1x32xf32, #tpu.memory_space<vmem>>, %arg15: memref<32x32xf32, #tpu.memory_space<vmem>>, %arg16: memref<1x32xf32, #tpu.memory_space<vmem>>, %arg17: memref<16x32xf32, #tpu.memory_space<vmem>>, %arg18: memref<1x32xf32, #tpu.memory_space<vmem>>, %arg19: memref<2x32xf32, #tpu.memory_space<vmem>>, %arg20: memref<2x16xf32, #tpu.memory_space<vmem>>, %arg21: memref<2x16xf32, #tpu.memory_space<vmem>>, %arg22: memref<2x10x32xf32, #tpu.memory_space<vmem>>) attributes {dimension_semantics = [#tpu.dimension_semantics<arbitrary>], iteration_bounds = array<i64: 2>, scalar_prefetch = 0 : i64, scratch_operands = 1 : i64, tpu.core_type = #tpu.core_type<tc>, window_params = [{pipeline_mode = #tpu.pipeline_mode<synchronous>, transform_indices = @transform_0, window_bounds = array<i64: 2, 10, 32>}, {pipeline_mode = #tpu.pipeline_mode<synchronous>, transform_indices = @transform_1, window_bounds = array<i64: 2, 16>}, {transform_indices = @transform_2, window_bounds = array<i64: 1, 32, 96>}, {transform_indices = @transform_3, window_bounds = array<i64: 1, 10, 96>}, {transform_indices = @transform_4, window_bounds = array<i64: 1, 32, 32>}, {transform_indices = @transform_5, window_bounds = array<i64: 1, 1, 32>}, {transform_indices = @transform_6, window_bounds = array<i64: 1, 1, 32>}, {transform_indices = @transform_7, window_bounds = array<i64: 1, 1, 32>}, {transform_indices = @transform_8, window_bounds = array<i64: 1, 32, 64>}, {transform_indices = @transform_9, window_bounds = array<i64: 1, 1, 64>}, {transform_indices = @transform_10, window_bounds = array<i64: 1, 64, 32>}, {transform_indices = @transform_11, window_bounds = array<i64: 1, 1, 32>}, {transform_indices = @transform_12, window_bounds = array<i64: 1, 1, 32>}, {transform_indices = @transform_13, window_bounds = array<i64: 1, 1, 32>}, {pipeline_mode = #tpu.pipeline_mode<synchronous>, transform_indices = @transform_14, window_bounds = array<i64: 32, 32>}, {pipeline_mode = #tpu.pipeline_mode<synchronous>, transform_indices = @transform_15, window_bounds = array<i64: 1, 32>}, {pipeline_mode = #tpu.pipeline_mode<synchronous>, transform_indices = @transform_16, window_bounds = array<i64: 16, 32>}, {pipeline_mode = #tpu.pipeline_mode<synchronous>, transform_indices = @transform_17, window_bounds = array<i64: 1, 32>}, {pipeline_mode = #tpu.pipeline_mode<synchronous>, transform_indices = @transform_18, window_bounds = array<i64: 2, 32>}, {pipeline_mode = #tpu.pipeline_mode<synchronous>, transform_indices = @transform_19, window_bounds = array<i64: 2, 16>}, {pipeline_mode = #tpu.pipeline_mode<synchronous>, transform_indices = @transform_20, window_bounds = array<i64: 2, 16>}]} {
    %c0_i32 = arith.constant 0 : i32
    %0 = arith.cmpi eq, %arg0, %c0_i32 : i32
    %1 = arith.extui %0 : i1 to i32
    %c0_i32_0 = arith.constant 0 : i32
    %2 = arith.cmpi ne, %1, %c0_i32_0 : i32
    scf.if %2 {
      %c0_153 = arith.constant 0 : index
      %c0_154 = arith.constant 0 : index
      %c0_155 = arith.constant 0 : index
      %318 = vector.load %arg1[%c0_153, %c0_154, %c0_155] : memref<2x10x32xf32, #tpu.memory_space<vmem>>, vector<2x10x32xf32>
      %c0_156 = arith.constant 0 : index
      %c0_157 = arith.constant 0 : index
      %c0_158 = arith.constant 0 : index
      %319 = vector.load %arg22[%c0_156, %c0_157, %c0_158] : memref<2x10x32xf32, #tpu.memory_space<vmem>>, vector<2x10x32xf32>
      tpu.vector_store %arg22[%c0_156, %c0_157, %c0_158], %318 {strides = array<i32>} : memref<2x10x32xf32, #tpu.memory_space<vmem>>, vector<2x10x32xf32>,
    } else {
    }
    %c0 = arith.constant 0 : index
    %c0_1 = arith.constant 0 : index
    %c0_2 = arith.constant 0 : index
    %3 = vector.load %arg22[%c0, %c0_1, %c0_2] : memref<2x10x32xf32, #tpu.memory_space<vmem>>, vector<1x10x32xf32>
    %4 = vector.shape_cast %3 : vector<1x10x32xf32> to vector<10x32xf32>
    %c0_3 = arith.constant 0 : index
    %c0_4 = arith.constant 0 : index
    %c0_5 = arith.constant 0 : index
    %5 = vector.load %arg3[%c0_3, %c0_4, %c0_5] : memref<1x32x96xf32, #tpu.memory_space<vmem>>, vector<1x32x96xf32>
    %6 = vector.shape_cast %5 : vector<1x32x96xf32> to vector<32x96xf32>
    %c0_6 = arith.constant 0 : index
    %c0_7 = arith.constant 0 : index
    %c0_8 = arith.constant 0 : index
    %7 = vector.load %arg4[%c0_6, %c0_7, %c0_8] : memref<1x10x96xf32, #tpu.memory_space<vmem>>, vector<1x10x96xf32>
    %8 = vector.shape_cast %7 : vector<1x10x96xf32> to vector<10x96xf32>
    %c0_9 = arith.constant 0 : index
    %c0_10 = arith.constant 0 : index
    %c0_11 = arith.constant 0 : index
    %9 = vector.load %arg5[%c0_9, %c0_10, %c0_11] : memref<1x32x32xf32, #tpu.memory_space<vmem>>, vector<1x32x32xf32>
    %10 = vector.shape_cast %9 : vector<1x32x32xf32> to vector<32x32xf32>
    %c0_12 = arith.constant 0 : index
    %c0_13 = arith.constant 0 : index
    %c0_14 = arith.constant 0 : index
    %11 = vector.load %arg6[%c0_12, %c0_13, %c0_14] : memref<1x1x32xf32, #tpu.memory_space<vmem>>, vector<1x1x32xf32>
    %12 = vector.shape_cast %11 : vector<1x1x32xf32> to vector<1x32xf32>
    %c0_15 = arith.constant 0 : index
    %c0_16 = arith.constant 0 : index
    %c0_17 = arith.constant 0 : index
    %13 = vector.load %arg7[%c0_15, %c0_16, %c0_17] : memref<1x1x32xf32, #tpu.memory_space<vmem>>, vector<1x1x32xf32>
    %14 = vector.shape_cast %13 : vector<1x1x32xf32> to vector<1x32xf32>
    %c0_18 = arith.constant 0 : index
    %c0_19 = arith.constant 0 : index
    %c0_20 = arith.constant 0 : index
    %15 = vector.load %arg8[%c0_18, %c0_19, %c0_20] : memref<1x1x32xf32, #tpu.memory_space<vmem>>, vector<1x1x32xf32>
    %16 = vector.shape_cast %15 : vector<1x1x32xf32> to vector<1x32xf32>
    %c0_21 = arith.constant 0 : index
    %c0_22 = arith.constant 0 : index
    %c0_23 = arith.constant 0 : index
    %17 = vector.load %arg9[%c0_21, %c0_22, %c0_23] : memref<1x32x64xf32, #tpu.memory_space<vmem>>, vector<1x32x64xf32>
    %18 = vector.shape_cast %17 : vector<1x32x64xf32> to vector<32x64xf32>
    %c0_24 = arith.constant 0 : index
    %c0_25 = arith.constant 0 : index
    %c0_26 = arith.constant 0 : index
    %19 = vector.load %arg10[%c0_24, %c0_25, %c0_26] : memref<1x1x64xf32, #tpu.memory_space<vmem>>, vector<1x1x64xf32>
    %20 = vector.shape_cast %19 : vector<1x1x64xf32> to vector<1x64xf32>
    %c0_27 = arith.constant 0 : index
    %c0_28 = arith.constant 0 : index
    %c0_29 = arith.constant 0 : index
    %21 = vector.load %arg11[%c0_27, %c0_28, %c0_29] : memref<1x64x32xf32, #tpu.memory_space<vmem>>, vector<1x64x32xf32>
    %22 = vector.shape_cast %21 : vector<1x64x32xf32> to vector<64x32xf32>
    %c0_30 = arith.constant 0 : index
    %c0_31 = arith.constant 0 : index
    %c0_32 = arith.constant 0 : index
    %23 = vector.load %arg12[%c0_30, %c0_31, %c0_32] : memref<1x1x32xf32, #tpu.memory_space<vmem>>, vector<1x1x32xf32>
    %24 = vector.shape_cast %23 : vector<1x1x32xf32> to vector<1x32xf32>
    %c0_33 = arith.constant 0 : index
    %c0_34 = arith.constant 0 : index
    %c0_35 = arith.constant 0 : index
    %25 = vector.load %arg13[%c0_33, %c0_34, %c0_35] : memref<1x1x32xf32, #tpu.memory_space<vmem>>, vector<1x1x32xf32>
    %26 = vector.shape_cast %25 : vector<1x1x32xf32> to vector<1x32xf32>
    %c0_36 = arith.constant 0 : index
    %c0_37 = arith.constant 0 : index
    %c0_38 = arith.constant 0 : index
    %27 = vector.load %arg14[%c0_36, %c0_37, %c0_38] : memref<1x1x32xf32, #tpu.memory_space<vmem>>, vector<1x1x32xf32>
    %28 = vector.shape_cast %27 : vector<1x1x32xf32> to vector<1x32xf32>
    %cst = arith.constant dense<0.000000e+00> : vector<10x96xf32>
    %29 = tpu.matmul %4, %6, %cst {dimension_numbers = #tpu.dot_dimension_numbers<[1], [0], [0], [1], [0, 0, 1, 1], [], []>} : vector<10x32xf32>, vector<32x96xf32>, vector<10x96xf32> -> vector<10x96xf32>
    %30 = arith.addf %29, %8 : vector<10x96xf32>
    %31 = vector.extract_strided_slice %30 {offsets = [0, 0], sizes = [10, 32], strides = [1, 1]} : vector<10x96xf32> to vector<10x32xf32>
    %32 = vector.extract_strided_slice %30 {offsets = [0, 32], sizes = [10, 32], strides = [1, 1]} : vector<10x96xf32> to vector<10x32xf32>
    %33 = vector.extract_strided_slice %30 {offsets = [0, 64], sizes = [10, 32], strides = [1, 1]} : vector<10x96xf32> to vector<10x32xf32>
    %34 = vector.extract_strided_slice %31 {offsets = [0, 0], sizes = [10, 8], strides = [1, 1]} : vector<10x32xf32> to vector<10x8xf32>
    %35 = vector.extract_strided_slice %32 {offsets = [0, 0], sizes = [10, 8], strides = [1, 1]} : vector<10x32xf32> to vector<10x8xf32>
    %cst_39 = arith.constant dense<0.000000e+00> : vector<10x10xf32>
    %36 = tpu.matmul %34, %35, %cst_39 {dimension_numbers = #tpu.dot_dimension_numbers<[1], [1], [0], [0], [0, 0, 1, 0], [], []>} : vector<10x8xf32>, vector<10x8xf32>, vector<10x10xf32> -> vector<10x10xf32>
    %cst_40 = arith.constant 0.353553385 : f32
    %37 = vector.broadcast %cst_40 : f32 to vector<10x10xf32>
    %38 = arith.mulf %36, %37 : vector<10x10xf32>
    %cst_41 = arith.constant dense<0xFF800000> : vector<10xf32>
    %39 = vector.multi_reduction <maximumf>, %38, %cst_41 [1] : vector<10x10xf32> to vector<10xf32>
    %40 = vector.shape_cast %39 : vector<10xf32> to vector<10x1xf32>
    %41 = vector.broadcast %40 : vector<10x1xf32> to vector<10x10xf32>
    %42 = arith.subf %38, %41 : vector<10x10xf32>
    %43 = math.exp %42 : vector<10x10xf32>
    %cst_42 = arith.constant dense<0.000000e+00> : vector<10xf32>
    %44 = vector.multi_reduction <add>, %43, %cst_42 [1] : vector<10x10xf32> to vector<10xf32>
    %45 = vector.shape_cast %44 : vector<10xf32> to vector<10x1xf32>
    %46 = tpu.reciprocal %45 {approx = true} : vector<10x1xf32> -> vector<10x1xf32>
    %47 = vector.broadcast %46 : vector<10x1xf32> to vector<10x10xf32>
    %48 = arith.mulf %43, %47 : vector<10x10xf32>
    %49 = vector.extract_strided_slice %33 {offsets = [0, 0], sizes = [10, 8], strides = [1, 1]} : vector<10x32xf32> to vector<10x8xf32>
    %cst_43 = arith.constant dense<0.000000e+00> : vector<10x8xf32>
    %50 = tpu.matmul %48, %49, %cst_43 {dimension_numbers = #tpu.dot_dimension_numbers<[1], [0], [0], [1], [0, 0, 1, 1], [], []>} : vector<10x10xf32>, vector<10x8xf32>, vector<10x8xf32> -> vector<10x8xf32>
    %51 = vector.extract_strided_slice %31 {offsets = [0, 8], sizes = [10, 8], strides = [1, 1]} : vector<10x32xf32> to vector<10x8xf32>
    %52 = vector.extract_strided_slice %32 {offsets = [0, 8], sizes = [10, 8], strides = [1, 1]} : vector<10x32xf32> to vector<10x8xf32>
    %cst_44 = arith.constant dense<0.000000e+00> : vector<10x10xf32>
    %53 = tpu.matmul %51, %52, %cst_44 {dimension_numbers = #tpu.dot_dimension_numbers<[1], [1], [0], [0], [0, 0, 1, 0], [], []>} : vector<10x8xf32>, vector<10x8xf32>, vector<10x10xf32> -> vector<10x10xf32>
    %cst_45 = arith.constant 0.353553385 : f32
    %54 = vector.broadcast %cst_45 : f32 to vector<10x10xf32>
    %55 = arith.mulf %53, %54 : vector<10x10xf32>
    %cst_46 = arith.constant dense<0xFF800000> : vector<10xf32>
    %56 = vector.multi_reduction <maximumf>, %55, %cst_46 [1] : vector<10x10xf32> to vector<10xf32>
    %57 = vector.shape_cast %56 : vector<10xf32> to vector<10x1xf32>
    %58 = vector.broadcast %57 : vector<10x1xf32> to vector<10x10xf32>
    %59 = arith.subf %55, %58 : vector<10x10xf32>
    %60 = math.exp %59 : vector<10x10xf32>
    %cst_47 = arith.constant dense<0.000000e+00> : vector<10xf32>
    %61 = vector.multi_reduction <add>, %60, %cst_47 [1] : vector<10x10xf32> to vector<10xf32>
    %62 = vector.shape_cast %61 : vector<10xf32> to vector<10x1xf32>
    %63 = tpu.reciprocal %62 {approx = true} : vector<10x1xf32> -> vector<10x1xf32>
    %64 = vector.broadcast %63 : vector<10x1xf32> to vector<10x10xf32>
    %65 = arith.mulf %60, %64 : vector<10x10xf32>
    %66 = vector.extract_strided_slice %33 {offsets = [0, 8], sizes = [10, 8], strides = [1, 1]} : vector<10x32xf32> to vector<10x8xf32>
    %cst_48 = arith.constant dense<0.000000e+00> : vector<10x8xf32>
    %67 = tpu.matmul %65, %66, %cst_48 {dimension_numbers = #tpu.dot_dimension_numbers<[1], [0], [0], [1], [0, 0, 1, 1], [], []>} : vector<10x10xf32>, vector<10x8xf32>, vector<10x8xf32> -> vector<10x8xf32>
    %68 = vector.extract_strided_slice %31 {offsets = [0, 16], sizes = [10, 8], strides = [1, 1]} : vector<10x32xf32> to vector<10x8xf32>
    %69 = vector.extract_strided_slice %32 {offsets = [0, 16], sizes = [10, 8], strides = [1, 1]} : vector<10x32xf32> to vector<10x8xf32>
    %cst_49 = arith.constant dense<0.000000e+00> : vector<10x10xf32>
    %70 = tpu.matmul %68, %69, %cst_49 {dimension_numbers = #tpu.dot_dimension_numbers<[1], [1], [0], [0], [0, 0, 1, 0], [], []>} : vector<10x8xf32>, vector<10x8xf32>, vector<10x10xf32> -> vector<10x10xf32>
    %cst_50 = arith.constant 0.353553385 : f32
    %71 = vector.broadcast %cst_50 : f32 to vector<10x10xf32>
    %72 = arith.mulf %70, %71 : vector<10x10xf32>
    %cst_51 = arith.constant dense<0xFF800000> : vector<10xf32>
    %73 = vector.multi_reduction <maximumf>, %72, %cst_51 [1] : vector<10x10xf32> to vector<10xf32>
    %74 = vector.shape_cast %73 : vector<10xf32> to vector<10x1xf32>
    %75 = vector.broadcast %74 : vector<10x1xf32> to vector<10x10xf32>
    %76 = arith.subf %72, %75 : vector<10x10xf32>
    %77 = math.exp %76 : vector<10x10xf32>
    %cst_52 = arith.constant dense<0.000000e+00> : vector<10xf32>
    %78 = vector.multi_reduction <add>, %77, %cst_52 [1] : vector<10x10xf32> to vector<10xf32>
    %79 = vector.shape_cast %78 : vector<10xf32> to vector<10x1xf32>
    %80 = tpu.reciprocal %79 {approx = true} : vector<10x1xf32> -> vector<10x1xf32>
    %81 = vector.broadcast %80 : vector<10x1xf32> to vector<10x10xf32>
    %82 = arith.mulf %77, %81 : vector<10x10xf32>
    %83 = vector.extract_strided_slice %33 {offsets = [0, 16], sizes = [10, 8], strides = [1, 1]} : vector<10x32xf32> to vector<10x8xf32>
    %cst_53 = arith.constant dense<0.000000e+00> : vector<10x8xf32>
    %84 = tpu.matmul %82, %83, %cst_53 {dimension_numbers = #tpu.dot_dimension_numbers<[1], [0], [0], [1], [0, 0, 1, 1], [], []>} : vector<10x10xf32>, vector<10x8xf32>, vector<10x8xf32> -> vector<10x8xf32>
    %85 = vector.extract_strided_slice %31 {offsets = [0, 24], sizes = [10, 8], strides = [1, 1]} : vector<10x32xf32> to vector<10x8xf32>
    %86 = vector.extract_strided_slice %32 {offsets = [0, 24], sizes = [10, 8], strides = [1, 1]} : vector<10x32xf32> to vector<10x8xf32>
    %cst_54 = arith.constant dense<0.000000e+00> : vector<10x10xf32>
    %87 = tpu.matmul %85, %86, %cst_54 {dimension_numbers = #tpu.dot_dimension_numbers<[1], [1], [0], [0], [0, 0, 1, 0], [], []>} : vector<10x8xf32>, vector<10x8xf32>, vector<10x10xf32> -> vector<10x10xf32>
    %cst_55 = arith.constant 0.353553385 : f32
    %88 = vector.broadcast %cst_55 : f32 to vector<10x10xf32>
    %89 = arith.mulf %87, %88 : vector<10x10xf32>
    %cst_56 = arith.constant dense<0xFF800000> : vector<10xf32>
    %90 = vector.multi_reduction <maximumf>, %89, %cst_56 [1] : vector<10x10xf32> to vector<10xf32>
    %91 = vector.shape_cast %90 : vector<10xf32> to vector<10x1xf32>
    %92 = vector.broadcast %91 : vector<10x1xf32> to vector<10x10xf32>
    %93 = arith.subf %89, %92 : vector<10x10xf32>
    %94 = math.exp %93 : vector<10x10xf32>
    %cst_57 = arith.constant dense<0.000000e+00> : vector<10xf32>
    %95 = vector.multi_reduction <add>, %94, %cst_57 [1] : vector<10x10xf32> to vector<10xf32>
    %96 = vector.shape_cast %95 : vector<10xf32> to vector<10x1xf32>
    %97 = tpu.reciprocal %96 {approx = true} : vector<10x1xf32> -> vector<10x1xf32>
    %98 = vector.broadcast %97 : vector<10x1xf32> to vector<10x10xf32>
    %99 = arith.mulf %94, %98 : vector<10x10xf32>
    %100 = vector.extract_strided_slice %33 {offsets = [0, 24], sizes = [10, 8], strides = [1, 1]} : vector<10x32xf32> to vector<10x8xf32>
    %cst_58 = arith.constant dense<0.000000e+00> : vector<10x8xf32>
    %101 = tpu.matmul %99, %100, %cst_58 {dimension_numbers = #tpu.dot_dimension_numbers<[1], [0], [0], [1], [0, 0, 1, 1], [], []>} : vector<10x10xf32>, vector<10x8xf32>, vector<10x8xf32> -> vector<10x8xf32>
    %102 = tpu.concatenate %50, %67, %84, %101 in 1 : vector<10x8xf32>, vector<10x8xf32>, vector<10x8xf32>, vector<10x8xf32> -> vector<10x32xf32>
    %cst_59 = arith.constant dense<0.000000e+00> : vector<10x32xf32>
    %103 = tpu.matmul %102, %10, %cst_59 {dimension_numbers = #tpu.dot_dimension_numbers<[1], [0], [0], [1], [0, 0, 1, 1], [], []>} : vector<10x32xf32>, vector<32x32xf32>, vector<10x32xf32> -> vector<10x32xf32>
    %104 = vector.broadcast %12 : vector<1x32xf32> to vector<10x32xf32>
    %105 = arith.addf %103, %104 : vector<10x32xf32>
    %106 = arith.addf %4, %105 : vector<10x32xf32>
    %cst_60 = arith.constant dense<0.000000e+00> : vector<10xf32>
    %107 = vector.multi_reduction <add>, %106, %cst_60 [1] : vector<10x32xf32> to vector<10xf32>
    %108 = vector.shape_cast %107 : vector<10xf32> to vector<10x1xf32>
    %cst_61 = arith.constant 3.200000e+01 : f32
    %109 = vector.broadcast %cst_61 : f32 to vector<10x1xf32>
    %110 = arith.divf %108, %109 : vector<10x1xf32>
    %111 = vector.broadcast %110 : vector<10x1xf32> to vector<10x32xf32>
    %112 = arith.subf %106, %111 : vector<10x32xf32>
    %113 = arith.mulf %112, %112 : vector<10x32xf32>
    %cst_62 = arith.constant dense<0.000000e+00> : vector<10xf32>
    %114 = vector.multi_reduction <add>, %113, %cst_62 [1] : vector<10x32xf32> to vector<10xf32>
    %115 = vector.shape_cast %114 : vector<10xf32> to vector<10x1xf32>
    %cst_63 = arith.constant 3.200000e+01 : f32
    %116 = vector.broadcast %cst_63 : f32 to vector<10x1xf32>
    %117 = arith.divf %115, %116 : vector<10x1xf32>
    %cst_64 = arith.constant 9.99999974E-6 : f32
    %118 = vector.broadcast %cst_64 : f32 to vector<10x1xf32>
    %119 = arith.addf %117, %118 : vector<10x1xf32>
    %120 = math.rsqrt %119 : vector<10x1xf32>
    %121 = vector.broadcast %120 : vector<10x1xf32> to vector<10x32xf32>
    %122 = arith.mulf %112, %121 : vector<10x32xf32>
    %123 = vector.broadcast %14 : vector<1x32xf32> to vector<10x32xf32>
    %124 = arith.mulf %122, %123 : vector<10x32xf32>
    %125 = vector.broadcast %16 : vector<1x32xf32> to vector<10x32xf32>
    %126 = arith.addf %124, %125 : vector<10x32xf32>
    %cst_65 = arith.constant dense<0.000000e+00> : vector<10x64xf32>
    %127 = tpu.matmul %126, %18, %cst_65 {dimension_numbers = #tpu.dot_dimension_numbers<[1], [0], [0], [1], [0, 0, 1, 1], [], []>} : vector<10x32xf32>, vector<32x64xf32>, vector<10x64xf32> -> vector<10x64xf32>
    %128 = vector.broadcast %20 : vector<1x64xf32> to vector<10x64xf32>
    %129 = arith.addf %127, %128 : vector<10x64xf32>
    %cst_66 = arith.constant 0.000000e+00 : f32
    %130 = vector.broadcast %cst_66 : f32 to vector<10x64xf32>
    %131 = arith.maximumf %129, %130 : vector<10x64xf32>
    %cst_67 = arith.constant dense<0.000000e+00> : vector<10x32xf32>
    %132 = tpu.matmul %131, %22, %cst_67 {dimension_numbers = #tpu.dot_dimension_numbers<[1], [0], [0], [1], [0, 0, 1, 1], [], []>} : vector<10x64xf32>, vector<64x32xf32>, vector<10x32xf32> -> vector<10x32xf32>
    %133 = vector.broadcast %24 : vector<1x32xf32> to vector<10x32xf32>
    %134 = arith.addf %132, %133 : vector<10x32xf32>
    %135 = arith.addf %126, %134 : vector<10x32xf32>
    %cst_68 = arith.constant dense<0.000000e+00> : vector<10xf32>
    %136 = vector.multi_reduction <add>, %135, %cst_68 [1] : vector<10x32xf32> to vector<10xf32>
    %137 = vector.shape_cast %136 : vector<10xf32> to vector<10x1xf32>
    %cst_69 = arith.constant 3.200000e+01 : f32
    %138 = vector.broadcast %cst_69 : f32 to vector<10x1xf32>
    %139 = arith.divf %137, %138 : vector<10x1xf32>
    %140 = vector.broadcast %139 : vector<10x1xf32> to vector<10x32xf32>
    %141 = arith.subf %135, %140 : vector<10x32xf32>
    %142 = arith.mulf %141, %141 : vector<10x32xf32>
    %cst_70 = arith.constant dense<0.000000e+00> : vector<10xf32>
    %143 = vector.multi_reduction <add>, %142, %cst_70 [1] : vector<10x32xf32> to vector<10xf32>
    %144 = vector.shape_cast %143 : vector<10xf32> to vector<10x1xf32>
    %cst_71 = arith.constant 3.200000e+01 : f32
    %145 = vector.broadcast %cst_71 : f32 to vector<10x1xf32>
    %146 = arith.divf %144, %145 : vector<10x1xf32>
    %cst_72 = arith.constant 9.99999974E-6 : f32
    %147 = vector.broadcast %cst_72 : f32 to vector<10x1xf32>
    %148 = arith.addf %146, %147 : vector<10x1xf32>
    %149 = math.rsqrt %148 : vector<10x1xf32>
    %150 = vector.broadcast %149 : vector<10x1xf32> to vector<10x32xf32>
    %151 = arith.mulf %141, %150 : vector<10x32xf32>
    %152 = vector.broadcast %26 : vector<1x32xf32> to vector<10x32xf32>
    %153 = arith.mulf %151, %152 : vector<10x32xf32>
    %154 = vector.broadcast %28 : vector<1x32xf32> to vector<10x32xf32>
    %155 = arith.addf %153, %154 : vector<10x32xf32>
    %c0_73 = arith.constant 0 : index
    %c0_74 = arith.constant 0 : index
    %c0_75 = arith.constant 0 : index
    %156 = vector.load %arg22[%c0_73, %c0_74, %c0_75] : memref<2x10x32xf32, #tpu.memory_space<vmem>>, vector<1x10x32xf32>
    %157 = vector.shape_cast %156 : vector<1x10x32xf32> to vector<10x32xf32>
    %158 = vector.shape_cast %155 : vector<10x32xf32> to vector<1x10x32xf32>
    tpu.vector_store %arg22[%c0_73, %c0_74, %c0_75], %158 {strides = array<i32>} : memref<2x10x32xf32, #tpu.memory_space<vmem>>, vector<1x10x32xf32>,
    %c1 = arith.constant 1 : index
    %c0_76 = arith.constant 0 : index
    %c0_77 = arith.constant 0 : index
    %159 = vector.load %arg22[%c1, %c0_76, %c0_77] : memref<2x10x32xf32, #tpu.memory_space<vmem>>, vector<1x10x32xf32>
    %160 = vector.shape_cast %159 : vector<1x10x32xf32> to vector<10x32xf32>
    %c0_78 = arith.constant 0 : index
    %c0_79 = arith.constant 0 : index
    %c0_80 = arith.constant 0 : index
    %161 = vector.load %arg3[%c0_78, %c0_79, %c0_80] : memref<1x32x96xf32, #tpu.memory_space<vmem>>, vector<1x32x96xf32>
    %162 = vector.shape_cast %161 : vector<1x32x96xf32> to vector<32x96xf32>
    %c0_81 = arith.constant 0 : index
    %c0_82 = arith.constant 0 : index
    %c0_83 = arith.constant 0 : index
    %163 = vector.load %arg4[%c0_81, %c0_82, %c0_83] : memref<1x10x96xf32, #tpu.memory_space<vmem>>, vector<1x10x96xf32>
    %164 = vector.shape_cast %163 : vector<1x10x96xf32> to vector<10x96xf32>
    %c0_84 = arith.constant 0 : index
    %c0_85 = arith.constant 0 : index
    %c0_86 = arith.constant 0 : index
    %165 = vector.load %arg5[%c0_84, %c0_85, %c0_86] : memref<1x32x32xf32, #tpu.memory_space<vmem>>, vector<1x32x32xf32>
    %166 = vector.shape_cast %165 : vector<1x32x32xf32> to vector<32x32xf32>
    %c0_87 = arith.constant 0 : index
    %c0_88 = arith.constant 0 : index
    %c0_89 = arith.constant 0 : index
    %167 = vector.load %arg6[%c0_87, %c0_88, %c0_89] : memref<1x1x32xf32, #tpu.memory_space<vmem>>, vector<1x1x32xf32>
    %168 = vector.shape_cast %167 : vector<1x1x32xf32> to vector<1x32xf32>
    %c0_90 = arith.constant 0 : index
    %c0_91 = arith.constant 0 : index
    %c0_92 = arith.constant 0 : index
    %169 = vector.load %arg7[%c0_90, %c0_91, %c0_92] : memref<1x1x32xf32, #tpu.memory_space<vmem>>, vector<1x1x32xf32>
    %170 = vector.shape_cast %169 : vector<1x1x32xf32> to vector<1x32xf32>
    %c0_93 = arith.constant 0 : index
    %c0_94 = arith.constant 0 : index
    %c0_95 = arith.constant 0 : index
    %171 = vector.load %arg8[%c0_93, %c0_94, %c0_95] : memref<1x1x32xf32, #tpu.memory_space<vmem>>, vector<1x1x32xf32>
    %172 = vector.shape_cast %171 : vector<1x1x32xf32> to vector<1x32xf32>
    %c0_96 = arith.constant 0 : index
    %c0_97 = arith.constant 0 : index
    %c0_98 = arith.constant 0 : index
    %173 = vector.load %arg9[%c0_96, %c0_97, %c0_98] : memref<1x32x64xf32, #tpu.memory_space<vmem>>, vector<1x32x64xf32>
    %174 = vector.shape_cast %173 : vector<1x32x64xf32> to vector<32x64xf32>
    %c0_99 = arith.constant 0 : index
    %c0_100 = arith.constant 0 : index
    %c0_101 = arith.constant 0 : index
    %175 = vector.load %arg10[%c0_99, %c0_100, %c0_101] : memref<1x1x64xf32, #tpu.memory_space<vmem>>, vector<1x1x64xf32>
    %176 = vector.shape_cast %175 : vector<1x1x64xf32> to vector<1x64xf32>
    %c0_102 = arith.constant 0 : index
    %c0_103 = arith.constant 0 : index
    %c0_104 = arith.constant 0 : index
    %177 = vector.load %arg11[%c0_102, %c0_103, %c0_104] : memref<1x64x32xf32, #tpu.memory_space<vmem>>, vector<1x64x32xf32>
    %178 = vector.shape_cast %177 : vector<1x64x32xf32> to vector<64x32xf32>
    %c0_105 = arith.constant 0 : index
    %c0_106 = arith.constant 0 : index
    %c0_107 = arith.constant 0 : index
    %179 = vector.load %arg12[%c0_105, %c0_106, %c0_107] : memref<1x1x32xf32, #tpu.memory_space<vmem>>, vector<1x1x32xf32>
    %180 = vector.shape_cast %179 : vector<1x1x32xf32> to vector<1x32xf32>
    %c0_108 = arith.constant 0 : index
    %c0_109 = arith.constant 0 : index
    %c0_110 = arith.constant 0 : index
    %181 = vector.load %arg13[%c0_108, %c0_109, %c0_110] : memref<1x1x32xf32, #tpu.memory_space<vmem>>, vector<1x1x32xf32>
    %182 = vector.shape_cast %181 : vector<1x1x32xf32> to vector<1x32xf32>
    %c0_111 = arith.constant 0 : index
    %c0_112 = arith.constant 0 : index
    %c0_113 = arith.constant 0 : index
    %183 = vector.load %arg14[%c0_111, %c0_112, %c0_113] : memref<1x1x32xf32, #tpu.memory_space<vmem>>, vector<1x1x32xf32>
    %184 = vector.shape_cast %183 : vector<1x1x32xf32> to vector<1x32xf32>
    %cst_114 = arith.constant dense<0.000000e+00> : vector<10x96xf32>
    %185 = tpu.matmul %160, %162, %cst_114 {dimension_numbers = #tpu.dot_dimension_numbers<[1], [0], [0], [1], [0, 0, 1, 1], [], []>} : vector<10x32xf32>, vector<32x96xf32>, vector<10x96xf32> -> vector<10x96xf32>
    %186 = arith.addf %185, %164 : vector<10x96xf32>
    %187 = vector.extract_strided_slice %186 {offsets = [0, 0], sizes = [10, 32], strides = [1, 1]} : vector<10x96xf32> to vector<10x32xf32>
    %188 = vector.extract_strided_slice %186 {offsets = [0, 32], sizes = [10, 32], strides = [1, 1]} : vector<10x96xf32> to vector<10x32xf32>
    %189 = vector.extract_strided_slice %186 {offsets = [0, 64], sizes = [10, 32], strides = [1, 1]} : vector<10x96xf32> to vector<10x32xf32>
    %190 = vector.extract_strided_slice %187 {offsets = [0, 0], sizes = [10, 8], strides = [1, 1]} : vector<10x32xf32> to vector<10x8xf32>
    %191 = vector.extract_strided_slice %188 {offsets = [0, 0], sizes = [10, 8], strides = [1, 1]} : vector<10x32xf32> to vector<10x8xf32>
    %cst_115 = arith.constant dense<0.000000e+00> : vector<10x10xf32>
    %192 = tpu.matmul %190, %191, %cst_115 {dimension_numbers = #tpu.dot_dimension_numbers<[1], [1], [0], [0], [0, 0, 1, 0], [], []>} : vector<10x8xf32>, vector<10x8xf32>, vector<10x10xf32> -> vector<10x10xf32>
    %cst_116 = arith.constant 0.353553385 : f32
    %193 = vector.broadcast %cst_116 : f32 to vector<10x10xf32>
    %194 = arith.mulf %192, %193 : vector<10x10xf32>
    %cst_117 = arith.constant dense<0xFF800000> : vector<10xf32>
    %195 = vector.multi_reduction <maximumf>, %194, %cst_117 [1] : vector<10x10xf32> to vector<10xf32>
    %196 = vector.shape_cast %195 : vector<10xf32> to vector<10x1xf32>
    %197 = vector.broadcast %196 : vector<10x1xf32> to vector<10x10xf32>
    %198 = arith.subf %194, %197 : vector<10x10xf32>
    %199 = math.exp %198 : vector<10x10xf32>
    %cst_118 = arith.constant dense<0.000000e+00> : vector<10xf32>
    %200 = vector.multi_reduction <add>, %199, %cst_118 [1] : vector<10x10xf32> to vector<10xf32>
    %201 = vector.shape_cast %200 : vector<10xf32> to vector<10x1xf32>
    %202 = tpu.reciprocal %201 {approx = true} : vector<10x1xf32> -> vector<10x1xf32>
    %203 = vector.broadcast %202 : vector<10x1xf32> to vector<10x10xf32>
    %204 = arith.mulf %199, %203 : vector<10x10xf32>
    %205 = vector.extract_strided_slice %189 {offsets = [0, 0], sizes = [10, 8], strides = [1, 1]} : vector<10x32xf32> to vector<10x8xf32>
    %cst_119 = arith.constant dense<0.000000e+00> : vector<10x8xf32>
    %206 = tpu.matmul %204, %205, %cst_119 {dimension_numbers = #tpu.dot_dimension_numbers<[1], [0], [0], [1], [0, 0, 1, 1], [], []>} : vector<10x10xf32>, vector<10x8xf32>, vector<10x8xf32> -> vector<10x8xf32>
    %207 = vector.extract_strided_slice %187 {offsets = [0, 8], sizes = [10, 8], strides = [1, 1]} : vector<10x32xf32> to vector<10x8xf32>
    %208 = vector.extract_strided_slice %188 {offsets = [0, 8], sizes = [10, 8], strides = [1, 1]} : vector<10x32xf32> to vector<10x8xf32>
    %cst_120 = arith.constant dense<0.000000e+00> : vector<10x10xf32>
    %209 = tpu.matmul %207, %208, %cst_120 {dimension_numbers = #tpu.dot_dimension_numbers<[1], [1], [0], [0], [0, 0, 1, 0], [], []>} : vector<10x8xf32>, vector<10x8xf32>, vector<10x10xf32> -> vector<10x10xf32>
    %cst_121 = arith.constant 0.353553385 : f32
    %210 = vector.broadcast %cst_121 : f32 to vector<10x10xf32>
    %211 = arith.mulf %209, %210 : vector<10x10xf32>
    %cst_122 = arith.constant dense<0xFF800000> : vector<10xf32>
    %212 = vector.multi_reduction <maximumf>, %211, %cst_122 [1] : vector<10x10xf32> to vector<10xf32>
    %213 = vector.shape_cast %212 : vector<10xf32> to vector<10x1xf32>
    %214 = vector.broadcast %213 : vector<10x1xf32> to vector<10x10xf32>
    %215 = arith.subf %211, %214 : vector<10x10xf32>
    %216 = math.exp %215 : vector<10x10xf32>
    %cst_123 = arith.constant dense<0.000000e+00> : vector<10xf32>
    %217 = vector.multi_reduction <add>, %216, %cst_123 [1] : vector<10x10xf32> to vector<10xf32>
    %218 = vector.shape_cast %217 : vector<10xf32> to vector<10x1xf32>
    %219 = tpu.reciprocal %218 {approx = true} : vector<10x1xf32> -> vector<10x1xf32>
    %220 = vector.broadcast %219 : vector<10x1xf32> to vector<10x10xf32>
    %221 = arith.mulf %216, %220 : vector<10x10xf32>
    %222 = vector.extract_strided_slice %189 {offsets = [0, 8], sizes = [10, 8], strides = [1, 1]} : vector<10x32xf32> to vector<10x8xf32>
    %cst_124 = arith.constant dense<0.000000e+00> : vector<10x8xf32>
    %223 = tpu.matmul %221, %222, %cst_124 {dimension_numbers = #tpu.dot_dimension_numbers<[1], [0], [0], [1], [0, 0, 1, 1], [], []>} : vector<10x10xf32>, vector<10x8xf32>, vector<10x8xf32> -> vector<10x8xf32>
    %224 = vector.extract_strided_slice %187 {offsets = [0, 16], sizes = [10, 8], strides = [1, 1]} : vector<10x32xf32> to vector<10x8xf32>
    %225 = vector.extract_strided_slice %188 {offsets = [0, 16], sizes = [10, 8], strides = [1, 1]} : vector<10x32xf32> to vector<10x8xf32>
    %cst_125 = arith.constant dense<0.000000e+00> : vector<10x10xf32>
    %226 = tpu.matmul %224, %225, %cst_125 {dimension_numbers = #tpu.dot_dimension_numbers<[1], [1], [0], [0], [0, 0, 1, 0], [], []>} : vector<10x8xf32>, vector<10x8xf32>, vector<10x10xf32> -> vector<10x10xf32>
    %cst_126 = arith.constant 0.353553385 : f32
    %227 = vector.broadcast %cst_126 : f32 to vector<10x10xf32>
    %228 = arith.mulf %226, %227 : vector<10x10xf32>
    %cst_127 = arith.constant dense<0xFF800000> : vector<10xf32>
    %229 = vector.multi_reduction <maximumf>, %228, %cst_127 [1] : vector<10x10xf32> to vector<10xf32>
    %230 = vector.shape_cast %229 : vector<10xf32> to vector<10x1xf32>
    %231 = vector.broadcast %230 : vector<10x1xf32> to vector<10x10xf32>
    %232 = arith.subf %228, %231 : vector<10x10xf32>
    %233 = math.exp %232 : vector<10x10xf32>
    %cst_128 = arith.constant dense<0.000000e+00> : vector<10xf32>
    %234 = vector.multi_reduction <add>, %233, %cst_128 [1] : vector<10x10xf32> to vector<10xf32>
    %235 = vector.shape_cast %234 : vector<10xf32> to vector<10x1xf32>
    %236 = tpu.reciprocal %235 {approx = true} : vector<10x1xf32> -> vector<10x1xf32>
    %237 = vector.broadcast %236 : vector<10x1xf32> to vector<10x10xf32>
    %238 = arith.mulf %233, %237 : vector<10x10xf32>
    %239 = vector.extract_strided_slice %189 {offsets = [0, 16], sizes = [10, 8], strides = [1, 1]} : vector<10x32xf32> to vector<10x8xf32>
    %cst_129 = arith.constant dense<0.000000e+00> : vector<10x8xf32>
    %240 = tpu.matmul %238, %239, %cst_129 {dimension_numbers = #tpu.dot_dimension_numbers<[1], [0], [0], [1], [0, 0, 1, 1], [], []>} : vector<10x10xf32>, vector<10x8xf32>, vector<10x8xf32> -> vector<10x8xf32>
    %241 = vector.extract_strided_slice %187 {offsets = [0, 24], sizes = [10, 8], strides = [1, 1]} : vector<10x32xf32> to vector<10x8xf32>
    %242 = vector.extract_strided_slice %188 {offsets = [0, 24], sizes = [10, 8], strides = [1, 1]} : vector<10x32xf32> to vector<10x8xf32>
    %cst_130 = arith.constant dense<0.000000e+00> : vector<10x10xf32>
    %243 = tpu.matmul %241, %242, %cst_130 {dimension_numbers = #tpu.dot_dimension_numbers<[1], [1], [0], [0], [0, 0, 1, 0], [], []>} : vector<10x8xf32>, vector<10x8xf32>, vector<10x10xf32> -> vector<10x10xf32>
    %cst_131 = arith.constant 0.353553385 : f32
    %244 = vector.broadcast %cst_131 : f32 to vector<10x10xf32>
    %245 = arith.mulf %243, %244 : vector<10x10xf32>
    %cst_132 = arith.constant dense<0xFF800000> : vector<10xf32>
    %246 = vector.multi_reduction <maximumf>, %245, %cst_132 [1] : vector<10x10xf32> to vector<10xf32>
    %247 = vector.shape_cast %246 : vector<10xf32> to vector<10x1xf32>
    %248 = vector.broadcast %247 : vector<10x1xf32> to vector<10x10xf32>
    %249 = arith.subf %245, %248 : vector<10x10xf32>
    %250 = math.exp %249 : vector<10x10xf32>
    %cst_133 = arith.constant dense<0.000000e+00> : vector<10xf32>
    %251 = vector.multi_reduction <add>, %250, %cst_133 [1] : vector<10x10xf32> to vector<10xf32>
    %252 = vector.shape_cast %251 : vector<10xf32> to vector<10x1xf32>
    %253 = tpu.reciprocal %252 {approx = true} : vector<10x1xf32> -> vector<10x1xf32>
    %254 = vector.broadcast %253 : vector<10x1xf32> to vector<10x10xf32>
    %255 = arith.mulf %250, %254 : vector<10x10xf32>
    %256 = vector.extract_strided_slice %189 {offsets = [0, 24], sizes = [10, 8], strides = [1, 1]} : vector<10x32xf32> to vector<10x8xf32>
    %cst_134 = arith.constant dense<0.000000e+00> : vector<10x8xf32>
    %257 = tpu.matmul %255, %256, %cst_134 {dimension_numbers = #tpu.dot_dimension_numbers<[1], [0], [0], [1], [0, 0, 1, 1], [], []>} : vector<10x10xf32>, vector<10x8xf32>, vector<10x8xf32> -> vector<10x8xf32>
    %258 = tpu.concatenate %206, %223, %240, %257 in 1 : vector<10x8xf32>, vector<10x8xf32>, vector<10x8xf32>, vector<10x8xf32> -> vector<10x32xf32>
    %cst_135 = arith.constant dense<0.000000e+00> : vector<10x32xf32>
    %259 = tpu.matmul %258, %166, %cst_135 {dimension_numbers = #tpu.dot_dimension_numbers<[1], [0], [0], [1], [0, 0, 1, 1], [], []>} : vector<10x32xf32>, vector<32x32xf32>, vector<10x32xf32> -> vector<10x32xf32>
    %260 = vector.broadcast %168 : vector<1x32xf32> to vector<10x32xf32>
    %261 = arith.addf %259, %260 : vector<10x32xf32>
    %262 = arith.addf %160, %261 : vector<10x32xf32>
    %cst_136 = arith.constant dense<0.000000e+00> : vector<10xf32>
    %263 = vector.multi_reduction <add>, %262, %cst_136 [1] : vector<10x32xf32> to vector<10xf32>
    %264 = vector.shape_cast %263 : vector<10xf32> to vector<10x1xf32>
    %cst_137 = arith.constant 3.200000e+01 : f32
    %265 = vector.broadcast %cst_137 : f32 to vector<10x1xf32>
    %266 = arith.divf %264, %265 : vector<10x1xf32>
    %267 = vector.broadcast %266 : vector<10x1xf32> to vector<10x32xf32>
    %268 = arith.subf %262, %267 : vector<10x32xf32>
    %269 = arith.mulf %268, %268 : vector<10x32xf32>
    %cst_138 = arith.constant dense<0.000000e+00> : vector<10xf32>
    %270 = vector.multi_reduction <add>, %269, %cst_138 [1] : vector<10x32xf32> to vector<10xf32>
    %271 = vector.shape_cast %270 : vector<10xf32> to vector<10x1xf32>
    %cst_139 = arith.constant 3.200000e+01 : f32
    %272 = vector.broadcast %cst_139 : f32 to vector<10x1xf32>
    %273 = arith.divf %271, %272 : vector<10x1xf32>
    %cst_140 = arith.constant 9.99999974E-6 : f32
    %274 = vector.broadcast %cst_140 : f32 to vector<10x1xf32>
    %275 = arith.addf %273, %274 : vector<10x1xf32>
    %276 = math.rsqrt %275 : vector<10x1xf32>
    %277 = vector.broadcast %276 : vector<10x1xf32> to vector<10x32xf32>
    %278 = arith.mulf %268, %277 : vector<10x32xf32>
    %279 = vector.broadcast %170 : vector<1x32xf32> to vector<10x32xf32>
    %280 = arith.mulf %278, %279 : vector<10x32xf32>
    %281 = vector.broadcast %172 : vector<1x32xf32> to vector<10x32xf32>
    %282 = arith.addf %280, %281 : vector<10x32xf32>
    %cst_141 = arith.constant dense<0.000000e+00> : vector<10x64xf32>
    %283 = tpu.matmul %282, %174, %cst_141 {dimension_numbers = #tpu.dot_dimension_numbers<[1], [0], [0], [1], [0, 0, 1, 1], [], []>} : vector<10x32xf32>, vector<32x64xf32>, vector<10x64xf32> -> vector<10x64xf32>
    %284 = vector.broadcast %176 : vector<1x64xf32> to vector<10x64xf32>
    %285 = arith.addf %283, %284 : vector<10x64xf32>
    %cst_142 = arith.constant 0.000000e+00 : f32
    %286 = vector.broadcast %cst_142 : f32 to vector<10x64xf32>
    %287 = arith.maximumf %285, %286 : vector<10x64xf32>
    %cst_143 = arith.constant dense<0.000000e+00> : vector<10x32xf32>
    %288 = tpu.matmul %287, %178, %cst_143 {dimension_numbers = #tpu.dot_dimension_numbers<[1], [0], [0], [1], [0, 0, 1, 1], [], []>} : vector<10x64xf32>, vector<64x32xf32>, vector<10x32xf32> -> vector<10x32xf32>
    %289 = vector.broadcast %180 : vector<1x32xf32> to vector<10x32xf32>
    %290 = arith.addf %288, %289 : vector<10x32xf32>
    %291 = arith.addf %282, %290 : vector<10x32xf32>
    %cst_144 = arith.constant dense<0.000000e+00> : vector<10xf32>
    %292 = vector.multi_reduction <add>, %291, %cst_144 [1] : vector<10x32xf32> to vector<10xf32>
    %293 = vector.shape_cast %292 : vector<10xf32> to vector<10x1xf32>
    %cst_145 = arith.constant 3.200000e+01 : f32
    %294 = vector.broadcast %cst_145 : f32 to vector<10x1xf32>
    %295 = arith.divf %293, %294 : vector<10x1xf32>
    %296 = vector.broadcast %295 : vector<10x1xf32> to vector<10x32xf32>
    %297 = arith.subf %291, %296 : vector<10x32xf32>
    %298 = arith.mulf %297, %297 : vector<10x32xf32>
    %cst_146 = arith.constant dense<0.000000e+00> : vector<10xf32>
    %299 = vector.multi_reduction <add>, %298, %cst_146 [1] : vector<10x32xf32> to vector<10xf32>
    %300 = vector.shape_cast %299 : vector<10xf32> to vector<10x1xf32>
    %cst_147 = arith.constant 3.200000e+01 : f32
    %301 = vector.broadcast %cst_147 : f32 to vector<10x1xf32>
    %302 = arith.divf %300, %301 : vector<10x1xf32>
    %cst_148 = arith.constant 9.99999974E-6 : f32
    %303 = vector.broadcast %cst_148 : f32 to vector<10x1xf32>
    %304 = arith.addf %302, %303 : vector<10x1xf32>
    %305 = math.rsqrt %304 : vector<10x1xf32>
    %306 = vector.broadcast %305 : vector<10x1xf32> to vector<10x32xf32>
    %307 = arith.mulf %297, %306 : vector<10x32xf32>
    %308 = vector.broadcast %182 : vector<1x32xf32> to vector<10x32xf32>
    %309 = arith.mulf %307, %308 : vector<10x32xf32>
    %310 = vector.broadcast %184 : vector<1x32xf32> to vector<10x32xf32>
    %311 = arith.addf %309, %310 : vector<10x32xf32>
    %c1_149 = arith.constant 1 : index
    %c0_150 = arith.constant 0 : index
    %c0_151 = arith.constant 0 : index
    %312 = vector.load %arg22[%c1_149, %c0_150, %c0_151] : memref<2x10x32xf32, #tpu.memory_space<vmem>>, vector<1x10x32xf32>
    %313 = vector.shape_cast %312 : vector<1x10x32xf32> to vector<10x32xf32>
    %314 = vector.shape_cast %311 : vector<10x32xf32> to vector<1x10x32xf32>
    tpu.vector_store %arg22[%c1_149, %c0_150, %c0_151], %314 {strides = array<i32>} : memref<2x10x32xf32, #tpu.memory_space<vmem>>, vector<1x10x32xf32>,
    %c1_i32 = arith.constant 1 : i32
    %315 = arith.cmpi eq, %arg0, %c1_i32 : i32
    %316 = arith.extui %315 : i1 to i32
    %c0_i32_152 = arith.constant 0 : i32
    %317 = arith.cmpi ne, %316, %c0_i32_152 : i32
    scf.if %317 {
      %c0_153 = arith.constant 0 : index
      %c0_154 = arith.constant 0 : index
      %c0_155 = arith.constant 0 : index
      %318 = vector.load %arg22[%c0_153, %c0_154, %c0_155] : memref<2x10x32xf32, #tpu.memory_space<vmem>>, vector<1x10x32xf32>
      %319 = vector.shape_cast %318 : vector<1x10x32xf32> to vector<10x32xf32>
      %320 = vector.extract_strided_slice %319 {offsets = [0, 0], sizes = [1, 32], strides = [1, 1]} : vector<10x32xf32> to vector<1x32xf32>
      %c1_156 = arith.constant 1 : index
      %c0_157 = arith.constant 0 : index
      %c0_158 = arith.constant 0 : index
      %321 = vector.load %arg22[%c1_156, %c0_157, %c0_158] : memref<2x10x32xf32, #tpu.memory_space<vmem>>, vector<1x10x32xf32>
      %322 = vector.shape_cast %321 : vector<1x10x32xf32> to vector<10x32xf32>
      %323 = vector.extract_strided_slice %322 {offsets = [0, 0], sizes = [1, 32], strides = [1, 1]} : vector<10x32xf32> to vector<1x32xf32>
      %324 = tpu.concatenate %320, %323 in 0 : vector<1x32xf32>, vector<1x32xf32> -> vector<2x32xf32>
      %c0_159 = arith.constant 0 : index
      %c0_160 = arith.constant 0 : index
      %325 = vector.load %arg15[%c0_159, %c0_160] : memref<32x32xf32, #tpu.memory_space<vmem>>, vector<32x32xf32>
      %cst_161 = arith.constant dense<0.000000e+00> : vector<2x32xf32>
      %326 = tpu.matmul %324, %325, %cst_161 {dimension_numbers = #tpu.dot_dimension_numbers<[1], [0], [0], [1], [0, 0, 1, 1], [], []>} : vector<2x32xf32>, vector<32x32xf32>, vector<2x32xf32> -> vector<2x32xf32>
      %c0_162 = arith.constant 0 : index
      %c0_163 = arith.constant 0 : index
      %327 = vector.load %arg16[%c0_162, %c0_163] : memref<1x32xf32, #tpu.memory_space<vmem>>, vector<1x32xf32>
      %328 = vector.broadcast %327 : vector<1x32xf32> to vector<2x32xf32>
      %329 = arith.addf %326, %328 : vector<2x32xf32>
      %330 = vector.extract_strided_slice %329 {offsets = [0, 0], sizes = [2, 16], strides = [1, 1]} : vector<2x32xf32> to vector<2x16xf32>
      %331 = vector.extract_strided_slice %329 {offsets = [0, 16], sizes = [2, 16], strides = [1, 1]} : vector<2x32xf32> to vector<2x16xf32>
      %cst_164 = arith.constant 5.000000e-01 : f32
      %332 = vector.broadcast %cst_164 : f32 to vector<2x16xf32>
      %333 = arith.mulf %332, %331 : vector<2x16xf32>
      %334 = math.exp %333 : vector<2x16xf32>
      %c0_165 = arith.constant 0 : index
      %c0_166 = arith.constant 0 : index
      %335 = vector.load %arg2[%c0_165, %c0_166] : memref<2x16xf32, #tpu.memory_space<vmem>>, vector<2x16xf32>
      %336 = arith.mulf %334, %335 : vector<2x16xf32>
      %337 = arith.addf %330, %336 : vector<2x16xf32>
      %c0_167 = arith.constant 0 : index
      %c0_168 = arith.constant 0 : index
      %338 = vector.load %arg17[%c0_167, %c0_168] : memref<16x32xf32, #tpu.memory_space<vmem>>, vector<16x32xf32>
      %cst_169 = arith.constant dense<0.000000e+00> : vector<2x32xf32>
      %339 = tpu.matmul %337, %338, %cst_169 {dimension_numbers = #tpu.dot_dimension_numbers<[1], [0], [0], [1], [0, 0, 1, 1], [], []>} : vector<2x16xf32>, vector<16x32xf32>, vector<2x32xf32> -> vector<2x32xf32>
      %c0_170 = arith.constant 0 : index
      %c0_171 = arith.constant 0 : index
      %340 = vector.load %arg18[%c0_170, %c0_171] : memref<1x32xf32, #tpu.memory_space<vmem>>, vector<1x32xf32>
      %341 = vector.broadcast %340 : vector<1x32xf32> to vector<2x32xf32>
      %342 = arith.addf %339, %341 : vector<2x32xf32>
      %c0_172 = arith.constant 0 : index
      %c0_173 = arith.constant 0 : index
      %343 = vector.load %arg19[%c0_172, %c0_173] : memref<2x32xf32, #tpu.memory_space<vmem>>, vector<2x32xf32>
      tpu.vector_store %arg19[%c0_172, %c0_173], %342 {strides = array<i32>} : memref<2x32xf32, #tpu.memory_space<vmem>>, vector<2x32xf32>,
      %c0_174 = arith.constant 0 : index
      %c0_175 = arith.constant 0 : index
      %344 = vector.load %arg20[%c0_174, %c0_175] : memref<2x16xf32, #tpu.memory_space<vmem>>, vector<2x16xf32>
      tpu.vector_store %arg20[%c0_174, %c0_175], %330 {strides = array<i32>} : memref<2x16xf32, #tpu.memory_space<vmem>>, vector<2x16xf32>,
      %c0_176 = arith.constant 0 : index
      %c0_177 = arith.constant 0 : index
      %345 = vector.load %arg21[%c0_176, %c0_177] : memref<2x16xf32, #tpu.memory_space<vmem>>, vector<2x16xf32>
      tpu.vector_store %arg21[%c0_176, %c0_177], %331 {strides = array<i32>} : memref<2x16xf32, #tpu.memory_space<vmem>>, vector<2x16xf32>,
    } else {
    }
    return
  }
  func.func @transform_0(%arg0: i32) -> (i32, i32, i32) {
    %c0_i32 = arith.constant 0 : i32
    %c0_i32_0 = arith.constant 0 : i32
    %c0_i32_1 = arith.constant 0 : i32
    %c0_i32_2 = arith.constant 0 : i32
    return %c0_i32, %c0_i32_0, %c0_i32_1 : i32, i32, i32
  }
  func.func @transform_1(%arg0: i32) -> (i32, i32) {
    %c0_i32 = arith.constant 0 : i32
    %c0_i32_0 = arith.constant 0 : i32
    %c0_i32_1 = arith.constant 0 : i32
    return %c0_i32, %c0_i32_0 : i32, i32
  }
  func.func @transform_2(%arg0: i32) -> (i32, i32, i32) {
    %c0_i32 = arith.constant 0 : i32
    %c0_i32_0 = arith.constant 0 : i32
    %c0_i32_1 = arith.constant 0 : i32
    return %arg0, %c0_i32, %c0_i32_0 : i32, i32, i32
  }
  func.func @transform_3(%arg0: i32) -> (i32, i32, i32) {
    %c0_i32 = arith.constant 0 : i32
    %c0_i32_0 = arith.constant 0 : i32
    %c0_i32_1 = arith.constant 0 : i32
    return %arg0, %c0_i32, %c0_i32_0 : i32, i32, i32
  }
  func.func @transform_4(%arg0: i32) -> (i32, i32, i32) {
    %c0_i32 = arith.constant 0 : i32
    %c0_i32_0 = arith.constant 0 : i32
    %c0_i32_1 = arith.constant 0 : i32
    return %arg0, %c0_i32, %c0_i32_0 : i32, i32, i32
  }
  func.func @transform_5(%arg0: i32) -> (i32, i32, i32) {
    %c0_i32 = arith.constant 0 : i32
    %c0_i32_0 = arith.constant 0 : i32
    %c0_i32_1 = arith.constant 0 : i32
    return %arg0, %c0_i32, %c0_i32_0 : i32, i32, i32
  }
  func.func @transform_6(%arg0: i32) -> (i32, i32, i32) {
    %c0_i32 = arith.constant 0 : i32
    %c0_i32_0 = arith.constant 0 : i32
    %c0_i32_1 = arith.constant 0 : i32
    return %arg0, %c0_i32, %c0_i32_0 : i32, i32, i32
  }
  func.func @transform_7(%arg0: i32) -> (i32, i32, i32) {
    %c0_i32 = arith.constant 0 : i32
    %c0_i32_0 = arith.constant 0 : i32
    %c0_i32_1 = arith.constant 0 : i32
    return %arg0, %c0_i32, %c0_i32_0 : i32, i32, i32
  }
  func.func @transform_8(%arg0: i32) -> (i32, i32, i32) {
    %c0_i32 = arith.constant 0 : i32
    %c0_i32_0 = arith.constant 0 : i32
    %c0_i32_1 = arith.constant 0 : i32
    return %arg0, %c0_i32, %c0_i32_0 : i32, i32, i32
  }
  func.func @transform_9(%arg0: i32) -> (i32, i32, i32) {
    %c0_i32 = arith.constant 0 : i32
    %c0_i32_0 = arith.constant 0 : i32
    %c0_i32_1 = arith.constant 0 : i32
    return %arg0, %c0_i32, %c0_i32_0 : i32, i32, i32
  }
  func.func @transform_10(%arg0: i32) -> (i32, i32, i32) {
    %c0_i32 = arith.constant 0 : i32
    %c0_i32_0 = arith.constant 0 : i32
    %c0_i32_1 = arith.constant 0 : i32
    return %arg0, %c0_i32, %c0_i32_0 : i32, i32, i32
  }
  func.func @transform_11(%arg0: i32) -> (i32, i32, i32) {
    %c0_i32 = arith.constant 0 : i32
    %c0_i32_0 = arith.constant 0 : i32
    %c0_i32_1 = arith.constant 0 : i32
    return %arg0, %c0_i32, %c0_i32_0 : i32, i32, i32
  }
  func.func @transform_12(%arg0: i32) -> (i32, i32, i32) {
    %c0_i32 = arith.constant 0 : i32
    %c0_i32_0 = arith.constant 0 : i32
    %c0_i32_1 = arith.constant 0 : i32
    return %arg0, %c0_i32, %c0_i32_0 : i32, i32, i32
  }
  func.func @transform_13(%arg0: i32) -> (i32, i32, i32) {
    %c0_i32 = arith.constant 0 : i32
    %c0_i32_0 = arith.constant 0 : i32
    %c0_i32_1 = arith.constant 0 : i32
    return %arg0, %c0_i32, %c0_i32_0 : i32, i32, i32
  }
  func.func @transform_14(%arg0: i32) -> (i32, i32) {
    %c0_i32 = arith.constant 0 : i32
    %c0_i32_0 = arith.constant 0 : i32
    %c0_i32_1 = arith.constant 0 : i32
    return %c0_i32, %c0_i32_0 : i32, i32
  }
  func.func @transform_15(%arg0: i32) -> (i32, i32) {
    %c0_i32 = arith.constant 0 : i32
    %c0_i32_0 = arith.constant 0 : i32
    %c0_i32_1 = arith.constant 0 : i32
    return %c0_i32, %c0_i32_0 : i32, i32
  }
  func.func @transform_16(%arg0: i32) -> (i32, i32) {
    %c0_i32 = arith.constant 0 : i32
    %c0_i32_0 = arith.constant 0 : i32
    %c0_i32_1 = arith.constant 0 : i32
    return %c0_i32, %c0_i32_0 : i32, i32
  }
  func.func @transform_17(%arg0: i32) -> (i32, i32) {
    %c0_i32 = arith.constant 0 : i32
    %c0_i32_0 = arith.constant 0 : i32
    %c0_i32_1 = arith.constant 0 : i32
    return %c0_i32, %c0_i32_0 : i32, i32
  }
  func.func @transform_18(%arg0: i32) -> (i32, i32) {
    %c0_i32 = arith.constant 0 : i32
    %c0_i32_0 = arith.constant 0 : i32
    %c0_i32_1 = arith.constant 0 : i32
    return %c0_i32, %c0_i32_0 : i32, i32
  }
  func.func @transform_19(%arg0: i32) -> (i32, i32) {
    %c0_i32 = arith.constant 0 : i32
    %c0_i32_0 = arith.constant 0 : i32
    %c0_i32_1 = arith.constant 0 : i32
    return %c0_i32, %c0_i32_0 : i32, i32
  }
  func.func @transform_20(%arg0: i32) -> (i32, i32) {
    %c0_i32 = arith.constant 0 : i32
    %c0_i32_0 = arith.constant 0 : i32
    %c0_i32_1 = arith.constant 0 : i32
    return %c0_i32, %c0_i32_0 : i32, i32
  }
}

module attributes {stable_mosaic.version = 11 : i64} {
  func.func @_backbone_kernel(%arg0: memref<2x3x256xf32, #tpu.memory_space<vmem>>, %arg1: memref<256x16xf32, #tpu.memory_space<vmem>>, %arg2: memref<8x3xf32, #tpu.memory_space<vmem>>, %arg3: memref<8x1xf32, #tpu.memory_space<vmem>>, %arg4: memref<32x8xf32, #tpu.memory_space<vmem>>, %arg5: memref<32x1xf32, #tpu.memory_space<vmem>>, %arg6: memref<2x32x16xf32, #tpu.memory_space<vmem>>) attributes {dimension_semantics = [], scalar_prefetch = 0 : i64, scratch_operands = 0 : i64, tpu.core_type = #tpu.core_type<tc>} {
    %c0 = arith.constant 0 : index
    %c0_0 = arith.constant 0 : index
    %c0_1 = arith.constant 0 : index
    %0 = vector.load %arg0[%c0, %c0_0, %c0_1] : memref<2x3x256xf32, #tpu.memory_space<vmem>>, vector<1x3x256xf32>
    %1 = vector.shape_cast %0 : vector<1x3x256xf32> to vector<3x256xf32>
    %c0_2 = arith.constant 0 : index
    %c0_3 = arith.constant 0 : index
    %2 = vector.load %arg2[%c0_2, %c0_3] : memref<8x3xf32, #tpu.memory_space<vmem>>, vector<8x3xf32>
    %cst = arith.constant dense<0.000000e+00> : vector<8x256xf32>
    %3 = tpu.matmul %2, %1, %cst {dimension_numbers = #tpu.dot_dimension_numbers<[1], [0], [0], [1], [0, 0, 1, 1], [], []>} : vector<8x3xf32>, vector<3x256xf32>, vector<8x256xf32> -> vector<8x256xf32>
    %c0_4 = arith.constant 0 : index
    %c0_5 = arith.constant 0 : index
    %4 = vector.load %arg3[%c0_4, %c0_5] : memref<8x1xf32, #tpu.memory_space<vmem>>, vector<8x1xf32>
    %5 = vector.broadcast %4 : vector<8x1xf32> to vector<8x256xf32>
    %6 = arith.addf %3, %5 : vector<8x256xf32>
    %cst_6 = arith.constant 0.000000e+00 : f32
    %7 = vector.broadcast %cst_6 : f32 to vector<8x256xf32>
    %8 = arith.maximumf %6, %7 : vector<8x256xf32>
    %c0_7 = arith.constant 0 : index
    %c0_8 = arith.constant 0 : index
    %9 = vector.load %arg1[%c0_7, %c0_8] : memref<256x16xf32, #tpu.memory_space<vmem>>, vector<256x16xf32>
    %cst_9 = arith.constant dense<0.000000e+00> : vector<8x16xf32>
    %10 = tpu.matmul %8, %9, %cst_9 {dimension_numbers = #tpu.dot_dimension_numbers<[1], [0], [0], [1], [0, 0, 1, 1], [], []>} : vector<8x256xf32>, vector<256x16xf32>, vector<8x16xf32> -> vector<8x16xf32>
    %c0_10 = arith.constant 0 : index
    %c0_11 = arith.constant 0 : index
    %11 = vector.load %arg4[%c0_10, %c0_11] : memref<32x8xf32, #tpu.memory_space<vmem>>, vector<32x8xf32>
    %cst_12 = arith.constant dense<0.000000e+00> : vector<32x16xf32>
    %12 = tpu.matmul %11, %10, %cst_12 {dimension_numbers = #tpu.dot_dimension_numbers<[1], [0], [0], [1], [0, 0, 1, 1], [], []>} : vector<32x8xf32>, vector<8x16xf32>, vector<32x16xf32> -> vector<32x16xf32>
    %c0_13 = arith.constant 0 : index
    %c0_14 = arith.constant 0 : index
    %13 = vector.load %arg5[%c0_13, %c0_14] : memref<32x1xf32, #tpu.memory_space<vmem>>, vector<32x1xf32>
    %14 = vector.broadcast %13 : vector<32x1xf32> to vector<32x16xf32>
    %15 = arith.addf %12, %14 : vector<32x16xf32>
    %c0_15 = arith.constant 0 : index
    %c0_16 = arith.constant 0 : index
    %c0_17 = arith.constant 0 : index
    %16 = vector.load %arg6[%c0_15, %c0_16, %c0_17] : memref<2x32x16xf32, #tpu.memory_space<vmem>>, vector<1x32x16xf32>
    %17 = vector.shape_cast %16 : vector<1x32x16xf32> to vector<32x16xf32>
    %18 = vector.shape_cast %15 : vector<32x16xf32> to vector<1x32x16xf32>
    tpu.vector_store %arg6[%c0_15, %c0_16, %c0_17], %18 {strides = array<i32>} : memref<2x32x16xf32, #tpu.memory_space<vmem>>, vector<1x32x16xf32>,
    %c1 = arith.constant 1 : index
    %c0_18 = arith.constant 0 : index
    %c0_19 = arith.constant 0 : index
    %19 = vector.load %arg0[%c1, %c0_18, %c0_19] : memref<2x3x256xf32, #tpu.memory_space<vmem>>, vector<1x3x256xf32>
    %20 = vector.shape_cast %19 : vector<1x3x256xf32> to vector<3x256xf32>
    %c0_20 = arith.constant 0 : index
    %c0_21 = arith.constant 0 : index
    %21 = vector.load %arg2[%c0_20, %c0_21] : memref<8x3xf32, #tpu.memory_space<vmem>>, vector<8x3xf32>
    %cst_22 = arith.constant dense<0.000000e+00> : vector<8x256xf32>
    %22 = tpu.matmul %21, %20, %cst_22 {dimension_numbers = #tpu.dot_dimension_numbers<[1], [0], [0], [1], [0, 0, 1, 1], [], []>} : vector<8x3xf32>, vector<3x256xf32>, vector<8x256xf32> -> vector<8x256xf32>
    %c0_23 = arith.constant 0 : index
    %c0_24 = arith.constant 0 : index
    %23 = vector.load %arg3[%c0_23, %c0_24] : memref<8x1xf32, #tpu.memory_space<vmem>>, vector<8x1xf32>
    %24 = vector.broadcast %23 : vector<8x1xf32> to vector<8x256xf32>
    %25 = arith.addf %22, %24 : vector<8x256xf32>
    %cst_25 = arith.constant 0.000000e+00 : f32
    %26 = vector.broadcast %cst_25 : f32 to vector<8x256xf32>
    %27 = arith.maximumf %25, %26 : vector<8x256xf32>
    %c0_26 = arith.constant 0 : index
    %c0_27 = arith.constant 0 : index
    %28 = vector.load %arg1[%c0_26, %c0_27] : memref<256x16xf32, #tpu.memory_space<vmem>>, vector<256x16xf32>
    %cst_28 = arith.constant dense<0.000000e+00> : vector<8x16xf32>
    %29 = tpu.matmul %27, %28, %cst_28 {dimension_numbers = #tpu.dot_dimension_numbers<[1], [0], [0], [1], [0, 0, 1, 1], [], []>} : vector<8x256xf32>, vector<256x16xf32>, vector<8x16xf32> -> vector<8x16xf32>
    %c0_29 = arith.constant 0 : index
    %c0_30 = arith.constant 0 : index
    %30 = vector.load %arg4[%c0_29, %c0_30] : memref<32x8xf32, #tpu.memory_space<vmem>>, vector<32x8xf32>
    %cst_31 = arith.constant dense<0.000000e+00> : vector<32x16xf32>
    %31 = tpu.matmul %30, %29, %cst_31 {dimension_numbers = #tpu.dot_dimension_numbers<[1], [0], [0], [1], [0, 0, 1, 1], [], []>} : vector<32x8xf32>, vector<8x16xf32>, vector<32x16xf32> -> vector<32x16xf32>
    %c0_32 = arith.constant 0 : index
    %c0_33 = arith.constant 0 : index
    %32 = vector.load %arg5[%c0_32, %c0_33] : memref<32x1xf32, #tpu.memory_space<vmem>>, vector<32x1xf32>
    %33 = vector.broadcast %32 : vector<32x1xf32> to vector<32x16xf32>
    %34 = arith.addf %31, %33 : vector<32x16xf32>
    %c1_34 = arith.constant 1 : index
    %c0_35 = arith.constant 0 : index
    %c0_36 = arith.constant 0 : index
    %35 = vector.load %arg6[%c1_34, %c0_35, %c0_36] : memref<2x32x16xf32, #tpu.memory_space<vmem>>, vector<1x32x16xf32>
    %36 = vector.shape_cast %35 : vector<1x32x16xf32> to vector<32x16xf32>
    %37 = vector.shape_cast %34 : vector<32x16xf32> to vector<1x32x16xf32>
    tpu.vector_store %arg6[%c1_34, %c0_35, %c0_36], %37 {strides = array<i32>} : memref<2x32x16xf32, #tpu.memory_space<vmem>>, vector<1x32x16xf32>,
    return
  }
}

module attributes {stable_mosaic.version = 11 : i64} {
  func.func @_encoder_stack_kernel(%arg0: i32, %arg1: memref<2x19x32xf32, #tpu.memory_space<vmem>>, %arg2: memref<1x32x96xf32, #tpu.memory_space<vmem>>, %arg3: memref<1x19x96xf32, #tpu.memory_space<vmem>>, %arg4: memref<1x32x32xf32, #tpu.memory_space<vmem>>, %arg5: memref<1x1x32xf32, #tpu.memory_space<vmem>>, %arg6: memref<1x1x32xf32, #tpu.memory_space<vmem>>, %arg7: memref<1x1x32xf32, #tpu.memory_space<vmem>>, %arg8: memref<1x32x64xf32, #tpu.memory_space<vmem>>, %arg9: memref<1x1x64xf32, #tpu.memory_space<vmem>>, %arg10: memref<1x64x32xf32, #tpu.memory_space<vmem>>, %arg11: memref<1x1x32xf32, #tpu.memory_space<vmem>>, %arg12: memref<1x1x32xf32, #tpu.memory_space<vmem>>, %arg13: memref<1x1x32xf32, #tpu.memory_space<vmem>>, %arg14: memref<2x19x32xf32, #tpu.memory_space<vmem>>) attributes {dimension_semantics = [#tpu.dimension_semantics<arbitrary>], iteration_bounds = array<i64: 2>, scalar_prefetch = 0 : i64, scratch_operands = 0 : i64, tpu.core_type = #tpu.core_type<tc>, window_params = [{pipeline_mode = #tpu.pipeline_mode<synchronous>, transform_indices = @transform_0, window_bounds = array<i64: 2, 19, 32>}, {transform_indices = @transform_1, window_bounds = array<i64: 1, 32, 96>}, {transform_indices = @transform_2, window_bounds = array<i64: 1, 19, 96>}, {transform_indices = @transform_3, window_bounds = array<i64: 1, 32, 32>}, {transform_indices = @transform_4, window_bounds = array<i64: 1, 1, 32>}, {transform_indices = @transform_5, window_bounds = array<i64: 1, 1, 32>}, {transform_indices = @transform_6, window_bounds = array<i64: 1, 1, 32>}, {transform_indices = @transform_7, window_bounds = array<i64: 1, 32, 64>}, {transform_indices = @transform_8, window_bounds = array<i64: 1, 1, 64>}, {transform_indices = @transform_9, window_bounds = array<i64: 1, 64, 32>}, {transform_indices = @transform_10, window_bounds = array<i64: 1, 1, 32>}, {transform_indices = @transform_11, window_bounds = array<i64: 1, 1, 32>}, {transform_indices = @transform_12, window_bounds = array<i64: 1, 1, 32>}, {pipeline_mode = #tpu.pipeline_mode<synchronous>, transform_indices = @transform_13, window_bounds = array<i64: 2, 19, 32>}]} {
    %c0_i32 = arith.constant 0 : i32
    %0 = arith.cmpi eq, %arg0, %c0_i32 : i32
    %1 = arith.extui %0 : i1 to i32
    %c0_i32_0 = arith.constant 0 : i32
    %2 = arith.cmpi ne, %1, %c0_i32_0 : i32
    scf.if %2 {
      %c0_152 = arith.constant 0 : index
      %c0_153 = arith.constant 0 : index
      %c0_154 = arith.constant 0 : index
      %315 = vector.load %arg1[%c0_152, %c0_153, %c0_154] : memref<2x19x32xf32, #tpu.memory_space<vmem>>, vector<2x19x32xf32>
      %c0_155 = arith.constant 0 : index
      %c0_156 = arith.constant 0 : index
      %c0_157 = arith.constant 0 : index
      %316 = vector.load %arg14[%c0_155, %c0_156, %c0_157] : memref<2x19x32xf32, #tpu.memory_space<vmem>>, vector<2x19x32xf32>
      tpu.vector_store %arg14[%c0_155, %c0_156, %c0_157], %315 {strides = array<i32>} : memref<2x19x32xf32, #tpu.memory_space<vmem>>, vector<2x19x32xf32>,
    } else {
    }
    %c0 = arith.constant 0 : index
    %c0_1 = arith.constant 0 : index
    %c0_2 = arith.constant 0 : index
    %3 = vector.load %arg14[%c0, %c0_1, %c0_2] : memref<2x19x32xf32, #tpu.memory_space<vmem>>, vector<1x19x32xf32>
    %4 = vector.shape_cast %3 : vector<1x19x32xf32> to vector<19x32xf32>
    %c0_3 = arith.constant 0 : index
    %c0_4 = arith.constant 0 : index
    %c0_5 = arith.constant 0 : index
    %5 = vector.load %arg2[%c0_3, %c0_4, %c0_5] : memref<1x32x96xf32, #tpu.memory_space<vmem>>, vector<1x32x96xf32>
    %6 = vector.shape_cast %5 : vector<1x32x96xf32> to vector<32x96xf32>
    %c0_6 = arith.constant 0 : index
    %c0_7 = arith.constant 0 : index
    %c0_8 = arith.constant 0 : index
    %7 = vector.load %arg3[%c0_6, %c0_7, %c0_8] : memref<1x19x96xf32, #tpu.memory_space<vmem>>, vector<1x19x96xf32>
    %8 = vector.shape_cast %7 : vector<1x19x96xf32> to vector<19x96xf32>
    %c0_9 = arith.constant 0 : index
    %c0_10 = arith.constant 0 : index
    %c0_11 = arith.constant 0 : index
    %9 = vector.load %arg4[%c0_9, %c0_10, %c0_11] : memref<1x32x32xf32, #tpu.memory_space<vmem>>, vector<1x32x32xf32>
    %10 = vector.shape_cast %9 : vector<1x32x32xf32> to vector<32x32xf32>
    %c0_12 = arith.constant 0 : index
    %c0_13 = arith.constant 0 : index
    %c0_14 = arith.constant 0 : index
    %11 = vector.load %arg5[%c0_12, %c0_13, %c0_14] : memref<1x1x32xf32, #tpu.memory_space<vmem>>, vector<1x1x32xf32>
    %12 = vector.shape_cast %11 : vector<1x1x32xf32> to vector<1x32xf32>
    %c0_15 = arith.constant 0 : index
    %c0_16 = arith.constant 0 : index
    %c0_17 = arith.constant 0 : index
    %13 = vector.load %arg6[%c0_15, %c0_16, %c0_17] : memref<1x1x32xf32, #tpu.memory_space<vmem>>, vector<1x1x32xf32>
    %14 = vector.shape_cast %13 : vector<1x1x32xf32> to vector<1x32xf32>
    %c0_18 = arith.constant 0 : index
    %c0_19 = arith.constant 0 : index
    %c0_20 = arith.constant 0 : index
    %15 = vector.load %arg7[%c0_18, %c0_19, %c0_20] : memref<1x1x32xf32, #tpu.memory_space<vmem>>, vector<1x1x32xf32>
    %16 = vector.shape_cast %15 : vector<1x1x32xf32> to vector<1x32xf32>
    %c0_21 = arith.constant 0 : index
    %c0_22 = arith.constant 0 : index
    %c0_23 = arith.constant 0 : index
    %17 = vector.load %arg8[%c0_21, %c0_22, %c0_23] : memref<1x32x64xf32, #tpu.memory_space<vmem>>, vector<1x32x64xf32>
    %18 = vector.shape_cast %17 : vector<1x32x64xf32> to vector<32x64xf32>
    %c0_24 = arith.constant 0 : index
    %c0_25 = arith.constant 0 : index
    %c0_26 = arith.constant 0 : index
    %19 = vector.load %arg9[%c0_24, %c0_25, %c0_26] : memref<1x1x64xf32, #tpu.memory_space<vmem>>, vector<1x1x64xf32>
    %20 = vector.shape_cast %19 : vector<1x1x64xf32> to vector<1x64xf32>
    %c0_27 = arith.constant 0 : index
    %c0_28 = arith.constant 0 : index
    %c0_29 = arith.constant 0 : index
    %21 = vector.load %arg10[%c0_27, %c0_28, %c0_29] : memref<1x64x32xf32, #tpu.memory_space<vmem>>, vector<1x64x32xf32>
    %22 = vector.shape_cast %21 : vector<1x64x32xf32> to vector<64x32xf32>
    %c0_30 = arith.constant 0 : index
    %c0_31 = arith.constant 0 : index
    %c0_32 = arith.constant 0 : index
    %23 = vector.load %arg11[%c0_30, %c0_31, %c0_32] : memref<1x1x32xf32, #tpu.memory_space<vmem>>, vector<1x1x32xf32>
    %24 = vector.shape_cast %23 : vector<1x1x32xf32> to vector<1x32xf32>
    %c0_33 = arith.constant 0 : index
    %c0_34 = arith.constant 0 : index
    %c0_35 = arith.constant 0 : index
    %25 = vector.load %arg12[%c0_33, %c0_34, %c0_35] : memref<1x1x32xf32, #tpu.memory_space<vmem>>, vector<1x1x32xf32>
    %26 = vector.shape_cast %25 : vector<1x1x32xf32> to vector<1x32xf32>
    %c0_36 = arith.constant 0 : index
    %c0_37 = arith.constant 0 : index
    %c0_38 = arith.constant 0 : index
    %27 = vector.load %arg13[%c0_36, %c0_37, %c0_38] : memref<1x1x32xf32, #tpu.memory_space<vmem>>, vector<1x1x32xf32>
    %28 = vector.shape_cast %27 : vector<1x1x32xf32> to vector<1x32xf32>
    %cst = arith.constant dense<0.000000e+00> : vector<19x96xf32>
    %29 = tpu.matmul %4, %6, %cst {dimension_numbers = #tpu.dot_dimension_numbers<[1], [0], [0], [1], [0, 0, 1, 1], [], []>} : vector<19x32xf32>, vector<32x96xf32>, vector<19x96xf32> -> vector<19x96xf32>
    %30 = arith.addf %29, %8 : vector<19x96xf32>
    %31 = vector.extract_strided_slice %30 {offsets = [0, 0], sizes = [19, 32], strides = [1, 1]} : vector<19x96xf32> to vector<19x32xf32>
    %32 = vector.extract_strided_slice %30 {offsets = [0, 32], sizes = [19, 32], strides = [1, 1]} : vector<19x96xf32> to vector<19x32xf32>
    %33 = vector.extract_strided_slice %30 {offsets = [0, 64], sizes = [19, 32], strides = [1, 1]} : vector<19x96xf32> to vector<19x32xf32>
    %34 = vector.extract_strided_slice %31 {offsets = [0, 0], sizes = [19, 8], strides = [1, 1]} : vector<19x32xf32> to vector<19x8xf32>
    %35 = vector.extract_strided_slice %32 {offsets = [0, 0], sizes = [19, 8], strides = [1, 1]} : vector<19x32xf32> to vector<19x8xf32>
    %cst_39 = arith.constant dense<0.000000e+00> : vector<19x19xf32>
    %36 = tpu.matmul %34, %35, %cst_39 {dimension_numbers = #tpu.dot_dimension_numbers<[1], [1], [0], [0], [0, 0, 1, 0], [], []>} : vector<19x8xf32>, vector<19x8xf32>, vector<19x19xf32> -> vector<19x19xf32>
    %cst_40 = arith.constant 0.353553385 : f32
    %37 = vector.broadcast %cst_40 : f32 to vector<19x19xf32>
    %38 = arith.mulf %36, %37 : vector<19x19xf32>
    %cst_41 = arith.constant dense<0xFF800000> : vector<19xf32>
    %39 = vector.multi_reduction <maximumf>, %38, %cst_41 [1] : vector<19x19xf32> to vector<19xf32>
    %40 = vector.shape_cast %39 : vector<19xf32> to vector<19x1xf32>
    %41 = vector.broadcast %40 : vector<19x1xf32> to vector<19x19xf32>
    %42 = arith.subf %38, %41 : vector<19x19xf32>
    %43 = math.exp %42 : vector<19x19xf32>
    %cst_42 = arith.constant dense<0.000000e+00> : vector<19xf32>
    %44 = vector.multi_reduction <add>, %43, %cst_42 [1] : vector<19x19xf32> to vector<19xf32>
    %45 = vector.shape_cast %44 : vector<19xf32> to vector<19x1xf32>
    %46 = tpu.reciprocal %45 {approx = true} : vector<19x1xf32> -> vector<19x1xf32>
    %47 = vector.broadcast %46 : vector<19x1xf32> to vector<19x19xf32>
    %48 = arith.mulf %43, %47 : vector<19x19xf32>
    %49 = vector.extract_strided_slice %33 {offsets = [0, 0], sizes = [19, 8], strides = [1, 1]} : vector<19x32xf32> to vector<19x8xf32>
    %cst_43 = arith.constant dense<0.000000e+00> : vector<19x8xf32>
    %50 = tpu.matmul %48, %49, %cst_43 {dimension_numbers = #tpu.dot_dimension_numbers<[1], [0], [0], [1], [0, 0, 1, 1], [], []>} : vector<19x19xf32>, vector<19x8xf32>, vector<19x8xf32> -> vector<19x8xf32>
    %51 = vector.extract_strided_slice %31 {offsets = [0, 8], sizes = [19, 8], strides = [1, 1]} : vector<19x32xf32> to vector<19x8xf32>
    %52 = vector.extract_strided_slice %32 {offsets = [0, 8], sizes = [19, 8], strides = [1, 1]} : vector<19x32xf32> to vector<19x8xf32>
    %cst_44 = arith.constant dense<0.000000e+00> : vector<19x19xf32>
    %53 = tpu.matmul %51, %52, %cst_44 {dimension_numbers = #tpu.dot_dimension_numbers<[1], [1], [0], [0], [0, 0, 1, 0], [], []>} : vector<19x8xf32>, vector<19x8xf32>, vector<19x19xf32> -> vector<19x19xf32>
    %cst_45 = arith.constant 0.353553385 : f32
    %54 = vector.broadcast %cst_45 : f32 to vector<19x19xf32>
    %55 = arith.mulf %53, %54 : vector<19x19xf32>
    %cst_46 = arith.constant dense<0xFF800000> : vector<19xf32>
    %56 = vector.multi_reduction <maximumf>, %55, %cst_46 [1] : vector<19x19xf32> to vector<19xf32>
    %57 = vector.shape_cast %56 : vector<19xf32> to vector<19x1xf32>
    %58 = vector.broadcast %57 : vector<19x1xf32> to vector<19x19xf32>
    %59 = arith.subf %55, %58 : vector<19x19xf32>
    %60 = math.exp %59 : vector<19x19xf32>
    %cst_47 = arith.constant dense<0.000000e+00> : vector<19xf32>
    %61 = vector.multi_reduction <add>, %60, %cst_47 [1] : vector<19x19xf32> to vector<19xf32>
    %62 = vector.shape_cast %61 : vector<19xf32> to vector<19x1xf32>
    %63 = tpu.reciprocal %62 {approx = true} : vector<19x1xf32> -> vector<19x1xf32>
    %64 = vector.broadcast %63 : vector<19x1xf32> to vector<19x19xf32>
    %65 = arith.mulf %60, %64 : vector<19x19xf32>
    %66 = vector.extract_strided_slice %33 {offsets = [0, 8], sizes = [19, 8], strides = [1, 1]} : vector<19x32xf32> to vector<19x8xf32>
    %cst_48 = arith.constant dense<0.000000e+00> : vector<19x8xf32>
    %67 = tpu.matmul %65, %66, %cst_48 {dimension_numbers = #tpu.dot_dimension_numbers<[1], [0], [0], [1], [0, 0, 1, 1], [], []>} : vector<19x19xf32>, vector<19x8xf32>, vector<19x8xf32> -> vector<19x8xf32>
    %68 = vector.extract_strided_slice %31 {offsets = [0, 16], sizes = [19, 8], strides = [1, 1]} : vector<19x32xf32> to vector<19x8xf32>
    %69 = vector.extract_strided_slice %32 {offsets = [0, 16], sizes = [19, 8], strides = [1, 1]} : vector<19x32xf32> to vector<19x8xf32>
    %cst_49 = arith.constant dense<0.000000e+00> : vector<19x19xf32>
    %70 = tpu.matmul %68, %69, %cst_49 {dimension_numbers = #tpu.dot_dimension_numbers<[1], [1], [0], [0], [0, 0, 1, 0], [], []>} : vector<19x8xf32>, vector<19x8xf32>, vector<19x19xf32> -> vector<19x19xf32>
    %cst_50 = arith.constant 0.353553385 : f32
    %71 = vector.broadcast %cst_50 : f32 to vector<19x19xf32>
    %72 = arith.mulf %70, %71 : vector<19x19xf32>
    %cst_51 = arith.constant dense<0xFF800000> : vector<19xf32>
    %73 = vector.multi_reduction <maximumf>, %72, %cst_51 [1] : vector<19x19xf32> to vector<19xf32>
    %74 = vector.shape_cast %73 : vector<19xf32> to vector<19x1xf32>
    %75 = vector.broadcast %74 : vector<19x1xf32> to vector<19x19xf32>
    %76 = arith.subf %72, %75 : vector<19x19xf32>
    %77 = math.exp %76 : vector<19x19xf32>
    %cst_52 = arith.constant dense<0.000000e+00> : vector<19xf32>
    %78 = vector.multi_reduction <add>, %77, %cst_52 [1] : vector<19x19xf32> to vector<19xf32>
    %79 = vector.shape_cast %78 : vector<19xf32> to vector<19x1xf32>
    %80 = tpu.reciprocal %79 {approx = true} : vector<19x1xf32> -> vector<19x1xf32>
    %81 = vector.broadcast %80 : vector<19x1xf32> to vector<19x19xf32>
    %82 = arith.mulf %77, %81 : vector<19x19xf32>
    %83 = vector.extract_strided_slice %33 {offsets = [0, 16], sizes = [19, 8], strides = [1, 1]} : vector<19x32xf32> to vector<19x8xf32>
    %cst_53 = arith.constant dense<0.000000e+00> : vector<19x8xf32>
    %84 = tpu.matmul %82, %83, %cst_53 {dimension_numbers = #tpu.dot_dimension_numbers<[1], [0], [0], [1], [0, 0, 1, 1], [], []>} : vector<19x19xf32>, vector<19x8xf32>, vector<19x8xf32> -> vector<19x8xf32>
    %85 = vector.extract_strided_slice %31 {offsets = [0, 24], sizes = [19, 8], strides = [1, 1]} : vector<19x32xf32> to vector<19x8xf32>
    %86 = vector.extract_strided_slice %32 {offsets = [0, 24], sizes = [19, 8], strides = [1, 1]} : vector<19x32xf32> to vector<19x8xf32>
    %cst_54 = arith.constant dense<0.000000e+00> : vector<19x19xf32>
    %87 = tpu.matmul %85, %86, %cst_54 {dimension_numbers = #tpu.dot_dimension_numbers<[1], [1], [0], [0], [0, 0, 1, 0], [], []>} : vector<19x8xf32>, vector<19x8xf32>, vector<19x19xf32> -> vector<19x19xf32>
    %cst_55 = arith.constant 0.353553385 : f32
    %88 = vector.broadcast %cst_55 : f32 to vector<19x19xf32>
    %89 = arith.mulf %87, %88 : vector<19x19xf32>
    %cst_56 = arith.constant dense<0xFF800000> : vector<19xf32>
    %90 = vector.multi_reduction <maximumf>, %89, %cst_56 [1] : vector<19x19xf32> to vector<19xf32>
    %91 = vector.shape_cast %90 : vector<19xf32> to vector<19x1xf32>
    %92 = vector.broadcast %91 : vector<19x1xf32> to vector<19x19xf32>
    %93 = arith.subf %89, %92 : vector<19x19xf32>
    %94 = math.exp %93 : vector<19x19xf32>
    %cst_57 = arith.constant dense<0.000000e+00> : vector<19xf32>
    %95 = vector.multi_reduction <add>, %94, %cst_57 [1] : vector<19x19xf32> to vector<19xf32>
    %96 = vector.shape_cast %95 : vector<19xf32> to vector<19x1xf32>
    %97 = tpu.reciprocal %96 {approx = true} : vector<19x1xf32> -> vector<19x1xf32>
    %98 = vector.broadcast %97 : vector<19x1xf32> to vector<19x19xf32>
    %99 = arith.mulf %94, %98 : vector<19x19xf32>
    %100 = vector.extract_strided_slice %33 {offsets = [0, 24], sizes = [19, 8], strides = [1, 1]} : vector<19x32xf32> to vector<19x8xf32>
    %cst_58 = arith.constant dense<0.000000e+00> : vector<19x8xf32>
    %101 = tpu.matmul %99, %100, %cst_58 {dimension_numbers = #tpu.dot_dimension_numbers<[1], [0], [0], [1], [0, 0, 1, 1], [], []>} : vector<19x19xf32>, vector<19x8xf32>, vector<19x8xf32> -> vector<19x8xf32>
    %102 = tpu.concatenate %50, %67, %84, %101 in 1 : vector<19x8xf32>, vector<19x8xf32>, vector<19x8xf32>, vector<19x8xf32> -> vector<19x32xf32>
    %cst_59 = arith.constant dense<0.000000e+00> : vector<19x32xf32>
    %103 = tpu.matmul %102, %10, %cst_59 {dimension_numbers = #tpu.dot_dimension_numbers<[1], [0], [0], [1], [0, 0, 1, 1], [], []>} : vector<19x32xf32>, vector<32x32xf32>, vector<19x32xf32> -> vector<19x32xf32>
    %104 = vector.broadcast %12 : vector<1x32xf32> to vector<19x32xf32>
    %105 = arith.addf %103, %104 : vector<19x32xf32>
    %106 = arith.addf %4, %105 : vector<19x32xf32>
    %cst_60 = arith.constant dense<0.000000e+00> : vector<19xf32>
    %107 = vector.multi_reduction <add>, %106, %cst_60 [1] : vector<19x32xf32> to vector<19xf32>
    %108 = vector.shape_cast %107 : vector<19xf32> to vector<19x1xf32>
    %cst_61 = arith.constant 3.200000e+01 : f32
    %109 = vector.broadcast %cst_61 : f32 to vector<19x1xf32>
    %110 = arith.divf %108, %109 : vector<19x1xf32>
    %111 = vector.broadcast %110 : vector<19x1xf32> to vector<19x32xf32>
    %112 = arith.subf %106, %111 : vector<19x32xf32>
    %113 = arith.mulf %112, %112 : vector<19x32xf32>
    %cst_62 = arith.constant dense<0.000000e+00> : vector<19xf32>
    %114 = vector.multi_reduction <add>, %113, %cst_62 [1] : vector<19x32xf32> to vector<19xf32>
    %115 = vector.shape_cast %114 : vector<19xf32> to vector<19x1xf32>
    %cst_63 = arith.constant 3.200000e+01 : f32
    %116 = vector.broadcast %cst_63 : f32 to vector<19x1xf32>
    %117 = arith.divf %115, %116 : vector<19x1xf32>
    %cst_64 = arith.constant 9.99999974E-6 : f32
    %118 = vector.broadcast %cst_64 : f32 to vector<19x1xf32>
    %119 = arith.addf %117, %118 : vector<19x1xf32>
    %120 = math.rsqrt %119 : vector<19x1xf32>
    %121 = vector.broadcast %120 : vector<19x1xf32> to vector<19x32xf32>
    %122 = arith.mulf %112, %121 : vector<19x32xf32>
    %123 = vector.broadcast %14 : vector<1x32xf32> to vector<19x32xf32>
    %124 = arith.mulf %122, %123 : vector<19x32xf32>
    %125 = vector.broadcast %16 : vector<1x32xf32> to vector<19x32xf32>
    %126 = arith.addf %124, %125 : vector<19x32xf32>
    %cst_65 = arith.constant dense<0.000000e+00> : vector<19x64xf32>
    %127 = tpu.matmul %126, %18, %cst_65 {dimension_numbers = #tpu.dot_dimension_numbers<[1], [0], [0], [1], [0, 0, 1, 1], [], []>} : vector<19x32xf32>, vector<32x64xf32>, vector<19x64xf32> -> vector<19x64xf32>
    %128 = vector.broadcast %20 : vector<1x64xf32> to vector<19x64xf32>
    %129 = arith.addf %127, %128 : vector<19x64xf32>
    %cst_66 = arith.constant 0.000000e+00 : f32
    %130 = vector.broadcast %cst_66 : f32 to vector<19x64xf32>
    %131 = arith.maximumf %129, %130 : vector<19x64xf32>
    %cst_67 = arith.constant dense<0.000000e+00> : vector<19x32xf32>
    %132 = tpu.matmul %131, %22, %cst_67 {dimension_numbers = #tpu.dot_dimension_numbers<[1], [0], [0], [1], [0, 0, 1, 1], [], []>} : vector<19x64xf32>, vector<64x32xf32>, vector<19x32xf32> -> vector<19x32xf32>
    %133 = vector.broadcast %24 : vector<1x32xf32> to vector<19x32xf32>
    %134 = arith.addf %132, %133 : vector<19x32xf32>
    %135 = arith.addf %126, %134 : vector<19x32xf32>
    %cst_68 = arith.constant dense<0.000000e+00> : vector<19xf32>
    %136 = vector.multi_reduction <add>, %135, %cst_68 [1] : vector<19x32xf32> to vector<19xf32>
    %137 = vector.shape_cast %136 : vector<19xf32> to vector<19x1xf32>
    %cst_69 = arith.constant 3.200000e+01 : f32
    %138 = vector.broadcast %cst_69 : f32 to vector<19x1xf32>
    %139 = arith.divf %137, %138 : vector<19x1xf32>
    %140 = vector.broadcast %139 : vector<19x1xf32> to vector<19x32xf32>
    %141 = arith.subf %135, %140 : vector<19x32xf32>
    %142 = arith.mulf %141, %141 : vector<19x32xf32>
    %cst_70 = arith.constant dense<0.000000e+00> : vector<19xf32>
    %143 = vector.multi_reduction <add>, %142, %cst_70 [1] : vector<19x32xf32> to vector<19xf32>
    %144 = vector.shape_cast %143 : vector<19xf32> to vector<19x1xf32>
    %cst_71 = arith.constant 3.200000e+01 : f32
    %145 = vector.broadcast %cst_71 : f32 to vector<19x1xf32>
    %146 = arith.divf %144, %145 : vector<19x1xf32>
    %cst_72 = arith.constant 9.99999974E-6 : f32
    %147 = vector.broadcast %cst_72 : f32 to vector<19x1xf32>
    %148 = arith.addf %146, %147 : vector<19x1xf32>
    %149 = math.rsqrt %148 : vector<19x1xf32>
    %150 = vector.broadcast %149 : vector<19x1xf32> to vector<19x32xf32>
    %151 = arith.mulf %141, %150 : vector<19x32xf32>
    %152 = vector.broadcast %26 : vector<1x32xf32> to vector<19x32xf32>
    %153 = arith.mulf %151, %152 : vector<19x32xf32>
    %154 = vector.broadcast %28 : vector<1x32xf32> to vector<19x32xf32>
    %155 = arith.addf %153, %154 : vector<19x32xf32>
    %c0_73 = arith.constant 0 : index
    %c0_74 = arith.constant 0 : index
    %c0_75 = arith.constant 0 : index
    %156 = vector.load %arg14[%c0_73, %c0_74, %c0_75] : memref<2x19x32xf32, #tpu.memory_space<vmem>>, vector<1x19x32xf32>
    %157 = vector.shape_cast %156 : vector<1x19x32xf32> to vector<19x32xf32>
    %158 = vector.shape_cast %155 : vector<19x32xf32> to vector<1x19x32xf32>
    tpu.vector_store %arg14[%c0_73, %c0_74, %c0_75], %158 {strides = array<i32>} : memref<2x19x32xf32, #tpu.memory_space<vmem>>, vector<1x19x32xf32>,
    %c1 = arith.constant 1 : index
    %c0_76 = arith.constant 0 : index
    %c0_77 = arith.constant 0 : index
    %159 = vector.load %arg14[%c1, %c0_76, %c0_77] : memref<2x19x32xf32, #tpu.memory_space<vmem>>, vector<1x19x32xf32>
    %160 = vector.shape_cast %159 : vector<1x19x32xf32> to vector<19x32xf32>
    %c0_78 = arith.constant 0 : index
    %c0_79 = arith.constant 0 : index
    %c0_80 = arith.constant 0 : index
    %161 = vector.load %arg2[%c0_78, %c0_79, %c0_80] : memref<1x32x96xf32, #tpu.memory_space<vmem>>, vector<1x32x96xf32>
    %162 = vector.shape_cast %161 : vector<1x32x96xf32> to vector<32x96xf32>
    %c0_81 = arith.constant 0 : index
    %c0_82 = arith.constant 0 : index
    %c0_83 = arith.constant 0 : index
    %163 = vector.load %arg3[%c0_81, %c0_82, %c0_83] : memref<1x19x96xf32, #tpu.memory_space<vmem>>, vector<1x19x96xf32>
    %164 = vector.shape_cast %163 : vector<1x19x96xf32> to vector<19x96xf32>
    %c0_84 = arith.constant 0 : index
    %c0_85 = arith.constant 0 : index
    %c0_86 = arith.constant 0 : index
    %165 = vector.load %arg4[%c0_84, %c0_85, %c0_86] : memref<1x32x32xf32, #tpu.memory_space<vmem>>, vector<1x32x32xf32>
    %166 = vector.shape_cast %165 : vector<1x32x32xf32> to vector<32x32xf32>
    %c0_87 = arith.constant 0 : index
    %c0_88 = arith.constant 0 : index
    %c0_89 = arith.constant 0 : index
    %167 = vector.load %arg5[%c0_87, %c0_88, %c0_89] : memref<1x1x32xf32, #tpu.memory_space<vmem>>, vector<1x1x32xf32>
    %168 = vector.shape_cast %167 : vector<1x1x32xf32> to vector<1x32xf32>
    %c0_90 = arith.constant 0 : index
    %c0_91 = arith.constant 0 : index
    %c0_92 = arith.constant 0 : index
    %169 = vector.load %arg6[%c0_90, %c0_91, %c0_92] : memref<1x1x32xf32, #tpu.memory_space<vmem>>, vector<1x1x32xf32>
    %170 = vector.shape_cast %169 : vector<1x1x32xf32> to vector<1x32xf32>
    %c0_93 = arith.constant 0 : index
    %c0_94 = arith.constant 0 : index
    %c0_95 = arith.constant 0 : index
    %171 = vector.load %arg7[%c0_93, %c0_94, %c0_95] : memref<1x1x32xf32, #tpu.memory_space<vmem>>, vector<1x1x32xf32>
    %172 = vector.shape_cast %171 : vector<1x1x32xf32> to vector<1x32xf32>
    %c0_96 = arith.constant 0 : index
    %c0_97 = arith.constant 0 : index
    %c0_98 = arith.constant 0 : index
    %173 = vector.load %arg8[%c0_96, %c0_97, %c0_98] : memref<1x32x64xf32, #tpu.memory_space<vmem>>, vector<1x32x64xf32>
    %174 = vector.shape_cast %173 : vector<1x32x64xf32> to vector<32x64xf32>
    %c0_99 = arith.constant 0 : index
    %c0_100 = arith.constant 0 : index
    %c0_101 = arith.constant 0 : index
    %175 = vector.load %arg9[%c0_99, %c0_100, %c0_101] : memref<1x1x64xf32, #tpu.memory_space<vmem>>, vector<1x1x64xf32>
    %176 = vector.shape_cast %175 : vector<1x1x64xf32> to vector<1x64xf32>
    %c0_102 = arith.constant 0 : index
    %c0_103 = arith.constant 0 : index
    %c0_104 = arith.constant 0 : index
    %177 = vector.load %arg10[%c0_102, %c0_103, %c0_104] : memref<1x64x32xf32, #tpu.memory_space<vmem>>, vector<1x64x32xf32>
    %178 = vector.shape_cast %177 : vector<1x64x32xf32> to vector<64x32xf32>
    %c0_105 = arith.constant 0 : index
    %c0_106 = arith.constant 0 : index
    %c0_107 = arith.constant 0 : index
    %179 = vector.load %arg11[%c0_105, %c0_106, %c0_107] : memref<1x1x32xf32, #tpu.memory_space<vmem>>, vector<1x1x32xf32>
    %180 = vector.shape_cast %179 : vector<1x1x32xf32> to vector<1x32xf32>
    %c0_108 = arith.constant 0 : index
    %c0_109 = arith.constant 0 : index
    %c0_110 = arith.constant 0 : index
    %181 = vector.load %arg12[%c0_108, %c0_109, %c0_110] : memref<1x1x32xf32, #tpu.memory_space<vmem>>, vector<1x1x32xf32>
    %182 = vector.shape_cast %181 : vector<1x1x32xf32> to vector<1x32xf32>
    %c0_111 = arith.constant 0 : index
    %c0_112 = arith.constant 0 : index
    %c0_113 = arith.constant 0 : index
    %183 = vector.load %arg13[%c0_111, %c0_112, %c0_113] : memref<1x1x32xf32, #tpu.memory_space<vmem>>, vector<1x1x32xf32>
    %184 = vector.shape_cast %183 : vector<1x1x32xf32> to vector<1x32xf32>
    %cst_114 = arith.constant dense<0.000000e+00> : vector<19x96xf32>
    %185 = tpu.matmul %160, %162, %cst_114 {dimension_numbers = #tpu.dot_dimension_numbers<[1], [0], [0], [1], [0, 0, 1, 1], [], []>} : vector<19x32xf32>, vector<32x96xf32>, vector<19x96xf32> -> vector<19x96xf32>
    %186 = arith.addf %185, %164 : vector<19x96xf32>
    %187 = vector.extract_strided_slice %186 {offsets = [0, 0], sizes = [19, 32], strides = [1, 1]} : vector<19x96xf32> to vector<19x32xf32>
    %188 = vector.extract_strided_slice %186 {offsets = [0, 32], sizes = [19, 32], strides = [1, 1]} : vector<19x96xf32> to vector<19x32xf32>
    %189 = vector.extract_strided_slice %186 {offsets = [0, 64], sizes = [19, 32], strides = [1, 1]} : vector<19x96xf32> to vector<19x32xf32>
    %190 = vector.extract_strided_slice %187 {offsets = [0, 0], sizes = [19, 8], strides = [1, 1]} : vector<19x32xf32> to vector<19x8xf32>
    %191 = vector.extract_strided_slice %188 {offsets = [0, 0], sizes = [19, 8], strides = [1, 1]} : vector<19x32xf32> to vector<19x8xf32>
    %cst_115 = arith.constant dense<0.000000e+00> : vector<19x19xf32>
    %192 = tpu.matmul %190, %191, %cst_115 {dimension_numbers = #tpu.dot_dimension_numbers<[1], [1], [0], [0], [0, 0, 1, 0], [], []>} : vector<19x8xf32>, vector<19x8xf32>, vector<19x19xf32> -> vector<19x19xf32>
    %cst_116 = arith.constant 0.353553385 : f32
    %193 = vector.broadcast %cst_116 : f32 to vector<19x19xf32>
    %194 = arith.mulf %192, %193 : vector<19x19xf32>
    %cst_117 = arith.constant dense<0xFF800000> : vector<19xf32>
    %195 = vector.multi_reduction <maximumf>, %194, %cst_117 [1] : vector<19x19xf32> to vector<19xf32>
    %196 = vector.shape_cast %195 : vector<19xf32> to vector<19x1xf32>
    %197 = vector.broadcast %196 : vector<19x1xf32> to vector<19x19xf32>
    %198 = arith.subf %194, %197 : vector<19x19xf32>
    %199 = math.exp %198 : vector<19x19xf32>
    %cst_118 = arith.constant dense<0.000000e+00> : vector<19xf32>
    %200 = vector.multi_reduction <add>, %199, %cst_118 [1] : vector<19x19xf32> to vector<19xf32>
    %201 = vector.shape_cast %200 : vector<19xf32> to vector<19x1xf32>
    %202 = tpu.reciprocal %201 {approx = true} : vector<19x1xf32> -> vector<19x1xf32>
    %203 = vector.broadcast %202 : vector<19x1xf32> to vector<19x19xf32>
    %204 = arith.mulf %199, %203 : vector<19x19xf32>
    %205 = vector.extract_strided_slice %189 {offsets = [0, 0], sizes = [19, 8], strides = [1, 1]} : vector<19x32xf32> to vector<19x8xf32>
    %cst_119 = arith.constant dense<0.000000e+00> : vector<19x8xf32>
    %206 = tpu.matmul %204, %205, %cst_119 {dimension_numbers = #tpu.dot_dimension_numbers<[1], [0], [0], [1], [0, 0, 1, 1], [], []>} : vector<19x19xf32>, vector<19x8xf32>, vector<19x8xf32> -> vector<19x8xf32>
    %207 = vector.extract_strided_slice %187 {offsets = [0, 8], sizes = [19, 8], strides = [1, 1]} : vector<19x32xf32> to vector<19x8xf32>
    %208 = vector.extract_strided_slice %188 {offsets = [0, 8], sizes = [19, 8], strides = [1, 1]} : vector<19x32xf32> to vector<19x8xf32>
    %cst_120 = arith.constant dense<0.000000e+00> : vector<19x19xf32>
    %209 = tpu.matmul %207, %208, %cst_120 {dimension_numbers = #tpu.dot_dimension_numbers<[1], [1], [0], [0], [0, 0, 1, 0], [], []>} : vector<19x8xf32>, vector<19x8xf32>, vector<19x19xf32> -> vector<19x19xf32>
    %cst_121 = arith.constant 0.353553385 : f32
    %210 = vector.broadcast %cst_121 : f32 to vector<19x19xf32>
    %211 = arith.mulf %209, %210 : vector<19x19xf32>
    %cst_122 = arith.constant dense<0xFF800000> : vector<19xf32>
    %212 = vector.multi_reduction <maximumf>, %211, %cst_122 [1] : vector<19x19xf32> to vector<19xf32>
    %213 = vector.shape_cast %212 : vector<19xf32> to vector<19x1xf32>
    %214 = vector.broadcast %213 : vector<19x1xf32> to vector<19x19xf32>
    %215 = arith.subf %211, %214 : vector<19x19xf32>
    %216 = math.exp %215 : vector<19x19xf32>
    %cst_123 = arith.constant dense<0.000000e+00> : vector<19xf32>
    %217 = vector.multi_reduction <add>, %216, %cst_123 [1] : vector<19x19xf32> to vector<19xf32>
    %218 = vector.shape_cast %217 : vector<19xf32> to vector<19x1xf32>
    %219 = tpu.reciprocal %218 {approx = true} : vector<19x1xf32> -> vector<19x1xf32>
    %220 = vector.broadcast %219 : vector<19x1xf32> to vector<19x19xf32>
    %221 = arith.mulf %216, %220 : vector<19x19xf32>
    %222 = vector.extract_strided_slice %189 {offsets = [0, 8], sizes = [19, 8], strides = [1, 1]} : vector<19x32xf32> to vector<19x8xf32>
    %cst_124 = arith.constant dense<0.000000e+00> : vector<19x8xf32>
    %223 = tpu.matmul %221, %222, %cst_124 {dimension_numbers = #tpu.dot_dimension_numbers<[1], [0], [0], [1], [0, 0, 1, 1], [], []>} : vector<19x19xf32>, vector<19x8xf32>, vector<19x8xf32> -> vector<19x8xf32>
    %224 = vector.extract_strided_slice %187 {offsets = [0, 16], sizes = [19, 8], strides = [1, 1]} : vector<19x32xf32> to vector<19x8xf32>
    %225 = vector.extract_strided_slice %188 {offsets = [0, 16], sizes = [19, 8], strides = [1, 1]} : vector<19x32xf32> to vector<19x8xf32>
    %cst_125 = arith.constant dense<0.000000e+00> : vector<19x19xf32>
    %226 = tpu.matmul %224, %225, %cst_125 {dimension_numbers = #tpu.dot_dimension_numbers<[1], [1], [0], [0], [0, 0, 1, 0], [], []>} : vector<19x8xf32>, vector<19x8xf32>, vector<19x19xf32> -> vector<19x19xf32>
    %cst_126 = arith.constant 0.353553385 : f32
    %227 = vector.broadcast %cst_126 : f32 to vector<19x19xf32>
    %228 = arith.mulf %226, %227 : vector<19x19xf32>
    %cst_127 = arith.constant dense<0xFF800000> : vector<19xf32>
    %229 = vector.multi_reduction <maximumf>, %228, %cst_127 [1] : vector<19x19xf32> to vector<19xf32>
    %230 = vector.shape_cast %229 : vector<19xf32> to vector<19x1xf32>
    %231 = vector.broadcast %230 : vector<19x1xf32> to vector<19x19xf32>
    %232 = arith.subf %228, %231 : vector<19x19xf32>
    %233 = math.exp %232 : vector<19x19xf32>
    %cst_128 = arith.constant dense<0.000000e+00> : vector<19xf32>
    %234 = vector.multi_reduction <add>, %233, %cst_128 [1] : vector<19x19xf32> to vector<19xf32>
    %235 = vector.shape_cast %234 : vector<19xf32> to vector<19x1xf32>
    %236 = tpu.reciprocal %235 {approx = true} : vector<19x1xf32> -> vector<19x1xf32>
    %237 = vector.broadcast %236 : vector<19x1xf32> to vector<19x19xf32>
    %238 = arith.mulf %233, %237 : vector<19x19xf32>
    %239 = vector.extract_strided_slice %189 {offsets = [0, 16], sizes = [19, 8], strides = [1, 1]} : vector<19x32xf32> to vector<19x8xf32>
    %cst_129 = arith.constant dense<0.000000e+00> : vector<19x8xf32>
    %240 = tpu.matmul %238, %239, %cst_129 {dimension_numbers = #tpu.dot_dimension_numbers<[1], [0], [0], [1], [0, 0, 1, 1], [], []>} : vector<19x19xf32>, vector<19x8xf32>, vector<19x8xf32> -> vector<19x8xf32>
    %241 = vector.extract_strided_slice %187 {offsets = [0, 24], sizes = [19, 8], strides = [1, 1]} : vector<19x32xf32> to vector<19x8xf32>
    %242 = vector.extract_strided_slice %188 {offsets = [0, 24], sizes = [19, 8], strides = [1, 1]} : vector<19x32xf32> to vector<19x8xf32>
    %cst_130 = arith.constant dense<0.000000e+00> : vector<19x19xf32>
    %243 = tpu.matmul %241, %242, %cst_130 {dimension_numbers = #tpu.dot_dimension_numbers<[1], [1], [0], [0], [0, 0, 1, 0], [], []>} : vector<19x8xf32>, vector<19x8xf32>, vector<19x19xf32> -> vector<19x19xf32>
    %cst_131 = arith.constant 0.353553385 : f32
    %244 = vector.broadcast %cst_131 : f32 to vector<19x19xf32>
    %245 = arith.mulf %243, %244 : vector<19x19xf32>
    %cst_132 = arith.constant dense<0xFF800000> : vector<19xf32>
    %246 = vector.multi_reduction <maximumf>, %245, %cst_132 [1] : vector<19x19xf32> to vector<19xf32>
    %247 = vector.shape_cast %246 : vector<19xf32> to vector<19x1xf32>
    %248 = vector.broadcast %247 : vector<19x1xf32> to vector<19x19xf32>
    %249 = arith.subf %245, %248 : vector<19x19xf32>
    %250 = math.exp %249 : vector<19x19xf32>
    %cst_133 = arith.constant dense<0.000000e+00> : vector<19xf32>
    %251 = vector.multi_reduction <add>, %250, %cst_133 [1] : vector<19x19xf32> to vector<19xf32>
    %252 = vector.shape_cast %251 : vector<19xf32> to vector<19x1xf32>
    %253 = tpu.reciprocal %252 {approx = true} : vector<19x1xf32> -> vector<19x1xf32>
    %254 = vector.broadcast %253 : vector<19x1xf32> to vector<19x19xf32>
    %255 = arith.mulf %250, %254 : vector<19x19xf32>
    %256 = vector.extract_strided_slice %189 {offsets = [0, 24], sizes = [19, 8], strides = [1, 1]} : vector<19x32xf32> to vector<19x8xf32>
    %cst_134 = arith.constant dense<0.000000e+00> : vector<19x8xf32>
    %257 = tpu.matmul %255, %256, %cst_134 {dimension_numbers = #tpu.dot_dimension_numbers<[1], [0], [0], [1], [0, 0, 1, 1], [], []>} : vector<19x19xf32>, vector<19x8xf32>, vector<19x8xf32> -> vector<19x8xf32>
    %258 = tpu.concatenate %206, %223, %240, %257 in 1 : vector<19x8xf32>, vector<19x8xf32>, vector<19x8xf32>, vector<19x8xf32> -> vector<19x32xf32>
    %cst_135 = arith.constant dense<0.000000e+00> : vector<19x32xf32>
    %259 = tpu.matmul %258, %166, %cst_135 {dimension_numbers = #tpu.dot_dimension_numbers<[1], [0], [0], [1], [0, 0, 1, 1], [], []>} : vector<19x32xf32>, vector<32x32xf32>, vector<19x32xf32> -> vector<19x32xf32>
    %260 = vector.broadcast %168 : vector<1x32xf32> to vector<19x32xf32>
    %261 = arith.addf %259, %260 : vector<19x32xf32>
    %262 = arith.addf %160, %261 : vector<19x32xf32>
    %cst_136 = arith.constant dense<0.000000e+00> : vector<19xf32>
    %263 = vector.multi_reduction <add>, %262, %cst_136 [1] : vector<19x32xf32> to vector<19xf32>
    %264 = vector.shape_cast %263 : vector<19xf32> to vector<19x1xf32>
    %cst_137 = arith.constant 3.200000e+01 : f32
    %265 = vector.broadcast %cst_137 : f32 to vector<19x1xf32>
    %266 = arith.divf %264, %265 : vector<19x1xf32>
    %267 = vector.broadcast %266 : vector<19x1xf32> to vector<19x32xf32>
    %268 = arith.subf %262, %267 : vector<19x32xf32>
    %269 = arith.mulf %268, %268 : vector<19x32xf32>
    %cst_138 = arith.constant dense<0.000000e+00> : vector<19xf32>
    %270 = vector.multi_reduction <add>, %269, %cst_138 [1] : vector<19x32xf32> to vector<19xf32>
    %271 = vector.shape_cast %270 : vector<19xf32> to vector<19x1xf32>
    %cst_139 = arith.constant 3.200000e+01 : f32
    %272 = vector.broadcast %cst_139 : f32 to vector<19x1xf32>
    %273 = arith.divf %271, %272 : vector<19x1xf32>
    %cst_140 = arith.constant 9.99999974E-6 : f32
    %274 = vector.broadcast %cst_140 : f32 to vector<19x1xf32>
    %275 = arith.addf %273, %274 : vector<19x1xf32>
    %276 = math.rsqrt %275 : vector<19x1xf32>
    %277 = vector.broadcast %276 : vector<19x1xf32> to vector<19x32xf32>
    %278 = arith.mulf %268, %277 : vector<19x32xf32>
    %279 = vector.broadcast %170 : vector<1x32xf32> to vector<19x32xf32>
    %280 = arith.mulf %278, %279 : vector<19x32xf32>
    %281 = vector.broadcast %172 : vector<1x32xf32> to vector<19x32xf32>
    %282 = arith.addf %280, %281 : vector<19x32xf32>
    %cst_141 = arith.constant dense<0.000000e+00> : vector<19x64xf32>
    %283 = tpu.matmul %282, %174, %cst_141 {dimension_numbers = #tpu.dot_dimension_numbers<[1], [0], [0], [1], [0, 0, 1, 1], [], []>} : vector<19x32xf32>, vector<32x64xf32>, vector<19x64xf32> -> vector<19x64xf32>
    %284 = vector.broadcast %176 : vector<1x64xf32> to vector<19x64xf32>
    %285 = arith.addf %283, %284 : vector<19x64xf32>
    %cst_142 = arith.constant 0.000000e+00 : f32
    %286 = vector.broadcast %cst_142 : f32 to vector<19x64xf32>
    %287 = arith.maximumf %285, %286 : vector<19x64xf32>
    %cst_143 = arith.constant dense<0.000000e+00> : vector<19x32xf32>
    %288 = tpu.matmul %287, %178, %cst_143 {dimension_numbers = #tpu.dot_dimension_numbers<[1], [0], [0], [1], [0, 0, 1, 1], [], []>} : vector<19x64xf32>, vector<64x32xf32>, vector<19x32xf32> -> vector<19x32xf32>
    %289 = vector.broadcast %180 : vector<1x32xf32> to vector<19x32xf32>
    %290 = arith.addf %288, %289 : vector<19x32xf32>
    %291 = arith.addf %282, %290 : vector<19x32xf32>
    %cst_144 = arith.constant dense<0.000000e+00> : vector<19xf32>
    %292 = vector.multi_reduction <add>, %291, %cst_144 [1] : vector<19x32xf32> to vector<19xf32>
    %293 = vector.shape_cast %292 : vector<19xf32> to vector<19x1xf32>
    %cst_145 = arith.constant 3.200000e+01 : f32
    %294 = vector.broadcast %cst_145 : f32 to vector<19x1xf32>
    %295 = arith.divf %293, %294 : vector<19x1xf32>
    %296 = vector.broadcast %295 : vector<19x1xf32> to vector<19x32xf32>
    %297 = arith.subf %291, %296 : vector<19x32xf32>
    %298 = arith.mulf %297, %297 : vector<19x32xf32>
    %cst_146 = arith.constant dense<0.000000e+00> : vector<19xf32>
    %299 = vector.multi_reduction <add>, %298, %cst_146 [1] : vector<19x32xf32> to vector<19xf32>
    %300 = vector.shape_cast %299 : vector<19xf32> to vector<19x1xf32>
    %cst_147 = arith.constant 3.200000e+01 : f32
    %301 = vector.broadcast %cst_147 : f32 to vector<19x1xf32>
    %302 = arith.divf %300, %301 : vector<19x1xf32>
    %cst_148 = arith.constant 9.99999974E-6 : f32
    %303 = vector.broadcast %cst_148 : f32 to vector<19x1xf32>
    %304 = arith.addf %302, %303 : vector<19x1xf32>
    %305 = math.rsqrt %304 : vector<19x1xf32>
    %306 = vector.broadcast %305 : vector<19x1xf32> to vector<19x32xf32>
    %307 = arith.mulf %297, %306 : vector<19x32xf32>
    %308 = vector.broadcast %182 : vector<1x32xf32> to vector<19x32xf32>
    %309 = arith.mulf %307, %308 : vector<19x32xf32>
    %310 = vector.broadcast %184 : vector<1x32xf32> to vector<19x32xf32>
    %311 = arith.addf %309, %310 : vector<19x32xf32>
    %c1_149 = arith.constant 1 : index
    %c0_150 = arith.constant 0 : index
    %c0_151 = arith.constant 0 : index
    %312 = vector.load %arg14[%c1_149, %c0_150, %c0_151] : memref<2x19x32xf32, #tpu.memory_space<vmem>>, vector<1x19x32xf32>
    %313 = vector.shape_cast %312 : vector<1x19x32xf32> to vector<19x32xf32>
    %314 = vector.shape_cast %311 : vector<19x32xf32> to vector<1x19x32xf32>
    tpu.vector_store %arg14[%c1_149, %c0_150, %c0_151], %314 {strides = array<i32>} : memref<2x19x32xf32, #tpu.memory_space<vmem>>, vector<1x19x32xf32>,
    return
  }
  func.func @transform_0(%arg0: i32) -> (i32, i32, i32) {
    %c0_i32 = arith.constant 0 : i32
    %c0_i32_0 = arith.constant 0 : i32
    %c0_i32_1 = arith.constant 0 : i32
    %c0_i32_2 = arith.constant 0 : i32
    return %c0_i32, %c0_i32_0, %c0_i32_1 : i32, i32, i32
  }
  func.func @transform_1(%arg0: i32) -> (i32, i32, i32) {
    %c0_i32 = arith.constant 0 : i32
    %c0_i32_0 = arith.constant 0 : i32
    %c0_i32_1 = arith.constant 0 : i32
    return %arg0, %c0_i32, %c0_i32_0 : i32, i32, i32
  }
  func.func @transform_2(%arg0: i32) -> (i32, i32, i32) {
    %c0_i32 = arith.constant 0 : i32
    %c0_i32_0 = arith.constant 0 : i32
    %c0_i32_1 = arith.constant 0 : i32
    return %arg0, %c0_i32, %c0_i32_0 : i32, i32, i32
  }
  func.func @transform_3(%arg0: i32) -> (i32, i32, i32) {
    %c0_i32 = arith.constant 0 : i32
    %c0_i32_0 = arith.constant 0 : i32
    %c0_i32_1 = arith.constant 0 : i32
    return %arg0, %c0_i32, %c0_i32_0 : i32, i32, i32
  }
  func.func @transform_4(%arg0: i32) -> (i32, i32, i32) {
    %c0_i32 = arith.constant 0 : i32
    %c0_i32_0 = arith.constant 0 : i32
    %c0_i32_1 = arith.constant 0 : i32
    return %arg0, %c0_i32, %c0_i32_0 : i32, i32, i32
  }
  func.func @transform_5(%arg0: i32) -> (i32, i32, i32) {
    %c0_i32 = arith.constant 0 : i32
    %c0_i32_0 = arith.constant 0 : i32
    %c0_i32_1 = arith.constant 0 : i32
    return %arg0, %c0_i32, %c0_i32_0 : i32, i32, i32
  }
  func.func @transform_6(%arg0: i32) -> (i32, i32, i32) {
    %c0_i32 = arith.constant 0 : i32
    %c0_i32_0 = arith.constant 0 : i32
    %c0_i32_1 = arith.constant 0 : i32
    return %arg0, %c0_i32, %c0_i32_0 : i32, i32, i32
  }
  func.func @transform_7(%arg0: i32) -> (i32, i32, i32) {
    %c0_i32 = arith.constant 0 : i32
    %c0_i32_0 = arith.constant 0 : i32
    %c0_i32_1 = arith.constant 0 : i32
    return %arg0, %c0_i32, %c0_i32_0 : i32, i32, i32
  }
  func.func @transform_8(%arg0: i32) -> (i32, i32, i32) {
    %c0_i32 = arith.constant 0 : i32
    %c0_i32_0 = arith.constant 0 : i32
    %c0_i32_1 = arith.constant 0 : i32
    return %arg0, %c0_i32, %c0_i32_0 : i32, i32, i32
  }
  func.func @transform_9(%arg0: i32) -> (i32, i32, i32) {
    %c0_i32 = arith.constant 0 : i32
    %c0_i32_0 = arith.constant 0 : i32
    %c0_i32_1 = arith.constant 0 : i32
    return %arg0, %c0_i32, %c0_i32_0 : i32, i32, i32
  }
  func.func @transform_10(%arg0: i32) -> (i32, i32, i32) {
    %c0_i32 = arith.constant 0 : i32
    %c0_i32_0 = arith.constant 0 : i32
    %c0_i32_1 = arith.constant 0 : i32
    return %arg0, %c0_i32, %c0_i32_0 : i32, i32, i32
  }
  func.func @transform_11(%arg0: i32) -> (i32, i32, i32) {
    %c0_i32 = arith.constant 0 : i32
    %c0_i32_0 = arith.constant 0 : i32
    %c0_i32_1 = arith.constant 0 : i32
    return %arg0, %c0_i32, %c0_i32_0 : i32, i32, i32
  }
  func.func @transform_12(%arg0: i32) -> (i32, i32, i32) {
    %c0_i32 = arith.constant 0 : i32
    %c0_i32_0 = arith.constant 0 : i32
    %c0_i32_1 = arith.constant 0 : i32
    return %arg0, %c0_i32, %c0_i32_0 : i32, i32, i32
  }
  func.func @transform_13(%arg0: i32) -> (i32, i32, i32) {
    %c0_i32 = arith.constant 0 : i32
    %c0_i32_0 = arith.constant 0 : i32
    %c0_i32_1 = arith.constant 0 : i32
    %c0_i32_2 = arith.constant 0 : i32
    return %c0_i32, %c0_i32_0, %c0_i32_1 : i32, i32, i32
  }
}

module attributes {stable_mosaic.version = 11 : i64} {
  func.func @_decoder_stack_kernel(%arg0: i32, %arg1: memref<2x19x32xf32, #tpu.memory_space<vmem>>, %arg2: memref<1x32x96xf32, #tpu.memory_space<vmem>>, %arg3: memref<1x8x96xf32, #tpu.memory_space<vmem>>, %arg4: memref<1x32x32xf32, #tpu.memory_space<vmem>>, %arg5: memref<1x1x32xf32, #tpu.memory_space<vmem>>, %arg6: memref<1x1x32xf32, #tpu.memory_space<vmem>>, %arg7: memref<1x1x32xf32, #tpu.memory_space<vmem>>, %arg8: memref<1x32x32xf32, #tpu.memory_space<vmem>>, %arg9: memref<1x8x32xf32, #tpu.memory_space<vmem>>, %arg10: memref<1x32x64xf32, #tpu.memory_space<vmem>>, %arg11: memref<1x19x64xf32, #tpu.memory_space<vmem>>, %arg12: memref<1x32x32xf32, #tpu.memory_space<vmem>>, %arg13: memref<1x1x32xf32, #tpu.memory_space<vmem>>, %arg14: memref<1x1x32xf32, #tpu.memory_space<vmem>>, %arg15: memref<1x1x32xf32, #tpu.memory_space<vmem>>, %arg16: memref<1x32x64xf32, #tpu.memory_space<vmem>>, %arg17: memref<1x1x64xf32, #tpu.memory_space<vmem>>, %arg18: memref<1x64x32xf32, #tpu.memory_space<vmem>>, %arg19: memref<1x1x32xf32, #tpu.memory_space<vmem>>, %arg20: memref<1x1x32xf32, #tpu.memory_space<vmem>>, %arg21: memref<1x1x32xf32, #tpu.memory_space<vmem>>, %arg22: memref<1x32xf32, #tpu.memory_space<vmem>>, %arg23: memref<1x32xf32, #tpu.memory_space<vmem>>, %arg24: memref<32x8xf32, #tpu.memory_space<vmem>>, %arg25: memref<1x8xf32, #tpu.memory_space<vmem>>, %arg26: memref<2x8x8xf32, #tpu.memory_space<vmem>>, %arg27: memref<2x8x32xf32, #tpu.memory_space<vmem>>) attributes {dimension_semantics = [#tpu.dimension_semantics<arbitrary>], iteration_bounds = array<i64: 2>, scalar_prefetch = 0 : i64, scratch_operands = 1 : i64, tpu.core_type = #tpu.core_type<tc>, window_params = [{pipeline_mode = #tpu.pipeline_mode<synchronous>, transform_indices = @transform_0, window_bounds = array<i64: 2, 19, 32>}, {transform_indices = @transform_1, window_bounds = array<i64: 1, 32, 96>}, {transform_indices = @transform_2, window_bounds = array<i64: 1, 8, 96>}, {transform_indices = @transform_3, window_bounds = array<i64: 1, 32, 32>}, {transform_indices = @transform_4, window_bounds = array<i64: 1, 1, 32>}, {transform_indices = @transform_5, window_bounds = array<i64: 1, 1, 32>}, {transform_indices = @transform_6, window_bounds = array<i64: 1, 1, 32>}, {transform_indices = @transform_7, window_bounds = array<i64: 1, 32, 32>}, {transform_indices = @transform_8, window_bounds = array<i64: 1, 8, 32>}, {transform_indices = @transform_9, window_bounds = array<i64: 1, 32, 64>}, {transform_indices = @transform_10, window_bounds = array<i64: 1, 19, 64>}, {transform_indices = @transform_11, window_bounds = array<i64: 1, 32, 32>}, {transform_indices = @transform_12, window_bounds = array<i64: 1, 1, 32>}, {transform_indices = @transform_13, window_bounds = array<i64: 1, 1, 32>}, {transform_indices = @transform_14, window_bounds = array<i64: 1, 1, 32>}, {transform_indices = @transform_15, window_bounds = array<i64: 1, 32, 64>}, {transform_indices = @transform_16, window_bounds = array<i64: 1, 1, 64>}, {transform_indices = @transform_17, window_bounds = array<i64: 1, 64, 32>}, {transform_indices = @transform_18, window_bounds = array<i64: 1, 1, 32>}, {transform_indices = @transform_19, window_bounds = array<i64: 1, 1, 32>}, {transform_indices = @transform_20, window_bounds = array<i64: 1, 1, 32>}, {pipeline_mode = #tpu.pipeline_mode<synchronous>, transform_indices = @transform_21, window_bounds = array<i64: 1, 32>}, {pipeline_mode = #tpu.pipeline_mode<synchronous>, transform_indices = @transform_22, window_bounds = array<i64: 1, 32>}, {pipeline_mode = #tpu.pipeline_mode<synchronous>, transform_indices = @transform_23, window_bounds = array<i64: 32, 8>}, {pipeline_mode = #tpu.pipeline_mode<synchronous>, transform_indices = @transform_24, window_bounds = array<i64: 1, 8>}, {pipeline_mode = #tpu.pipeline_mode<synchronous>, transform_indices = @transform_25, window_bounds = array<i64: 2, 8, 8>}]} {
    %c0_i32 = arith.constant 0 : i32
    %0 = arith.cmpi eq, %arg0, %c0_i32 : i32
    %1 = arith.extui %0 : i1 to i32
    %c0_i32_0 = arith.constant 0 : i32
    %2 = arith.cmpi ne, %1, %c0_i32_0 : i32
    scf.if %2 {
      %cst_265 = arith.constant 0.000000e+00 : f32
      %555 = vector.broadcast %cst_265 : f32 to vector<2x8x32xf32>
      %c0_266 = arith.constant 0 : index
      %c0_267 = arith.constant 0 : index
      %c0_268 = arith.constant 0 : index
      %556 = vector.load %arg27[%c0_266, %c0_267, %c0_268] : memref<2x8x32xf32, #tpu.memory_space<vmem>>, vector<2x8x32xf32>
      tpu.vector_store %arg27[%c0_266, %c0_267, %c0_268], %555 {strides = array<i32>} : memref<2x8x32xf32, #tpu.memory_space<vmem>>, vector<2x8x32xf32>,
    } else {
    }
    %c0 = arith.constant 0 : index
    %c0_1 = arith.constant 0 : index
    %c0_2 = arith.constant 0 : index
    %3 = vector.load %arg27[%c0, %c0_1, %c0_2] : memref<2x8x32xf32, #tpu.memory_space<vmem>>, vector<1x8x32xf32>
    %4 = vector.shape_cast %3 : vector<1x8x32xf32> to vector<8x32xf32>
    %c0_3 = arith.constant 0 : index
    %c0_4 = arith.constant 0 : index
    %c0_5 = arith.constant 0 : index
    %5 = vector.load %arg1[%c0_3, %c0_4, %c0_5] : memref<2x19x32xf32, #tpu.memory_space<vmem>>, vector<1x19x32xf32>
    %6 = vector.shape_cast %5 : vector<1x19x32xf32> to vector<19x32xf32>
    %c0_6 = arith.constant 0 : index
    %c0_7 = arith.constant 0 : index
    %c0_8 = arith.constant 0 : index
    %7 = vector.load %arg2[%c0_6, %c0_7, %c0_8] : memref<1x32x96xf32, #tpu.memory_space<vmem>>, vector<1x32x96xf32>
    %8 = vector.shape_cast %7 : vector<1x32x96xf32> to vector<32x96xf32>
    %cst = arith.constant dense<0.000000e+00> : vector<8x96xf32>
    %9 = tpu.matmul %4, %8, %cst {dimension_numbers = #tpu.dot_dimension_numbers<[1], [0], [0], [1], [0, 0, 1, 1], [], []>} : vector<8x32xf32>, vector<32x96xf32>, vector<8x96xf32> -> vector<8x96xf32>
    %c0_9 = arith.constant 0 : index
    %c0_10 = arith.constant 0 : index
    %c0_11 = arith.constant 0 : index
    %10 = vector.load %arg3[%c0_9, %c0_10, %c0_11] : memref<1x8x96xf32, #tpu.memory_space<vmem>>, vector<1x8x96xf32>
    %11 = vector.shape_cast %10 : vector<1x8x96xf32> to vector<8x96xf32>
    %12 = arith.addf %9, %11 : vector<8x96xf32>
    %13 = vector.extract_strided_slice %12 {offsets = [0, 0], sizes = [8, 32], strides = [1, 1]} : vector<8x96xf32> to vector<8x32xf32>
    %14 = vector.extract_strided_slice %12 {offsets = [0, 32], sizes = [8, 32], strides = [1, 1]} : vector<8x96xf32> to vector<8x32xf32>
    %15 = vector.extract_strided_slice %12 {offsets = [0, 64], sizes = [8, 32], strides = [1, 1]} : vector<8x96xf32> to vector<8x32xf32>
    %16 = vector.extract_strided_slice %13 {offsets = [0, 0], sizes = [8, 8], strides = [1, 1]} : vector<8x32xf32> to vector<8x8xf32>
    %17 = vector.extract_strided_slice %14 {offsets = [0, 0], sizes = [8, 8], strides = [1, 1]} : vector<8x32xf32> to vector<8x8xf32>
    %cst_12 = arith.constant dense<0.000000e+00> : vector<8x8xf32>
    %18 = tpu.matmul %16, %17, %cst_12 {dimension_numbers = #tpu.dot_dimension_numbers<[1], [1], [0], [0], [0, 0, 1, 0], [], []>} : vector<8x8xf32>, vector<8x8xf32>, vector<8x8xf32> -> vector<8x8xf32>
    %cst_13 = arith.constant 0.353553385 : f32
    %19 = vector.broadcast %cst_13 : f32 to vector<8x8xf32>
    %20 = arith.mulf %18, %19 : vector<8x8xf32>
    %cst_14 = arith.constant dense<0xFF800000> : vector<8xf32>
    %21 = vector.multi_reduction <maximumf>, %20, %cst_14 [1] : vector<8x8xf32> to vector<8xf32>
    %22 = vector.shape_cast %21 : vector<8xf32> to vector<8x1xf32>
    %23 = vector.broadcast %22 : vector<8x1xf32> to vector<8x8xf32>
    %24 = arith.subf %20, %23 : vector<8x8xf32>
    %25 = math.exp %24 : vector<8x8xf32>
    %cst_15 = arith.constant dense<0.000000e+00> : vector<8xf32>
    %26 = vector.multi_reduction <add>, %25, %cst_15 [1] : vector<8x8xf32> to vector<8xf32>
    %27 = vector.shape_cast %26 : vector<8xf32> to vector<8x1xf32>
    %28 = tpu.reciprocal %27 {approx = true} : vector<8x1xf32> -> vector<8x1xf32>
    %29 = vector.broadcast %28 : vector<8x1xf32> to vector<8x8xf32>
    %30 = arith.mulf %25, %29 : vector<8x8xf32>
    %31 = vector.extract_strided_slice %15 {offsets = [0, 0], sizes = [8, 8], strides = [1, 1]} : vector<8x32xf32> to vector<8x8xf32>
    %cst_16 = arith.constant dense<0.000000e+00> : vector<8x8xf32>
    %32 = tpu.matmul %30, %31, %cst_16 {dimension_numbers = #tpu.dot_dimension_numbers<[1], [0], [0], [1], [0, 0, 1, 1], [], []>} : vector<8x8xf32>, vector<8x8xf32>, vector<8x8xf32> -> vector<8x8xf32>
    %33 = vector.extract_strided_slice %13 {offsets = [0, 8], sizes = [8, 8], strides = [1, 1]} : vector<8x32xf32> to vector<8x8xf32>
    %34 = vector.extract_strided_slice %14 {offsets = [0, 8], sizes = [8, 8], strides = [1, 1]} : vector<8x32xf32> to vector<8x8xf32>
    %cst_17 = arith.constant dense<0.000000e+00> : vector<8x8xf32>
    %35 = tpu.matmul %33, %34, %cst_17 {dimension_numbers = #tpu.dot_dimension_numbers<[1], [1], [0], [0], [0, 0, 1, 0], [], []>} : vector<8x8xf32>, vector<8x8xf32>, vector<8x8xf32> -> vector<8x8xf32>
    %cst_18 = arith.constant 0.353553385 : f32
    %36 = vector.broadcast %cst_18 : f32 to vector<8x8xf32>
    %37 = arith.mulf %35, %36 : vector<8x8xf32>
    %cst_19 = arith.constant dense<0xFF800000> : vector<8xf32>
    %38 = vector.multi_reduction <maximumf>, %37, %cst_19 [1] : vector<8x8xf32> to vector<8xf32>
    %39 = vector.shape_cast %38 : vector<8xf32> to vector<8x1xf32>
    %40 = vector.broadcast %39 : vector<8x1xf32> to vector<8x8xf32>
    %41 = arith.subf %37, %40 : vector<8x8xf32>
    %42 = math.exp %41 : vector<8x8xf32>
    %cst_20 = arith.constant dense<0.000000e+00> : vector<8xf32>
    %43 = vector.multi_reduction <add>, %42, %cst_20 [1] : vector<8x8xf32> to vector<8xf32>
    %44 = vector.shape_cast %43 : vector<8xf32> to vector<8x1xf32>
    %45 = tpu.reciprocal %44 {approx = true} : vector<8x1xf32> -> vector<8x1xf32>
    %46 = vector.broadcast %45 : vector<8x1xf32> to vector<8x8xf32>
    %47 = arith.mulf %42, %46 : vector<8x8xf32>
    %48 = vector.extract_strided_slice %15 {offsets = [0, 8], sizes = [8, 8], strides = [1, 1]} : vector<8x32xf32> to vector<8x8xf32>
    %cst_21 = arith.constant dense<0.000000e+00> : vector<8x8xf32>
    %49 = tpu.matmul %47, %48, %cst_21 {dimension_numbers = #tpu.dot_dimension_numbers<[1], [0], [0], [1], [0, 0, 1, 1], [], []>} : vector<8x8xf32>, vector<8x8xf32>, vector<8x8xf32> -> vector<8x8xf32>
    %50 = vector.extract_strided_slice %13 {offsets = [0, 16], sizes = [8, 8], strides = [1, 1]} : vector<8x32xf32> to vector<8x8xf32>
    %51 = vector.extract_strided_slice %14 {offsets = [0, 16], sizes = [8, 8], strides = [1, 1]} : vector<8x32xf32> to vector<8x8xf32>
    %cst_22 = arith.constant dense<0.000000e+00> : vector<8x8xf32>
    %52 = tpu.matmul %50, %51, %cst_22 {dimension_numbers = #tpu.dot_dimension_numbers<[1], [1], [0], [0], [0, 0, 1, 0], [], []>} : vector<8x8xf32>, vector<8x8xf32>, vector<8x8xf32> -> vector<8x8xf32>
    %cst_23 = arith.constant 0.353553385 : f32
    %53 = vector.broadcast %cst_23 : f32 to vector<8x8xf32>
    %54 = arith.mulf %52, %53 : vector<8x8xf32>
    %cst_24 = arith.constant dense<0xFF800000> : vector<8xf32>
    %55 = vector.multi_reduction <maximumf>, %54, %cst_24 [1] : vector<8x8xf32> to vector<8xf32>
    %56 = vector.shape_cast %55 : vector<8xf32> to vector<8x1xf32>
    %57 = vector.broadcast %56 : vector<8x1xf32> to vector<8x8xf32>
    %58 = arith.subf %54, %57 : vector<8x8xf32>
    %59 = math.exp %58 : vector<8x8xf32>
    %cst_25 = arith.constant dense<0.000000e+00> : vector<8xf32>
    %60 = vector.multi_reduction <add>, %59, %cst_25 [1] : vector<8x8xf32> to vector<8xf32>
    %61 = vector.shape_cast %60 : vector<8xf32> to vector<8x1xf32>
    %62 = tpu.reciprocal %61 {approx = true} : vector<8x1xf32> -> vector<8x1xf32>
    %63 = vector.broadcast %62 : vector<8x1xf32> to vector<8x8xf32>
    %64 = arith.mulf %59, %63 : vector<8x8xf32>
    %65 = vector.extract_strided_slice %15 {offsets = [0, 16], sizes = [8, 8], strides = [1, 1]} : vector<8x32xf32> to vector<8x8xf32>
    %cst_26 = arith.constant dense<0.000000e+00> : vector<8x8xf32>
    %66 = tpu.matmul %64, %65, %cst_26 {dimension_numbers = #tpu.dot_dimension_numbers<[1], [0], [0], [1], [0, 0, 1, 1], [], []>} : vector<8x8xf32>, vector<8x8xf32>, vector<8x8xf32> -> vector<8x8xf32>
    %67 = vector.extract_strided_slice %13 {offsets = [0, 24], sizes = [8, 8], strides = [1, 1]} : vector<8x32xf32> to vector<8x8xf32>
    %68 = vector.extract_strided_slice %14 {offsets = [0, 24], sizes = [8, 8], strides = [1, 1]} : vector<8x32xf32> to vector<8x8xf32>
    %cst_27 = arith.constant dense<0.000000e+00> : vector<8x8xf32>
    %69 = tpu.matmul %67, %68, %cst_27 {dimension_numbers = #tpu.dot_dimension_numbers<[1], [1], [0], [0], [0, 0, 1, 0], [], []>} : vector<8x8xf32>, vector<8x8xf32>, vector<8x8xf32> -> vector<8x8xf32>
    %cst_28 = arith.constant 0.353553385 : f32
    %70 = vector.broadcast %cst_28 : f32 to vector<8x8xf32>
    %71 = arith.mulf %69, %70 : vector<8x8xf32>
    %cst_29 = arith.constant dense<0xFF800000> : vector<8xf32>
    %72 = vector.multi_reduction <maximumf>, %71, %cst_29 [1] : vector<8x8xf32> to vector<8xf32>
    %73 = vector.shape_cast %72 : vector<8xf32> to vector<8x1xf32>
    %74 = vector.broadcast %73 : vector<8x1xf32> to vector<8x8xf32>
    %75 = arith.subf %71, %74 : vector<8x8xf32>
    %76 = math.exp %75 : vector<8x8xf32>
    %cst_30 = arith.constant dense<0.000000e+00> : vector<8xf32>
    %77 = vector.multi_reduction <add>, %76, %cst_30 [1] : vector<8x8xf32> to vector<8xf32>
    %78 = vector.shape_cast %77 : vector<8xf32> to vector<8x1xf32>
    %79 = tpu.reciprocal %78 {approx = true} : vector<8x1xf32> -> vector<8x1xf32>
    %80 = vector.broadcast %79 : vector<8x1xf32> to vector<8x8xf32>
    %81 = arith.mulf %76, %80 : vector<8x8xf32>
    %82 = vector.extract_strided_slice %15 {offsets = [0, 24], sizes = [8, 8], strides = [1, 1]} : vector<8x32xf32> to vector<8x8xf32>
    %cst_31 = arith.constant dense<0.000000e+00> : vector<8x8xf32>
    %83 = tpu.matmul %81, %82, %cst_31 {dimension_numbers = #tpu.dot_dimension_numbers<[1], [0], [0], [1], [0, 0, 1, 1], [], []>} : vector<8x8xf32>, vector<8x8xf32>, vector<8x8xf32> -> vector<8x8xf32>
    %84 = tpu.concatenate %32, %49, %66, %83 in 1 : vector<8x8xf32>, vector<8x8xf32>, vector<8x8xf32>, vector<8x8xf32> -> vector<8x32xf32>
    %c0_32 = arith.constant 0 : index
    %c0_33 = arith.constant 0 : index
    %c0_34 = arith.constant 0 : index
    %85 = vector.load %arg4[%c0_32, %c0_33, %c0_34] : memref<1x32x32xf32, #tpu.memory_space<vmem>>, vector<1x32x32xf32>
    %86 = vector.shape_cast %85 : vector<1x32x32xf32> to vector<32x32xf32>
    %cst_35 = arith.constant dense<0.000000e+00> : vector<8x32xf32>
    %87 = tpu.matmul %84, %86, %cst_35 {dimension_numbers = #tpu.dot_dimension_numbers<[1], [0], [0], [1], [0, 0, 1, 1], [], []>} : vector<8x32xf32>, vector<32x32xf32>, vector<8x32xf32> -> vector<8x32xf32>
    %c0_36 = arith.constant 0 : index
    %c0_37 = arith.constant 0 : index
    %c0_38 = arith.constant 0 : index
    %88 = vector.load %arg5[%c0_36, %c0_37, %c0_38] : memref<1x1x32xf32, #tpu.memory_space<vmem>>, vector<1x1x32xf32>
    %89 = vector.shape_cast %88 : vector<1x1x32xf32> to vector<1x32xf32>
    %90 = vector.broadcast %89 : vector<1x32xf32> to vector<8x32xf32>
    %91 = arith.addf %87, %90 : vector<8x32xf32>
    %92 = arith.addf %4, %91 : vector<8x32xf32>
    %c0_39 = arith.constant 0 : index
    %c0_40 = arith.constant 0 : index
    %c0_41 = arith.constant 0 : index
    %93 = vector.load %arg6[%c0_39, %c0_40, %c0_41] : memref<1x1x32xf32, #tpu.memory_space<vmem>>, vector<1x1x32xf32>
    %94 = vector.shape_cast %93 : vector<1x1x32xf32> to vector<1x32xf32>
    %c0_42 = arith.constant 0 : index
    %c0_43 = arith.constant 0 : index
    %c0_44 = arith.constant 0 : index
    %95 = vector.load %arg7[%c0_42, %c0_43, %c0_44] : memref<1x1x32xf32, #tpu.memory_space<vmem>>, vector<1x1x32xf32>
    %96 = vector.shape_cast %95 : vector<1x1x32xf32> to vector<1x32xf32>
    %cst_45 = arith.constant dense<0.000000e+00> : vector<8xf32>
    %97 = vector.multi_reduction <add>, %92, %cst_45 [1] : vector<8x32xf32> to vector<8xf32>
    %98 = vector.shape_cast %97 : vector<8xf32> to vector<8x1xf32>
    %cst_46 = arith.constant 3.200000e+01 : f32
    %99 = vector.broadcast %cst_46 : f32 to vector<8x1xf32>
    %100 = arith.divf %98, %99 : vector<8x1xf32>
    %101 = vector.broadcast %100 : vector<8x1xf32> to vector<8x32xf32>
    %102 = arith.subf %92, %101 : vector<8x32xf32>
    %103 = arith.mulf %102, %102 : vector<8x32xf32>
    %cst_47 = arith.constant dense<0.000000e+00> : vector<8xf32>
    %104 = vector.multi_reduction <add>, %103, %cst_47 [1] : vector<8x32xf32> to vector<8xf32>
    %105 = vector.shape_cast %104 : vector<8xf32> to vector<8x1xf32>
    %cst_48 = arith.constant 3.200000e+01 : f32
    %106 = vector.broadcast %cst_48 : f32 to vector<8x1xf32>
    %107 = arith.divf %105, %106 : vector<8x1xf32>
    %cst_49 = arith.constant 9.99999974E-6 : f32
    %108 = vector.broadcast %cst_49 : f32 to vector<8x1xf32>
    %109 = arith.addf %107, %108 : vector<8x1xf32>
    %110 = math.rsqrt %109 : vector<8x1xf32>
    %111 = vector.broadcast %110 : vector<8x1xf32> to vector<8x32xf32>
    %112 = arith.mulf %102, %111 : vector<8x32xf32>
    %113 = vector.broadcast %94 : vector<1x32xf32> to vector<8x32xf32>
    %114 = arith.mulf %112, %113 : vector<8x32xf32>
    %115 = vector.broadcast %96 : vector<1x32xf32> to vector<8x32xf32>
    %116 = arith.addf %114, %115 : vector<8x32xf32>
    %c0_50 = arith.constant 0 : index
    %c0_51 = arith.constant 0 : index
    %c0_52 = arith.constant 0 : index
    %117 = vector.load %arg8[%c0_50, %c0_51, %c0_52] : memref<1x32x32xf32, #tpu.memory_space<vmem>>, vector<1x32x32xf32>
    %118 = vector.shape_cast %117 : vector<1x32x32xf32> to vector<32x32xf32>
    %cst_53 = arith.constant dense<0.000000e+00> : vector<8x32xf32>
    %119 = tpu.matmul %116, %118, %cst_53 {dimension_numbers = #tpu.dot_dimension_numbers<[1], [0], [0], [1], [0, 0, 1, 1], [], []>} : vector<8x32xf32>, vector<32x32xf32>, vector<8x32xf32> -> vector<8x32xf32>
    %c0_54 = arith.constant 0 : index
    %c0_55 = arith.constant 0 : index
    %c0_56 = arith.constant 0 : index
    %120 = vector.load %arg9[%c0_54, %c0_55, %c0_56] : memref<1x8x32xf32, #tpu.memory_space<vmem>>, vector<1x8x32xf32>
    %121 = vector.shape_cast %120 : vector<1x8x32xf32> to vector<8x32xf32>
    %122 = arith.addf %119, %121 : vector<8x32xf32>
    %c0_57 = arith.constant 0 : index
    %c0_58 = arith.constant 0 : index
    %c0_59 = arith.constant 0 : index
    %123 = vector.load %arg10[%c0_57, %c0_58, %c0_59] : memref<1x32x64xf32, #tpu.memory_space<vmem>>, vector<1x32x64xf32>
    %124 = vector.shape_cast %123 : vector<1x32x64xf32> to vector<32x64xf32>
    %cst_60 = arith.constant dense<0.000000e+00> : vector<19x64xf32>
    %125 = tpu.matmul %6, %124, %cst_60 {dimension_numbers = #tpu.dot_dimension_numbers<[1], [0], [0], [1], [0, 0, 1, 1], [], []>} : vector<19x32xf32>, vector<32x64xf32>, vector<19x64xf32> -> vector<19x64xf32>
    %c0_61 = arith.constant 0 : index
    %c0_62 = arith.constant 0 : index
    %c0_63 = arith.constant 0 : index
    %126 = vector.load %arg11[%c0_61, %c0_62, %c0_63] : memref<1x19x64xf32, #tpu.memory_space<vmem>>, vector<1x19x64xf32>
    %127 = vector.shape_cast %126 : vector<1x19x64xf32> to vector<19x64xf32>
    %128 = arith.addf %125, %127 : vector<19x64xf32>
    %129 = vector.extract_strided_slice %128 {offsets = [0, 0], sizes = [19, 32], strides = [1, 1]} : vector<19x64xf32> to vector<19x32xf32>
    %130 = vector.extract_strided_slice %128 {offsets = [0, 32], sizes = [19, 32], strides = [1, 1]} : vector<19x64xf32> to vector<19x32xf32>
    %131 = vector.extract_strided_slice %122 {offsets = [0, 0], sizes = [8, 8], strides = [1, 1]} : vector<8x32xf32> to vector<8x8xf32>
    %132 = vector.extract_strided_slice %129 {offsets = [0, 0], sizes = [19, 8], strides = [1, 1]} : vector<19x32xf32> to vector<19x8xf32>
    %cst_64 = arith.constant dense<0.000000e+00> : vector<8x19xf32>
    %133 = tpu.matmul %131, %132, %cst_64 {dimension_numbers = #tpu.dot_dimension_numbers<[1], [1], [0], [0], [0, 0, 1, 0], [], []>} : vector<8x8xf32>, vector<19x8xf32>, vector<8x19xf32> -> vector<8x19xf32>
    %cst_65 = arith.constant 0.353553385 : f32
    %134 = vector.broadcast %cst_65 : f32 to vector<8x19xf32>
    %135 = arith.mulf %133, %134 : vector<8x19xf32>
    %cst_66 = arith.constant dense<0xFF800000> : vector<8xf32>
    %136 = vector.multi_reduction <maximumf>, %135, %cst_66 [1] : vector<8x19xf32> to vector<8xf32>
    %137 = vector.shape_cast %136 : vector<8xf32> to vector<8x1xf32>
    %138 = vector.broadcast %137 : vector<8x1xf32> to vector<8x19xf32>
    %139 = arith.subf %135, %138 : vector<8x19xf32>
    %140 = math.exp %139 : vector<8x19xf32>
    %cst_67 = arith.constant dense<0.000000e+00> : vector<8xf32>
    %141 = vector.multi_reduction <add>, %140, %cst_67 [1] : vector<8x19xf32> to vector<8xf32>
    %142 = vector.shape_cast %141 : vector<8xf32> to vector<8x1xf32>
    %143 = tpu.reciprocal %142 {approx = true} : vector<8x1xf32> -> vector<8x1xf32>
    %144 = vector.broadcast %143 : vector<8x1xf32> to vector<8x19xf32>
    %145 = arith.mulf %140, %144 : vector<8x19xf32>
    %146 = vector.extract_strided_slice %130 {offsets = [0, 0], sizes = [19, 8], strides = [1, 1]} : vector<19x32xf32> to vector<19x8xf32>
    %cst_68 = arith.constant dense<0.000000e+00> : vector<8x8xf32>
    %147 = tpu.matmul %145, %146, %cst_68 {dimension_numbers = #tpu.dot_dimension_numbers<[1], [0], [0], [1], [0, 0, 1, 1], [], []>} : vector<8x19xf32>, vector<19x8xf32>, vector<8x8xf32> -> vector<8x8xf32>
    %148 = vector.extract_strided_slice %122 {offsets = [0, 8], sizes = [8, 8], strides = [1, 1]} : vector<8x32xf32> to vector<8x8xf32>
    %149 = vector.extract_strided_slice %129 {offsets = [0, 8], sizes = [19, 8], strides = [1, 1]} : vector<19x32xf32> to vector<19x8xf32>
    %cst_69 = arith.constant dense<0.000000e+00> : vector<8x19xf32>
    %150 = tpu.matmul %148, %149, %cst_69 {dimension_numbers = #tpu.dot_dimension_numbers<[1], [1], [0], [0], [0, 0, 1, 0], [], []>} : vector<8x8xf32>, vector<19x8xf32>, vector<8x19xf32> -> vector<8x19xf32>
    %cst_70 = arith.constant 0.353553385 : f32
    %151 = vector.broadcast %cst_70 : f32 to vector<8x19xf32>
    %152 = arith.mulf %150, %151 : vector<8x19xf32>
    %cst_71 = arith.constant dense<0xFF800000> : vector<8xf32>
    %153 = vector.multi_reduction <maximumf>, %152, %cst_71 [1] : vector<8x19xf32> to vector<8xf32>
    %154 = vector.shape_cast %153 : vector<8xf32> to vector<8x1xf32>
    %155 = vector.broadcast %154 : vector<8x1xf32> to vector<8x19xf32>
    %156 = arith.subf %152, %155 : vector<8x19xf32>
    %157 = math.exp %156 : vector<8x19xf32>
    %cst_72 = arith.constant dense<0.000000e+00> : vector<8xf32>
    %158 = vector.multi_reduction <add>, %157, %cst_72 [1] : vector<8x19xf32> to vector<8xf32>
    %159 = vector.shape_cast %158 : vector<8xf32> to vector<8x1xf32>
    %160 = tpu.reciprocal %159 {approx = true} : vector<8x1xf32> -> vector<8x1xf32>
    %161 = vector.broadcast %160 : vector<8x1xf32> to vector<8x19xf32>
    %162 = arith.mulf %157, %161 : vector<8x19xf32>
    %163 = vector.extract_strided_slice %130 {offsets = [0, 8], sizes = [19, 8], strides = [1, 1]} : vector<19x32xf32> to vector<19x8xf32>
    %cst_73 = arith.constant dense<0.000000e+00> : vector<8x8xf32>
    %164 = tpu.matmul %162, %163, %cst_73 {dimension_numbers = #tpu.dot_dimension_numbers<[1], [0], [0], [1], [0, 0, 1, 1], [], []>} : vector<8x19xf32>, vector<19x8xf32>, vector<8x8xf32> -> vector<8x8xf32>
    %165 = vector.extract_strided_slice %122 {offsets = [0, 16], sizes = [8, 8], strides = [1, 1]} : vector<8x32xf32> to vector<8x8xf32>
    %166 = vector.extract_strided_slice %129 {offsets = [0, 16], sizes = [19, 8], strides = [1, 1]} : vector<19x32xf32> to vector<19x8xf32>
    %cst_74 = arith.constant dense<0.000000e+00> : vector<8x19xf32>
    %167 = tpu.matmul %165, %166, %cst_74 {dimension_numbers = #tpu.dot_dimension_numbers<[1], [1], [0], [0], [0, 0, 1, 0], [], []>} : vector<8x8xf32>, vector<19x8xf32>, vector<8x19xf32> -> vector<8x19xf32>
    %cst_75 = arith.constant 0.353553385 : f32
    %168 = vector.broadcast %cst_75 : f32 to vector<8x19xf32>
    %169 = arith.mulf %167, %168 : vector<8x19xf32>
    %cst_76 = arith.constant dense<0xFF800000> : vector<8xf32>
    %170 = vector.multi_reduction <maximumf>, %169, %cst_76 [1] : vector<8x19xf32> to vector<8xf32>
    %171 = vector.shape_cast %170 : vector<8xf32> to vector<8x1xf32>
    %172 = vector.broadcast %171 : vector<8x1xf32> to vector<8x19xf32>
    %173 = arith.subf %169, %172 : vector<8x19xf32>
    %174 = math.exp %173 : vector<8x19xf32>
    %cst_77 = arith.constant dense<0.000000e+00> : vector<8xf32>
    %175 = vector.multi_reduction <add>, %174, %cst_77 [1] : vector<8x19xf32> to vector<8xf32>
    %176 = vector.shape_cast %175 : vector<8xf32> to vector<8x1xf32>
    %177 = tpu.reciprocal %176 {approx = true} : vector<8x1xf32> -> vector<8x1xf32>
    %178 = vector.broadcast %177 : vector<8x1xf32> to vector<8x19xf32>
    %179 = arith.mulf %174, %178 : vector<8x19xf32>
    %180 = vector.extract_strided_slice %130 {offsets = [0, 16], sizes = [19, 8], strides = [1, 1]} : vector<19x32xf32> to vector<19x8xf32>
    %cst_78 = arith.constant dense<0.000000e+00> : vector<8x8xf32>
    %181 = tpu.matmul %179, %180, %cst_78 {dimension_numbers = #tpu.dot_dimension_numbers<[1], [0], [0], [1], [0, 0, 1, 1], [], []>} : vector<8x19xf32>, vector<19x8xf32>, vector<8x8xf32> -> vector<8x8xf32>
    %182 = vector.extract_strided_slice %122 {offsets = [0, 24], sizes = [8, 8], strides = [1, 1]} : vector<8x32xf32> to vector<8x8xf32>
    %183 = vector.extract_strided_slice %129 {offsets = [0, 24], sizes = [19, 8], strides = [1, 1]} : vector<19x32xf32> to vector<19x8xf32>
    %cst_79 = arith.constant dense<0.000000e+00> : vector<8x19xf32>
    %184 = tpu.matmul %182, %183, %cst_79 {dimension_numbers = #tpu.dot_dimension_numbers<[1], [1], [0], [0], [0, 0, 1, 0], [], []>} : vector<8x8xf32>, vector<19x8xf32>, vector<8x19xf32> -> vector<8x19xf32>
    %cst_80 = arith.constant 0.353553385 : f32
    %185 = vector.broadcast %cst_80 : f32 to vector<8x19xf32>
    %186 = arith.mulf %184, %185 : vector<8x19xf32>
    %cst_81 = arith.constant dense<0xFF800000> : vector<8xf32>
    %187 = vector.multi_reduction <maximumf>, %186, %cst_81 [1] : vector<8x19xf32> to vector<8xf32>
    %188 = vector.shape_cast %187 : vector<8xf32> to vector<8x1xf32>
    %189 = vector.broadcast %188 : vector<8x1xf32> to vector<8x19xf32>
    %190 = arith.subf %186, %189 : vector<8x19xf32>
    %191 = math.exp %190 : vector<8x19xf32>
    %cst_82 = arith.constant dense<0.000000e+00> : vector<8xf32>
    %192 = vector.multi_reduction <add>, %191, %cst_82 [1] : vector<8x19xf32> to vector<8xf32>
    %193 = vector.shape_cast %192 : vector<8xf32> to vector<8x1xf32>
    %194 = tpu.reciprocal %193 {approx = true} : vector<8x1xf32> -> vector<8x1xf32>
    %195 = vector.broadcast %194 : vector<8x1xf32> to vector<8x19xf32>
    %196 = arith.mulf %191, %195 : vector<8x19xf32>
    %197 = vector.extract_strided_slice %130 {offsets = [0, 24], sizes = [19, 8], strides = [1, 1]} : vector<19x32xf32> to vector<19x8xf32>
    %cst_83 = arith.constant dense<0.000000e+00> : vector<8x8xf32>
    %198 = tpu.matmul %196, %197, %cst_83 {dimension_numbers = #tpu.dot_dimension_numbers<[1], [0], [0], [1], [0, 0, 1, 1], [], []>} : vector<8x19xf32>, vector<19x8xf32>, vector<8x8xf32> -> vector<8x8xf32>
    %199 = tpu.concatenate %147, %164, %181, %198 in 1 : vector<8x8xf32>, vector<8x8xf32>, vector<8x8xf32>, vector<8x8xf32> -> vector<8x32xf32>
    %c0_84 = arith.constant 0 : index
    %c0_85 = arith.constant 0 : index
    %c0_86 = arith.constant 0 : index
    %200 = vector.load %arg12[%c0_84, %c0_85, %c0_86] : memref<1x32x32xf32, #tpu.memory_space<vmem>>, vector<1x32x32xf32>
    %201 = vector.shape_cast %200 : vector<1x32x32xf32> to vector<32x32xf32>
    %cst_87 = arith.constant dense<0.000000e+00> : vector<8x32xf32>
    %202 = tpu.matmul %199, %201, %cst_87 {dimension_numbers = #tpu.dot_dimension_numbers<[1], [0], [0], [1], [0, 0, 1, 1], [], []>} : vector<8x32xf32>, vector<32x32xf32>, vector<8x32xf32> -> vector<8x32xf32>
    %c0_88 = arith.constant 0 : index
    %c0_89 = arith.constant 0 : index
    %c0_90 = arith.constant 0 : index
    %203 = vector.load %arg13[%c0_88, %c0_89, %c0_90] : memref<1x1x32xf32, #tpu.memory_space<vmem>>, vector<1x1x32xf32>
    %204 = vector.shape_cast %203 : vector<1x1x32xf32> to vector<1x32xf32>
    %205 = vector.broadcast %204 : vector<1x32xf32> to vector<8x32xf32>
    %206 = arith.addf %202, %205 : vector<8x32xf32>
    %207 = arith.addf %116, %206 : vector<8x32xf32>
    %c0_91 = arith.constant 0 : index
    %c0_92 = arith.constant 0 : index
    %c0_93 = arith.constant 0 : index
    %208 = vector.load %arg14[%c0_91, %c0_92, %c0_93] : memref<1x1x32xf32, #tpu.memory_space<vmem>>, vector<1x1x32xf32>
    %209 = vector.shape_cast %208 : vector<1x1x32xf32> to vector<1x32xf32>
    %c0_94 = arith.constant 0 : index
    %c0_95 = arith.constant 0 : index
    %c0_96 = arith.constant 0 : index
    %210 = vector.load %arg15[%c0_94, %c0_95, %c0_96] : memref<1x1x32xf32, #tpu.memory_space<vmem>>, vector<1x1x32xf32>
    %211 = vector.shape_cast %210 : vector<1x1x32xf32> to vector<1x32xf32>
    %cst_97 = arith.constant dense<0.000000e+00> : vector<8xf32>
    %212 = vector.multi_reduction <add>, %207, %cst_97 [1] : vector<8x32xf32> to vector<8xf32>
    %213 = vector.shape_cast %212 : vector<8xf32> to vector<8x1xf32>
    %cst_98 = arith.constant 3.200000e+01 : f32
    %214 = vector.broadcast %cst_98 : f32 to vector<8x1xf32>
    %215 = arith.divf %213, %214 : vector<8x1xf32>
    %216 = vector.broadcast %215 : vector<8x1xf32> to vector<8x32xf32>
    %217 = arith.subf %207, %216 : vector<8x32xf32>
    %218 = arith.mulf %217, %217 : vector<8x32xf32>
    %cst_99 = arith.constant dense<0.000000e+00> : vector<8xf32>
    %219 = vector.multi_reduction <add>, %218, %cst_99 [1] : vector<8x32xf32> to vector<8xf32>
    %220 = vector.shape_cast %219 : vector<8xf32> to vector<8x1xf32>
    %cst_100 = arith.constant 3.200000e+01 : f32
    %221 = vector.broadcast %cst_100 : f32 to vector<8x1xf32>
    %222 = arith.divf %220, %221 : vector<8x1xf32>
    %cst_101 = arith.constant 9.99999974E-6 : f32
    %223 = vector.broadcast %cst_101 : f32 to vector<8x1xf32>
    %224 = arith.addf %222, %223 : vector<8x1xf32>
    %225 = math.rsqrt %224 : vector<8x1xf32>
    %226 = vector.broadcast %225 : vector<8x1xf32> to vector<8x32xf32>
    %227 = arith.mulf %217, %226 : vector<8x32xf32>
    %228 = vector.broadcast %209 : vector<1x32xf32> to vector<8x32xf32>
    %229 = arith.mulf %227, %228 : vector<8x32xf32>
    %230 = vector.broadcast %211 : vector<1x32xf32> to vector<8x32xf32>
    %231 = arith.addf %229, %230 : vector<8x32xf32>
    %c0_102 = arith.constant 0 : index
    %c0_103 = arith.constant 0 : index
    %c0_104 = arith.constant 0 : index
    %232 = vector.load %arg16[%c0_102, %c0_103, %c0_104] : memref<1x32x64xf32, #tpu.memory_space<vmem>>, vector<1x32x64xf32>
    %233 = vector.shape_cast %232 : vector<1x32x64xf32> to vector<32x64xf32>
    %cst_105 = arith.constant dense<0.000000e+00> : vector<8x64xf32>
    %234 = tpu.matmul %231, %233, %cst_105 {dimension_numbers = #tpu.dot_dimension_numbers<[1], [0], [0], [1], [0, 0, 1, 1], [], []>} : vector<8x32xf32>, vector<32x64xf32>, vector<8x64xf32> -> vector<8x64xf32>
    %c0_106 = arith.constant 0 : index
    %c0_107 = arith.constant 0 : index
    %c0_108 = arith.constant 0 : index
    %235 = vector.load %arg17[%c0_106, %c0_107, %c0_108] : memref<1x1x64xf32, #tpu.memory_space<vmem>>, vector<1x1x64xf32>
    %236 = vector.shape_cast %235 : vector<1x1x64xf32> to vector<1x64xf32>
    %237 = vector.broadcast %236 : vector<1x64xf32> to vector<8x64xf32>
    %238 = arith.addf %234, %237 : vector<8x64xf32>
    %cst_109 = arith.constant 0.000000e+00 : f32
    %239 = vector.broadcast %cst_109 : f32 to vector<8x64xf32>
    %240 = arith.maximumf %238, %239 : vector<8x64xf32>
    %c0_110 = arith.constant 0 : index
    %c0_111 = arith.constant 0 : index
    %c0_112 = arith.constant 0 : index
    %241 = vector.load %arg18[%c0_110, %c0_111, %c0_112] : memref<1x64x32xf32, #tpu.memory_space<vmem>>, vector<1x64x32xf32>
    %242 = vector.shape_cast %241 : vector<1x64x32xf32> to vector<64x32xf32>
    %cst_113 = arith.constant dense<0.000000e+00> : vector<8x32xf32>
    %243 = tpu.matmul %240, %242, %cst_113 {dimension_numbers = #tpu.dot_dimension_numbers<[1], [0], [0], [1], [0, 0, 1, 1], [], []>} : vector<8x64xf32>, vector<64x32xf32>, vector<8x32xf32> -> vector<8x32xf32>
    %c0_114 = arith.constant 0 : index
    %c0_115 = arith.constant 0 : index
    %c0_116 = arith.constant 0 : index
    %244 = vector.load %arg19[%c0_114, %c0_115, %c0_116] : memref<1x1x32xf32, #tpu.memory_space<vmem>>, vector<1x1x32xf32>
    %245 = vector.shape_cast %244 : vector<1x1x32xf32> to vector<1x32xf32>
    %246 = vector.broadcast %245 : vector<1x32xf32> to vector<8x32xf32>
    %247 = arith.addf %243, %246 : vector<8x32xf32>
    %248 = arith.addf %231, %247 : vector<8x32xf32>
    %c0_117 = arith.constant 0 : index
    %c0_118 = arith.constant 0 : index
    %c0_119 = arith.constant 0 : index
    %249 = vector.load %arg20[%c0_117, %c0_118, %c0_119] : memref<1x1x32xf32, #tpu.memory_space<vmem>>, vector<1x1x32xf32>
    %250 = vector.shape_cast %249 : vector<1x1x32xf32> to vector<1x32xf32>
    %c0_120 = arith.constant 0 : index
    %c0_121 = arith.constant 0 : index
    %c0_122 = arith.constant 0 : index
    %251 = vector.load %arg21[%c0_120, %c0_121, %c0_122] : memref<1x1x32xf32, #tpu.memory_space<vmem>>, vector<1x1x32xf32>
    %252 = vector.shape_cast %251 : vector<1x1x32xf32> to vector<1x32xf32>
    %cst_123 = arith.constant dense<0.000000e+00> : vector<8xf32>
    %253 = vector.multi_reduction <add>, %248, %cst_123 [1] : vector<8x32xf32> to vector<8xf32>
    %254 = vector.shape_cast %253 : vector<8xf32> to vector<8x1xf32>
    %cst_124 = arith.constant 3.200000e+01 : f32
    %255 = vector.broadcast %cst_124 : f32 to vector<8x1xf32>
    %256 = arith.divf %254, %255 : vector<8x1xf32>
    %257 = vector.broadcast %256 : vector<8x1xf32> to vector<8x32xf32>
    %258 = arith.subf %248, %257 : vector<8x32xf32>
    %259 = arith.mulf %258, %258 : vector<8x32xf32>
    %cst_125 = arith.constant dense<0.000000e+00> : vector<8xf32>
    %260 = vector.multi_reduction <add>, %259, %cst_125 [1] : vector<8x32xf32> to vector<8xf32>
    %261 = vector.shape_cast %260 : vector<8xf32> to vector<8x1xf32>
    %cst_126 = arith.constant 3.200000e+01 : f32
    %262 = vector.broadcast %cst_126 : f32 to vector<8x1xf32>
    %263 = arith.divf %261, %262 : vector<8x1xf32>
    %cst_127 = arith.constant 9.99999974E-6 : f32
    %264 = vector.broadcast %cst_127 : f32 to vector<8x1xf32>
    %265 = arith.addf %263, %264 : vector<8x1xf32>
    %266 = math.rsqrt %265 : vector<8x1xf32>
    %267 = vector.broadcast %266 : vector<8x1xf32> to vector<8x32xf32>
    %268 = arith.mulf %258, %267 : vector<8x32xf32>
    %269 = vector.broadcast %250 : vector<1x32xf32> to vector<8x32xf32>
    %270 = arith.mulf %268, %269 : vector<8x32xf32>
    %271 = vector.broadcast %252 : vector<1x32xf32> to vector<8x32xf32>
    %272 = arith.addf %270, %271 : vector<8x32xf32>
    %c0_128 = arith.constant 0 : index
    %c0_129 = arith.constant 0 : index
    %c0_130 = arith.constant 0 : index
    %273 = vector.load %arg27[%c0_128, %c0_129, %c0_130] : memref<2x8x32xf32, #tpu.memory_space<vmem>>, vector<1x8x32xf32>
    %274 = vector.shape_cast %273 : vector<1x8x32xf32> to vector<8x32xf32>
    %275 = vector.shape_cast %272 : vector<8x32xf32> to vector<1x8x32xf32>
    tpu.vector_store %arg27[%c0_128, %c0_129, %c0_130], %275 {strides = array<i32>} : memref<2x8x32xf32, #tpu.memory_space<vmem>>, vector<1x8x32xf32>,
    %c1_i32 = arith.constant 1 : i32
    %276 = arith.cmpi eq, %arg0, %c1_i32 : i32
    %277 = arith.extui %276 : i1 to i32
    %c0_i32_131 = arith.constant 0 : i32
    %278 = arith.cmpi ne, %277, %c0_i32_131 : i32
    scf.if %278 {
      %c0_265 = arith.constant 0 : index
      %c0_266 = arith.constant 0 : index
      %555 = vector.load %arg22[%c0_265, %c0_266] : memref<1x32xf32, #tpu.memory_space<vmem>>, vector<1x32xf32>
      %c0_267 = arith.constant 0 : index
      %c0_268 = arith.constant 0 : index
      %556 = vector.load %arg23[%c0_267, %c0_268] : memref<1x32xf32, #tpu.memory_space<vmem>>, vector<1x32xf32>
      %cst_269 = arith.constant dense<0.000000e+00> : vector<8xf32>
      %557 = vector.multi_reduction <add>, %272, %cst_269 [1] : vector<8x32xf32> to vector<8xf32>
      %558 = vector.shape_cast %557 : vector<8xf32> to vector<8x1xf32>
      %cst_270 = arith.constant 3.200000e+01 : f32
      %559 = vector.broadcast %cst_270 : f32 to vector<8x1xf32>
      %560 = arith.divf %558, %559 : vector<8x1xf32>
      %561 = vector.broadcast %560 : vector<8x1xf32> to vector<8x32xf32>
      %562 = arith.subf %272, %561 : vector<8x32xf32>
      %563 = arith.mulf %562, %562 : vector<8x32xf32>
      %cst_271 = arith.constant dense<0.000000e+00> : vector<8xf32>
      %564 = vector.multi_reduction <add>, %563, %cst_271 [1] : vector<8x32xf32> to vector<8xf32>
      %565 = vector.shape_cast %564 : vector<8xf32> to vector<8x1xf32>
      %cst_272 = arith.constant 3.200000e+01 : f32
      %566 = vector.broadcast %cst_272 : f32 to vector<8x1xf32>
      %567 = arith.divf %565, %566 : vector<8x1xf32>
      %cst_273 = arith.constant 9.99999974E-6 : f32
      %568 = vector.broadcast %cst_273 : f32 to vector<8x1xf32>
      %569 = arith.addf %567, %568 : vector<8x1xf32>
      %570 = math.rsqrt %569 : vector<8x1xf32>
      %571 = vector.broadcast %570 : vector<8x1xf32> to vector<8x32xf32>
      %572 = arith.mulf %562, %571 : vector<8x32xf32>
      %573 = vector.broadcast %555 : vector<1x32xf32> to vector<8x32xf32>
      %574 = arith.mulf %572, %573 : vector<8x32xf32>
      %575 = vector.broadcast %556 : vector<1x32xf32> to vector<8x32xf32>
      %576 = arith.addf %574, %575 : vector<8x32xf32>
      %c0_274 = arith.constant 0 : index
      %c0_275 = arith.constant 0 : index
      %577 = vector.load %arg24[%c0_274, %c0_275] : memref<32x8xf32, #tpu.memory_space<vmem>>, vector<32x8xf32>
      %cst_276 = arith.constant dense<0.000000e+00> : vector<8x8xf32>
      %578 = tpu.matmul %576, %577, %cst_276 {dimension_numbers = #tpu.dot_dimension_numbers<[1], [0], [0], [1], [0, 0, 1, 1], [], []>} : vector<8x32xf32>, vector<32x8xf32>, vector<8x8xf32> -> vector<8x8xf32>
      %c0_277 = arith.constant 0 : index
      %c0_278 = arith.constant 0 : index
      %579 = vector.load %arg25[%c0_277, %c0_278] : memref<1x8xf32, #tpu.memory_space<vmem>>, vector<1x8xf32>
      %580 = vector.broadcast %579 : vector<1x8xf32> to vector<8x8xf32>
      %581 = arith.addf %578, %580 : vector<8x8xf32>
      %c0_279 = arith.constant 0 : index
      %c0_280 = arith.constant 0 : index
      %c0_281 = arith.constant 0 : index
      %582 = vector.load %arg26[%c0_279, %c0_280, %c0_281] : memref<2x8x8xf32, #tpu.memory_space<vmem>>, vector<1x8x8xf32>
      %583 = vector.shape_cast %582 : vector<1x8x8xf32> to vector<8x8xf32>
      %584 = vector.shape_cast %581 : vector<8x8xf32> to vector<1x8x8xf32>
      tpu.vector_store %arg26[%c0_279, %c0_280, %c0_281], %584 {strides = array<i32>} : memref<2x8x8xf32, #tpu.memory_space<vmem>>, vector<1x8x8xf32>,
    } else {
    }
    %c1 = arith.constant 1 : index
    %c0_132 = arith.constant 0 : index
    %c0_133 = arith.constant 0 : index
    %279 = vector.load %arg27[%c1, %c0_132, %c0_133] : memref<2x8x32xf32, #tpu.memory_space<vmem>>, vector<1x8x32xf32>
    %280 = vector.shape_cast %279 : vector<1x8x32xf32> to vector<8x32xf32>
    %c1_134 = arith.constant 1 : index
    %c0_135 = arith.constant 0 : index
    %c0_136 = arith.constant 0 : index
    %281 = vector.load %arg1[%c1_134, %c0_135, %c0_136] : memref<2x19x32xf32, #tpu.memory_space<vmem>>, vector<1x19x32xf32>
    %282 = vector.shape_cast %281 : vector<1x19x32xf32> to vector<19x32xf32>
    %c0_137 = arith.constant 0 : index
    %c0_138 = arith.constant 0 : index
    %c0_139 = arith.constant 0 : index
    %283 = vector.load %arg2[%c0_137, %c0_138, %c0_139] : memref<1x32x96xf32, #tpu.memory_space<vmem>>, vector<1x32x96xf32>
    %284 = vector.shape_cast %283 : vector<1x32x96xf32> to vector<32x96xf32>
    %cst_140 = arith.constant dense<0.000000e+00> : vector<8x96xf32>
    %285 = tpu.matmul %280, %284, %cst_140 {dimension_numbers = #tpu.dot_dimension_numbers<[1], [0], [0], [1], [0, 0, 1, 1], [], []>} : vector<8x32xf32>, vector<32x96xf32>, vector<8x96xf32> -> vector<8x96xf32>
    %c0_141 = arith.constant 0 : index
    %c0_142 = arith.constant 0 : index
    %c0_143 = arith.constant 0 : index
    %286 = vector.load %arg3[%c0_141, %c0_142, %c0_143] : memref<1x8x96xf32, #tpu.memory_space<vmem>>, vector<1x8x96xf32>
    %287 = vector.shape_cast %286 : vector<1x8x96xf32> to vector<8x96xf32>
    %288 = arith.addf %285, %287 : vector<8x96xf32>
    %289 = vector.extract_strided_slice %288 {offsets = [0, 0], sizes = [8, 32], strides = [1, 1]} : vector<8x96xf32> to vector<8x32xf32>
    %290 = vector.extract_strided_slice %288 {offsets = [0, 32], sizes = [8, 32], strides = [1, 1]} : vector<8x96xf32> to vector<8x32xf32>
    %291 = vector.extract_strided_slice %288 {offsets = [0, 64], sizes = [8, 32], strides = [1, 1]} : vector<8x96xf32> to vector<8x32xf32>
    %292 = vector.extract_strided_slice %289 {offsets = [0, 0], sizes = [8, 8], strides = [1, 1]} : vector<8x32xf32> to vector<8x8xf32>
    %293 = vector.extract_strided_slice %290 {offsets = [0, 0], sizes = [8, 8], strides = [1, 1]} : vector<8x32xf32> to vector<8x8xf32>
    %cst_144 = arith.constant dense<0.000000e+00> : vector<8x8xf32>
    %294 = tpu.matmul %292, %293, %cst_144 {dimension_numbers = #tpu.dot_dimension_numbers<[1], [1], [0], [0], [0, 0, 1, 0], [], []>} : vector<8x8xf32>, vector<8x8xf32>, vector<8x8xf32> -> vector<8x8xf32>
    %cst_145 = arith.constant 0.353553385 : f32
    %295 = vector.broadcast %cst_145 : f32 to vector<8x8xf32>
    %296 = arith.mulf %294, %295 : vector<8x8xf32>
    %cst_146 = arith.constant dense<0xFF800000> : vector<8xf32>
    %297 = vector.multi_reduction <maximumf>, %296, %cst_146 [1] : vector<8x8xf32> to vector<8xf32>
    %298 = vector.shape_cast %297 : vector<8xf32> to vector<8x1xf32>
    %299 = vector.broadcast %298 : vector<8x1xf32> to vector<8x8xf32>
    %300 = arith.subf %296, %299 : vector<8x8xf32>
    %301 = math.exp %300 : vector<8x8xf32>
    %cst_147 = arith.constant dense<0.000000e+00> : vector<8xf32>
    %302 = vector.multi_reduction <add>, %301, %cst_147 [1] : vector<8x8xf32> to vector<8xf32>
    %303 = vector.shape_cast %302 : vector<8xf32> to vector<8x1xf32>
    %304 = tpu.reciprocal %303 {approx = true} : vector<8x1xf32> -> vector<8x1xf32>
    %305 = vector.broadcast %304 : vector<8x1xf32> to vector<8x8xf32>
    %306 = arith.mulf %301, %305 : vector<8x8xf32>
    %307 = vector.extract_strided_slice %291 {offsets = [0, 0], sizes = [8, 8], strides = [1, 1]} : vector<8x32xf32> to vector<8x8xf32>
    %cst_148 = arith.constant dense<0.000000e+00> : vector<8x8xf32>
    %308 = tpu.matmul %306, %307, %cst_148 {dimension_numbers = #tpu.dot_dimension_numbers<[1], [0], [0], [1], [0, 0, 1, 1], [], []>} : vector<8x8xf32>, vector<8x8xf32>, vector<8x8xf32> -> vector<8x8xf32>
    %309 = vector.extract_strided_slice %289 {offsets = [0, 8], sizes = [8, 8], strides = [1, 1]} : vector<8x32xf32> to vector<8x8xf32>
    %310 = vector.extract_strided_slice %290 {offsets = [0, 8], sizes = [8, 8], strides = [1, 1]} : vector<8x32xf32> to vector<8x8xf32>
    %cst_149 = arith.constant dense<0.000000e+00> : vector<8x8xf32>
    %311 = tpu.matmul %309, %310, %cst_149 {dimension_numbers = #tpu.dot_dimension_numbers<[1], [1], [0], [0], [0, 0, 1, 0], [], []>} : vector<8x8xf32>, vector<8x8xf32>, vector<8x8xf32> -> vector<8x8xf32>
    %cst_150 = arith.constant 0.353553385 : f32
    %312 = vector.broadcast %cst_150 : f32 to vector<8x8xf32>
    %313 = arith.mulf %311, %312 : vector<8x8xf32>
    %cst_151 = arith.constant dense<0xFF800000> : vector<8xf32>
    %314 = vector.multi_reduction <maximumf>, %313, %cst_151 [1] : vector<8x8xf32> to vector<8xf32>
    %315 = vector.shape_cast %314 : vector<8xf32> to vector<8x1xf32>
    %316 = vector.broadcast %315 : vector<8x1xf32> to vector<8x8xf32>
    %317 = arith.subf %313, %316 : vector<8x8xf32>
    %318 = math.exp %317 : vector<8x8xf32>
    %cst_152 = arith.constant dense<0.000000e+00> : vector<8xf32>
    %319 = vector.multi_reduction <add>, %318, %cst_152 [1] : vector<8x8xf32> to vector<8xf32>
    %320 = vector.shape_cast %319 : vector<8xf32> to vector<8x1xf32>
    %321 = tpu.reciprocal %320 {approx = true} : vector<8x1xf32> -> vector<8x1xf32>
    %322 = vector.broadcast %321 : vector<8x1xf32> to vector<8x8xf32>
    %323 = arith.mulf %318, %322 : vector<8x8xf32>
    %324 = vector.extract_strided_slice %291 {offsets = [0, 8], sizes = [8, 8], strides = [1, 1]} : vector<8x32xf32> to vector<8x8xf32>
    %cst_153 = arith.constant dense<0.000000e+00> : vector<8x8xf32>
    %325 = tpu.matmul %323, %324, %cst_153 {dimension_numbers = #tpu.dot_dimension_numbers<[1], [0], [0], [1], [0, 0, 1, 1], [], []>} : vector<8x8xf32>, vector<8x8xf32>, vector<8x8xf32> -> vector<8x8xf32>
    %326 = vector.extract_strided_slice %289 {offsets = [0, 16], sizes = [8, 8], strides = [1, 1]} : vector<8x32xf32> to vector<8x8xf32>
    %327 = vector.extract_strided_slice %290 {offsets = [0, 16], sizes = [8, 8], strides = [1, 1]} : vector<8x32xf32> to vector<8x8xf32>
    %cst_154 = arith.constant dense<0.000000e+00> : vector<8x8xf32>
    %328 = tpu.matmul %326, %327, %cst_154 {dimension_numbers = #tpu.dot_dimension_numbers<[1], [1], [0], [0], [0, 0, 1, 0], [], []>} : vector<8x8xf32>, vector<8x8xf32>, vector<8x8xf32> -> vector<8x8xf32>
    %cst_155 = arith.constant 0.353553385 : f32
    %329 = vector.broadcast %cst_155 : f32 to vector<8x8xf32>
    %330 = arith.mulf %328, %329 : vector<8x8xf32>
    %cst_156 = arith.constant dense<0xFF800000> : vector<8xf32>
    %331 = vector.multi_reduction <maximumf>, %330, %cst_156 [1] : vector<8x8xf32> to vector<8xf32>
    %332 = vector.shape_cast %331 : vector<8xf32> to vector<8x1xf32>
    %333 = vector.broadcast %332 : vector<8x1xf32> to vector<8x8xf32>
    %334 = arith.subf %330, %333 : vector<8x8xf32>
    %335 = math.exp %334 : vector<8x8xf32>
    %cst_157 = arith.constant dense<0.000000e+00> : vector<8xf32>
    %336 = vector.multi_reduction <add>, %335, %cst_157 [1] : vector<8x8xf32> to vector<8xf32>
    %337 = vector.shape_cast %336 : vector<8xf32> to vector<8x1xf32>
    %338 = tpu.reciprocal %337 {approx = true} : vector<8x1xf32> -> vector<8x1xf32>
    %339 = vector.broadcast %338 : vector<8x1xf32> to vector<8x8xf32>
    %340 = arith.mulf %335, %339 : vector<8x8xf32>
    %341 = vector.extract_strided_slice %291 {offsets = [0, 16], sizes = [8, 8], strides = [1, 1]} : vector<8x32xf32> to vector<8x8xf32>
    %cst_158 = arith.constant dense<0.000000e+00> : vector<8x8xf32>
    %342 = tpu.matmul %340, %341, %cst_158 {dimension_numbers = #tpu.dot_dimension_numbers<[1], [0], [0], [1], [0, 0, 1, 1], [], []>} : vector<8x8xf32>, vector<8x8xf32>, vector<8x8xf32> -> vector<8x8xf32>
    %343 = vector.extract_strided_slice %289 {offsets = [0, 24], sizes = [8, 8], strides = [1, 1]} : vector<8x32xf32> to vector<8x8xf32>
    %344 = vector.extract_strided_slice %290 {offsets = [0, 24], sizes = [8, 8], strides = [1, 1]} : vector<8x32xf32> to vector<8x8xf32>
    %cst_159 = arith.constant dense<0.000000e+00> : vector<8x8xf32>
    %345 = tpu.matmul %343, %344, %cst_159 {dimension_numbers = #tpu.dot_dimension_numbers<[1], [1], [0], [0], [0, 0, 1, 0], [], []>} : vector<8x8xf32>, vector<8x8xf32>, vector<8x8xf32> -> vector<8x8xf32>
    %cst_160 = arith.constant 0.353553385 : f32
    %346 = vector.broadcast %cst_160 : f32 to vector<8x8xf32>
    %347 = arith.mulf %345, %346 : vector<8x8xf32>
    %cst_161 = arith.constant dense<0xFF800000> : vector<8xf32>
    %348 = vector.multi_reduction <maximumf>, %347, %cst_161 [1] : vector<8x8xf32> to vector<8xf32>
    %349 = vector.shape_cast %348 : vector<8xf32> to vector<8x1xf32>
    %350 = vector.broadcast %349 : vector<8x1xf32> to vector<8x8xf32>
    %351 = arith.subf %347, %350 : vector<8x8xf32>
    %352 = math.exp %351 : vector<8x8xf32>
    %cst_162 = arith.constant dense<0.000000e+00> : vector<8xf32>
    %353 = vector.multi_reduction <add>, %352, %cst_162 [1] : vector<8x8xf32> to vector<8xf32>
    %354 = vector.shape_cast %353 : vector<8xf32> to vector<8x1xf32>
    %355 = tpu.reciprocal %354 {approx = true} : vector<8x1xf32> -> vector<8x1xf32>
    %356 = vector.broadcast %355 : vector<8x1xf32> to vector<8x8xf32>
    %357 = arith.mulf %352, %356 : vector<8x8xf32>
    %358 = vector.extract_strided_slice %291 {offsets = [0, 24], sizes = [8, 8], strides = [1, 1]} : vector<8x32xf32> to vector<8x8xf32>
    %cst_163 = arith.constant dense<0.000000e+00> : vector<8x8xf32>
    %359 = tpu.matmul %357, %358, %cst_163 {dimension_numbers = #tpu.dot_dimension_numbers<[1], [0], [0], [1], [0, 0, 1, 1], [], []>} : vector<8x8xf32>, vector<8x8xf32>, vector<8x8xf32> -> vector<8x8xf32>
    %360 = tpu.concatenate %308, %325, %342, %359 in 1 : vector<8x8xf32>, vector<8x8xf32>, vector<8x8xf32>, vector<8x8xf32> -> vector<8x32xf32>
    %c0_164 = arith.constant 0 : index
    %c0_165 = arith.constant 0 : index
    %c0_166 = arith.constant 0 : index
    %361 = vector.load %arg4[%c0_164, %c0_165, %c0_166] : memref<1x32x32xf32, #tpu.memory_space<vmem>>, vector<1x32x32xf32>
    %362 = vector.shape_cast %361 : vector<1x32x32xf32> to vector<32x32xf32>
    %cst_167 = arith.constant dense<0.000000e+00> : vector<8x32xf32>
    %363 = tpu.matmul %360, %362, %cst_167 {dimension_numbers = #tpu.dot_dimension_numbers<[1], [0], [0], [1], [0, 0, 1, 1], [], []>} : vector<8x32xf32>, vector<32x32xf32>, vector<8x32xf32> -> vector<8x32xf32>
    %c0_168 = arith.constant 0 : index
    %c0_169 = arith.constant 0 : index
    %c0_170 = arith.constant 0 : index
    %364 = vector.load %arg5[%c0_168, %c0_169, %c0_170] : memref<1x1x32xf32, #tpu.memory_space<vmem>>, vector<1x1x32xf32>
    %365 = vector.shape_cast %364 : vector<1x1x32xf32> to vector<1x32xf32>
    %366 = vector.broadcast %365 : vector<1x32xf32> to vector<8x32xf32>
    %367 = arith.addf %363, %366 : vector<8x32xf32>
    %368 = arith.addf %280, %367 : vector<8x32xf32>
    %c0_171 = arith.constant 0 : index
    %c0_172 = arith.constant 0 : index
    %c0_173 = arith.constant 0 : index
    %369 = vector.load %arg6[%c0_171, %c0_172, %c0_173] : memref<1x1x32xf32, #tpu.memory_space<vmem>>, vector<1x1x32xf32>
    %370 = vector.shape_cast %369 : vector<1x1x32xf32> to vector<1x32xf32>
    %c0_174 = arith.constant 0 : index
    %c0_175 = arith.constant 0 : index
    %c0_176 = arith.constant 0 : index
    %371 = vector.load %arg7[%c0_174, %c0_175, %c0_176] : memref<1x1x32xf32, #tpu.memory_space<vmem>>, vector<1x1x32xf32>
    %372 = vector.shape_cast %371 : vector<1x1x32xf32> to vector<1x32xf32>
    %cst_177 = arith.constant dense<0.000000e+00> : vector<8xf32>
    %373 = vector.multi_reduction <add>, %368, %cst_177 [1] : vector<8x32xf32> to vector<8xf32>
    %374 = vector.shape_cast %373 : vector<8xf32> to vector<8x1xf32>
    %cst_178 = arith.constant 3.200000e+01 : f32
    %375 = vector.broadcast %cst_178 : f32 to vector<8x1xf32>
    %376 = arith.divf %374, %375 : vector<8x1xf32>
    %377 = vector.broadcast %376 : vector<8x1xf32> to vector<8x32xf32>
    %378 = arith.subf %368, %377 : vector<8x32xf32>
    %379 = arith.mulf %378, %378 : vector<8x32xf32>
    %cst_179 = arith.constant dense<0.000000e+00> : vector<8xf32>
    %380 = vector.multi_reduction <add>, %379, %cst_179 [1] : vector<8x32xf32> to vector<8xf32>
    %381 = vector.shape_cast %380 : vector<8xf32> to vector<8x1xf32>
    %cst_180 = arith.constant 3.200000e+01 : f32
    %382 = vector.broadcast %cst_180 : f32 to vector<8x1xf32>
    %383 = arith.divf %381, %382 : vector<8x1xf32>
    %cst_181 = arith.constant 9.99999974E-6 : f32
    %384 = vector.broadcast %cst_181 : f32 to vector<8x1xf32>
    %385 = arith.addf %383, %384 : vector<8x1xf32>
    %386 = math.rsqrt %385 : vector<8x1xf32>
    %387 = vector.broadcast %386 : vector<8x1xf32> to vector<8x32xf32>
    %388 = arith.mulf %378, %387 : vector<8x32xf32>
    %389 = vector.broadcast %370 : vector<1x32xf32> to vector<8x32xf32>
    %390 = arith.mulf %388, %389 : vector<8x32xf32>
    %391 = vector.broadcast %372 : vector<1x32xf32> to vector<8x32xf32>
    %392 = arith.addf %390, %391 : vector<8x32xf32>
    %c0_182 = arith.constant 0 : index
    %c0_183 = arith.constant 0 : index
    %c0_184 = arith.constant 0 : index
    %393 = vector.load %arg8[%c0_182, %c0_183, %c0_184] : memref<1x32x32xf32, #tpu.memory_space<vmem>>, vector<1x32x32xf32>
    %394 = vector.shape_cast %393 : vector<1x32x32xf32> to vector<32x32xf32>
    %cst_185 = arith.constant dense<0.000000e+00> : vector<8x32xf32>
    %395 = tpu.matmul %392, %394, %cst_185 {dimension_numbers = #tpu.dot_dimension_numbers<[1], [0], [0], [1], [0, 0, 1, 1], [], []>} : vector<8x32xf32>, vector<32x32xf32>, vector<8x32xf32> -> vector<8x32xf32>
    %c0_186 = arith.constant 0 : index
    %c0_187 = arith.constant 0 : index
    %c0_188 = arith.constant 0 : index
    %396 = vector.load %arg9[%c0_186, %c0_187, %c0_188] : memref<1x8x32xf32, #tpu.memory_space<vmem>>, vector<1x8x32xf32>
    %397 = vector.shape_cast %396 : vector<1x8x32xf32> to vector<8x32xf32>
    %398 = arith.addf %395, %397 : vector<8x32xf32>
    %c0_189 = arith.constant 0 : index
    %c0_190 = arith.constant 0 : index
    %c0_191 = arith.constant 0 : index
    %399 = vector.load %arg10[%c0_189, %c0_190, %c0_191] : memref<1x32x64xf32, #tpu.memory_space<vmem>>, vector<1x32x64xf32>
    %400 = vector.shape_cast %399 : vector<1x32x64xf32> to vector<32x64xf32>
    %cst_192 = arith.constant dense<0.000000e+00> : vector<19x64xf32>
    %401 = tpu.matmul %282, %400, %cst_192 {dimension_numbers = #tpu.dot_dimension_numbers<[1], [0], [0], [1], [0, 0, 1, 1], [], []>} : vector<19x32xf32>, vector<32x64xf32>, vector<19x64xf32> -> vector<19x64xf32>
    %c0_193 = arith.constant 0 : index
    %c0_194 = arith.constant 0 : index
    %c0_195 = arith.constant 0 : index
    %402 = vector.load %arg11[%c0_193, %c0_194, %c0_195] : memref<1x19x64xf32, #tpu.memory_space<vmem>>, vector<1x19x64xf32>
    %403 = vector.shape_cast %402 : vector<1x19x64xf32> to vector<19x64xf32>
    %404 = arith.addf %401, %403 : vector<19x64xf32>
    %405 = vector.extract_strided_slice %404 {offsets = [0, 0], sizes = [19, 32], strides = [1, 1]} : vector<19x64xf32> to vector<19x32xf32>
    %406 = vector.extract_strided_slice %404 {offsets = [0, 32], sizes = [19, 32], strides = [1, 1]} : vector<19x64xf32> to vector<19x32xf32>
    %407 = vector.extract_strided_slice %398 {offsets = [0, 0], sizes = [8, 8], strides = [1, 1]} : vector<8x32xf32> to vector<8x8xf32>
    %408 = vector.extract_strided_slice %405 {offsets = [0, 0], sizes = [19, 8], strides = [1, 1]} : vector<19x32xf32> to vector<19x8xf32>
    %cst_196 = arith.constant dense<0.000000e+00> : vector<8x19xf32>
    %409 = tpu.matmul %407, %408, %cst_196 {dimension_numbers = #tpu.dot_dimension_numbers<[1], [1], [0], [0], [0, 0, 1, 0], [], []>} : vector<8x8xf32>, vector<19x8xf32>, vector<8x19xf32> -> vector<8x19xf32>
    %cst_197 = arith.constant 0.353553385 : f32
    %410 = vector.broadcast %cst_197 : f32 to vector<8x19xf32>
    %411 = arith.mulf %409, %410 : vector<8x19xf32>
    %cst_198 = arith.constant dense<0xFF800000> : vector<8xf32>
    %412 = vector.multi_reduction <maximumf>, %411, %cst_198 [1] : vector<8x19xf32> to vector<8xf32>
    %413 = vector.shape_cast %412 : vector<8xf32> to vector<8x1xf32>
    %414 = vector.broadcast %413 : vector<8x1xf32> to vector<8x19xf32>
    %415 = arith.subf %411, %414 : vector<8x19xf32>
    %416 = math.exp %415 : vector<8x19xf32>
    %cst_199 = arith.constant dense<0.000000e+00> : vector<8xf32>
    %417 = vector.multi_reduction <add>, %416, %cst_199 [1] : vector<8x19xf32> to vector<8xf32>
    %418 = vector.shape_cast %417 : vector<8xf32> to vector<8x1xf32>
    %419 = tpu.reciprocal %418 {approx = true} : vector<8x1xf32> -> vector<8x1xf32>
    %420 = vector.broadcast %419 : vector<8x1xf32> to vector<8x19xf32>
    %421 = arith.mulf %416, %420 : vector<8x19xf32>
    %422 = vector.extract_strided_slice %406 {offsets = [0, 0], sizes = [19, 8], strides = [1, 1]} : vector<19x32xf32> to vector<19x8xf32>
    %cst_200 = arith.constant dense<0.000000e+00> : vector<8x8xf32>
    %423 = tpu.matmul %421, %422, %cst_200 {dimension_numbers = #tpu.dot_dimension_numbers<[1], [0], [0], [1], [0, 0, 1, 1], [], []>} : vector<8x19xf32>, vector<19x8xf32>, vector<8x8xf32> -> vector<8x8xf32>
    %424 = vector.extract_strided_slice %398 {offsets = [0, 8], sizes = [8, 8], strides = [1, 1]} : vector<8x32xf32> to vector<8x8xf32>
    %425 = vector.extract_strided_slice %405 {offsets = [0, 8], sizes = [19, 8], strides = [1, 1]} : vector<19x32xf32> to vector<19x8xf32>
    %cst_201 = arith.constant dense<0.000000e+00> : vector<8x19xf32>
    %426 = tpu.matmul %424, %425, %cst_201 {dimension_numbers = #tpu.dot_dimension_numbers<[1], [1], [0], [0], [0, 0, 1, 0], [], []>} : vector<8x8xf32>, vector<19x8xf32>, vector<8x19xf32> -> vector<8x19xf32>
    %cst_202 = arith.constant 0.353553385 : f32
    %427 = vector.broadcast %cst_202 : f32 to vector<8x19xf32>
    %428 = arith.mulf %426, %427 : vector<8x19xf32>
    %cst_203 = arith.constant dense<0xFF800000> : vector<8xf32>
    %429 = vector.multi_reduction <maximumf>, %428, %cst_203 [1] : vector<8x19xf32> to vector<8xf32>
    %430 = vector.shape_cast %429 : vector<8xf32> to vector<8x1xf32>
    %431 = vector.broadcast %430 : vector<8x1xf32> to vector<8x19xf32>
    %432 = arith.subf %428, %431 : vector<8x19xf32>
    %433 = math.exp %432 : vector<8x19xf32>
    %cst_204 = arith.constant dense<0.000000e+00> : vector<8xf32>
    %434 = vector.multi_reduction <add>, %433, %cst_204 [1] : vector<8x19xf32> to vector<8xf32>
    %435 = vector.shape_cast %434 : vector<8xf32> to vector<8x1xf32>
    %436 = tpu.reciprocal %435 {approx = true} : vector<8x1xf32> -> vector<8x1xf32>
    %437 = vector.broadcast %436 : vector<8x1xf32> to vector<8x19xf32>
    %438 = arith.mulf %433, %437 : vector<8x19xf32>
    %439 = vector.extract_strided_slice %406 {offsets = [0, 8], sizes = [19, 8], strides = [1, 1]} : vector<19x32xf32> to vector<19x8xf32>
    %cst_205 = arith.constant dense<0.000000e+00> : vector<8x8xf32>
    %440 = tpu.matmul %438, %439, %cst_205 {dimension_numbers = #tpu.dot_dimension_numbers<[1], [0], [0], [1], [0, 0, 1, 1], [], []>} : vector<8x19xf32>, vector<19x8xf32>, vector<8x8xf32> -> vector<8x8xf32>
    %441 = vector.extract_strided_slice %398 {offsets = [0, 16], sizes = [8, 8], strides = [1, 1]} : vector<8x32xf32> to vector<8x8xf32>
    %442 = vector.extract_strided_slice %405 {offsets = [0, 16], sizes = [19, 8], strides = [1, 1]} : vector<19x32xf32> to vector<19x8xf32>
    %cst_206 = arith.constant dense<0.000000e+00> : vector<8x19xf32>
    %443 = tpu.matmul %441, %442, %cst_206 {dimension_numbers = #tpu.dot_dimension_numbers<[1], [1], [0], [0], [0, 0, 1, 0], [], []>} : vector<8x8xf32>, vector<19x8xf32>, vector<8x19xf32> -> vector<8x19xf32>
    %cst_207 = arith.constant 0.353553385 : f32
    %444 = vector.broadcast %cst_207 : f32 to vector<8x19xf32>
    %445 = arith.mulf %443, %444 : vector<8x19xf32>
    %cst_208 = arith.constant dense<0xFF800000> : vector<8xf32>
    %446 = vector.multi_reduction <maximumf>, %445, %cst_208 [1] : vector<8x19xf32> to vector<8xf32>
    %447 = vector.shape_cast %446 : vector<8xf32> to vector<8x1xf32>
    %448 = vector.broadcast %447 : vector<8x1xf32> to vector<8x19xf32>
    %449 = arith.subf %445, %448 : vector<8x19xf32>
    %450 = math.exp %449 : vector<8x19xf32>
    %cst_209 = arith.constant dense<0.000000e+00> : vector<8xf32>
    %451 = vector.multi_reduction <add>, %450, %cst_209 [1] : vector<8x19xf32> to vector<8xf32>
    %452 = vector.shape_cast %451 : vector<8xf32> to vector<8x1xf32>
    %453 = tpu.reciprocal %452 {approx = true} : vector<8x1xf32> -> vector<8x1xf32>
    %454 = vector.broadcast %453 : vector<8x1xf32> to vector<8x19xf32>
    %455 = arith.mulf %450, %454 : vector<8x19xf32>
    %456 = vector.extract_strided_slice %406 {offsets = [0, 16], sizes = [19, 8], strides = [1, 1]} : vector<19x32xf32> to vector<19x8xf32>
    %cst_210 = arith.constant dense<0.000000e+00> : vector<8x8xf32>
    %457 = tpu.matmul %455, %456, %cst_210 {dimension_numbers = #tpu.dot_dimension_numbers<[1], [0], [0], [1], [0, 0, 1, 1], [], []>} : vector<8x19xf32>, vector<19x8xf32>, vector<8x8xf32> -> vector<8x8xf32>
    %458 = vector.extract_strided_slice %398 {offsets = [0, 24], sizes = [8, 8], strides = [1, 1]} : vector<8x32xf32> to vector<8x8xf32>
    %459 = vector.extract_strided_slice %405 {offsets = [0, 24], sizes = [19, 8], strides = [1, 1]} : vector<19x32xf32> to vector<19x8xf32>
    %cst_211 = arith.constant dense<0.000000e+00> : vector<8x19xf32>
    %460 = tpu.matmul %458, %459, %cst_211 {dimension_numbers = #tpu.dot_dimension_numbers<[1], [1], [0], [0], [0, 0, 1, 0], [], []>} : vector<8x8xf32>, vector<19x8xf32>, vector<8x19xf32> -> vector<8x19xf32>
    %cst_212 = arith.constant 0.353553385 : f32
    %461 = vector.broadcast %cst_212 : f32 to vector<8x19xf32>
    %462 = arith.mulf %460, %461 : vector<8x19xf32>
    %cst_213 = arith.constant dense<0xFF800000> : vector<8xf32>
    %463 = vector.multi_reduction <maximumf>, %462, %cst_213 [1] : vector<8x19xf32> to vector<8xf32>
    %464 = vector.shape_cast %463 : vector<8xf32> to vector<8x1xf32>
    %465 = vector.broadcast %464 : vector<8x1xf32> to vector<8x19xf32>
    %466 = arith.subf %462, %465 : vector<8x19xf32>
    %467 = math.exp %466 : vector<8x19xf32>
    %cst_214 = arith.constant dense<0.000000e+00> : vector<8xf32>
    %468 = vector.multi_reduction <add>, %467, %cst_214 [1] : vector<8x19xf32> to vector<8xf32>
    %469 = vector.shape_cast %468 : vector<8xf32> to vector<8x1xf32>
    %470 = tpu.reciprocal %469 {approx = true} : vector<8x1xf32> -> vector<8x1xf32>
    %471 = vector.broadcast %470 : vector<8x1xf32> to vector<8x19xf32>
    %472 = arith.mulf %467, %471 : vector<8x19xf32>
    %473 = vector.extract_strided_slice %406 {offsets = [0, 24], sizes = [19, 8], strides = [1, 1]} : vector<19x32xf32> to vector<19x8xf32>
    %cst_215 = arith.constant dense<0.000000e+00> : vector<8x8xf32>
    %474 = tpu.matmul %472, %473, %cst_215 {dimension_numbers = #tpu.dot_dimension_numbers<[1], [0], [0], [1], [0, 0, 1, 1], [], []>} : vector<8x19xf32>, vector<19x8xf32>, vector<8x8xf32> -> vector<8x8xf32>
    %475 = tpu.concatenate %423, %440, %457, %474 in 1 : vector<8x8xf32>, vector<8x8xf32>, vector<8x8xf32>, vector<8x8xf32> -> vector<8x32xf32>
    %c0_216 = arith.constant 0 : index
    %c0_217 = arith.constant 0 : index
    %c0_218 = arith.constant 0 : index
    %476 = vector.load %arg12[%c0_216, %c0_217, %c0_218] : memref<1x32x32xf32, #tpu.memory_space<vmem>>, vector<1x32x32xf32>
    %477 = vector.shape_cast %476 : vector<1x32x32xf32> to vector<32x32xf32>
    %cst_219 = arith.constant dense<0.000000e+00> : vector<8x32xf32>
    %478 = tpu.matmul %475, %477, %cst_219 {dimension_numbers = #tpu.dot_dimension_numbers<[1], [0], [0], [1], [0, 0, 1, 1], [], []>} : vector<8x32xf32>, vector<32x32xf32>, vector<8x32xf32> -> vector<8x32xf32>
    %c0_220 = arith.constant 0 : index
    %c0_221 = arith.constant 0 : index
    %c0_222 = arith.constant 0 : index
    %479 = vector.load %arg13[%c0_220, %c0_221, %c0_222] : memref<1x1x32xf32, #tpu.memory_space<vmem>>, vector<1x1x32xf32>
    %480 = vector.shape_cast %479 : vector<1x1x32xf32> to vector<1x32xf32>
    %481 = vector.broadcast %480 : vector<1x32xf32> to vector<8x32xf32>
    %482 = arith.addf %478, %481 : vector<8x32xf32>
    %483 = arith.addf %392, %482 : vector<8x32xf32>
    %c0_223 = arith.constant 0 : index
    %c0_224 = arith.constant 0 : index
    %c0_225 = arith.constant 0 : index
    %484 = vector.load %arg14[%c0_223, %c0_224, %c0_225] : memref<1x1x32xf32, #tpu.memory_space<vmem>>, vector<1x1x32xf32>
    %485 = vector.shape_cast %484 : vector<1x1x32xf32> to vector<1x32xf32>
    %c0_226 = arith.constant 0 : index
    %c0_227 = arith.constant 0 : index
    %c0_228 = arith.constant 0 : index
    %486 = vector.load %arg15[%c0_226, %c0_227, %c0_228] : memref<1x1x32xf32, #tpu.memory_space<vmem>>, vector<1x1x32xf32>
    %487 = vector.shape_cast %486 : vector<1x1x32xf32> to vector<1x32xf32>
    %cst_229 = arith.constant dense<0.000000e+00> : vector<8xf32>
    %488 = vector.multi_reduction <add>, %483, %cst_229 [1] : vector<8x32xf32> to vector<8xf32>
    %489 = vector.shape_cast %488 : vector<8xf32> to vector<8x1xf32>
    %cst_230 = arith.constant 3.200000e+01 : f32
    %490 = vector.broadcast %cst_230 : f32 to vector<8x1xf32>
    %491 = arith.divf %489, %490 : vector<8x1xf32>
    %492 = vector.broadcast %491 : vector<8x1xf32> to vector<8x32xf32>
    %493 = arith.subf %483, %492 : vector<8x32xf32>
    %494 = arith.mulf %493, %493 : vector<8x32xf32>
    %cst_231 = arith.constant dense<0.000000e+00> : vector<8xf32>
    %495 = vector.multi_reduction <add>, %494, %cst_231 [1] : vector<8x32xf32> to vector<8xf32>
    %496 = vector.shape_cast %495 : vector<8xf32> to vector<8x1xf32>
    %cst_232 = arith.constant 3.200000e+01 : f32
    %497 = vector.broadcast %cst_232 : f32 to vector<8x1xf32>
    %498 = arith.divf %496, %497 : vector<8x1xf32>
    %cst_233 = arith.constant 9.99999974E-6 : f32
    %499 = vector.broadcast %cst_233 : f32 to vector<8x1xf32>
    %500 = arith.addf %498, %499 : vector<8x1xf32>
    %501 = math.rsqrt %500 : vector<8x1xf32>
    %502 = vector.broadcast %501 : vector<8x1xf32> to vector<8x32xf32>
    %503 = arith.mulf %493, %502 : vector<8x32xf32>
    %504 = vector.broadcast %485 : vector<1x32xf32> to vector<8x32xf32>
    %505 = arith.mulf %503, %504 : vector<8x32xf32>
    %506 = vector.broadcast %487 : vector<1x32xf32> to vector<8x32xf32>
    %507 = arith.addf %505, %506 : vector<8x32xf32>
    %c0_234 = arith.constant 0 : index
    %c0_235 = arith.constant 0 : index
    %c0_236 = arith.constant 0 : index
    %508 = vector.load %arg16[%c0_234, %c0_235, %c0_236] : memref<1x32x64xf32, #tpu.memory_space<vmem>>, vector<1x32x64xf32>
    %509 = vector.shape_cast %508 : vector<1x32x64xf32> to vector<32x64xf32>
    %cst_237 = arith.constant dense<0.000000e+00> : vector<8x64xf32>
    %510 = tpu.matmul %507, %509, %cst_237 {dimension_numbers = #tpu.dot_dimension_numbers<[1], [0], [0], [1], [0, 0, 1, 1], [], []>} : vector<8x32xf32>, vector<32x64xf32>, vector<8x64xf32> -> vector<8x64xf32>
    %c0_238 = arith.constant 0 : index
    %c0_239 = arith.constant 0 : index
    %c0_240 = arith.constant 0 : index
    %511 = vector.load %arg17[%c0_238, %c0_239, %c0_240] : memref<1x1x64xf32, #tpu.memory_space<vmem>>, vector<1x1x64xf32>
    %512 = vector.shape_cast %511 : vector<1x1x64xf32> to vector<1x64xf32>
    %513 = vector.broadcast %512 : vector<1x64xf32> to vector<8x64xf32>
    %514 = arith.addf %510, %513 : vector<8x64xf32>
    %cst_241 = arith.constant 0.000000e+00 : f32
    %515 = vector.broadcast %cst_241 : f32 to vector<8x64xf32>
    %516 = arith.maximumf %514, %515 : vector<8x64xf32>
    %c0_242 = arith.constant 0 : index
    %c0_243 = arith.constant 0 : index
    %c0_244 = arith.constant 0 : index
    %517 = vector.load %arg18[%c0_242, %c0_243, %c0_244] : memref<1x64x32xf32, #tpu.memory_space<vmem>>, vector<1x64x32xf32>
    %518 = vector.shape_cast %517 : vector<1x64x32xf32> to vector<64x32xf32>
    %cst_245 = arith.constant dense<0.000000e+00> : vector<8x32xf32>
    %519 = tpu.matmul %516, %518, %cst_245 {dimension_numbers = #tpu.dot_dimension_numbers<[1], [0], [0], [1], [0, 0, 1, 1], [], []>} : vector<8x64xf32>, vector<64x32xf32>, vector<8x32xf32> -> vector<8x32xf32>
    %c0_246 = arith.constant 0 : index
    %c0_247 = arith.constant 0 : index
    %c0_248 = arith.constant 0 : index
    %520 = vector.load %arg19[%c0_246, %c0_247, %c0_248] : memref<1x1x32xf32, #tpu.memory_space<vmem>>, vector<1x1x32xf32>
    %521 = vector.shape_cast %520 : vector<1x1x32xf32> to vector<1x32xf32>
    %522 = vector.broadcast %521 : vector<1x32xf32> to vector<8x32xf32>
    %523 = arith.addf %519, %522 : vector<8x32xf32>
    %524 = arith.addf %507, %523 : vector<8x32xf32>
    %c0_249 = arith.constant 0 : index
    %c0_250 = arith.constant 0 : index
    %c0_251 = arith.constant 0 : index
    %525 = vector.load %arg20[%c0_249, %c0_250, %c0_251] : memref<1x1x32xf32, #tpu.memory_space<vmem>>, vector<1x1x32xf32>
    %526 = vector.shape_cast %525 : vector<1x1x32xf32> to vector<1x32xf32>
    %c0_252 = arith.constant 0 : index
    %c0_253 = arith.constant 0 : index
    %c0_254 = arith.constant 0 : index
    %527 = vector.load %arg21[%c0_252, %c0_253, %c0_254] : memref<1x1x32xf32, #tpu.memory_space<vmem>>, vector<1x1x32xf32>
    %528 = vector.shape_cast %527 : vector<1x1x32xf32> to vector<1x32xf32>
    %cst_255 = arith.constant dense<0.000000e+00> : vector<8xf32>
    %529 = vector.multi_reduction <add>, %524, %cst_255 [1] : vector<8x32xf32> to vector<8xf32>
    %530 = vector.shape_cast %529 : vector<8xf32> to vector<8x1xf32>
    %cst_256 = arith.constant 3.200000e+01 : f32
    %531 = vector.broadcast %cst_256 : f32 to vector<8x1xf32>
    %532 = arith.divf %530, %531 : vector<8x1xf32>
    %533 = vector.broadcast %532 : vector<8x1xf32> to vector<8x32xf32>
    %534 = arith.subf %524, %533 : vector<8x32xf32>
    %535 = arith.mulf %534, %534 : vector<8x32xf32>
    %cst_257 = arith.constant dense<0.000000e+00> : vector<8xf32>
    %536 = vector.multi_reduction <add>, %535, %cst_257 [1] : vector<8x32xf32> to vector<8xf32>
    %537 = vector.shape_cast %536 : vector<8xf32> to vector<8x1xf32>
    %cst_258 = arith.constant 3.200000e+01 : f32
    %538 = vector.broadcast %cst_258 : f32 to vector<8x1xf32>
    %539 = arith.divf %537, %538 : vector<8x1xf32>
    %cst_259 = arith.constant 9.99999974E-6 : f32
    %540 = vector.broadcast %cst_259 : f32 to vector<8x1xf32>
    %541 = arith.addf %539, %540 : vector<8x1xf32>
    %542 = math.rsqrt %541 : vector<8x1xf32>
    %543 = vector.broadcast %542 : vector<8x1xf32> to vector<8x32xf32>
    %544 = arith.mulf %534, %543 : vector<8x32xf32>
    %545 = vector.broadcast %526 : vector<1x32xf32> to vector<8x32xf32>
    %546 = arith.mulf %544, %545 : vector<8x32xf32>
    %547 = vector.broadcast %528 : vector<1x32xf32> to vector<8x32xf32>
    %548 = arith.addf %546, %547 : vector<8x32xf32>
    %c1_260 = arith.constant 1 : index
    %c0_261 = arith.constant 0 : index
    %c0_262 = arith.constant 0 : index
    %549 = vector.load %arg27[%c1_260, %c0_261, %c0_262] : memref<2x8x32xf32, #tpu.memory_space<vmem>>, vector<1x8x32xf32>
    %550 = vector.shape_cast %549 : vector<1x8x32xf32> to vector<8x32xf32>
    %551 = vector.shape_cast %548 : vector<8x32xf32> to vector<1x8x32xf32>
    tpu.vector_store %arg27[%c1_260, %c0_261, %c0_262], %551 {strides = array<i32>} : memref<2x8x32xf32, #tpu.memory_space<vmem>>, vector<1x8x32xf32>,
    %c1_i32_263 = arith.constant 1 : i32
    %552 = arith.cmpi eq, %arg0, %c1_i32_263 : i32
    %553 = arith.extui %552 : i1 to i32
    %c0_i32_264 = arith.constant 0 : i32
    %554 = arith.cmpi ne, %553, %c0_i32_264 : i32
    scf.if %554 {
      %c0_265 = arith.constant 0 : index
      %c0_266 = arith.constant 0 : index
      %555 = vector.load %arg22[%c0_265, %c0_266] : memref<1x32xf32, #tpu.memory_space<vmem>>, vector<1x32xf32>
      %c0_267 = arith.constant 0 : index
      %c0_268 = arith.constant 0 : index
      %556 = vector.load %arg23[%c0_267, %c0_268] : memref<1x32xf32, #tpu.memory_space<vmem>>, vector<1x32xf32>
      %cst_269 = arith.constant dense<0.000000e+00> : vector<8xf32>
      %557 = vector.multi_reduction <add>, %548, %cst_269 [1] : vector<8x32xf32> to vector<8xf32>
      %558 = vector.shape_cast %557 : vector<8xf32> to vector<8x1xf32>
      %cst_270 = arith.constant 3.200000e+01 : f32
      %559 = vector.broadcast %cst_270 : f32 to vector<8x1xf32>
      %560 = arith.divf %558, %559 : vector<8x1xf32>
      %561 = vector.broadcast %560 : vector<8x1xf32> to vector<8x32xf32>
      %562 = arith.subf %548, %561 : vector<8x32xf32>
      %563 = arith.mulf %562, %562 : vector<8x32xf32>
      %cst_271 = arith.constant dense<0.000000e+00> : vector<8xf32>
      %564 = vector.multi_reduction <add>, %563, %cst_271 [1] : vector<8x32xf32> to vector<8xf32>
      %565 = vector.shape_cast %564 : vector<8xf32> to vector<8x1xf32>
      %cst_272 = arith.constant 3.200000e+01 : f32
      %566 = vector.broadcast %cst_272 : f32 to vector<8x1xf32>
      %567 = arith.divf %565, %566 : vector<8x1xf32>
      %cst_273 = arith.constant 9.99999974E-6 : f32
      %568 = vector.broadcast %cst_273 : f32 to vector<8x1xf32>
      %569 = arith.addf %567, %568 : vector<8x1xf32>
      %570 = math.rsqrt %569 : vector<8x1xf32>
      %571 = vector.broadcast %570 : vector<8x1xf32> to vector<8x32xf32>
      %572 = arith.mulf %562, %571 : vector<8x32xf32>
      %573 = vector.broadcast %555 : vector<1x32xf32> to vector<8x32xf32>
      %574 = arith.mulf %572, %573 : vector<8x32xf32>
      %575 = vector.broadcast %556 : vector<1x32xf32> to vector<8x32xf32>
      %576 = arith.addf %574, %575 : vector<8x32xf32>
      %c0_274 = arith.constant 0 : index
      %c0_275 = arith.constant 0 : index
      %577 = vector.load %arg24[%c0_274, %c0_275] : memref<32x8xf32, #tpu.memory_space<vmem>>, vector<32x8xf32>
      %cst_276 = arith.constant dense<0.000000e+00> : vector<8x8xf32>
      %578 = tpu.matmul %576, %577, %cst_276 {dimension_numbers = #tpu.dot_dimension_numbers<[1], [0], [0], [1], [0, 0, 1, 1], [], []>} : vector<8x32xf32>, vector<32x8xf32>, vector<8x8xf32> -> vector<8x8xf32>
      %c0_277 = arith.constant 0 : index
      %c0_278 = arith.constant 0 : index
      %579 = vector.load %arg25[%c0_277, %c0_278] : memref<1x8xf32, #tpu.memory_space<vmem>>, vector<1x8xf32>
      %580 = vector.broadcast %579 : vector<1x8xf32> to vector<8x8xf32>
      %581 = arith.addf %578, %580 : vector<8x8xf32>
      %c1_279 = arith.constant 1 : index
      %c0_280 = arith.constant 0 : index
      %c0_281 = arith.constant 0 : index
      %582 = vector.load %arg26[%c1_279, %c0_280, %c0_281] : memref<2x8x8xf32, #tpu.memory_space<vmem>>, vector<1x8x8xf32>
      %583 = vector.shape_cast %582 : vector<1x8x8xf32> to vector<8x8xf32>
      %584 = vector.shape_cast %581 : vector<8x8xf32> to vector<1x8x8xf32>
      tpu.vector_store %arg26[%c1_279, %c0_280, %c0_281], %584 {strides = array<i32>} : memref<2x8x8xf32, #tpu.memory_space<vmem>>, vector<1x8x8xf32>,
    } else {
    }
    return
  }
  func.func @transform_0(%arg0: i32) -> (i32, i32, i32) {
    %c0_i32 = arith.constant 0 : i32
    %c0_i32_0 = arith.constant 0 : i32
    %c0_i32_1 = arith.constant 0 : i32
    %c0_i32_2 = arith.constant 0 : i32
    return %c0_i32, %c0_i32_0, %c0_i32_1 : i32, i32, i32
  }
  func.func @transform_1(%arg0: i32) -> (i32, i32, i32) {
    %c0_i32 = arith.constant 0 : i32
    %c0_i32_0 = arith.constant 0 : i32
    %c0_i32_1 = arith.constant 0 : i32
    return %arg0, %c0_i32, %c0_i32_0 : i32, i32, i32
  }
  func.func @transform_2(%arg0: i32) -> (i32, i32, i32) {
    %c0_i32 = arith.constant 0 : i32
    %c0_i32_0 = arith.constant 0 : i32
    %c0_i32_1 = arith.constant 0 : i32
    return %arg0, %c0_i32, %c0_i32_0 : i32, i32, i32
  }
  func.func @transform_3(%arg0: i32) -> (i32, i32, i32) {
    %c0_i32 = arith.constant 0 : i32
    %c0_i32_0 = arith.constant 0 : i32
    %c0_i32_1 = arith.constant 0 : i32
    return %arg0, %c0_i32, %c0_i32_0 : i32, i32, i32
  }
  func.func @transform_4(%arg0: i32) -> (i32, i32, i32) {
    %c0_i32 = arith.constant 0 : i32
    %c0_i32_0 = arith.constant 0 : i32
    %c0_i32_1 = arith.constant 0 : i32
    return %arg0, %c0_i32, %c0_i32_0 : i32, i32, i32
  }
  func.func @transform_5(%arg0: i32) -> (i32, i32, i32) {
    %c0_i32 = arith.constant 0 : i32
    %c0_i32_0 = arith.constant 0 : i32
    %c0_i32_1 = arith.constant 0 : i32
    return %arg0, %c0_i32, %c0_i32_0 : i32, i32, i32
  }
  func.func @transform_6(%arg0: i32) -> (i32, i32, i32) {
    %c0_i32 = arith.constant 0 : i32
    %c0_i32_0 = arith.constant 0 : i32
    %c0_i32_1 = arith.constant 0 : i32
    return %arg0, %c0_i32, %c0_i32_0 : i32, i32, i32
  }
  func.func @transform_7(%arg0: i32) -> (i32, i32, i32) {
    %c0_i32 = arith.constant 0 : i32
    %c0_i32_0 = arith.constant 0 : i32
    %c0_i32_1 = arith.constant 0 : i32
    return %arg0, %c0_i32, %c0_i32_0 : i32, i32, i32
  }
  func.func @transform_8(%arg0: i32) -> (i32, i32, i32) {
    %c0_i32 = arith.constant 0 : i32
    %c0_i32_0 = arith.constant 0 : i32
    %c0_i32_1 = arith.constant 0 : i32
    return %arg0, %c0_i32, %c0_i32_0 : i32, i32, i32
  }
  func.func @transform_9(%arg0: i32) -> (i32, i32, i32) {
    %c0_i32 = arith.constant 0 : i32
    %c0_i32_0 = arith.constant 0 : i32
    %c0_i32_1 = arith.constant 0 : i32
    return %arg0, %c0_i32, %c0_i32_0 : i32, i32, i32
  }
  func.func @transform_10(%arg0: i32) -> (i32, i32, i32) {
    %c0_i32 = arith.constant 0 : i32
    %c0_i32_0 = arith.constant 0 : i32
    %c0_i32_1 = arith.constant 0 : i32
    return %arg0, %c0_i32, %c0_i32_0 : i32, i32, i32
  }
  func.func @transform_11(%arg0: i32) -> (i32, i32, i32) {
    %c0_i32 = arith.constant 0 : i32
    %c0_i32_0 = arith.constant 0 : i32
    %c0_i32_1 = arith.constant 0 : i32
    return %arg0, %c0_i32, %c0_i32_0 : i32, i32, i32
  }
  func.func @transform_12(%arg0: i32) -> (i32, i32, i32) {
    %c0_i32 = arith.constant 0 : i32
    %c0_i32_0 = arith.constant 0 : i32
    %c0_i32_1 = arith.constant 0 : i32
    return %arg0, %c0_i32, %c0_i32_0 : i32, i32, i32
  }
  func.func @transform_13(%arg0: i32) -> (i32, i32, i32) {
    %c0_i32 = arith.constant 0 : i32
    %c0_i32_0 = arith.constant 0 : i32
    %c0_i32_1 = arith.constant 0 : i32
    return %arg0, %c0_i32, %c0_i32_0 : i32, i32, i32
  }
  func.func @transform_14(%arg0: i32) -> (i32, i32, i32) {
    %c0_i32 = arith.constant 0 : i32
    %c0_i32_0 = arith.constant 0 : i32
    %c0_i32_1 = arith.constant 0 : i32
    return %arg0, %c0_i32, %c0_i32_0 : i32, i32, i32
  }
  func.func @transform_15(%arg0: i32) -> (i32, i32, i32) {
    %c0_i32 = arith.constant 0 : i32
    %c0_i32_0 = arith.constant 0 : i32
    %c0_i32_1 = arith.constant 0 : i32
    return %arg0, %c0_i32, %c0_i32_0 : i32, i32, i32
  }
  func.func @transform_16(%arg0: i32) -> (i32, i32, i32) {
    %c0_i32 = arith.constant 0 : i32
    %c0_i32_0 = arith.constant 0 : i32
    %c0_i32_1 = arith.constant 0 : i32
    return %arg0, %c0_i32, %c0_i32_0 : i32, i32, i32
  }
  func.func @transform_17(%arg0: i32) -> (i32, i32, i32) {
    %c0_i32 = arith.constant 0 : i32
    %c0_i32_0 = arith.constant 0 : i32
    %c0_i32_1 = arith.constant 0 : i32
    return %arg0, %c0_i32, %c0_i32_0 : i32, i32, i32
  }
  func.func @transform_18(%arg0: i32) -> (i32, i32, i32) {
    %c0_i32 = arith.constant 0 : i32
    %c0_i32_0 = arith.constant 0 : i32
    %c0_i32_1 = arith.constant 0 : i32
    return %arg0, %c0_i32, %c0_i32_0 : i32, i32, i32
  }
  func.func @transform_19(%arg0: i32) -> (i32, i32, i32) {
    %c0_i32 = arith.constant 0 : i32
    %c0_i32_0 = arith.constant 0 : i32
    %c0_i32_1 = arith.constant 0 : i32
    return %arg0, %c0_i32, %c0_i32_0 : i32, i32, i32
  }
  func.func @transform_20(%arg0: i32) -> (i32, i32, i32) {
    %c0_i32 = arith.constant 0 : i32
    %c0_i32_0 = arith.constant 0 : i32
    %c0_i32_1 = arith.constant 0 : i32
    return %arg0, %c0_i32, %c0_i32_0 : i32, i32, i32
  }
  func.func @transform_21(%arg0: i32) -> (i32, i32) {
    %c0_i32 = arith.constant 0 : i32
    %c0_i32_0 = arith.constant 0 : i32
    %c0_i32_1 = arith.constant 0 : i32
    return %c0_i32, %c0_i32_0 : i32, i32
  }
  func.func @transform_22(%arg0: i32) -> (i32, i32) {
    %c0_i32 = arith.constant 0 : i32
    %c0_i32_0 = arith.constant 0 : i32
    %c0_i32_1 = arith.constant 0 : i32
    return %c0_i32, %c0_i32_0 : i32, i32
  }
  func.func @transform_23(%arg0: i32) -> (i32, i32) {
    %c0_i32 = arith.constant 0 : i32
    %c0_i32_0 = arith.constant 0 : i32
    %c0_i32_1 = arith.constant 0 : i32
    return %c0_i32, %c0_i32_0 : i32, i32
  }
  func.func @transform_24(%arg0: i32) -> (i32, i32) {
    %c0_i32 = arith.constant 0 : i32
    %c0_i32_0 = arith.constant 0 : i32
    %c0_i32_1 = arith.constant 0 : i32
    return %c0_i32, %c0_i32_0 : i32, i32
  }
  func.func @transform_25(%arg0: i32) -> (i32, i32, i32) {
    %c0_i32 = arith.constant 0 : i32
    %c0_i32_0 = arith.constant 0 : i32
    %c0_i32_1 = arith.constant 0 : i32
    %c0_i32_2 = arith.constant 0 : i32
    return %c0_i32, %c0_i32_0, %c0_i32_1 : i32, i32, i32
  }
}

</mosaic_0001>

<bundles_post_ra>
// kernel: _lambda_.4
= control target key start
LH: loop header
LB: loop body
LE: loop exit
PB: predicated region body
PF: predicated region fallthrough
CT: control target
= control target key end

     0   :  { %11 = vsyncpa [#allocation3], 0  ;;  %s739_s0 = inlined_call_operand.vmem [shape: f32[2,3,256], index: 0, kind: input, shape index: {}]   ;;  %s740_s1 = inlined_call_operand.hbm [shape: f32[256,16], index: 1, kind: input, shape index: {}]   ;;  %s741_s2 = inlined_call_operand.vmem [shape: f32[8,3], index: 2, kind: input, shape index: {}]   ;;  %s742_s3 = inlined_call_operand.vmem [shape: f32[8,1], index: 3, kind: input, shape index: {}]   ;;  %s743_s4 = inlined_call_operand.hbm [shape: f32[32,8], index: 4, kind: input, shape index: {}]   ;;  %s744_s5 = inlined_call_operand.vmem [shape: f32[32,1], index: 5, kind: input, shape index: {}]   ;;  %s745_s6 = inlined_call_operand.vmem [shape: f32[2,32,16], index: 6, kind: output, shape index: {}]  }
   0x1   :  { %s19_s23 = sshll.u32 %s740_s1, 4  ;;  %s20_s23 = int_to_ptr.hbm [resolvable:$true] %s19_s23 }
   0x2   :  { %12 = vsyncpa [#allocation5], 0  ;;  %s561_s24 = smov [#allocation2]   ;;  %s36_s28 = sshll.u32 %s743_s4, 4  ;;  %s37_s28 = int_to_ptr.hbm [resolvable:$true] %s36_s28 }
   0x3   :  { %s21_s25 = sshll.u32 %s561_s24, 4  ;;  %s562_s29 = smov 128   ;;  %s22_s25 = int_to_ptr.vmem [resolvable:$true] %s21_s25 }
   0x4   :  { %s563_s30 = smov 8   ;;  %s564_s7 = smov [#allocation4]  }
   0x5   :  { %27 = dma.hbm_to_vmem [thread:$0]  %s20_s23, 4096, %s22_s25, [#allocation3], %s562_s29, %s562_s29, %s563_s30  }
   0x6   :  { %s38_s8 = sshll.u32 %s564_s7, 4  ;;  %s39_s8 = int_to_ptr.vmem [resolvable:$true] %s38_s8 }
   0x7   :  { %44 = dma.hbm_to_vmem [thread:$0]  %s37_s28, 512, %s39_s8, [#allocation5], %s562_s29, %s562_s29, %s563_s30  }
   0x8   :  { %557 = dma.done.wait [#allocation3], 4096  }
   0x9   :  { %558 = vsyncadd [#allocation3], 4294963200 }
   0xa   :  { %559 = dma.done.wait [#allocation5], 512  }
   0xb   :  { %560 = vsyncadd [#allocation5], 4294966784  ;;  %v565_v0 = vmov 0   ;;  %v57_v1 = vld [vmem:[%s742_s3] sm:$0xff]  ;;  %v618_v6 = vld [vmem:[#allocation2 + $0x70] sm:$0xff]  ;;  %vm71_vm0 = vcmask 1042432  }
   0xc   :  { %506 = vset.pattern.permute.xlu0 %v565_v0  ;;  %507 = vset.pattern.permute.xlu1 %v565_v0  ;;  %v55_v2 = vld [vmem:[%s739_s0] sm:$0x77]  ;;  %v148_v7 = vld [vmem:[#allocation2 + $0xf0] sm:$0xff]  ;;  %v621_v8 = vld [vmem:[#allocation2 + $0x68] sm:$0xff]  ;;  %vm67_vm1 = vcmask 23552   ;;  %vm218_vm2 = vcmask 64512  }
   0xd   :  { %508 = vset.pattern.permute.xlu2 %v565_v0  ;;  %60 = vperm.xlu0 %506, %v57_v1   ;;  %64 = vst [vmem:[#allocation1] ss:$2 sm:$0xff] %v55_v2  ;;  %v403_v3 = vld [vmem:[%s744_s5] sm:$0xff]  ;;  %v147_v9 = vld [vmem:[#allocation2 + $0xe8] sm:$0xff]  ;;  %v487_v10 = vld [vmem:[%s739_s0 + $0x8] sm:$0x77] }
   0xe   :  { %v616_v4 = vld [vmem:[#allocation2 + $0x78] sm:$0xff]  ;;  %200 = vperm.xlu1 %507, %v403_v3   ;;  %v631_v12 = vld [vmem:[#allocation2 + $0x60] sm:$0xff]  ;;  %v644_v18 = vld [vmem:[%s744_s5 + $0x18] sm:$0xff]  ;;  %vm260_vm3 = vcmask 130048  }
   0xf   :  { %v149_v5 = vld [vmem:[#allocation2 + $0xf8] sm:$0xff]  ;;  %150 = vmatpush.msra.mxu2 %v616_v4  ;;  %v146_v15 = vld [vmem:[#allocation2 + $0xe0] sm:$0xff]  ;;  %v650_v21 = vld [vmem:[#allocation2 + $0x50] sm:$0xff] }
  0x10   :  { %170 = vmatpush.msra.mxu3 %v149_v5  ;;  %v56_v11 = vld [vmem:[%s741_s2] sm:$0xff]  ;;  %v144_v22 = vld [vmem:[#allocation2 + $0xd0] sm:$0xff]  ;;  %v653_v23 = vld [vmem:[#allocation2 + $0x48] sm:$0xff] }
  0x11   :  { %151 = vmatpush.msra.mxu2 %v618_v6  ;;  %v648_v19 = vld [vmem:[#allocation2 + $0x58] sm:$0xff]  ;;  %v143_v24 = vld [vmem:[#allocation2 + $0xc8] sm:$0xff]  ;;  %v656_v25 = vld [vmem:[#allocation2 + $0x40] sm:$0xff] }
  0x12   :  { %171 = vmatpush.msra.mxu3 %v148_v7  ;;  %v145_v20 = vld [vmem:[#allocation2 + $0xd8] sm:$0xff]  ;;  %v142_v26 = vld [vmem:[#allocation2 + $0xc0] sm:$0xff]  ;;  %v662_v29 = vld [vmem:[#allocation2 + $0x30] sm:$0xff] }
  0x13   :  { %152 = vmatpush.msra.mxu2 %v621_v8  ;;  %v660_v27 = vld [vmem:[#allocation2 + $0x38] sm:$0xff]  ;;  %v140_v30 = vld [vmem:[#allocation2 + $0xb0] sm:$0xff]  ;;  %v665_v31 = vld [vmem:[#allocation2 + $0x28] sm:$0xff] }
  0x14   :  { %172 = vmatpush.msra.mxu3 %v147_v9  ;;  %v65_v13 = vld.sshfl [vmem:[#allocation1] sm:$0xff pattern:$0x75316420]  ;;  %v66_v14 = vld.sshfl [vmem:[#allocation1 + $0x8] sm:$0xff pattern:$0x75316420] }
  0x15   :  { %271 = vperm.xlu0 %506, %v57_v1   ;;  %479 = vmatpush.msk.msra.mxu0 %vm71_vm0, %v65_v13  ;;  %275 = vst [vmem:[#allocation1] ss:$2 sm:$0xff] %v487_v10  ;;  %v141_v28 = vld [vmem:[#allocation2 + $0xb8] sm:$0xff]  ;;  %v139_v32 = vld [vmem:[#allocation2 + $0xa8] sm:$0xff]  ;;  %v668_v33 = vld [vmem:[#allocation2 + $0x20] sm:$0xff] }
  0x16   :  { %481 = vmatpush.msk.msra.mxu1 %vm71_vm0, %v66_v14  ;;  %480 = vmatmul.msk.f32.vlgmr.msra.gmra.mxu0 %vm67_vm1, %v56_v11  ;;  %v138_v34 = vld [vmem:[#allocation2 + $0xa0] sm:$0xff]  ;;  %v672_v35 = vld [vmem:[#allocation2 + $0x18] sm:$0xff]  ;;  %v675_v37 = vld [vmem:[#allocation2 + $0x10] sm:$0xff] }
  0x17   :  { %482 = vmatmul.msk.f32.vlgmr.msra.gmra.mxu1 %vm67_vm1, %v56_v11  ;;  %153 = vmatpush.msra.mxu2 %v631_v12  ;;  %v137_v36 = vld [vmem:[#allocation2 + $0x98] sm:$0xff]  ;;  %v136_v38 = vld [vmem:[#allocation2 + $0x90] sm:$0xff]  ;;  %v119_v39 = vld [vmem:[#allocation2 + $0x8] sm:$0xff] }
  0x18   :  { %173 = vmatpush.msra.mxu3 %v146_v15  ;;  %v135_v40 = vld [vmem:[#allocation2 + $0x88] sm:$0xff]  ;;  %v118_v41 = vld [vmem:[#allocation2] sm:$0xff]  ;;  %v192_v63 = vld [vmem:[#allocation4 + $0x10] sm:$0xff] }
  0x19   :  { %154 = vmatpush.msra.mxu2 %v648_v19  ;;  %v134_v42 = vld [vmem:[#allocation2 + $0x80] sm:$0xff]  ;;  %v196_v61 = vld [vmem:[%s744_s5 + $0x10] sm:$0xff]  ;;  %v193_v0 = vld [vmem:[#allocation4 + $0x18] sm:$0xff] }
  0x1a   :  { %174 = vmatpush.msra.mxu3 %v145_v20  ;;  %v195_v56 = vld [vmem:[%s744_s5 + $0x8] sm:$0xff]  ;;  %210 = vperm.xlu2 %508, %v196_v61   ;;  %v191_v62 = vld [vmem:[#allocation4 + $0x8] sm:$0xff] }
  0x1b   :  { %155 = vmatpush.msra.mxu2 %v650_v21  ;;  %205 = vperm.xlu1 %507, %v195_v56   ;;  %v190_v60 = vld [vmem:[#allocation4] sm:$0xff] }
  0x1c   :  { %v276_v16 = vld.sshfl [vmem:[#allocation1] sm:$0xff pattern:$0x75316420]  ;;  %v277_v17 = vld.sshfl [vmem:[#allocation1 + $0x8] sm:$0xff pattern:$0x75316420]  ;;  %175 = vmatpush.msra.mxu3 %v144_v22 }
  0x1d   :  { %409 = vperm.xlu0 %506, %v403_v3   ;;  %488 = vmatpush.msk.msrb.mxu1 %vm71_vm0, %v276_v16 }
  0x1e   :  { %156 = vmatpush.msra.mxu2 %v653_v23  ;;  %176 = vmatpush.msra.mxu3 %v143_v24 }
  0x1f   :  { %490 = vmatpush.msk.msra.mxu1 %vm71_vm0, %v277_v17 }
  0x20   :  { %489 = vmatmul.msk.f32.vlgmr.msrb.gmra.mxu1 %vm67_vm1, %v56_v11  ;;  %157 = vmatpush.msra.mxu2 %v656_v25 }
  0x21   :  { %379 = vmatpush.msrb.mxu1 %v149_v5  ;;  %177 = vmatpush.msra.mxu3 %v142_v26 }
  0x22   :  { %158 = vmatpush.msra.mxu2 %v660_v27  ;;  %215 = vperm.xlu2 %508, %v644_v18  }
  0x23   :  { %380 = vmatpush.msrb.mxu1 %v148_v7  ;;  %178 = vmatpush.msra.mxu3 %v141_v28 }
  0x24   :  { %159 = vmatpush.msra.mxu2 %v662_v29  ;;  %414 = vperm.xlu1 %507, %v195_v56  }
  0x25   :  { %381 = vmatpush.msrb.mxu1 %v147_v9  ;;  %424 = vperm.xlu0 %506, %v644_v18  }
  0x26   :  { %179 = vmatpush.msra.mxu3 %v140_v30  ;;  %160 = vmatpush.msra.mxu2 %v665_v31 }
  0x27   :  { %382 = vmatpush.msrb.mxu1 %v146_v15 }
  0x28   :  { %491 = vmatmul.msk.f32.vlgmr.msra.gmra.mxu1 %vm67_vm1, %v56_v11  ;;  %180 = vmatpush.msra.mxu3 %v139_v32 }
  0x29   :  { %383 = vmatpush.msrb.mxu1 %v145_v20  ;;  %161 = vmatpush.msra.mxu2 %v668_v33 }
  0x2a   :  { %181 = vmatpush.msra.mxu3 %v138_v34  ;;  %419 = vperm.xlu2 %508, %v196_v61  }
  0x2b   :  { %384 = vmatpush.msrb.mxu1 %v144_v22  ;;  %162 = vmatpush.msra.mxu2 %v672_v35 }
  0x2c   :  { %182 = vmatpush.msra.mxu3 %v137_v36 }
  0x2d   :  { %385 = vmatpush.msrb.mxu1 %v143_v24  ;;  %163 = vmatpush.msra.mxu2 %v675_v37 }
  0x2e   :  { %183 = vmatpush.msra.mxu3 %v136_v38 }
  0x2f   :  { %386 = vmatpush.msrb.mxu1 %v142_v26  ;;  %164 = vmatpush.msra.mxu2 %v119_v39 }
  0x30   :  { %184 = vmatpush.msra.mxu3 %v135_v40 }
  0x31   :  { %387 = vmatpush.msrb.mxu1 %v141_v28  ;;  %165 = vmatpush.msra.mxu2 %v118_v41 }
  0x32   :  { %185 = vmatpush.msra.mxu3 %v134_v42 }
  0x33   :  { %388 = vmatpush.msrb.mxu1 %v140_v30 }
  0x35   :  { %389 = vmatpush.msrb.mxu1 %v139_v32 }
  0x37   :  { %390 = vmatpush.msrb.mxu1 %v138_v34 }
  0x39   :  { %391 = vmatpush.msrb.mxu1 %v137_v36 }
  0x3b   :  { %392 = vmatpush.msrb.mxu1 %v136_v38 }
  0x3d   :  { %393 = vmatpush.msrb.mxu1 %v135_v40 }
  0x3f   :  { %394 = vmatpush.msrb.mxu1 %v134_v42 }
  0x7f   :  { %v61_v43 = vpop.permute.xlu0 %60 }
  0x80   :  { %v201_v2 = vpop.permute.xlu1 %200 }
  0x87   :  { %v272_v50 = vpop.permute.xlu0 %271 }
  0x8d   :  { %v206_v5 = vpop.permute.xlu1 %205 }
  0x8f   :  { %v410_v17 = vpop.permute.xlu0 %409 }
  0x93   :  { %v93_v44 = vpop.f32.mrf.mxu0 }
  0x94   :  { %v94_v45 = vadd.f32 %v93_v44, %v61_v43  ;;  %v113_v46 = vpop.f32.mrf.mxu1 }
  0x95   :  { %v114_v47 = vadd.f32 %v113_v46, %v61_v43 }
  0x96   :  { %v116_v48 = vmax.f32 %v94_v45, 0.0  ;;  %v415_v24 = vpop.permute.xlu1 %414 }
  0x97   :  { %v117_v49 = vmax.f32 %v114_v47, 0.0 }
  0x98   :  { %166 = vmatmul.f32.vlgmr.msra.gmra.mxu2 %v116_v48 }
  0x99   :  { %186 = vmatmul.f32.vlgmr.msra.gmra.mxu3 %v117_v49 }
  0x9d   :  { %v302_v51 = vpop.f32.mrf.mxu1 }
  0x9e   :  { %v303_v52 = vadd.f32 %v302_v51, %v272_v50 }
  0xa0   :  { %v325_v1 = vmax.f32 %v303_v52, 0.0 }
  0xa5   :  { %v322_v53 = vpop.f32.mrf.mxu1 }
  0xa6   :  { %v323_v54 = vadd.f32 %v322_v53, %v272_v50 }
  0xa8   :  { %v326_v55 = vmax.f32 %v323_v54, 0.0 }
  0xaa   :  { %395 = vmatmul.f32.vlgmr.msrb.gmra.mxu1 %v326_v55 }
 0x11b   :  { %v167_v57 = vpop.f32.mrf.mxu2 }
 0x11c   :  { %v187_v58 = vpop.f32.mrf.mxu3 }
 0x11d   :  { %v188_v59 = vadd.f32 %v187_v58, %v167_v57 }
 0x11f   :  { %246 = vmatpush.msrb.mxu0 %v188_v59 }
 0x120   :  { %483 = vmatmul.msk.f32.vlgmr.msrb.gmra.mxu0 %vm218_vm2, %v190_v60 }
 0x121   :  { %359 = vmatpush.msra.mxu0 %v616_v4 }
 0x123   :  { %360 = vmatpush.msra.mxu0 %v618_v6 }
 0x125   :  { %361 = vmatpush.msra.mxu0 %v621_v8  ;;  %v211_v8 = vpop.permute.xlu2 %210 }
 0x127   :  { %362 = vmatpush.msra.mxu0 %v631_v12  ;;  %v396_v14 = vpop.f32.mrf.mxu1 }
 0x128   :  { %484 = vmatmul.msk.f32.gmra.mxu0 %vm218_vm2, %v191_v62 }
 0x129   :  { %363 = vmatpush.msra.mxu0 %v648_v19 }
 0x12b   :  { %364 = vmatpush.msra.mxu0 %v650_v21 }
 0x12d   :  { %365 = vmatpush.msra.mxu0 %v653_v23  ;;  %v216_v11 = vpop.permute.xlu2 %215  ;;  %v425_v23 = vpop.permute.xlu0 %424 }
 0x12f   :  { %366 = vmatpush.msra.mxu0 %v656_v25 }
 0x130   :  { %485 = vmatmul.msk.f32.gmra.mxu0 %vm218_vm2, %v192_v63 }
 0x131   :  { %367 = vmatpush.msra.mxu0 %v660_v27 }
 0x133   :  { %368 = vmatpush.msra.mxu0 %v662_v29 }
 0x135   :  { %369 = vmatpush.msra.mxu0 %v665_v31  ;;  %v420_v18 = vpop.permute.xlu2 %419 }
 0x137   :  { %370 = vmatpush.msra.mxu0 %v668_v33 }
 0x138   :  { %486 = vmatmul.msk.f32.gmra.mxu0 %vm218_vm2, %v193_v0 }
 0x139   :  { %371 = vmatpush.msra.mxu0 %v672_v35 }
 0x13b   :  { %372 = vmatpush.msra.mxu0 %v675_v37 }
 0x13d   :  { %373 = vmatpush.msra.mxu0 %v119_v39 }
 0x13f   :  { %374 = vmatpush.msra.mxu0 %v118_v41 }
 0x140   :  { %375 = vmatmul.f32.vlgmr.msra.gmra.mxu0 %v325_v1 }
 0x19d   :  { %v248_v3 = vpop.f32.mrf.mxu0 }
 0x19e   :  { %v249_v4 = vadd.f32 %v248_v3, %v201_v2 }
 0x1a0   :  { %261 = vst.msk [vmem:[%s745_s6] sm:$0xff] %vm260_vm3, %v249_v4 }
 0x1a5   :  { %v251_v6 = vpop.f32.mrf.mxu0 }
 0x1a6   :  { %v252_v7 = vadd.f32 %v251_v6, %v206_v5 }
 0x1a8   :  { %262 = vst.msk [vmem:[%s745_s6 + $0x8] sm:$0xff] %vm260_vm3, %v252_v7 }
 0x1ad   :  { %v254_v9 = vpop.f32.mrf.mxu0 }
 0x1ae   :  { %v255_v10 = vadd.f32 %v254_v9, %v211_v8 }
 0x1b0   :  { %263 = vst.msk [vmem:[%s745_s6 + $0x10] sm:$0xff] %vm260_vm3, %v255_v10 }
 0x1b5   :  { %v257_v12 = vpop.f32.mrf.mxu0 }
 0x1b6   :  { %v258_v13 = vadd.f32 %v257_v12, %v216_v11 }
 0x1b8   :  { %264 = vst.msk [vmem:[%s745_s6 + $0x18] sm:$0xff] %vm260_vm3, %v258_v13 }
 0x1bd   :  { %v376_v15 = vpop.f32.mrf.mxu0 }
 0x1be   :  { %v397_v16 = vadd.f32 %v396_v14, %v376_v15 }
 0x1c0   :  { %454 = vmatpush.msrb.mxu2 %v397_v16  ;;  %500 = vmatpush.msrb.mxu3 %v397_v16 }
 0x1c1   :  { %492 = vmatmul.msk.f32.vlgmr.msrb.gmra.mxu2 %vm218_vm2, %v190_v60  ;;  %494 = vmatmul.msk.f32.vlgmr.msrb.gmra.mxu3 %vm218_vm2, %v192_v63 }
 0x1c9   :  { %493 = vmatmul.msk.f32.gmra.mxu2 %vm218_vm2, %v191_v62  ;;  %495 = vmatmul.msk.f32.gmra.mxu3 %vm218_vm2, %v193_v0 }
 0x244   :  { %v456_v19 = vpop.f32.mrf.mxu2  ;;  %v462_v20 = vpop.f32.mrf.mxu3 }
 0x245   :  { %v457_v21 = vadd.f32 %v456_v19, %v410_v17  ;;  %v463_v22 = vadd.f32 %v462_v20, %v420_v18 }
 0x247   :  { %496 = vst.msk [vmem:[%s745_s6 + $0x20] sm:$0xff] %vm260_vm3, %v457_v21 }
 0x248   :  { %498 = vst.msk [vmem:[%s745_s6 + $0x30] sm:$0xff] %vm260_vm3, %v463_v22 }
 0x24c   :  { %v459_v25 = vpop.f32.mrf.mxu2  ;;  %v465_v26 = vpop.f32.mrf.mxu3 }
 0x24d   :  { %v460_v27 = vadd.f32 %v459_v25, %v415_v24  ;;  %v466_v28 = vadd.f32 %v465_v26, %v425_v23 }
 0x24f   :  { %497 = vst.msk [vmem:[%s745_s6 + $0x28] sm:$0xff] %vm260_vm3, %v460_v27 }
 0x250   :  { %499 = vst.msk [vmem:[%s745_s6 + $0x38] sm:$0xff] %vm260_vm3, %v466_v28 }
 0x251   :  { %477 = vsyncpa [#allocation3], 1 }
 0x252   :  { %478 = vsyncpa [#allocation5], 1 }

// kernel: _lambda_.5
= control target key start
LH: loop header
LB: loop body
LE: loop exit
PB: predicated region body
PF: predicated region fallthrough
CT: control target
= control target key end

     0   :  { %s4191_s0 = inlined_call_operand.vmem [shape: f32[2,10,32], index: 0, kind: input, shape index: {}]   ;;  %s4192_s1 = inlined_call_operand.vmem [shape: f32[2,16], index: 1, kind: input, shape index: {}]   ;;  %s4193_s2 = inlined_call_operand.hbm [shape: f32[2,32,96], index: 2, kind: input, shape index: {}]   ;;  %s4194_s3 = inlined_call_operand.hbm [shape: f32[2,10,96], index: 3, kind: input, shape index: {}]   ;;  %s4195_s4 = inlined_call_operand.hbm [shape: f32[2,32,32], index: 4, kind: input, shape index: {}]   ;;  %s4196_s5 = inlined_call_operand.vmem [shape: f32[2,1,32], index: 5, kind: input, shape index: {}, may-alias: {5,7,11,13}]   ;;  %s4197_s6 = inlined_call_operand.vmem [shape: f32[2,1,32], index: 6, kind: input, shape index: {}, may-alias: {6,12}]   ;;  %s4198_s7 = inlined_call_operand.vmem [shape: f32[2,1,32], index: 7, kind: input, shape index: {}, may-alias: {5,7,11,13}]   ;;  %s4199_s8 = inlined_call_operand.hbm [shape: f32[2,32,64], index: 8, kind: input, shape index: {}]   ;;  %s4200_s9 = inlined_call_operand.vmem [shape: f32[2,1,64], index: 9, kind: input, shape index: {}]   ;;  %s4201_s10 = inlined_call_operand.hbm [shape: f32[2,64,32], index: 10, kind: input, shape index: {}]   ;;  %s4202_s11 = inlined_call_operand.vmem [shape: f32[2,1,32], index: 11, kind: input, shape index: {}, may-alias: {5,7,11,13}]   ;;  %s4203_s12 = inlined_call_operand.vmem [shape: f32[2,1,32], index: 12, kind: input, shape index: {}, may-alias: {6,12}]   ;;  %s4204_s13 = inlined_call_operand.vmem [shape: f32[2,1,32], index: 13, kind: input, shape index: {}, may-alias: {5,7,11,13}]   ;;  %s4205_s14 = inlined_call_operand.hbm [shape: f32[32,32], index: 14, kind: input, shape index: {}]   ;;  %s4206_s15 = inlined_call_operand.vmem [shape: f32[1,32], index: 15, kind: input, shape index: {}, may-alias: {15,17}]   ;;  %s4207_s16 = inlined_call_operand.vmem [shape: f32[16,32], index: 16, kind: input, shape index: {}]   ;;  %s4208_s17 = inlined_call_operand.vmem [shape: f32[1,32], index: 17, kind: input, shape index: {}, may-alias: {15,17}]   ;;  %s4209_s18 = inlined_call_operand.vmem [shape: f32[2,32], index: 18, kind: output, shape index: {0}]   ;;  %s4210_s19 = inlined_call_operand.hbm [shape: f32[2,16], index: 19, kind: output, shape index: {1}]   ;;  %s4211_s20 = inlined_call_operand.hbm [shape: f32[2,16], index: 20, kind: output, shape index: {2}]  }
   0x1   :  { %4227 = sst [smem:[#allocation26_spill]] %s4191_s0 }
   0x2   :  { %4228 = sst [smem:[#allocation27_spill]] %s4192_s1 }
   0x3   :  { %4229 = sst [smem:[#allocation28_spill]] %s4193_s2 }
   0x4   :  { %4230 = sst [smem:[#allocation29_spill]] %s4194_s3 }
   0x5   :  { %4231 = sst [smem:[#allocation30_spill]] %s4195_s4 }
   0x6   :  { %4232 = sst [smem:[#allocation31_spill]] %s4196_s5 }
   0x7   :  { %4233 = sst [smem:[#allocation32_spill]] %s4198_s7 }
   0x8   :  { %4234 = sst [smem:[#allocation33_spill]] %s4199_s8 }
   0x9   :  { %4235 = sst [smem:[#allocation34_spill]] %s4200_s9 }
   0xa   :  { %4236 = sst [smem:[#allocation35_spill]] %s4202_s11 }
   0xb   :  { %4237 = sst [smem:[#allocation36_spill]] %s4203_s12 }
   0xc   :  { %4238 = sst [smem:[#allocation37_spill]] %s4204_s13 }
   0xd   :  { %4239 = sst [smem:[#allocation38_spill]] %s4205_s14 }
   0xe   :  { %4240 = sst [smem:[#allocation39_spill]] %s4206_s15 }
   0xf   :  { %4241 = sst [smem:[#allocation40_spill]] %s4207_s16 }
  0x10   :  { %4242 = sst [smem:[#allocation41_spill]] %s4208_s17 }
  0x11   :  { %4243 = sst [smem:[#allocation42_spill]] %s4209_s18 }
  0x12   :  { %4244 = sst [smem:[#allocation43_spill]] %s4210_s19 }
  0x13   :  { %4245 = sst [smem:[#allocation44_spill]] %s4211_s20 }
  0x14   :  { %26 = vsyncpa [#allocation4], 0 }
  0x15   :  { %28 = vsyncpa [#allocation4 + $0x1], 0 }
  0x16   :  { %29 = vsyncpa [#allocation7], 0 }
  0x17   :  { %31 = vsyncpa [#allocation7 + $0x1], 0 }
  0x18   :  { %32 = vsyncpa [#allocation10], 0 }
  0x19   :  { %34 = vsyncpa [#allocation10 + $0x1], 0 }
  0x1a   :  { %35 = vsyncpa [#allocation13], 0 }
  0x1b   :  { %36 = vsyncpa [#allocation5], 0 }
  0x1c   :  { %37 = vsyncpa [#allocation16], 0  ;;  %s3410_s1 = smov 0   ;;  %s3412_s22 = smov 0  }
  0x1d   :  { %s3414_s23 = smov 0   ;;  %s3416_s24 = smov 0  }
  0x1e LB: > { %4246 = sst [smem:[#allocation23_spill]] %s3277_s23  ;;  %s3431_s2 = sadd.s32 1, %s3281_s24   ;;  %s3281_s24 = sphi %s3416_s24, %s4275_s24   ;;  %s3277_s23 = sphi %s3414_s23, %s4277_s23   ;;  %s3273_s22 = sphi %s3412_s22, %s4279_s22   ;;  %s3269_s1 = sphi %s3410_s1, %s4278_s1  }
  0x1f   : > { %4247 = sst [smem:[#allocation24_spill]] %s3431_s2  ;;  %s92_s25 = sadd.s32 1, %s3277_s23 }
  0x20   : > { %s89_s3 = ssub.s32 %s3281_s24, %s3431_s2  ;;  %p99_p0 = scmp.ne.s32.totalorder %s3277_s23, %s3273_s22 }
  0x21   : > { %p90_p1 = scmp.eq.s32.totalorder %s89_s3, 0  ;;  %p100_p2 = scmp.eq.s32.totalorder %s3281_s24, 0 }
  0x22   : > { %p2831_p4 = scmp.lt.s32.totalorder %s3281_s24, 2  ;;  %s3444_s27 = sand.u32 1, %s3277_s23  }
  0x23   : > { %s3440_s26 = scalar_select %p90_p1, %s3277_s23, %s92_s25  }
  0x24   : > { %p101_p3 = por %p100_p2, %p99_p0  ;;  %s4219_s28 = sand.u32 1, %s3281_s24  }
  0x25   : > { %4248 = sst [smem:[#allocation25_spill]] %s3440_s26  ;;  %s2682_s4 = sshll.u32 %s3444_s27, 4 }
  0x26   : > { %p3448_p5 = pnand %p2831_p4, %p101_p3  ;;  %s2784_s30 = sshll.u32 %s3281_s24, 4 }
  0x27   : > { %s4250_s3 = sld [smem:[#allocation29_spill]]  ;;  %s617_s25 = scalar_lea.vmem [#allocation6], %s2682_s4 }
  0x28   : > { %s625_s26 = sshll.u32 %s617_s25, 4  ;;  %s3458_s23 = scalar_lea.sflag [#allocation7], %s4219_s28  ;;  %s626_s26 = int_to_ptr.vmem [resolvable:$true] %s625_s26 }
  0x29   : > { %p3462_p7 = pneg %p3448_p5 }
  0x2d   : > { %s622_s2 = scalar_lea.hbm %s4250_s3, %s2784_s30  ;;  %s2998_s30 = scalar_lea.hbm %s4250_s3, 32 }
  0x2e   : > { %s623_s20 = sshll.u32 %s622_s2, 4  ;;  %s624_s20 = int_to_ptr.hbm [resolvable:$true] %s623_s20 }
  0x2f   : > { %s2991_s19 = sshra.s32 %s624_s20, 4  ;;  %s2992_s19 = int_to_ptr.hbm [resolvable:$true] %s2991_s19 }
  0x30   : > { %s2993_s18 = scalar_lea.hbm %s2992_s19, 16  ;;  %p2999_p10 = scmp.lt.s32.totalorder %s2992_s19, %s4250_s3 }
  0x31   : > { %p2994_p6 = scmp.ne.s32.totalorder %s2992_s19, %s2993_s18  ;;  %p3000_p11 = scmp.lt.s32.totalorder %s2998_s30, %s2993_s18 }
  0x33   : > { %p2996_p8 = pnand %p3462_p7, %p2994_p6  ;;  %p3001_p12 = por %p3000_p11, %p2999_p10 }
  0x35   : > { %p2997_p9 = pneg %p2996_p8 }
  0x37   : > { %p3002_p13 = pnand %p3001_p12, %p2997_p9 }
  0x39   : > { %3005 = shalt.err (!%p3002_p13)
}
  0x3a   : > { %s4222_s25 = smov 128   ;;  %s4224_s28 = smov 8  }
  0x3b   : > { %2820 = dma.hbm_to_vmem [thread:$0]  (!%p3448_p5), %s624_s20, 256, %s626_s26, %s3458_s23, %s4222_s25, %s4222_s25, %s4224_s28  }
  0x3c   : > { %s3481_s2 = sshll.u32 %s3444_s27, 5  ;;  %s3484_s18 = sshll.u32 %s3281_s24, 5 }
  0x3d   : > { %s4252_s8 = sld [smem:[#allocation33_spill]]  ;;  %s679_s0 = scalar_lea.vmem [#allocation9], %s3481_s2 }
  0x3e   : > { %s687_s21 = sshll.u32 %s679_s0, 4  ;;  %s4253_s16 = sand.u32 1, %s3281_s24   ;;  %s688_s21 = int_to_ptr.vmem [resolvable:$true] %s687_s21 }
  0x3f   : > { %s3493_s15 = scalar_lea.sflag [#allocation10], %s4253_s16 }
  0x43   : > { %s684_s30 = scalar_lea.hbm %s4252_s8, %s3484_s18  ;;  %s3028_s19 = scalar_lea.hbm %s4252_s8, 64 }
  0x44   : > { %s685_s3 = sshll.u32 %s684_s30, 4  ;;  %s686_s3 = int_to_ptr.hbm [resolvable:$true] %s685_s3 }
  0x45   : > { %s3021_s13 = sshra.s32 %s686_s3, 4  ;;  %s3022_s13 = int_to_ptr.hbm [resolvable:$true] %s3021_s13 }
  0x46   : > { %s3023_s20 = scalar_lea.hbm %s3022_s13, 32  ;;  %p3029_p3 = scmp.lt.s32.totalorder %s3022_s13, %s4252_s8 }
  0x47   : > { %p3024_p0 = scmp.ne.s32.totalorder %s3022_s13, %s3023_s20  ;;  %p3030_p4 = scmp.lt.s32.totalorder %s3028_s19, %s3023_s20 }
  0x49   : > { %p3026_p1 = pnand %p3024_p0, %p3462_p7  ;;  %p3031_p6 = por %p3030_p4, %p3029_p3 }
  0x4b   : > { %p3027_p2 = pneg %p3026_p1 }
  0x4d   : > { %p3032_p8 = pnand %p3031_p6, %p3027_p2 }
  0x4f   : > { %3035 = shalt.err (!%p3032_p8)
}
  0x50   : > { %s4254_s16 = smov 8   ;;  %s4255_s30 = smov 128  }
  0x51   : > { %2826 = dma.hbm_to_vmem [thread:$0]  (!%p3448_p5), %s686_s3, 512, %s688_s21, %s3493_s15, %s4255_s30, %s4255_s30, %s4254_s16  }
  0x52   : > { %s3510_s25 = sadd.s32 4294967295, %s3281_s24   ;;  %p105_p9 = scmp.ne.s32.totalorder %s3273_s22, %s3269_s1 }
  0x53   : > { %p106_p10 = scmp.eq.s32.totalorder %s3510_s25, 0  ;;  %p2676_p11 = scmp.ge.s32.totalorder %s3281_s24, 1 }
  0x54   : > { %p549_p12 = scmp.lt.s32.totalorder %s3281_s24, 3  ;;  %p2677_p0 = scmp.ne.s32.totalorder %s3510_s25, 0 }
  0x55   : > { %p3519_p13 = por %p106_p10, %p105_p9  ;;  %s4258_s14 = sld [smem:[#allocation38_spill]] }
  0x56   : > { %p3524_p1 = pnand %p2676_p11, %p549_p12  ;;  %s3285_s1 = smov [#allocation12]  }
  0x57   : > { %s568_s20 = sshll.u32 %s3285_s1, 4  ;;  %s4259_s4 = sld [smem:[#allocation28_spill]]  ;;  %s569_s20 = int_to_ptr.vmem [resolvable:$true] %s568_s20 }
  0x58   : > { %p2810_p2 = pneg %p3524_p1  ;;  %s595_s12 = scalar_lea.vmem [#allocation3], %s3481_s2 }
  0x59   : > { %s603_s11 = sshll.u32 %s595_s12, 4  ;;  %s592_s3 = scalar_lea.sflag [#allocation4], %s3444_s27  ;;  %s604_s11 = int_to_ptr.vmem [resolvable:$true] %s603_s11 }
  0x5a   : > { %p2811_p3 = pnand %p2810_p2, %p106_p10 }
  0x5b   : > { %s566_s21 = sshll.u32 %s4258_s14, 4  ;;  %s567_s21 = int_to_ptr.hbm [resolvable:$true] %s566_s21 }
  0x5c   : > { %2813 = dma.hbm_to_vmem [thread:$0]  (!%p2811_p3), %s567_s21, 512, %s569_s20, [#allocation13], %s4255_s30, %s4255_s30, %s4254_s16  }
  0x5d   : > { %s600_s8 = scalar_lea.hbm %s4259_s4, %s3484_s18  ;;  %s3088_s19 = scalar_lea.hbm %s4259_s4, 64 }
  0x5e   : > { %s601_s9 = sshll.u32 %s600_s8, 4  ;;  %s602_s9 = int_to_ptr.hbm [resolvable:$true] %s601_s9 }
  0x5f   : > { %s3081_s0 = sshra.s32 %s602_s9, 4  ;;  %s3082_s0 = int_to_ptr.hbm [resolvable:$true] %s3081_s0 }
  0x60   : > { %s3083_s1 = scalar_lea.hbm %s3082_s0, 32  ;;  %p3089_p9 = scmp.lt.s32.totalorder %s3082_s0, %s4259_s4 }
  0x61   : > { %p3084_p4 = scmp.ne.s32.totalorder %s3082_s0, %s3083_s1  ;;  %p3090_p11 = scmp.lt.s32.totalorder %s3088_s19, %s3083_s1 }
  0x63   : > { %p3086_p6 = pnand %p3084_p4, %p3462_p7  ;;  %p3091_p12 = por %p3090_p11, %p3089_p9 }
  0x65   : > { %p3087_p8 = pneg %p3086_p6 }
  0x67   : > { %p3092_p2 = pnand %p3091_p12, %p3087_p8 }
  0x69   : > { %3095 = shalt.err (!%p3092_p2)
}
  0x6a   : > { %2817 = dma.hbm_to_vmem [thread:$0]  (!%p3448_p5), %s602_s9, 512, %s604_s11, %s592_s3, %s4255_s30, %s4255_s30, %s4254_s16  }
  0x6b   : > { %s4260_s20 = sld [smem:[#allocation30_spill]]  ;;  %s639_s12 = scalar_lea.vmem [#allocation8], %s3481_s2 }
  0x6c   : > { %s647_s0 = sshll.u32 %s639_s12, 4  ;;  %s648_s0 = int_to_ptr.vmem [resolvable:$true] %s647_s0 }
  0x71   : > { %s644_s26 = scalar_lea.hbm %s4260_s20, %s3484_s18  ;;  %s3118_s9 = scalar_lea.hbm %s4260_s20, 64 }
  0x72   : > { %s645_s7 = sshll.u32 %s644_s26, 4  ;;  %s646_s7 = int_to_ptr.hbm [resolvable:$true] %s645_s7 }
  0x73   : > { %s3111_s1 = sshra.s32 %s646_s7, 4  ;;  %s3112_s1 = int_to_ptr.hbm [resolvable:$true] %s3111_s1 }
  0x74   : > { %s3113_s19 = scalar_lea.hbm %s3112_s1, 32  ;;  %p3119_p8 = scmp.lt.s32.totalorder %s3112_s1, %s4260_s20 }
  0x75   : > { %p3114_p3 = scmp.ne.s32.totalorder %s3112_s1, %s3113_s19  ;;  %p3120_p9 = scmp.lt.s32.totalorder %s3118_s9, %s3113_s19 }
  0x77   : > { %p3116_p4 = pnand %p3114_p3, %p3462_p7  ;;  %p3121_p11 = por %p3120_p9, %p3119_p8 }
  0x79   : > { %p3117_p6 = pneg %p3116_p4 }
  0x7b   : > { %p3122_p12 = pnand %p3121_p11, %p3117_p6 }
  0x7d   : > { %3125 = shalt.err (!%p3122_p12)
}
  0x7e   : > { %2823 = dma.hbm_to_vmem [thread:$0]  (!%p3448_p5), %s646_s7, 512, %s648_s0, %s3458_s23, %s4255_s30, %s4255_s30, %s4254_s16  }
  0x7f   : > { %s2691_s2 = sshll.u32 %s3444_s27, 6  ;;  %s2787_s18 = sshll.u32 %s3281_s24, 6 }
  0x80   : > { %s712_s14 = scalar_lea.hbm %s4201_s10, %s2787_s18  ;;  %s707_s12 = scalar_lea.vmem [#allocation11], %s2691_s2 }
  0x81   : > { %s713_s26 = sshll.u32 %s712_s14, 4  ;;  %s715_s1 = sshll.u32 %s707_s12, 4  ;;  %s714_s26 = int_to_ptr.hbm [resolvable:$true] %s713_s26  ;;  %s716_s1 = int_to_ptr.vmem [resolvable:$true] %s715_s1 }
  0x82   : > { %s3141_s19 = sshra.s32 %s714_s26, 4  ;;  %s3148_s23 = scalar_lea.hbm %s4201_s10, 128  ;;  %s3142_s19 = int_to_ptr.hbm [resolvable:$true] %s3141_s19 }
  0x83   : > { %s3143_s8 = scalar_lea.hbm %s3142_s19, 64  ;;  %p3149_p6 = scmp.lt.s32.totalorder %s3142_s19, %s4201_s10 }
  0x84   : > { %p3144_p2 = scmp.ne.s32.totalorder %s3142_s19, %s3143_s8  ;;  %p3150_p8 = scmp.lt.s32.totalorder %s3148_s23, %s3143_s8 }
  0x86   : > { %p3146_p3 = pnand %p3144_p2, %p3462_p7  ;;  %p3151_p9 = por %p3150_p8, %p3149_p6 }
  0x88   : > { %p3147_p4 = pneg %p3146_p3 }
  0x8a   : > { %p3152_p11 = pnand %p3151_p9, %p3147_p4 }
  0x8c   : > { %3155 = shalt.err (!%p3152_p11)
}
  0x8d   : > { %2829 = dma.hbm_to_vmem [thread:$0]  (!%p3448_p5), %s714_s26, 1024, %s716_s1, %s3493_s15, %s4255_s30, %s4255_s30, %s4254_s16  }
  0x8e   : > { %745 = sbr.rel (%p3524_p1) target bundleno = 3748 (0xea4), region = 92  ;;  %s747_s17 = sand.u32 (!%p3524_p1), 1, %s3273_s22  }
  0x8f   : > { %s2695_s0 = sshll.u32 (!%p3524_p1), %s747_s17, 5  ;;  %s748_s11 = scalar_lea.sflag (!%p3524_p1), [#allocation4], %s747_s17 }
  0x90   : > { %s3598_s3 = scalar_lea.vmem (!%p3524_p1), [#allocation3], %s2695_s0 }
  0x93   : > { %3244 = dma.done.wait (%p3519_p13), %s748_s11, 512  }
  0x94   : > { %3246 = vsyncadd (%p3519_p13), %s748_s11, 4294966784  ;;  %s757_s29 = sand.u32 1, %s3510_s25   ;;  %s2696_s2 = sshll.u32 %s747_s17, 4 }
  0x95   : > { %s758_s15 = scalar_lea.sflag [#allocation7], %s757_s29  ;;  %s3605_s16 = scalar_lea.vmem [#allocation6], %s2696_s2 }
  0x96   : > { %3248 = dma.done.wait (%p3519_p13), %s758_s15, 768  }
  0x97   : > { %3250 = vsyncadd (%p3519_p13), %s758_s15, 4294966528  ;;  %s3611_s30 = scalar_lea.vmem [#allocation8], %s2695_s0  ;;  %s778_s28 = scalar_lea.sflag [#allocation10], %s757_s29 }
  0x98   : > { %s3613_s18 = scalar_lea.vmem [#allocation9], %s2695_s0 }
  0x99   : > { %3252 = dma.done.wait (%p3519_p13), %s778_s28, 1536  }
  0x9a   : > { %3254 = vsyncadd (%p3519_p13), %s778_s28, 4294965760  ;;  %s2699_s4 = sshll.u32 %s747_s17, 6 }
  0x9b   : > { %s3619_s21 = scalar_lea.vmem [#allocation11], %s2699_s4 }
  0x9c   : > { %3256 = dma.done.wait (%p106_p10), [#allocation13], 512  }
  0x9d   : > { %3258 = vsyncadd (%p106_p10), [#allocation13], 4294966784  ;;  %p890_p5 = scmp.lt.s32.totalorder %s3510_s25, 1  ;;  %s4261_s5 = sld [smem:[#allocation31_spill]] }
  0x9e   : > { %s4262_s23 = sld [smem:[#allocation32_spill]] }
  0x9f   : > { %s891_s14 = scalar_select %p890_p5, %s3510_s25, 1 }
  0xa0   : > { %s4263_s0 = sld [smem:[#allocation34_spill]] }
  0xa1   : > { %s3635_s8 = scalar_lea.vmem %s4197_s6, %s891_s14  ;;  %s4264_s15 = sld [smem:[#allocation35_spill]] }
  0xa2   : > { %s4265_s12 = sld [smem:[#allocation36_spill]] }
  0xa3   : > { %s3630_s1 = scalar_lea.vmem %s4261_s5, %s891_s14  ;;  %s4266_s9 = sld [smem:[#allocation37_spill]] }
  0xa4   : > { %s3640_s24 = scalar_lea.vmem %s4262_s23, %s891_s14  ;;  %s4267_s17 = sld [smem:[#allocation26_spill]] (!%p2677_p0) }
  0xa5   : > { %914 = sbr.rel (%p2677_p0) target bundleno = 175 (0xaf), region = 120 }
  0xa6   : > { %s3645_s11 = scalar_lea.vmem %s4263_s0, %s891_s14 }
  0xa7   : > { %s3650_s28 = scalar_lea.vmem %s4264_s15, %s891_s14 }
  0xa8   : > { %s3655_s13 = scalar_lea.vmem %s4265_s12, %s891_s14 }
  0xa9   : > { %s3660_s7 = scalar_lea.vmem %s4266_s9, %s891_s14 }
  0xaa   : > { %v915_v0 = vld [vmem:[%s4267_s17] sm:$0xff]  ;;  %vm919_vm0 = vcmask 261120   ;;  %v916_v1 = vld [vmem:[%s4267_s17 + $0x8] sm:$0x3]  ;;  %vm921_vm1 = vcmask 254976   ;;  %v917_v2 = vld [vmem:[%s4267_s17 + $0x10] sm:$0xff] }
  0xab   : > { %920 = vst.msk [vmem:[#allocation2] sm:$0xff] %vm919_vm0, %v915_v0  ;;  %v918_v3 = vld [vmem:[%s4267_s17 + $0x18] sm:$0x3] }
  0xac   : > { %922 = vst.msk [vmem:[#allocation2 + $0x8] sm:$0x3] %vm921_vm1, %v916_v1 }
  0xad   : > { %923 = vst.msk [vmem:[#allocation2 + $0x10] sm:$0xff] %vm919_vm0, %v917_v2 }
  0xae   : > { %924 = vst.msk [vmem:[#allocation2 + $0x18] sm:$0x3] %vm921_vm1, %v918_v3 }
  0xaf PF: > { %v3677_v4 = vld [vmem:[%s3598_s3 + $0x18] sm:$0xff]  ;;  %v3680_v5 = vld [vmem:[%s3598_s3 + $0x10] sm:$0xff]  ;;  %v3684_v6 = vld [vmem:[%s3598_s3 + $0x8] sm:$0xff]  ;;  %vm956_vm2 = vcmask 261120   ;;  %s3287_s4 = smov 88   ;;  %s3288_s26 = smov 96  }
  0xb0   : > { %975 = vmatpush.msra.mxu0 %v3677_v4  ;;  %v3687_v7 = vld [vmem:[%s3598_s3] sm:$0xff]  ;;  %s3286_s3 = smov 120   ;;  %v932_v13 = vld [vmem:[%s3605_s16 + $0x8] sm:$0x3]  ;;  %s3289_s12 = smov 104   ;;  %vm992_vm3 = vcmask 64512  }
  0xb1   : > { %v3701_v10 = vld [vmem:[%s3605_s16] sm:$0xff]  ;;  %s3290_s19 = smov 72   ;;  %s3291_s9 = smov 80   ;;  %vm1061_vm4 = vcmask 1041408   ;;  %vm1026_vm5 = vcmask 80896   ;;  %vm1030_vm6 = vcmask 74752  }
  0xb2   : > { %976 = vmatpush.msra.mxu0 %v3680_v5  ;;  %v3690_v8 = vld [vmem:[#allocation2] sm:$0xff]  ;;  %s3292_s23 = smov 112   ;;  %s3293_s27 = smov 64   ;;  %vm1410_vm7 = vcmask 130048   ;;  %vm1413_vm8 = vcmask 195584   ;;  %vm1453_vm9 = vcmask 254976  }
  0xb3   : > { %v3696_v9 = vld [vmem:[#allocation2 + $0x8] sm:$0x3]  ;;  %s3294_s0 = smov 56   ;;  %s3295_s29 = smov 40   ;;  %vm1549_vm1 = vcmask 523264  }
  0xb4   : > { %977 = vmatpush.msra.mxu0 %v3684_v6  ;;  %s3296_s2 = smov 48   ;;  %s3297_s15 = smov 8  }
  0xb5   : > { %s3298_s5 = smov 24   ;;  %s3299_s14 = smov 16  }
  0xb6   : > { %978 = vmatpush.msra.mxu0 %v3687_v7  ;;  %p2774_p7 = scmp.ne.s32.totalorder %s3510_s25, 1 }
  0xb7   : > { %2702 = vmatmul.msk.f32.vlgmr.msra.gmra.mxu0 %vm956_vm2, %v3690_v8 }
  0xbf   : > { %2703 = vmatmul.msk.f32.gmra.mxu0 %vm956_vm2, %v3696_v9 }
 0x134   : > { %v980_v11 = vpop.f32.mrf.mxu0 }
 0x135   : > { %v3704_v12 = vadd.f32 %v980_v11, %v3701_v10 }
 0x137   : > { %1087 = vrot.lane.b32.xlu2 %v3704_v12, %s3286_s3 }
 0x13c   : > { %v983_v14 = vpop.f32.mrf.mxu0 }
 0x13d   : > { %v3709_v15 = vadd.f32 %v983_v14, %v932_v13 }
 0x13f   : > { %1093 = vrot.lane.b32.xlu1 %v3709_v15, %s3287_s4  ;;  %990 = vrot.lane.b32.xlu0 %v3709_v15, %s3288_s26 }
 0x140   : > { %1089 = vrot.lane.b32.xlu2 %v3709_v15, %s3286_s3 }
 0x147   : > { %1091 = vrot.lane.b32.xlu1 %v3704_v12, %s3287_s4  ;;  %988 = vrot.lane.b32.xlu0 %v3704_v12, %s3288_s26 }
 0x148   : > { %1285 = vrot.lane.b32.xlu2 %v3704_v12, %s3289_s12 }
 0x14f   : > { %1289 = vrot.lane.b32.xlu1 %v3704_v12, %s3290_s19  ;;  %1291 = vrot.lane.b32.xlu0 %v3709_v15, %s3290_s19 }
 0x150   : > { %1287 = vrot.lane.b32.xlu2 %v3709_v15, %s3289_s12 }
 0x157   : > { %1190 = vrot.lane.b32.xlu1 %v3704_v12, %s3291_s9  ;;  %1192 = vrot.lane.b32.xlu0 %v3709_v15, %s3291_s9 }
 0x15f   : > { %1188 = vrot.lane.b32.xlu1 %v3709_v15, %s3292_s23  ;;  %1186 = vrot.lane.b32.xlu0 %v3704_v12, %s3292_s23 }
 0x167   : > { %1052 = vrot.lane.b32.xlu1 %v3709_v15, %s3293_s27  ;;  %1050 = vrot.lane.b32.xlu0 %v3704_v12, %s3293_s27 }
 0x16f   : > { %1150 = vrot.lane.b32.xlu0 %v3704_v12, %s3294_s0 }
 0x191   : > { %v1088_v18 = vpop.permute.xlu2 %1087 }
 0x19a   : > { %v1090_v21 = vpop.permute.xlu2 %1089 }
 0x1a2   : > { %v1286_v26 = vpop.permute.xlu2 %1285 }
 0x1aa   : > { %v1288_v29 = vpop.permute.xlu2 %1287 }
 0x1b1   : > { %v1094_v16 = vpop.permute.xlu1 %1093  ;;  %v991_v17 = vpop.permute.xlu0 %990 }
 0x1b2   : > { %2704 = vmatpush.xpose.msk.msra.mxu1 %vm992_vm3, %v991_v17  ;;  %2711 = vmatpush.xpose.msk.msra.mxu3 %vm992_vm3, %v1094_v16 }
 0x1b9   : > { %v1092_v19 = vpop.permute.xlu1 %1091  ;;  %v989_v20 = vpop.permute.xlu0 %988 }
 0x1ba   : > { %2705 = vmatpush.xpose.msk.msra.mxu1 %vm992_vm3, %v989_v20  ;;  %2712 = vmatpush.xpose.msk.msra.mxu3 %vm992_vm3, %v1092_v19 }
 0x1bd   : > { %2706 = vmatmul.msk.f32.vlgmr.msra.gmra.mxu1 %vm992_vm3, %v3704_v12  ;;  %2713 = vmatmul.msk.f32.vlgmr.msra.gmra.mxu3 %vm992_vm3, %v1088_v18 }
 0x1c1   : > { %v1290_v22 = vpop.permute.xlu1 %1289  ;;  %v1292_v23 = vpop.permute.xlu0 %1291 }
 0x1c2   : > { %2725 = vmatpush.xpose.msk.msrb.mxu3 %vm992_vm3, %v1292_v23 }
 0x1c5   : > { %2707 = vmatmul.msk.f32.gmra.mxu1 %vm992_vm3, %v3709_v15  ;;  %2714 = vmatmul.msk.f32.gmra.mxu3 %vm992_vm3, %v1090_v21 }
 0x1c6   : > { %2726 = vmatpush.xpose.msk.msrb.mxu3 %vm992_vm3, %v1290_v22 }
 0x1c9   : > { %v1191_v24 = vpop.permute.xlu1 %1190  ;;  %v1193_v25 = vpop.permute.xlu0 %1192 }
 0x1ca   : > { %2718 = vmatpush.xpose.msk.msrb.mxu0 %vm992_vm3, %v1193_v25 }
 0x1cd   : > { %2727 = vmatmul.msk.f32.vlgmr.msrb.gmra.mxu3 %vm992_vm3, %v1286_v26 }
 0x1ce   : > { %2719 = vmatpush.xpose.msk.msrb.mxu0 %vm992_vm3, %v1191_v24 }
 0x1d1   : > { %v1189_v27 = vpop.permute.xlu1 %1188  ;;  %v1187_v28 = vpop.permute.xlu0 %1186 }
 0x1d2   : > { %2720 = vmatmul.msk.f32.vlgmr.msrb.gmra.mxu0 %vm992_vm3, %v1187_v28 }
 0x1d5   : > { %2728 = vmatmul.msk.f32.gmra.mxu3 %vm992_vm3, %v1288_v29 }
 0x1d9   : > { %v1053_v30 = vpop.permute.xlu1 %1052  ;;  %v1051_v31 = vpop.permute.xlu0 %1050 }
 0x1da   : > { %2708 = vmatpush.msk.msra.mxu2 %vm1061_vm4, %v1053_v30  ;;  %2721 = vmatmul.msk.f32.gmra.mxu0 %vm992_vm3, %v1189_v27 }
 0x1dc   : > { %1079 = vmatpush.msra.mxu2 %v1051_v31 }
 0x1e1   : > { %v1151_v60 = vpop.permute.xlu0 %1150 }
 0x23a   : > { %v1018_v32 = vpop.f32.mrf.mxu1 }
 0x23b   : > { %v1024_v33 = vmul.f32 0.35355338, %v1018_v32 }
 0x23d   : > { %v1027_v34 = vsel %vm1026_vm5, %v1024_v33, -inf }
 0x23e   : > { %1028 = vmax.xlane.f32.xlu2 %v1027_v34 }
 0x240   : > { %v1120_v35 = vpop.f32.mrf.mxu3 }
 0x241   : > { %v1126_v36 = vmul.f32 0.35355338, %v1120_v35 }
 0x242   : > { %v1021_v43 = vpop.f32.mrf.mxu1 }
 0x243   : > { %v1128_v37 = vsel %vm1026_vm5, %v1126_v36, -inf  ;;  %v1025_v44 = vmul.f32 0.35355338, %v1021_v43 }
 0x244   : > { %1129 = vmax.xlane.f32.xlu1 %v1128_v37 }
 0x245   : > { %v1031_v47 = vsel %vm1030_vm6, %v1025_v44, -inf }
 0x248   : > { %v1123_v38 = vpop.f32.mrf.mxu3 }
 0x249   : > { %v1127_v52 = vmul.f32 0.35355338, %v1123_v38 }
 0x24b   : > { %v1131_v53 = vsel %vm1030_vm6, %v1127_v52, -inf }
 0x24f   : > { %v1219_v39 = vpop.f32.mrf.mxu0 }
 0x250   : > { %v1225_v40 = vmul.f32 0.35355338, %v1219_v39  ;;  %v1318_v41 = vpop.f32.mrf.mxu3 }
 0x251   : > { %v1324_v54 = vmul.f32 0.35355338, %v1318_v41 }
 0x252   : > { %v1227_v42 = vsel %vm1026_vm5, %v1225_v40, -inf }
 0x253   : > { %1228 = vmax.xlane.f32.xlu0 %v1227_v42  ;;  %v1326_v55 = vsel %vm1026_vm5, %v1324_v54, -inf }
 0x256   : > { %1152 = vrot.lane.b32.xlu2 %v3709_v15, %s3294_s0 }
 0x257   : > { %v1222_v49 = vpop.f32.mrf.mxu0 }
 0x258   : > { %v1321_v45 = vpop.f32.mrf.mxu3  ;;  %v3772_v50 = vmul.f32 0.35355338, %v1222_v49 }
 0x259   : > { %v3767_v46 = vmul.f32 0.35355338, %v1321_v45 }
 0x25a   : > { %v1230_v51 = vsel %vm1030_vm6, %v3772_v50, -inf }
 0x25b   : > { %1032 = vmax.xlane.f32.xlu0 %v1031_v47  ;;  %v1329_v48 = vsel %vm1030_vm6, %v3767_v46, -inf }
 0x25c   : > { %1330 = vmax.xlane.f32.xlu1 %v1329_v48 }
 0x27f   : > { %1231 = vmax.xlane.f32.xlu2 %v1230_v51 }
 0x287   : > { %1132 = vmax.xlane.f32.xlu2 %v1131_v53 }
 0x28f   : > { %1327 = vmax.xlane.f32.xlu2 %v1326_v55 }
 0x2b1   : > { %v1029_v56 = vpop.xlane.xlu2 %1028 }
 0x2b2   : > { %v1034_v57 = vsub.f32 %v1024_v33, %v1029_v56 }
 0x2b4   : > { %v1036_v58 = vmul.f32 1.442695, %v1034_v57 }
 0x2b6   : > { %2905 = vpow2.f32 %v1036_v58 }
 0x2b7   : > { %v1130_v63 = vpop.xlane.xlu1 %1129 }
 0x2b8   : > { %v1134_v2 = vsub.f32 %v1126_v36, %v1130_v63 }
 0x2b9   : > { %v1153_v59 = vpop.permute.xlu2 %1152 }
 0x2ba   : > { %2715 = vmatpush.msk.msrb.mxu2 %vm1061_vm4, %v1153_v59  ;;  %v1136_v11 = vmul.f32 1.442695, %v1134_v2 }
 0x2bc   : > { %v2906_v61 = vpop.eup %2905  ;;  %1178 = vmatpush.msrb.mxu2 %v1151_v60 }
 0x2bd   : > { %v1040_v62 = vsel %vm1026_vm5, %v2906_v61, 0.0 }
 0x2be   : > { %1041 = vadd.xlane.f32.xlu0 %v1040_v62 }
 0x2c6   : > { %v1229_v0 = vpop.xlane.xlu0 %1228 }
 0x2c7   : > { %v1233_v1 = vsub.f32 %v1225_v40, %v1229_v0 }
 0x2c9   : > { %v1235_v3 = vmul.f32 1.442695, %v1233_v1 }
 0x2cb   : > { %2907 = vpow2.f32 %v1235_v3 }
 0x2cc   : > { %2909 = vpow2.f32 %v1136_v11 }
 0x2ce   : > { %v1033_v13 = vpop.xlane.xlu0 %1032 }
 0x2cf   : > { %v1035_v16 = vsub.f32 %v1025_v44, %v1033_v13  ;;  %v1331_v27 = vpop.xlane.xlu1 %1330 }
 0x2d0   : > { %v1333_v31 = vsub.f32 %v3767_v46, %v1331_v27 }
 0x2d1   : > { %v3780_v14 = vpop.eup %2907  ;;  %v1038_v18 = vmul.f32 1.442695, %v1035_v16 }
 0x2d2   : > { %1348 = vrot.lane.b32.xlu0 %v3704_v12, %s3295_s29  ;;  %v1239_v17 = vsel %vm1026_vm5, %v3780_v14, 0.0  ;;  %v2910_v19 = vpop.eup %2909  ;;  %v1336_v34 = vmul.f32 1.442695, %v1333_v31 }
 0x2d3   : > { %1240 = vadd.xlane.f32.xlu2 %v1239_v17  ;;  %2911 = vpow2.f32 %v1038_v18  ;;  %v1140_v20 = vsel %vm1026_vm5, %v2910_v19, 0.0  ;;  %v3822_v18 = vld [vmem:[%s3611_s30 + $0x18] sm:$0xff] }
 0x2d4   : > { %1437 = vmatpush.msra.mxu0 %v3822_v18 }
 0x2d9   : > { %v2912_v21 = vpop.eup %2911 }
 0x2da   : > { %v1043_v22 = vsel %vm1030_vm6, %v2912_v21, 0.0 }
 0x2db   : > { %1141 = vadd.xlane.f32.xlu2 %v1140_v20  ;;  %v3829_v20 = vld [vmem:[%s3611_s30 + $0x8] sm:$0xff] }
 0x2e3   : > { %1044 = vadd.xlane.f32.xlu2 %v1043_v22 }
 0x2f2   : > { %v1232_v23 = vpop.xlane.xlu2 %1231 }
 0x2f3   : > { %v1234_v41 = vsub.f32 %v3772_v50, %v1232_v23 }
 0x2f5   : > { %v1237_v43 = vmul.f32 1.442695, %v1234_v41 }
 0x2fa   : > { %v1133_v24 = vpop.xlane.xlu2 %1132 }
 0x2fb   : > { %v1135_v25 = vsub.f32 %v1127_v52, %v1133_v24  ;;  %1251 = vrot.lane.b32.xlu2 %v3709_v15, %s3296_s2 }
 0x2fd   : > { %v1138_v26 = vmul.f32 1.442695, %v1135_v25 }
 0x2ff   : > { %2913 = vpow2.f32 %v1138_v26 }
 0x302   : > { %v1328_v28 = vpop.xlane.xlu2 %1327 }
 0x303   : > { %v1332_v29 = vsub.f32 %v1324_v54, %v1328_v28 }
 0x305   : > { %v2914_v30 = vpop.eup %2913  ;;  %v1334_v32 = vmul.f32 1.442695, %v1332_v29 }
 0x306   : > { %v1143_v33 = vsel %vm1030_vm6, %v2914_v30, 0.0 }
 0x307   : > { %2915 = vpow2.f32 %v1334_v32  ;;  %1144 = vadd.xlane.f32.xlu1 %v1143_v33 }
 0x308   : > { %2917 = vpow2.f32 %v1336_v34  ;;  %v3845_v34 = vld [vmem:[#allocation2 + $0x10] sm:$0xff] }
 0x30d   : > { %v2916_v35 = vpop.eup %2915 }
 0x30e   : > { %v1338_v36 = vsel %vm1026_vm5, %v2916_v35, 0.0  ;;  %v2918_v37 = vpop.eup %2917 }
 0x30f   : > { %1339 = vadd.xlane.f32.xlu0 %v1338_v36  ;;  %v1341_v38 = vsel %vm1030_vm6, %v2918_v37, 0.0  ;;  %v2891_v36 = vld [vmem:[%s3630_s1] ss:$0 sm:$0xff] }
 0x317   : > { %1342 = vadd.xlane.f32.xlu0 %v1341_v38 }
 0x320   : > { %1350 = vrot.lane.b32.xlu1 %v3709_v15, %s3295_s29 }
 0x32b   : > { %1249 = vrot.lane.b32.xlu0 %v3704_v12, %s3296_s2 }
 0x331   : > { %v1042_v39 = vpop.xlane.xlu0 %1041 }
 0x332   : > { %2919 = vrcp.f32 %v1042_v39 }
 0x333   : > { %2921 = vpow2.f32 %v1237_v43 }
 0x338   : > { %v2920_v40 = vpop.eup %2919 }
 0x339   : > { %v1048_v42 = vmul.f32 %v2920_v40, %v2906_v61  ;;  %v2922_v44 = vpop.eup %2921 }
 0x33a   : > { %v1242_v46 = vsel %vm1030_vm6, %v2922_v44, 0.0 }
 0x33b   : > { %2709 = vmatmul.msk.f32.vlgmr.msra.gmra.mxu2 %vm1026_vm5, %v1048_v42 }
 0x344   : > { %v1349_v53 = vpop.permute.xlu0 %1348 }
 0x346   : > { %v1241_v45 = vpop.xlane.xlu2 %1240 }
 0x34a   : > { %1243 = vadd.xlane.f32.xlu1 %v1242_v46 }
 0x34e   : > { %v1142_v47 = vpop.xlane.xlu2 %1141 }
 0x356   : > { %v1045_v15 = vpop.xlane.xlu2 %1044 }
 0x357   : > { %2923 = vrcp.f32 %v1045_v15 }
 0x358   : > { %2925 = vrcp.f32 %v1142_v47 }
 0x35d   : > { %v2924_v48 = vpop.eup %2923 }
 0x35e   : > { %v1252_v12 = vpop.permute.xlu2 %1251  ;;  %v1049_v49 = vmul.f32 %v2924_v48, %v2912_v21  ;;  %v2926_v50 = vpop.eup %2925  ;;  %v3834_v21 = vld [vmem:[%s3611_s30] sm:$0xff] }
 0x35f   : > { %2722 = vmatpush.msk.msrb.mxu1 %vm1061_vm4, %v1252_v12  ;;  %v1148_v51 = vmul.f32 %v2926_v50, %v2910_v19  ;;  %v3825_v19 = vld [vmem:[%s3611_s30 + $0x10] sm:$0xff] }
 0x360   : > { %2710 = vmatmul.msk.f32.gmra.mxu2 %vm1026_vm5, %v1049_v49  ;;  %1438 = vmatpush.msra.mxu0 %v3825_v19 }
 0x362   : > { %1439 = vmatpush.msra.mxu0 %v3829_v20 }
 0x364   : > { %1440 = vmatpush.msra.mxu0 %v3834_v21 }
 0x368   : > { %2716 = vmatmul.msk.f32.vlgmr.msrb.gmra.mxu2 %vm1026_vm5, %v1148_v51  ;;  %v1645_v51 = vld [vmem:[%s3605_s16 + $0x8] sm:$0x3] }
 0x37a   : > { %v1145_v52 = vpop.xlane.xlu1 %1144 }
 0x37b   : > { %2927 = vrcp.f32 %v1145_v52 }
 0x381   : > { %v2928_v54 = vpop.eup %2927 }
 0x382   : > { %v1149_v55 = vmul.f32 %v2928_v54, %v2914_v30  ;;  %v1340_v56 = vpop.xlane.xlu0 %1339 }
 0x383   : > { %2929 = vrcp.f32 %v1340_v56 }
 0x384   : > { %2717 = vmatmul.msk.f32.gmra.mxu2 %vm1026_vm5, %v1149_v55 }
 0x389   : > { %v2930_v58 = vpop.eup %2929 }
 0x38a   : > { %v1343_v57 = vpop.xlane.xlu0 %1342  ;;  %v1346_v60 = vmul.f32 %v2930_v58, %v2916_v35  ;;  %v3849_v35 = vld [vmem:[#allocation2 + $0x18] sm:$0x3] }
 0x38b   : > { %2931 = vrcp.f32 %v1343_v57 }
 0x38c   : > { %2933 = vrcp.f32 %v1241_v45  ;;  %v3300_v45 = vmov 32.0  }
 0x391   : > { %v2932_v61 = vpop.eup %2931 }
 0x392   : > { %v1351_v59 = vpop.permute.xlu1 %1350  ;;  %v2934_v62 = vpop.eup %2933  ;;  %v1347_v63 = vmul.f32 %v2932_v61, %v2918_v37 }
 0x393   : > { %2729 = vmatpush.msk.msra.mxu2 %vm1061_vm4, %v1351_v59  ;;  %v1247_v1 = vmul.f32 %v2934_v62, %v3780_v14  ;;  %v3907_v62 = vld [vmem:[%s3613_s18 + $0x18] sm:$0xff] }
 0x395   : > { %1376 = vmatpush.msra.mxu2 %v1349_v53 }
 0x396   : > { %2730 = vmatmul.msk.f32.vlgmr.msra.gmra.mxu2 %vm1026_vm5, %v1346_v60 }
 0x397   : > { %1687 = vmatpush.msrb.mxu2 %v3677_v4 }
 0x399   : > { %1688 = vmatpush.msrb.mxu2 %v3680_v5 }
 0x39b   : > { %1689 = vmatpush.msrb.mxu2 %v3684_v6 }
 0x39d   : > { %v1250_v0 = vpop.permute.xlu0 %1249  ;;  %1690 = vmatpush.msrb.mxu2 %v3687_v7 }
 0x39e   : > { %1277 = vmatpush.msrb.mxu1 %v1250_v0  ;;  %2731 = vmatmul.msk.f32.gmra.mxu2 %vm1026_vm5, %v1347_v63  ;;  %v3911_v63 = vld [vmem:[%s3613_s18 + $0x10] sm:$0xff]  ;;  %v3915_v0 = vld [vmem:[%s3613_s18 + $0x8] sm:$0xff] }
 0x39f   : > { %2723 = vmatmul.msk.f32.vlgmr.msrb.gmra.mxu1 %vm1026_vm5, %v1247_v1  ;;  %v3918_v1 = vld [vmem:[%s3619_s21 + $0x38] sm:$0xff] }
 0x3a0   : > { %1533 = vmatpush.msra.mxu1 %v3907_v62  ;;  %1564 = vmatpush.msra.mxu3 %v3918_v1 }
 0x3a2   : > { %1534 = vmatpush.msra.mxu1 %v3911_v63 }
 0x3a4   : > { %1535 = vmatpush.msra.mxu1 %v3915_v0 }
 0x3a6   : > { %2738 = vmatmul.msk.f32.vlgmr.msrb.gmra.mxu2 %vm956_vm2, %v3845_v34 }
 0x3ae   : > { %2739 = vmatmul.msk.f32.gmra.mxu2 %vm956_vm2, %v3849_v35 }
 0x3bd   : > { %v1244_v2 = vpop.xlane.xlu1 %1243 }
 0x3be   : > { %2935 = vrcp.f32 %v1244_v2  ;;  %v1081_v5 = vpop.f32.mrf.mxu2  ;;  %v3923_v2 = vld [vmem:[%s3613_s18] sm:$0xff]  ;;  %s4268_s18 = sld [smem:[#allocation27_spill]] (!%p2774_p7) }
 0x3bf   : > { %2937 = vrcp.f32 %v3300_v45  ;;  %1536 = vmatpush.msra.mxu1 %v3923_v2 }
 0x3c4   : > { %v2936_v4 = vpop.eup %2935 }
 0x3c5   : > { %v1248_v3 = vmul.f32 %v2936_v4, %v2922_v44  ;;  %v2938_v46 = vpop.eup %2937  ;;  %v3926_v4 = vld [vmem:[%s3619_s21 + $0x30] sm:$0xff] }
 0x3c6   : > { %v1458_v47 = vmul.f32 32.0, %v2938_v46  ;;  %vm1462_vm10 = vweird.f32 %v2938_v46  ;;  %1565 = vmatpush.msra.mxu3 %v3926_v4 }
 0x3c7   : > { %2724 = vmatmul.msk.f32.gmra.mxu1 %vm1026_vm5, %v1248_v3  ;;  %v3931_v3 = vld [vmem:[%s3619_s21 + $0x28] sm:$0xff] }
 0x3c8   : > { %v1459_v15 = vsub.f32 1.0, %v1458_v47  ;;  %1566 = vmatpush.msra.mxu3 %v3931_v3 }
 0x3ca   : > { %v1460_v12 = vmul.f32 %v2938_v46, %v1459_v15 }
 0x3cc   : > { %v1461_v49 = vadd.f32 %v2938_v46, %v1460_v12 }
 0x3e3   : > { %v1084_v11 = vpop.f32.mrf.mxu2 }
 0x3eb   : > { %v1180_v6 = vpop.f32.mrf.mxu2 }
 0x3ec   : > { %1386 = vrot.lane.b32.xlu2 %v1180_v6, %s3297_s15 }
 0x407   : > { %v1183_v7 = vpop.f32.mrf.mxu2 }
 0x419   : > { %v1378_v13 = vpop.f32.mrf.mxu2 }
 0x41a   : > { %1402 = vrot.lane.b32.xlu2 %v1378_v13, %s3298_s5 }
 0x41c   : > { %v1279_v14 = vpop.f32.mrf.mxu1 }
 0x41d   : > { %1394 = vrot.lane.b32.xlu0 %v1279_v14, %s3299_s14  ;;  %v3944_v14 = vld [vmem:[%s3619_s21 + $0x10] sm:$0xff] }
 0x421   : > { %v1381_v16 = vpop.f32.mrf.mxu2 }
 0x425   : > { %1388 = vrot.lane.b32.xlu0 %v1183_v7, %s3297_s15  ;;  %v3940_v7 = vld [vmem:[%s3619_s21 + $0x18] sm:$0xff] }
 0x429   : > { %v1692_v48 = vpop.f32.mrf.mxu2 }
 0x42d   : > { %1404 = vrot.lane.b32.xlu0 %v1381_v16, %s3298_s5  ;;  %v3948_v16 = vld [vmem:[%s3619_s21 + $0x8] sm:$0xff] }
 0x431   : > { %v1695_v52 = vpop.f32.mrf.mxu2 }
 0x444   : > { %v1282_v17 = vpop.f32.mrf.mxu1 }
 0x445   : > { %1396 = vrot.lane.b32.xlu2 %v1282_v17, %s3299_s14  ;;  %v3951_v17 = vld [vmem:[%s3619_s21] sm:$0xff] }
 0x446   : > { %v1387_v22 = vpop.permute.xlu2 %1386 }
 0x447   : > { %v1408_v23 = vsel %vm992_vm3, %v1081_v5, %v1387_v22 }
 0x474   : > { %v1403_v25 = vpop.permute.xlu2 %1402 }
 0x48f   : > { %v1395_v24 = vpop.permute.xlu0 %1394 }
 0x490   : > { %v1411_v26 = vsel %vm1410_vm7, %v1408_v23, %v1395_v24 }
 0x491   : > { %v1414_v27 = vsel %vm1413_vm8, %v1411_v26, %v1403_v25 }
 0x492   : > { %2732 = vmatmul.msk.f32.vlgmr.msra.gmra.mxu0 %vm956_vm2, %v1414_v27 }
 0x497   : > { %v1389_v28 = vpop.permute.xlu0 %1388 }
 0x498   : > { %v1409_v29 = vsel %vm992_vm3, %v1084_v11, %v1389_v28  ;;  %v3935_v11 = vld [vmem:[%s3619_s21 + $0x20] sm:$0xff]  ;;  %s3301_s21 = smov (!%p2774_p7), 16  }
 0x499   : > { %1567 = vmatpush.msra.mxu3 %v3935_v11 }
 0x49b   : > { %1568 = vmatpush.msra.mxu3 %v3940_v7 }
 0x49d   : > { %1569 = vmatpush.msra.mxu3 %v3944_v14 }
 0x49f   : > { %v1405_v30 = vpop.permute.xlu0 %1404  ;;  %v1397_v31 = vpop.permute.xlu2 %1396  ;;  %1570 = vmatpush.msra.mxu3 %v3948_v16 }
 0x4a0   : > { %v1412_v32 = vsel %vm1410_vm7, %v1409_v29, %v1397_v31 }
 0x4a1   : > { %v1415_v33 = vsel %vm1413_vm8, %v1412_v32, %v1405_v30  ;;  %1571 = vmatpush.msra.mxu3 %v3951_v17  ;;  %v2892_v32 = vld [vmem:[%s3635_s8] ss:$0 sm:$0xff] }
 0x4a2   : > { %2733 = vmatmul.msk.f32.gmra.mxu0 %vm956_vm2, %v1415_v33 }
 0x50f   : > { %v1442_v37 = vpop.f32.mrf.mxu0 }
 0x510   : > { %v1443_v38 = vadd.f32 %v2891_v36, %v1442_v37  ;;  %v2893_v37 = vld [vmem:[%s3640_s24] ss:$0 sm:$0xff] }
 0x512   : > { %v1448_v39 = vadd.f32 %v1443_v38, %v3690_v8  ;;  %v3859_v8 = vadd.f32 %v1692_v48, %v3701_v10  ;;  %v3871_v10 = vadd.f32 %v1695_v52, %v1645_v51 }
 0x514   : > { %v1450_v40 = vsel %vm956_vm2, %v1448_v39, 0.0 }
 0x515   : > { %1451 = vadd.xlane.f32.xlu1 %v1450_v40 }
 0x51f   : > { %v1445_v41 = vpop.f32.mrf.mxu0 }
 0x520   : > { %v1446_v42 = vadd.f32 %v2891_v36, %v1445_v41 }
 0x522   : > { %v1449_v43 = vadd.f32 %v1446_v42, %v3696_v9  ;;  %v3865_v9 = vsel %vm1462_vm10, %v2938_v46, %v1461_v49 }
 0x524   : > { %v1454_v44 = vsel %vm1453_vm9, %v1449_v43, 0.0 }
 0x525   : > { %1455 = vadd.xlane.f32.xlu2 %v1454_v44 }
 0x53d   : > { %1795 = vrot.lane.b32.xlu2 %v3859_v8, %s3286_s3 }
 0x545   : > { %1993 = vrot.lane.b32.xlu2 %v3859_v8, %s3289_s12 }
 0x54d   : > { %1995 = vrot.lane.b32.xlu2 %v3871_v10, %s3289_s12 }
 0x588   : > { %v1452_v50 = vpop.xlane.xlu1 %1451 }
 0x589   : > { %v1464_v53 = vmul.f32 %v3865_v9, %v1452_v50 }
 0x58b   : > { %v3869_v54 = vsub.f32 %v1448_v39, %v1464_v53 }
 0x58d   : > { %v1468_v55 = vmul.f32 %v3869_v54, %v3869_v54 }
 0x58f   : > { %v1470_v56 = vsel %vm956_vm2, %v1468_v55, 0.0 }
 0x590   : > { %1471 = vadd.xlane.f32.xlu0 %v1470_v56 }
 0x598   : > { %v1456_v57 = vpop.xlane.xlu2 %1455 }
 0x599   : > { %v1465_v58 = vmul.f32 %v3865_v9, %v1456_v57 }
 0x59b   : > { %v3879_v59 = vsub.f32 %v1449_v43, %v1465_v58  ;;  %v2894_v58 = vld [vmem:[%s3645_s11] ss:$0 sm:$0xff] }
 0x59d   : > { %v1469_v60 = vmul.f32 %v3879_v59, %v3879_v59 }
 0x59f   : > { %v1473_v61 = vsel %vm1453_vm9, %v1469_v60, 0.0 }
 0x5a0   : > { %1474 = vadd.xlane.f32.xlu1 %v1473_v61 }
 0x5a4   : > { %1702 = vrot.lane.b32.xlu0 %v3871_v10, %s3288_s26 }
 0x5ac   : > { %1997 = vrot.lane.b32.xlu0 %v3859_v8, %s3290_s19 }
 0x5b4   : > { %1898 = vrot.lane.b32.xlu0 %v3859_v8, %s3291_s9 }
 0x5b9   : > { %1801 = vrot.lane.b32.xlu1 %v3871_v10, %s3287_s4 }
 0x5bc   : > { %1896 = vrot.lane.b32.xlu0 %v3871_v10, %s3292_s23 }
 0x5c1   : > { %1799 = vrot.lane.b32.xlu1 %v3859_v8, %s3287_s4 }
 0x5c9   : > { %1700 = vrot.lane.b32.xlu1 %v3859_v8, %s3288_s26 }
 0x5d1   : > { %1797 = vrot.lane.b32.xlu1 %v3871_v10, %s3286_s3 }
 0x5d9   : > { %1999 = vrot.lane.b32.xlu1 %v3871_v10, %s3290_s19  ;;  %s4271_s19 = sld [smem:[#allocation41_spill]] (!%p2774_p7) }
 0x5e1   : > { %1900 = vrot.lane.b32.xlu1 %v3871_v10, %s3291_s9 }
 0x5e9   : > { %1894 = vrot.lane.b32.xlu1 %v3859_v8, %s3292_s23 }
 0x603   : > { %v1472_v5 = vpop.xlane.xlu0 %1471 }
 0x604   : > { %v1476_v6 = vmul.f32 %v1472_v5, %v3865_v9 }
 0x606   : > { %v1478_v13 = vadd.f32 1e-05, %v1476_v6 }
 0x608   : > { %2939 = vrsqrt.f32 %v1478_v13  ;;  %vm1486_vm12 = vweird.f32 %v1478_v13 }
 0x60e   : > { %v2940_v22 = vpop.eup %2939 }
 0x60f   : > { %v1481_v23 = vmul.f32 %v2940_v22, %v1478_v13  ;;  %vm1487_vm11 = vweird.f32 %v2940_v22 }
 0x610   : > { %vm1488_vm13 = vmor %vm1486_vm12, %vm1487_vm11 }
 0x611   : > { %v1482_v24 = vmul.f32 %v2940_v22, %v1481_v23 }
 0x613   : > { %v1483_v25 = vmul.f32 0.5, %v1482_v24  ;;  %v1475_v26 = vpop.xlane.xlu1 %1474 }
 0x614   : > { %v1477_v27 = vmul.f32 %v1475_v26, %v3865_v9 }
 0x615   : > { %v1484_v28 = vsub.f32 1.5, %v1483_v25 }
 0x616   : > { %v1479_v29 = vadd.f32 1e-05, %v1477_v27  ;;  %v1703_v30 = vpop.permute.xlu0 %1702 }
 0x617   : > { %v1485_v31 = vmul.f32 %v2940_v22, %v1484_v28  ;;  %2740 = vmatpush.xpose.msk.msrb.mxu0 %vm992_vm3, %v1703_v30 }
 0x618   : > { %2941 = vrsqrt.f32 %v1479_v29  ;;  %vm1496_vm15 = vweird.f32 %v1479_v29 }
 0x619   : > { %v1489_v33 = vsel %vm1488_vm13, %v2940_v22, %v1485_v31 }
 0x61a   : > { %v1500_v36 = vmul.f32 %v1489_v33, %v3869_v54 }
 0x61c   : > { %v1505_v38 = vmul.f32 %v2892_v32, %v1500_v36 }
 0x61e   : > { %v2942_v39 = vpop.eup %2941  ;;  %v3960_v40 = vadd.f32 %v2893_v37, %v1505_v38  ;;  %v1998_v53 = vpop.permute.xlu0 %1997 }
 0x61f   : > { %v1491_v41 = vmul.f32 %v2942_v39, %v1479_v29  ;;  %vm1497_vm14 = vweird.f32 %v2942_v39 }
 0x620   : > { %2734 = vmatmul.msk.f32.vlgmr.msra.gmra.mxu1 %vm956_vm2, %v3960_v40  ;;  %vm1498_vm0 = vmor %vm1496_vm15, %vm1497_vm14 }
 0x621   : > { %v1492_v42 = vmul.f32 %v2942_v39, %v1491_v41 }
 0x623   : > { %v1493_v43 = vmul.f32 0.5, %v1492_v42 }
 0x625   : > { %v1494_v44 = vsub.f32 1.5, %v1493_v43 }
 0x626   : > { %v1899_v55 = vpop.permute.xlu0 %1898 }
 0x627   : > { %v1495_v45 = vmul.f32 %v2942_v39, %v1494_v44 }
 0x629   : > { %v1499_v46 = vsel %vm1498_vm0, %v2942_v39, %v1495_v45 }
 0x62a   : > { %v1501_v47 = vmul.f32 %v1499_v46, %v3879_v59 }
 0x62b   : > { %v1802_v15 = vpop.permute.xlu1 %1801 }
 0x62c   : > { %2747 = vmatpush.xpose.msk.msrb.mxu3 %vm992_vm3, %v1802_v15  ;;  %v1506_v48 = vmul.f32 %v2892_v32, %v1501_v47 }
 0x62e   : > { %v3966_v12 = vadd.f32 %v2893_v37, %v1506_v48  ;;  %v1897_v57 = vpop.permute.xlu0 %1896 }
 0x630   : > { %2735 = vmatmul.msk.f32.gmra.mxu1 %vm956_vm2, %v3966_v12 }
 0x633   : > { %v1800_v49 = vpop.permute.xlu1 %1799 }
 0x634   : > { %2748 = vmatpush.xpose.msk.msrb.mxu3 %vm992_vm3, %v1800_v49 }
 0x63b   : > { %v1701_v50 = vpop.permute.xlu1 %1700 }
 0x63c   : > { %2741 = vmatpush.xpose.msk.msrb.mxu0 %vm992_vm3, %v1701_v50 }
 0x63f   : > { %2742 = vmatmul.msk.f32.vlgmr.msrb.gmra.mxu0 %vm992_vm3, %v3859_v8 }
 0x643   : > { %v1798_v51 = vpop.permute.xlu1 %1797 }
 0x647   : > { %2743 = vmatmul.msk.f32.gmra.mxu0 %vm992_vm3, %v3871_v10 }
 0x64b   : > { %v2000_v52 = vpop.permute.xlu1 %1999 }
 0x653   : > { %v1901_v54 = vpop.permute.xlu1 %1900 }
 0x654   : > { %2754 = vmatpush.xpose.msk.msra.mxu0 %vm992_vm3, %v1901_v54 }
 0x658   : > { %2755 = vmatpush.xpose.msk.msra.mxu0 %vm992_vm3, %v1899_v55 }
 0x65b   : > { %v1895_v56 = vpop.permute.xlu1 %1894 }
 0x65c   : > { %2143 = vmatpush.msrb.mxu0 %v3822_v18 }
 0x65d   : > { %2756 = vmatmul.msk.f32.vlgmr.msra.gmra.mxu0 %vm992_vm3, %v1895_v56 }
 0x65e   : > { %2144 = vmatpush.msrb.mxu0 %v3825_v19 }
 0x660   : > { %2145 = vmatpush.msrb.mxu0 %v3829_v20  ;;  %v1796_v20 = vpop.permute.xlu2 %1795 }
 0x662   : > { %2146 = vmatpush.msrb.mxu0 %v3834_v21 }
 0x665   : > { %2757 = vmatmul.msk.f32.gmra.mxu0 %vm992_vm3, %v1897_v57 }
 0x69d   : > { %v1538_v59 = vpop.f32.mrf.mxu1 }
 0x69e   : > { %v1539_v60 = vadd.f32 %v2894_v58, %v1538_v59 }
 0x6a0   : > { %v1544_v61 = vmax.f32 %v1539_v60, 0.0 }
 0x6a2   : > { %2736 = vmatmul.msk.f32.vlgmr.msra.gmra.mxu3 %vm1549_vm1, %v1544_v61 }
 0x6a3   : > { %2761 = vmatpush.xpose.msk.msra.mxu3 %vm992_vm3, %v2000_v52 }
 0x6a7   : > { %2762 = vmatpush.xpose.msk.msra.mxu3 %vm992_vm3, %v1998_v53 }
 0x6ad   : > { %v1541_v18 = vpop.f32.mrf.mxu1 }
 0x6ae   : > { %v1542_v19 = vadd.f32 %v2894_v58, %v1541_v18 }
 0x6b0   : > { %v1545_v5 = vmax.f32 %v1542_v19, 0.0 }
 0x6b2   : > { %2737 = vmatmul.msk.f32.gmra.mxu3 %vm1549_vm1, %v1545_v5 }
 0x6ba   : > { %2749 = vmatmul.msk.f32.vlgmr.msrb.gmra.mxu3 %vm992_vm3, %v1796_v20 }
 0x6bb   : > { %2261 = vmatpush.msrb.mxu3 %v3918_v1  ;;  %v1994_v1 = vpop.permute.xlu2 %1993 }
 0x6bc   : > { %v1729_v21 = vpop.f32.mrf.mxu0 }
 0x6bd   : > { %v1735_v6 = vmul.f32 0.35355338, %v1729_v21  ;;  %2262 = vmatpush.msrb.mxu3 %v3926_v4 }
 0x6bf   : > { %v1737_v13 = vsel %vm1026_vm5, %v1735_v6, -inf  ;;  %2263 = vmatpush.msrb.mxu3 %v3931_v3 }
 0x6c0   : > { %1738 = vmax.xlane.f32.xlu1 %v1737_v13 }
 0x6c1   : > { %2264 = vmatpush.msrb.mxu3 %v3935_v11 }
 0x6c2   : > { %2750 = vmatmul.msk.f32.gmra.mxu3 %vm992_vm3, %v1798_v51 }
 0x6c3   : > { %2265 = vmatpush.msrb.mxu3 %v3940_v7  ;;  %v1996_v4 = vpop.permute.xlu2 %1995 }
 0x6c4   : > { %v1732_v22 = vpop.f32.mrf.mxu0 }
 0x6c5   : > { %v1736_v23 = vmul.f32 0.35355338, %v1732_v22  ;;  %2266 = vmatpush.msrb.mxu3 %v3944_v14 }
 0x6c7   : > { %v1740_v24 = vsel %vm1030_vm6, %v1736_v23, -inf  ;;  %2267 = vmatpush.msrb.mxu3 %v3948_v16 }
 0x6c8   : > { %1741 = vmax.xlane.f32.xlu2 %v1740_v24 }
 0x6c9   : > { %2268 = vmatpush.msrb.mxu3 %v3951_v17 }
 0x6ca   : > { %2763 = vmatmul.msk.f32.vlgmr.msra.gmra.mxu3 %vm992_vm3, %v1994_v1 }
 0x6d2   : > { %2764 = vmatmul.msk.f32.gmra.mxu3 %vm992_vm3, %v1996_v4 }
 0x6da   : > { %v1927_v3 = vpop.f32.mrf.mxu0 }
 0x6db   : > { %v1933_v11 = vmul.f32 0.35355338, %v1927_v3 }
 0x6dd   : > { %v1935_v7 = vsel %vm1026_vm5, %v1933_v11, -inf }
 0x6de   : > { %1936 = vmax.xlane.f32.xlu0 %v1935_v7 }
 0x6e0   : > { %1858 = vrot.lane.b32.xlu2 %v3859_v8, %s3294_s0 }
 0x6e2   : > { %v1930_v14 = vpop.f32.mrf.mxu0 }
 0x6e3   : > { %v1934_v25 = vmul.f32 0.35355338, %v1930_v14 }
 0x6e5   : > { %v1938_v16 = vsel %vm1030_vm6, %v1934_v25, -inf }
 0x6e6   : > { %1939 = vmax.xlane.f32.xlu1 %v1938_v16 }
 0x6f2   : > { %1761 = vrot.lane.b32.xlu0 %v3871_v10, %s3293_s27 }
 0x6ff   : > { %1860 = vrot.lane.b32.xlu1 %v3871_v10, %s3294_s0 }
 0x725   : > { %v4011_v17 = vpop.f32.mrf.mxu3 }
 0x733   : > { %v1739_v26 = vpop.xlane.xlu1 %1738 }
 0x734   : > { %v1743_v27 = vsub.f32 %v1735_v6, %v1739_v26 }
 0x735   : > { %v4013_v28 = vpop.f32.mrf.mxu3 }
 0x736   : > { %v1745_v29 = vmul.f32 1.442695, %v1743_v27 }
 0x738   : > { %2943 = vpow2.f32 %v1745_v29 }
 0x73b   : > { %v1742_v30 = vpop.xlane.xlu2 %1741 }
 0x73c   : > { %v1744_v31 = vsub.f32 %v1736_v23, %v1742_v30 }
 0x73d   : > { %v1828_v32 = vpop.f32.mrf.mxu3 }
 0x73e   : > { %v4015_v33 = vpop.eup %2943  ;;  %v1747_v36 = vmul.f32 1.442695, %v1744_v31  ;;  %v1834_v38 = vmul.f32 0.35355338, %v1828_v32 }
 0x73f   : > { %v1749_v37 = vsel %vm1026_vm5, %v4015_v33, 0.0 }
 0x740   : > { %2945 = vpow2.f32 %v1747_v36  ;;  %1750 = vadd.xlane.f32.xlu2 %v1749_v37  ;;  %v1836_v44 = vsel %vm1026_vm5, %v1834_v38, -inf }
 0x743   : > { %v1859_v55 = vpop.permute.xlu2 %1858 }
 0x745   : > { %v1831_v39 = vpop.f32.mrf.mxu3 }
 0x746   : > { %v4019_v41 = vpop.eup %2945  ;;  %v1835_v42 = vmul.f32 0.35355338, %v1831_v39 }
 0x747   : > { %v1752_v43 = vsel %vm1030_vm6, %v4019_v41, 0.0 }
 0x748   : > { %1753 = vadd.xlane.f32.xlu1 %v1752_v43  ;;  %1837 = vmax.xlane.f32.xlu2 %v1836_v44  ;;  %v1839_v45 = vsel %vm1030_vm6, %v1835_v42, -inf }
 0x749   : > { %1840 = vmax.xlane.f32.xlu0 %v1839_v45 }
 0x74d   : > { %v2026_v46 = vpop.f32.mrf.mxu3 }
 0x74e   : > { %v2032_v47 = vmul.f32 0.35355338, %v2026_v46 }
 0x750   : > { %v2034_v15 = vsel %vm1026_vm5, %v2032_v47, -inf }
 0x751   : > { %2035 = vmax.xlane.f32.xlu1 %v2034_v15  ;;  %v1937_v51 = vpop.xlane.xlu0 %1936 }
 0x752   : > { %v1941_v58 = vsub.f32 %v1933_v11, %v1937_v51 }
 0x754   : > { %v1943_v59 = vmul.f32 1.442695, %v1941_v58 }
 0x755   : > { %v2029_v48 = vpop.f32.mrf.mxu3 }
 0x756   : > { %v2033_v49 = vmul.f32 0.35355338, %v2029_v48 }
 0x758   : > { %v2037_v50 = vsel %vm1030_vm6, %v2033_v49, -inf }
 0x759   : > { %2038 = vmax.xlane.f32.xlu2 %v2037_v50  ;;  %v1940_v53 = vpop.xlane.xlu1 %1939 }
 0x75a   : > { %v1942_v56 = vsub.f32 %v1934_v25, %v1940_v53 }
 0x75c   : > { %v1945_v57 = vmul.f32 1.442695, %v1942_v56 }
 0x75e   : > { %2947 = vpow2.f32 %v1945_v57 }
 0x75f   : > { %2949 = vpow2.f32 %v1943_v59 }
 0x764   : > { %v1762_v52 = vpop.permute.xlu0 %1761  ;;  %v4033_v60 = vpop.eup %2947 }
 0x765   : > { %2744 = vmatpush.msk.msrb.mxu1 %vm1061_vm4, %v1762_v52  ;;  %v1950_v61 = vsel %vm1030_vm6, %v4033_v60, 0.0  ;;  %v4037_v18 = vpop.eup %2949 }
 0x766   : > { %v1947_v19 = vsel %vm1026_vm5, %v4037_v18, 0.0 }
 0x76a   : > { %2058 = vrot.lane.b32.xlu1 %v3871_v10, %s3295_s29 }
 0x771   : > { %v1861_v54 = vpop.permute.xlu1 %1860  ;;  %1759 = vrot.lane.b32.xlu2 %v3859_v8, %s3293_s27  ;;  %s4272_s27 = sld [smem:[#allocation42_spill]] (!%p2774_p7) }
 0x772   : > { %2751 = vmatpush.msk.msra.mxu2 %vm1061_vm4, %v1861_v54 }
 0x774   : > { %1886 = vmatpush.msra.mxu2 %v1859_v55 }
 0x794   : > { %1951 = vadd.xlane.f32.xlu1 %v1950_v61 }
 0x79a   : > { %1948 = vadd.xlane.f32.xlu2 %v1947_v19 }
 0x7b2   : > { %2056 = vrot.lane.b32.xlu2 %v3859_v8, %s3295_s29 }
 0x7b3   : > { %v1751_v5 = vpop.xlane.xlu2 %1750 }
 0x7ba   : > { %1957 = vrot.lane.b32.xlu2 %v3859_v8, %s3296_s2 }
 0x7bb   : > { %v1754_v20 = vpop.xlane.xlu1 %1753  ;;  %v1838_v21 = vpop.xlane.xlu2 %1837 }
 0x7bc   : > { %v1842_v6 = vsub.f32 %v1834_v38, %v1838_v21  ;;  %v1841_v13 = vpop.xlane.xlu0 %1840 }
 0x7bd   : > { %v1843_v23 = vsub.f32 %v1835_v42, %v1841_v13 }
 0x7be   : > { %v1844_v22 = vmul.f32 1.442695, %v1842_v6 }
 0x7bf   : > { %v1846_v1 = vmul.f32 1.442695, %v1843_v23 }
 0x7c0   : > { %2951 = vpow2.f32 %v1844_v22 }
 0x7c1   : > { %2953 = vpow2.f32 %v1846_v1 }
 0x7c2   : > { %2955 = vrcp.f32 %v1751_v5 }
 0x7c4   : > { %v2036_v24 = vpop.xlane.xlu1 %2035 }
 0x7c5   : > { %v2040_v3 = vsub.f32 %v2032_v47, %v2036_v24 }
 0x7c6   : > { %v2952_v4 = vpop.eup %2951 }
 0x7c7   : > { %v1848_v11 = vsel %vm1026_vm5, %v2952_v4, 0.0  ;;  %v2042_v7 = vmul.f32 1.442695, %v2040_v3  ;;  %v2954_v14 = vpop.eup %2953 }
 0x7c8   : > { %1849 = vadd.xlane.f32.xlu0 %v1848_v11  ;;  %v1851_v16 = vsel %vm1030_vm6, %v2954_v14, 0.0  ;;  %v2956_v26 = vpop.eup %2955 }
 0x7c9   : > { %2957 = vpow2.f32 %v2042_v7  ;;  %v1757_v30 = vmul.f32 %v2956_v26, %v4015_v33  ;;  %v2896_v7 = vld [vmem:[%s3630_s1] ss:$0 sm:$0xff] }
 0x7ca   : > { %2959 = vrcp.f32 %v1754_v20 }
 0x7cc   : > { %v2039_v25 = vpop.xlane.xlu2 %2038 }
 0x7cd   : > { %v2041_v8 = vsub.f32 %v2033_v49, %v2039_v25 }
 0x7cf   : > { %v2044_v27 = vmul.f32 1.442695, %v2041_v8  ;;  %v2958_v29 = vpop.eup %2957 }
 0x7d0   : > { %1852 = vadd.xlane.f32.xlu0 %v1851_v16  ;;  %v2046_v32 = vsel %vm1026_vm5, %v2958_v29, 0.0  ;;  %v2960_v36 = vpop.eup %2959 }
 0x7d1   : > { %2961 = vpow2.f32 %v2044_v27  ;;  %v1758_v39 = vmul.f32 %v2960_v36, %v4019_v41 }
 0x7d4   : > { %v1760_v31 = vpop.permute.xlu2 %1759 }
 0x7d5   : > { %1787 = vmatpush.msrb.mxu1 %v1760_v31 }
 0x7d6   : > { %2745 = vmatmul.msk.f32.vlgmr.msrb.gmra.mxu1 %vm1026_vm5, %v1757_v30 }
 0x7d7   : > { %v2962_v37 = vpop.eup %2961 }
 0x7d8   : > { %2047 = vadd.xlane.f32.xlu0 %v2046_v32  ;;  %v2049_v42 = vsel %vm1030_vm6, %v2962_v37, 0.0 }
 0x7dc   : > { %v2059_v38 = vpop.permute.xlu1 %2058 }
 0x7dd   : > { %2765 = vmatpush.msk.msrb.mxu2 %vm1061_vm4, %v2059_v38 }
 0x7de   : > { %2746 = vmatmul.msk.f32.gmra.mxu1 %vm1026_vm5, %v1758_v39 }
 0x7e0   : > { %2050 = vadd.xlane.f32.xlu0 %v2049_v42  ;;  %v2895_v42 = vld [vmem:[%s3650_s28] ss:$0 sm:$0xff] }
 0x7f4   : > { %1959 = vrot.lane.b32.xlu0 %v3871_v10, %s3296_s2 }
 0x807   : > { %v1952_v53 = vpop.xlane.xlu1 %1951 }
 0x80d   : > { %v1949_v33 = vpop.xlane.xlu2 %1948 }
 0x815   : > { %v2057_v43 = vpop.permute.xlu2 %2056 }
 0x816   : > { %2084 = vmatpush.msrb.mxu2 %v2057_v43 }
 0x81d   : > { %v1958_v57 = vpop.permute.xlu2 %1957 }
 0x83b   : > { %v1850_v44 = vpop.xlane.xlu0 %1849 }
 0x83c   : > { %2963 = vrcp.f32 %v1850_v44  ;;  %v1574_v44 = vadd.f32 %v2895_v42, %v4011_v17 }
 0x842   : > { %v2964_v45 = vpop.eup %2963 }
 0x843   : > { %v1856_v46 = vmul.f32 %v2964_v45, %v2952_v4  ;;  %v1853_v47 = vpop.xlane.xlu0 %1852  ;;  %v1579_v45 = vadd.f32 %v1574_v44, %v3960_v40 }
 0x844   : > { %2965 = vrcp.f32 %v1853_v47 }
 0x845   : > { %2752 = vmatmul.msk.f32.vlgmr.msra.gmra.mxu2 %vm1026_vm5, %v1856_v46  ;;  %v1577_v46 = vadd.f32 %v2895_v42, %v4013_v28  ;;  %v1581_v47 = vsel %vm956_vm2, %v1579_v45, 0.0 }
 0x84a   : > { %v2966_v41 = vpop.eup %2965 }
 0x84b   : > { %v2048_v15 = vpop.xlane.xlu0 %2047  ;;  %v1857_v48 = vmul.f32 %v2966_v41, %v2954_v14  ;;  %v4098_v41 = vadd.f32 %v1577_v46, %v3966_v12  ;;  %v2897_v12 = vld [vmem:[%s3635_s8] ss:$0 sm:$0xff] }
 0x84c   : > { %2967 = vrcp.f32 %v2048_v15 }
 0x84d   : > { %2753 = vmatmul.msk.f32.gmra.mxu2 %vm1026_vm5, %v1857_v48  ;;  %v1584_v15 = vsel %vm1453_vm9, %v4098_v41, 0.0 }
 0x852   : > { %v2968_v49 = vpop.eup %2967 }
 0x853   : > { %v2054_v50 = vmul.f32 %v2968_v49, %v2958_v29  ;;  %v2051_v10 = vpop.xlane.xlu0 %2050  ;;  %v1789_v19 = vpop.f32.mrf.mxu1 }
 0x854   : > { %2969 = vrcp.f32 %v2051_v10 }
 0x855   : > { %2766 = vmatmul.msk.f32.vlgmr.msrb.gmra.mxu2 %vm1026_vm5, %v2054_v50  ;;  %2971 = vrcp.f32 %v1949_v33 }
 0x856   : > { %2973 = vrcp.f32 %v1952_v53 }
 0x85a   : > { %v2970_v51 = vpop.eup %2969 }
 0x85b   : > { %v2055_v52 = vmul.f32 %v2970_v51, %v2962_v37  ;;  %v2972_v54 = vpop.eup %2971 }
 0x85c   : > { %v1955_v56 = vmul.f32 %v2972_v54, %v4037_v18  ;;  %v2974_v58 = vpop.eup %2973 }
 0x85d   : > { %2767 = vmatmul.msk.f32.gmra.mxu2 %vm1026_vm5, %v2055_v52  ;;  %v1956_v59 = vmul.f32 %v2974_v58, %v4033_v60 }
 0x866   : > { %v1960_v55 = vpop.permute.xlu0 %1959 }
 0x867   : > { %2758 = vmatpush.msk.msra.mxu1 %vm1061_vm4, %v1960_v55  ;;  %v2898_v55 = vld [vmem:[%s3640_s24] ss:$0 sm:$0xff]  ;;  %s4269_s24 = sld [smem:[#allocation39_spill]] (!%p2774_p7) }
 0x869   : > { %1985 = vmatpush.msra.mxu1 %v1958_v57 }
 0x86a   : > { %2759 = vmatmul.msk.f32.vlgmr.msra.gmra.mxu1 %vm1026_vm5, %v1955_v56 }
 0x86b   : > { %2231 = vmatpush.msrb.mxu1 %v3907_v62  ;;  %v1792_v62 = vpop.f32.mrf.mxu1 }
 0x86d   : > { %2232 = vmatpush.msrb.mxu1 %v3911_v63 }
 0x86f   : > { %2233 = vmatpush.msrb.mxu1 %v3915_v0 }
 0x871   : > { %2234 = vmatpush.msrb.mxu1 %v3923_v2 }
 0x872   : > { %2760 = vmatmul.msk.f32.gmra.mxu1 %vm1026_vm5, %v1956_v59 }
 0x8c8   : > { %v1888_v61 = vpop.f32.mrf.mxu2 }
 0x8c9   : > { %2094 = vrot.lane.b32.xlu0 %v1888_v61, %s3297_s15 }
 0x8d0   : > { %v1891_v18 = vpop.f32.mrf.mxu2 }
 0x8d8   : > { %v2086_v5 = vpop.f32.mrf.mxu2 }
 0x8d9   : > { %2110 = vrot.lane.b32.xlu0 %v2086_v5, %s3298_s5 }
 0x8e0   : > { %v2089_v0 = vpop.f32.mrf.mxu2 }
 0x8e7   : > { %v1987_v20 = vpop.f32.mrf.mxu1 }
 0x8e8   : > { %2102 = vrot.lane.b32.xlu2 %v1987_v20, %s3299_s14 }
 0x8ef   : > { %v1990_v63 = vpop.f32.mrf.mxu1 }
 0x8f0   : > { %2096 = vrot.lane.b32.xlu2 %v1891_v18, %s3297_s15  ;;  %2104 = vrot.lane.b32.xlu0 %v1990_v63, %s3299_s14 }
 0x8f8   : > { %2112 = vrot.lane.b32.xlu2 %v2089_v0, %s3298_s5 }
 0x93b   : > { %v2095_v2 = vpop.permute.xlu0 %2094 }
 0x93c   : > { %v2116_v21 = vsel %vm992_vm3, %v1789_v19, %v2095_v2 }
 0x942   : > { %v2103_v60 = vpop.permute.xlu2 %2102 }
 0x943   : > { %v2118_v6 = vsel %vm1410_vm7, %v2116_v21, %v2103_v60 }
 0x94a   : > { %v2097_v23 = vpop.permute.xlu2 %2096 }
 0x94b   : > { %v2111_v13 = vpop.permute.xlu0 %2110  ;;  %v2117_v1 = vsel %vm992_vm3, %v1792_v62, %v2097_v23 }
 0x94c   : > { %v2120_v22 = vsel %vm1413_vm8, %v2118_v6, %v2111_v13 }
 0x94d   : > { %2768 = vmatmul.msk.f32.vlgmr.msrb.gmra.mxu0 %vm956_vm2, %v2120_v22 }
 0x952   : > { %v2113_v4 = vpop.permute.xlu2 %2112 }
 0x962   : > { %v2105_v24 = vpop.permute.xlu0 %2104 }
 0x963   : > { %v2119_v3 = vsel %vm1410_vm7, %v2117_v1, %v2105_v24  ;;  %v2899_v24 = vld [vmem:[%s3645_s11] ss:$0 sm:$0xff]  ;;  %s3302_s11 = smov (!%p2774_p7), 112  }
 0x964   : > { %v2121_v11 = vsel %vm1413_vm8, %v2119_v3, %v2113_v4 }
 0x965   : > { %2769 = vmatmul.msk.f32.gmra.mxu0 %vm956_vm2, %v2121_v11 }
 0x9ca   : > { %v2148_v14 = vpop.f32.mrf.mxu0 }
 0x9cb   : > { %v2149_v25 = vadd.f32 %v2896_v7, %v2148_v14 }
 0x9cd   : > { %v2154_v8 = vadd.f32 %v2149_v25, %v3845_v34 }
 0x9cf   : > { %v2156_v16 = vsel %vm956_vm2, %v2154_v8, 0.0 }
 0x9d0   : > { %2157 = vadd.xlane.f32.xlu0 %v2156_v16 }
 0x9e2   : > { %v2151_v26 = vpop.f32.mrf.mxu0 }
 0x9e3   : > { %v2152_v27 = vadd.f32 %v2896_v7, %v2151_v26 }
 0x9e5   : > { %v2155_v29 = vadd.f32 %v2152_v27, %v3849_v35 }
 0x9e7   : > { %v2159_v30 = vsel %vm1453_vm9, %v2155_v29, 0.0 }
 0x9e8   : > { %2160 = vadd.xlane.f32.xlu2 %v2159_v30 }
 0xa43   : > { %v2158_v31 = vpop.xlane.xlu0 %2157 }
 0xa44   : > { %v2162_v32 = vmul.f32 %v2158_v31, %v3865_v9  ;;  %v2900_v31 = vld [vmem:[%s3655_s13] ss:$0 sm:$0xff] }
 0xa46   : > { %v2164_v36 = vsub.f32 %v2154_v8, %v2162_v32 }
 0xa48   : > { %v2166_v37 = vmul.f32 %v2164_v36, %v2164_v36 }
 0xa4a   : > { %v2168_v38 = vsel %vm956_vm2, %v2166_v37, 0.0 }
 0xa4b   : > { %2169 = vadd.xlane.f32.xlu1 %v2168_v38 }
 0xa5b   : > { %v2161_v34 = vpop.xlane.xlu2 %2160 }
 0xa5c   : > { %v2163_v39 = vmul.f32 %v2161_v34, %v3865_v9 }
 0xa5e   : > { %v2165_v33 = vsub.f32 %v2155_v29, %v2163_v39 }
 0xa60   : > { %v2167_v43 = vmul.f32 %v2165_v33, %v2165_v33 }
 0xa62   : > { %v2171_v35 = vsel %vm1453_vm9, %v2167_v43, 0.0  ;;  %v2902_v43 = vld [vmem:[%s3650_s28] ss:$0 sm:$0xff] }
 0xa63   : > { %2172 = vadd.xlane.f32.xlu1 %v2171_v35 }
 0xa6b   : > { %1582 = vadd.xlane.f32.xlu1 %v1581_v47 }
 0xa73   : > { %1585 = vadd.xlane.f32.xlu1 %v1584_v15 }
 0xabe   : > { %v2170_v48 = vpop.xlane.xlu1 %2169 }
 0xabf   : > { %v2174_v17 = vmul.f32 %v2170_v48, %v3865_v9 }
 0xac1   : > { %v2176_v49 = vadd.f32 1e-05, %v2174_v17 }
 0xac3   : > { %2975 = vrsqrt.f32 %v2176_v49  ;;  %vm2184_vm4 = vweird.f32 %v2176_v49 }
 0xac9   : > { %v2976_v40 = vpop.eup %2975 }
 0xaca   : > { %v2179_v50 = vmul.f32 %v2976_v40, %v2176_v49  ;;  %vm2185_vm3 = vweird.f32 %v2976_v40 }
 0xacb   : > { %vm2186_vm5 = vmor %vm2184_vm4, %vm2185_vm3 }
 0xacc   : > { %v2180_v28 = vmul.f32 %v2976_v40, %v2179_v50 }
 0xace   : > { %v2181_v10 = vmul.f32 0.5, %v2180_v28 }
 0xad0   : > { %v2182_v51 = vsub.f32 1.5, %v2181_v10 }
 0xad2   : > { %v2183_v52 = vmul.f32 %v2976_v40, %v2182_v51 }
 0xad4   : > { %v2187_v53 = vsel %vm2186_vm5, %v2976_v40, %v2183_v52 }
 0xad5   : > { %v2198_v54 = vmul.f32 %v2187_v53, %v2164_v36  ;;  %v2901_v36 = vld [vmem:[%s3660_s7] ss:$0 sm:$0xff] }
 0xad6   : > { %v2173_v56 = vpop.xlane.xlu1 %2172 }
 0xad7   : > { %v2203_v57 = vmul.f32 %v2897_v12, %v2198_v54  ;;  %v2175_v58 = vmul.f32 %v2173_v56, %v3865_v9 }
 0xad9   : > { %v2177_v59 = vadd.f32 1e-05, %v2175_v58  ;;  %v2208_v61 = vadd.f32 %v2898_v55, %v2203_v57 }
 0xadb   : > { %2977 = vrsqrt.f32 %v2177_v59  ;;  %2770 = vmatmul.msk.f32.vlgmr.msrb.gmra.mxu1 %vm956_vm2, %v2208_v61  ;;  %vm2194_vm8 = vweird.f32 %v2177_v59 }
 0xade   : > { %v1583_v18 = vpop.xlane.xlu1 %1582 }
 0xadf   : > { %v1587_v19 = vmul.f32 %v1583_v18, %v3865_v9 }
 0xae1   : > { %v2978_v5 = vpop.eup %2977  ;;  %v1589_v62 = vsub.f32 %v1579_v45, %v1587_v19 }
 0xae2   : > { %v2189_v20 = vmul.f32 %v2978_v5, %v2177_v59  ;;  %vm2195_vm6 = vweird.f32 %v2978_v5 }
 0xae3   : > { %v1591_v63 = vmul.f32 %v1589_v62, %v1589_v62  ;;  %vm2196_vm10 = vmor %vm2194_vm8, %vm2195_vm6 }
 0xae4   : > { %v2190_v0 = vmul.f32 %v2978_v5, %v2189_v20 }
 0xae5   : > { %v1593_v2 = vsel %vm956_vm2, %v1591_v63, 0.0 }
 0xae6   : > { %v2191_v60 = vmul.f32 0.5, %v2190_v0  ;;  %1594 = vadd.xlane.f32.xlu2 %v1593_v2  ;;  %v1586_v44 = vpop.xlane.xlu1 %1585 }
 0xae7   : > { %v1588_v45 = vmul.f32 %v1586_v44, %v3865_v9 }
 0xae8   : > { %v2192_v21 = vsub.f32 1.5, %v2191_v60 }
 0xae9   : > { %v1590_v15 = vsub.f32 %v4098_v41, %v1588_v45 }
 0xaea   : > { %v2193_v6 = vmul.f32 %v2978_v5, %v2192_v21 }
 0xaeb   : > { %v1592_v17 = vmul.f32 %v1590_v15, %v1590_v15 }
 0xaec   : > { %v2197_v13 = vsel %vm2196_vm10, %v2978_v5, %v2193_v6 }
 0xaed   : > { %v2199_v22 = vmul.f32 %v2197_v13, %v2165_v33  ;;  %v1596_v49 = vsel %vm1453_vm9, %v1592_v17, 0.0 }
 0xaef   : > { %v2204_v23 = vmul.f32 %v2897_v12, %v2199_v22 }
 0xaf1   : > { %v2209_v1 = vadd.f32 %v2898_v55, %v2204_v23 }
 0xaf3   : > { %2771 = vmatmul.msk.f32.gmra.mxu1 %vm956_vm2, %v2209_v1 }
 0xb58   : > { %v2236_v4 = vpop.f32.mrf.mxu1 }
 0xb59   : > { %v2237_v3 = vadd.f32 %v2899_v24, %v2236_v4  ;;  %v1595_v11 = vpop.xlane.xlu2 %1594 }
 0xb5a   : > { %v1599_v7 = vmul.f32 %v1595_v11, %v3865_v9 }
 0xb5b   : > { %v2242_v14 = vmax.f32 %v2237_v3, 0.0 }
 0xb5c   : > { %v1601_v25 = vadd.f32 1e-05, %v1599_v7 }
 0xb5d   : > { %2772 = vmatmul.msk.f32.vlgmr.msrb.gmra.mxu3 %vm1549_vm1, %v2242_v14  ;;  %v2903_v14 = vld [vmem:[%s3655_s13] ss:$0 sm:$0xff] }
 0xb5e   : > { %2979 = vrsqrt.f32 %v1601_v25  ;;  %vm1609_vm12 = vweird.f32 %v1601_v25 }
 0xb64   : > { %v2980_v8 = vpop.eup %2979 }
 0xb65   : > { %v1604_v16 = vmul.f32 %v2980_v8, %v1601_v25  ;;  %vm1610_vm11 = vweird.f32 %v2980_v8 }
 0xb66   : > { %vm1611_vm13 = vmor %vm1609_vm12, %vm1610_vm11 }
 0xb67   : > { %v1605_v26 = vmul.f32 %v2980_v8, %v1604_v16 }
 0xb69   : > { %v1606_v27 = vmul.f32 0.5, %v1605_v26 }
 0xb6b   : > { %v1607_v29 = vsub.f32 1.5, %v1606_v27 }
 0xb6d   : > { %v1608_v30 = vmul.f32 %v2980_v8, %v1607_v29 }
 0xb6f   : > { %v1612_v32 = vsel %vm1611_vm13, %v2980_v8, %v1608_v30  ;;  %v2904_v8 = vld [vmem:[%s3660_s7] ss:$0 sm:$0xff]  ;;  %s4270_s7 = sld [smem:[#allocation40_spill]] (!%p2774_p7) }
 0xb70   : > { %v1623_v37 = vmul.f32 %v1612_v32, %v1589_v62  ;;  %v2239_v38 = vpop.f32.mrf.mxu1 }
 0xb71   : > { %v2240_v34 = vadd.f32 %v2899_v24, %v2239_v38 }
 0xb72   : > { %v1628_v39 = vmul.f32 %v2900_v31, %v1623_v37 }
 0xb73   : > { %v2243_v42 = vmax.f32 %v2240_v34, 0.0 }
 0xb74   : > { %v1633_v33 = vadd.f32 %v2901_v36, %v1628_v39 }
 0xb75   : > { %2773 = vmatmul.msk.f32.gmra.mxu3 %vm1549_vm1, %v2243_v42 }
 0xb76   : > { %1635 = vst.msk [vmem:[#allocation2] sm:$0xff] %vm956_vm2, %v1633_v33 }
 0xbe0   : > { %v2270_v35 = vpop.f32.mrf.mxu3 }
 0xbe1   : > { %v2271_v46 = vadd.f32 %v2902_v43, %v2270_v35 }
 0xbe3   : > { %v2276_v47 = vadd.f32 %v2271_v46, %v2208_v61 }
 0xbe5   : > { %v2278_v48 = vsel %vm956_vm2, %v2276_v47, 0.0 }
 0xbe6   : > { %2279 = vadd.xlane.f32.xlu0 %v2278_v48 }
 0xbee   : > { %1597 = vadd.xlane.f32.xlu0 %v1596_v49 }
 0xbf8   : > { %v2273_v40 = vpop.f32.mrf.mxu3 }
 0xbf9   : > { %v2274_v50 = vadd.f32 %v2902_v43, %v2273_v40 }
 0xbfb   : > { %v2277_v28 = vadd.f32 %v2274_v50, %v2209_v1 }
 0xbfd   : > { %v2281_v10 = vsel %vm1453_vm9, %v2277_v28, 0.0 }
 0xbfe   : > { %2282 = vadd.xlane.f32.xlu1 %v2281_v10 }
 0xc59   : > { %v2280_v51 = vpop.xlane.xlu0 %2279 }
 0xc5a   : > { %v2284_v52 = vmul.f32 %v2280_v51, %v3865_v9 }
 0xc5c   : > { %v2286_v12 = vsub.f32 %v2276_v47, %v2284_v52 }
 0xc5e   : > { %v2288_v53 = vmul.f32 %v2286_v12, %v2286_v12 }
 0xc60   : > { %v2290_v41 = vsel %vm956_vm2, %v2288_v53, 0.0 }
 0xc61   : > { %2291 = vadd.xlane.f32.xlu1 %v2290_v41  ;;  %v1598_v54 = vpop.xlane.xlu0 %1597 }
 0xc62   : > { %v1600_v55 = vmul.f32 %v1598_v54, %v3865_v9 }
 0xc64   : > { %v1602_v56 = vadd.f32 1e-05, %v1600_v55 }
 0xc66   : > { %2981 = vrsqrt.f32 %v1602_v56  ;;  %vm1619_vm15 = vweird.f32 %v1602_v56 }
 0xc6c   : > { %v2982_v57 = vpop.eup %2981 }
 0xc6d   : > { %v1614_v58 = vmul.f32 %v2982_v57, %v1602_v56  ;;  %vm1620_vm14 = vweird.f32 %v2982_v57 }
 0xc6e   : > { %vm1621_vm0 = vmor %vm1619_vm15, %vm1620_vm14 }
 0xc6f   : > { %v1615_v59 = vmul.f32 %v2982_v57, %v1614_v58 }
 0xc71   : > { %v1616_v61 = vmul.f32 0.5, %v1615_v59  ;;  %v2283_v18 = vpop.xlane.xlu1 %2282 }
 0xc72   : > { %v2285_v19 = vmul.f32 %v2283_v18, %v3865_v9 }
 0xc73   : > { %v1617_v5 = vsub.f32 1.5, %v1616_v61 }
 0xc74   : > { %v2287_v62 = vsub.f32 %v2277_v28, %v2285_v19 }
 0xc75   : > { %v1618_v20 = vmul.f32 %v2982_v57, %v1617_v5 }
 0xc76   : > { %v2289_v63 = vmul.f32 %v2287_v62, %v2287_v62 }
 0xc77   : > { %v1622_v0 = vsel %vm1621_vm0, %v2982_v57, %v1618_v20 }
 0xc78   : > { %v1624_v2 = vmul.f32 %v1622_v0, %v1590_v15  ;;  %v2293_v60 = vsel %vm1453_vm9, %v2289_v63, 0.0 }
 0xc79   : > { %2294 = vadd.xlane.f32.xlu2 %v2293_v60 }
 0xc7a   : > { %v1629_v21 = vmul.f32 %v2900_v31, %v1624_v2 }
 0xc7c   : > { %v1634_v6 = vadd.f32 %v2901_v36, %v1629_v21 }
 0xc7e   : > { %1636 = vst.msk [vmem:[#allocation2 + $0x8] sm:$0x3] %vm1453_vm9, %v1634_v6 }
 0xcd4   : > { %v2292_v13 = vpop.xlane.xlu1 %2291 }
 0xcd5   : > { %v2296_v22 = vmul.f32 %v2292_v13, %v3865_v9 }
 0xcd7   : > { %v2298_v23 = vadd.f32 1e-05, %v2296_v22 }
 0xcd9   : > { %2983 = vrsqrt.f32 %v2298_v23  ;;  %vm2306_vm3 = vweird.f32 %v2298_v23 }
 0xcdf   : > { %v2984_v1 = vpop.eup %2983 }
 0xce0   : > { %v2301_v24 = vmul.f32 %v2984_v1, %v2298_v23  ;;  %vm2307_vm1 = vweird.f32 %v2984_v1 }
 0xce1   : > { %vm2308_vm4 = vmor %vm2306_vm3, %vm2307_vm1 }
 0xce2   : > { %v2302_v4 = vmul.f32 %v2984_v1, %v2301_v24 }
 0xce4   : > { %v2303_v3 = vmul.f32 0.5, %v2302_v4 }
 0xce6   : > { %v2304_v11 = vsub.f32 1.5, %v2303_v3 }
 0xce8   : > { %v2305_v7 = vmul.f32 %v2984_v1, %v2304_v11 }
 0xcea   : > { %v2309_v25 = vsel %vm2308_vm4, %v2984_v1, %v2305_v7 }
 0xceb   : > { %v2320_v16 = vmul.f32 %v2309_v25, %v2286_v12 }
 0xcec   : > { %v2295_v26 = vpop.xlane.xlu2 %2294 }
 0xced   : > { %v2325_v27 = vmul.f32 %v2903_v14, %v2320_v16  ;;  %v2297_v29 = vmul.f32 %v2295_v26, %v3865_v9 }
 0xcef   : > { %v2330_v30 = vadd.f32 %v2904_v8, %v2325_v27  ;;  %v2299_v31 = vadd.f32 1e-05, %v2297_v29 }
 0xcf1   : > { %2332 = vst.msk [vmem:[#allocation2 + $0x10] sm:$0xff] %vm956_vm2, %v2330_v30  ;;  %2985 = vrsqrt.f32 %v2299_v31  ;;  %vm2316_vm6 = vweird.f32 %v2299_v31 }
 0xcf7   : > { %v2986_v32 = vpop.eup %2985 }
 0xcf8   : > { %v2311_v36 = vmul.f32 %v2986_v32, %v2299_v31  ;;  %vm2317_vm5 = vweird.f32 %v2986_v32 }
 0xcf9   : > { %vm2318_vm8 = vmor %vm2316_vm6, %vm2317_vm5 }
 0xcfa   : > { %v2312_v37 = vmul.f32 %v2986_v32, %v2311_v36 }
 0xcfc   : > { %v2313_v38 = vmul.f32 0.5, %v2312_v37 }
 0xcfe   : > { %v2314_v34 = vsub.f32 1.5, %v2313_v38 }
 0xd00   : > { %v2315_v39 = vmul.f32 %v2986_v32, %v2314_v34 }
 0xd02   : > { %v2319_v42 = vsel %vm2318_vm8, %v2986_v32, %v2315_v39 }
 0xd03   : > { %v2321_v33 = vmul.f32 %v2319_v42, %v2287_v62 }
 0xd05   : > { %v2326_v43 = vmul.f32 %v2903_v14, %v2321_v33  ;;  %2337 = sbr.rel (%p2774_p7) target bundleno = 3733 (0xe95), region = 124 }
 0xd07   : > { %v2331_v44 = vadd.f32 %v2904_v8, %v2326_v43 }
 0xd09   : > { %2333 = vst.msk [vmem:[#allocation2 + $0x18] sm:$0x3] %vm1453_vm9, %v2331_v44 }
 0xd0a   : > { %v2348_v9 = vld [vmem:[#allocation12 + $0x18] sm:$0xff]  ;;  %v2347_v35 = vld [vmem:[#allocation12 + $0x10] sm:$0xff]  ;;  %v2346_v45 = vld [vmem:[#allocation12 + $0x8] sm:$0xff]  ;;  %vm2343_vm10 = vcmask 1040384   ;;  %vm2420_vm11 = vcmask 123904  }
 0xd0b   : > { %2368 = vmatpush.msra.mxu0 %v2348_v9  ;;  %v2339_v46 = vld [vmem:[#allocation2 + $0x10] sm:$0xff]  ;;  %v2338_v47 = vld [vmem:[#allocation2] sm:$0xff]  ;;  %v2391_v41 = vld [vmem:[%s4270_s7 + $0x8] sm:$0xff] }
 0xd0c   : > { %v2341_v15 = vrot.slane %v2339_v46, 7  ;;  %v2379_v48 = vld [vmem:[%s4268_s18] sm:$0x3]  ;;  %2413 = vmatpush.msra.mxu1 %v2391_v41 }
 0xd0d   : > { %2369 = vmatpush.msra.mxu0 %v2347_v35  ;;  %2381 = vrot.lane.b32.xlu0 %v2379_v48, %s3301_s21  ;;  %v2345_v17 = vld [vmem:[#allocation12] sm:$0xff] }
 0xd0e   : > { %v2344_v49 = vsel %vm2343_vm10, %v2338_v47, %v2341_v15  ;;  %v2987_v40 = vld [vmem:[%s4269_s24] ss:$0 sm:$0xff] }
 0xd0f   : > { %2370 = vmatpush.msra.mxu0 %v2346_v45  ;;  %v2390_v54 = vld [vmem:[%s4270_s7] sm:$0xff] }
 0xd10   : > { %2414 = vmatpush.msra.mxu1 %v2390_v54  ;;  %v2988_v58 = vld [vmem:[%s4271_s19] ss:$0 sm:$0xff] }
 0xd11   : > { %2371 = vmatpush.msra.mxu0 %v2345_v17 }
 0xd12   : > { %2775 = vmatmul.msk.f32.vlgmr.msra.gmra.mxu0 %vm956_vm2, %v2344_v49 }
 0xd7f   : > { %v2382_v52 = vpop.permute.xlu0 %2381 }
 0xd8f   : > { %v2373_v50 = vpop.f32.mrf.mxu0 }
 0xd90   : > { %v2374_v28 = vadd.f32 %v2987_v40, %v2373_v50 }
 0xd92   : > { %2423 = vrot.lane.b32.xlu1 %v2374_v28, %s3302_s11  ;;  %v2376_v10 = vmul.f32 0.5, %v2374_v28  ;;  %2421 = vst.msk [vmem:[#allocation14] sm:$0x3] %vm2420_vm11, %v2374_v28 }
 0xd94   : > { %v2377_v51 = vmul.f32 1.442695, %v2376_v10 }
 0xd96   : > { %2989 = vpow2.f32 %v2377_v51 }
 0xd9c   : > { %v2990_v12 = vpop.eup %2989 }
 0xd9d   : > { %v2384_v53 = vmul.f32 %v2990_v12, %v2382_v52 }
 0xd9f   : > { %2386 = vrot.lane.b32.xlu0 %v2384_v53, %s3302_s11 }
 0xe04   : > { %v2424_v55 = vpop.permute.xlu1 %2423 }
 0xe05   : > { %2426 = vst.msk [vmem:[#allocation15] sm:$0x3] %vm2420_vm11, %v2424_v55 }
 0xe11   : > { %v2387_v56 = vpop.permute.xlu0 %2386 }
 0xe12   : > { %v2389_v57 = vadd.f32 %v2387_v56, %v2374_v28 }
 0xe14   : > { %2776 = vmatmul.msk.f32.vlgmr.msra.gmra.mxu1 %vm1410_vm7, %v2389_v57 }
 0xe91   : > { %v2416_v59 = vpop.f32.mrf.mxu1 }
 0xe92   : > { %v2417_v61 = vadd.f32 %v2988_v58, %v2416_v59 }
 0xe94   : > { %2419 = vst.msk [vmem:[%s4272_s27] sm:$0x3] %vm1453_vm9, %v2417_v61 }
 0xe95 PF: > { %p2833_p10 = scmp.eq.s32.totalorder %s3510_s25, 1  ;;  %s3303_s0 = smov [#allocation14]  }
 0xe96   : > { %s2436_s29 = sshll.u32 %s3303_s0, 4  ;;  %s4273_s5 = sld [smem:[#allocation43_spill]]  ;;  %s2437_s29 = int_to_ptr.vmem [resolvable:$true] %s2436_s29 }
 0xe97   : > { %s4274_s18 = sld [smem:[#allocation44_spill]]  ;;  %s3304_s1 = smov [#allocation15]  }
 0xe98   : > { %s2448_s8 = sshll.u32 %s3304_s1, 4  ;;  %s2449_s8 = int_to_ptr.vmem [resolvable:$true] %s2448_s8 }
 0xe9c   : > { %s2438_s14 = sshll.u32 %s4273_s5, 4  ;;  %s2439_s14 = int_to_ptr.hbm [resolvable:$true] %s2438_s14 }
 0xe9d   : > { %2803 = dma.vmem_to_hbm [thread:$0]  (%p2833_p10), %s2437_s29, 32, %s2439_s14, [#allocation5]  }
 0xe9e   : > { %s2450_s21 = sshll.u32 %s4274_s18, 4  ;;  %s2451_s21 = int_to_ptr.hbm [resolvable:$true] %s2450_s21 }
 0xe9f   : > { %2805 = dma.vmem_to_hbm [thread:$0]  (%p2833_p10), %s2449_s8, 32, %s2451_s21, [#allocation16]  }
 0xea0   : > { %3260 = dma.done.wait (%p2833_p10), [#allocation5], 32  }
 0xea1   : > { %3262 = vsyncadd (%p2833_p10), [#allocation5], 4294967264 }
 0xea2   : > { %3264 = dma.done.wait (%p2833_p10), [#allocation16], 32  }
 0xea3   : > { %3266 = vsyncadd (%p2833_p10), [#allocation16], 4294967264 }
 0xea4 PF: > { %s4275_s24 = sld [smem:[#allocation24_spill]]  ;;  %s4278_s1 = smov %s3273_s22 }
 0xea5   : > { %s4276_s11 = sld [smem:[#allocation23_spill]] }
 0xea6   : > { %s4277_s23 = sld [smem:[#allocation25_spill]] }
 0xeaa   : > { %p40_p13 = scmp.ge.s32.totalorder %s4275_s24, 4  }
 0xeab   : > { %s4279_s22 = smov %s4276_s11 }
 0xeac   :  { %42 = sbr.rel (!%p40_p13) target bundleno = 30 (0x1e), region = 227 }
 0xeb1   :  { %2472 = vsyncpa [#allocation4], 1 }
 0xeb2   :  { %2474 = vsyncpa [#allocation4 + $0x1], 1 }
 0xeb3   :  { %2475 = vsyncpa [#allocation7], 1 }
 0xeb4   :  { %2477 = vsyncpa [#allocation7 + $0x1], 1 }
 0xeb5   :  { %2478 = vsyncpa [#allocation10], 1 }
 0xeb6   :  { %2480 = vsyncpa [#allocation10 + $0x1], 1 }
 0xeb7   :  { %2481 = vsyncpa [#allocation13], 1 }
 0xeb8   :  { %2482 = vsyncpa [#allocation5], 1 }
 0xeb9   :  { %2484 = vsyncpa [#allocation5 + $0x1], 1 }
 0xeba   :  { %2485 = vsyncpa [#allocation16], 1 }

// kernel: _lambda_.6
= control target key start
LH: loop header
LB: loop body
LE: loop exit
PB: predicated region body
PF: predicated region fallthrough
CT: control target
= control target key end

     0   :  { %s4402_s0 = inlined_call_operand.vmem [shape: f32[2,19,32], index: 0, kind: input, shape index: {}]   ;;  %s4403_s1 = inlined_call_operand.hbm [shape: f32[2,32,96], index: 1, kind: input, shape index: {}]   ;;  %s4404_s2 = inlined_call_operand.hbm [shape: f32[2,19,96], index: 2, kind: input, shape index: {}]   ;;  %s4405_s3 = inlined_call_operand.hbm [shape: f32[2,32,32], index: 3, kind: input, shape index: {}]   ;;  %s4406_s4 = inlined_call_operand.vmem [shape: f32[2,1,32], index: 4, kind: input, shape index: {}, may-alias: {4,6,10,12}]   ;;  %s4407_s5 = inlined_call_operand.vmem [shape: f32[2,1,32], index: 5, kind: input, shape index: {}, may-alias: {5,11}]   ;;  %s4408_s6 = inlined_call_operand.vmem [shape: f32[2,1,32], index: 6, kind: input, shape index: {}, may-alias: {4,6,10,12}]   ;;  %s4409_s7 = inlined_call_operand.hbm [shape: f32[2,32,64], index: 7, kind: input, shape index: {}]   ;;  %s4410_s8 = inlined_call_operand.vmem [shape: f32[2,1,64], index: 8, kind: input, shape index: {}]   ;;  %s4411_s9 = inlined_call_operand.vmem [shape: f32[2,64,32], index: 9, kind: input, shape index: {}]   ;;  %s4412_s10 = inlined_call_operand.vmem [shape: f32[2,1,32], index: 10, kind: input, shape index: {}, may-alias: {4,6,10,12}]   ;;  %s4413_s11 = inlined_call_operand.vmem [shape: f32[2,1,32], index: 11, kind: input, shape index: {}, may-alias: {5,11}]   ;;  %s4414_s12 = inlined_call_operand.vmem [shape: f32[2,1,32], index: 12, kind: input, shape index: {}, may-alias: {4,6,10,12}]   ;;  %s4415_s13 = inlined_call_operand.vmem [shape: f32[2,19,32], index: 13, kind: output, shape index: {}]  }
   0x1   :  { %4432 = sst [smem:[#allocation15_spill]] %s4402_s0 }
   0x2   :  { %4433 = sst [smem:[#allocation16_spill]] %s4403_s1 }
   0x3   :  { %4434 = sst [smem:[#allocation17_spill]] %s4404_s2 }
   0x4   :  { %4435 = sst [smem:[#allocation18_spill]] %s4405_s3 }
   0x5   :  { %4436 = sst [smem:[#allocation19_spill]] %s4406_s4 }
   0x6   :  { %4437 = sst [smem:[#allocation20_spill]] %s4407_s5 }
   0x7   :  { %4438 = sst [smem:[#allocation21_spill]] %s4408_s6 }
   0x8   :  { %4439 = sst [smem:[#allocation22_spill]] %s4411_s9 }
   0x9   :  { %4440 = sst [smem:[#allocation23_spill]] %s4413_s11 }
   0xa   :  { %4441 = sst [smem:[#allocation24_spill]] %s4414_s12 }
   0xb   :  { %4442 = sst [smem:[#allocation25_spill]] %s4415_s13 }
   0xc   :  { %18 = vsyncpa [#allocation3], 0 }
   0xd   :  { %20 = vsyncpa [#allocation3 + $0x1], 0 }
   0xe   :  { %21 = vsyncpa [#allocation5], 0 }
   0xf   :  { %23 = vsyncpa [#allocation5 + $0x1], 0 }
  0x10   :  { %24 = vsyncpa [#allocation8], 0 }
  0x11   :  { %26 = vsyncpa [#allocation8 + $0x1], 0  ;;  %s3375_s25 = smov 0   ;;  %s3377_s26 = smov 0  }
  0x12   :  { %s3379_s27 = smov 0   ;;  %s3381_s28 = smov 0  }
  0x13 LB: > { %4443 = sst [smem:[#allocation12_spill]] %s3282_s27  ;;  %s3394_s29 = sadd.s32 4294967295, %s3286_s28   ;;  %s3286_s28 = sphi %s3381_s28, %s4466_s28   ;;  %s3282_s27 = sphi %s3379_s27, %s4468_s27   ;;  %s3278_s26 = sphi %s3377_s26, %s4470_s26   ;;  %s3274_s25 = sphi %s3375_s25, %s4469_s25  }
  0x14   : > { %s3397_s30 = sadd.s32 1, %s3286_s28   ;;  %s60_s15 = sadd.s32 1, %s3282_s27 }
  0x15   : > { %4444 = sst [smem:[#allocation13_spill]] %s3397_s30  ;;  %s57_s14 = ssub.s32 %s3286_s28, %s3397_s30 }
  0x16   : > { %p58_p0 = scmp.eq.s32.totalorder %s57_s14, 0  ;;  %p67_p1 = scmp.ne.s32.totalorder %s3282_s27, %s3278_s26 }
  0x17   : > { %p68_p2 = scmp.eq.s32.totalorder %s3286_s28, 0  ;;  %p73_p3 = scmp.ne.s32.totalorder %s3278_s26, %s3274_s25 }
  0x18   : > { %s3407_s16 = scalar_select %p58_p0, %s3282_s27, %s60_s15  }
  0x19   : > { %p69_p4 = por %p68_p2, %p67_p1  ;;  %p74_p5 = scmp.eq.s32.totalorder %s3394_s29, 0 }
  0x1a   : > { %4445 = sst [smem:[#allocation14_spill]] %s3407_s16  ;;  %p2896_p6 = scmp.lt.s32.totalorder %s3286_s28, 2 }
  0x1b   : > { %p3411_p7 = por %p74_p5, %p73_p3  ;;  %s3416_s18 = sand.u32 1, %s3282_s27  }
  0x1c   : > { %p3418_p8 = pnand %p2896_p6, %p69_p4  ;;  %s429_s20 = sand.u32 1, %s3286_s28  }
  0x1d   : > { %s2872_s21 = smul.u32 24, %s3416_s18  ;;  %p2749_p9 = scmp.ge.s32.totalorder %s3286_s28, 1 }
  0x1e   : > { %s2873_s22 = smul.u32 24, %s3286_s28  ;;  %p543_p10 = scmp.lt.s32.totalorder %s3286_s28, 3 }
  0x1f   : > { %s4448_s2 = sld [smem:[#allocation17_spill]]  ;;  %s433_s14 = scalar_lea.vmem [#allocation4], %s2872_s21 }
  0x20   : > { %s441_s15 = sshll.u32 %s433_s14, 4  ;;  %p3430_p11 = pnand %p2749_p9, %p543_p10  ;;  %s442_s15 = int_to_ptr.vmem [resolvable:$true] %s441_s15 }
  0x21   : > { %s3434_s30 = scalar_lea.sflag [#allocation5], %s429_s20  ;;  %p3128_p13 = pneg %p3418_p8 }
  0x25   : > { %s438_s25 = scalar_lea.hbm %s4448_s2, %s2873_s22  ;;  %s3131_s23 = scalar_lea.hbm %s4448_s2, 48 }
  0x26   : > { %s439_s16 = sshll.u32 %s438_s25, 4  ;;  %s440_s16 = int_to_ptr.hbm [resolvable:$true] %s439_s16 }
  0x27   : > { %s3124_s13 = sshra.s32 %s440_s16, 4  ;;  %s3125_s13 = int_to_ptr.hbm [resolvable:$true] %s3124_s13 }
  0x28   : > { %s3126_s0 = scalar_lea.hbm %s3125_s13, 24  ;;  %p3132_p2 = scmp.lt.s32.totalorder %s3125_s13, %s4448_s2 }
  0x29   : > { %p3127_p12 = scmp.ne.s32.totalorder %s3125_s13, %s3126_s0  ;;  %p3133_p3 = scmp.lt.s32.totalorder %s3131_s23, %s3126_s0 }
  0x2b   : > { %p3129_p0 = pnand %p3128_p13, %p3127_p12  ;;  %p3134_p4 = por %p3133_p3, %p3132_p2 }
  0x2d   : > { %p3130_p1 = pneg %p3129_p0 }
  0x2f   : > { %p3135_p5 = pnand %p3134_p4, %p3130_p1 }
  0x31   : > { %3138 = shalt.err (!%p3135_p5)
}
  0x32   : > { %s3288_s20 = smov 128   ;;  %s3289_s14 = smov 8  }
  0x33   : > { %2889 = dma.hbm_to_vmem [thread:$0]  (!%p3418_p8), %s440_s16, 384, %s442_s15, %s3434_s30, %s3288_s20, %s3288_s20, %s3289_s14  }
  0x34   : > { %s3454_s21 = sshll.u32 %s3416_s18, 5  ;;  %s3457_s0 = sshll.u32 %s3286_s28, 5 }
  0x35   : > { %s4450_s1 = sld [smem:[#allocation16_spill]]  ;;  %s411_s25 = scalar_lea.vmem [#allocation2], %s3454_s21 }
  0x36   : > { %s419_s2 = sshll.u32 %s411_s25, 4  ;;  %s408_s12 = scalar_lea.sflag [#allocation3], %s3416_s18  ;;  %s420_s2 = int_to_ptr.vmem [resolvable:$true] %s419_s2 }
  0x3b   : > { %s416_s23 = scalar_lea.hbm %s4450_s1, %s3457_s0  ;;  %s3161_s15 = scalar_lea.hbm %s4450_s1, 64 }
  0x3c   : > { %s417_s24 = sshll.u32 %s416_s23, 4  ;;  %s418_s24 = int_to_ptr.hbm [resolvable:$true] %s417_s24 }
  0x3d   : > { %s3154_s11 = sshra.s32 %s418_s24, 4  ;;  %s3155_s11 = int_to_ptr.hbm [resolvable:$true] %s3154_s11 }
  0x3e   : > { %s3156_s9 = scalar_lea.hbm %s3155_s11, 32  ;;  %p3162_p12 = scmp.lt.s32.totalorder %s3155_s11, %s4450_s1 }
  0x3f   : > { %p3157_p6 = scmp.ne.s32.totalorder %s3155_s11, %s3156_s9  ;;  %p3163_p0 = scmp.lt.s32.totalorder %s3161_s15, %s3156_s9 }
  0x41   : > { %p3159_p9 = pnand %p3157_p6, %p3128_p13  ;;  %p3164_p1 = por %p3163_p0, %p3162_p12 }
  0x43   : > { %p3160_p10 = pneg %p3159_p9 }
  0x45   : > { %p3165_p2 = pnand %p3164_p1, %p3160_p10 }
  0x47   : > { %3168 = shalt.err (!%p3165_p2)
}
  0x48   : > { %2886 = dma.hbm_to_vmem [thread:$0]  (!%p3418_p8), %s418_s24, 512, %s420_s2, %s408_s12, %s3288_s20, %s3288_s20, %s3289_s14  }
  0x49   : > { %s4451_s3 = sld [smem:[#allocation18_spill]]  ;;  %s455_s13 = scalar_lea.vmem [#allocation6], %s3454_s21 }
  0x4a   : > { %s463_s11 = sshll.u32 %s455_s13, 4  ;;  %s464_s11 = int_to_ptr.vmem [resolvable:$true] %s463_s11 }
  0x4f   : > { %s460_s28 = scalar_lea.hbm %s4451_s3, %s3457_s0  ;;  %s3191_s2 = scalar_lea.hbm %s4451_s3, 64 }
  0x50   : > { %s461_s16 = sshll.u32 %s460_s28, 4  ;;  %s462_s16 = int_to_ptr.hbm [resolvable:$true] %s461_s16 }
  0x51   : > { %s3184_s9 = sshra.s32 %s462_s16, 4  ;;  %s3185_s9 = int_to_ptr.hbm [resolvable:$true] %s3184_s9 }
  0x52   : > { %s3186_s15 = scalar_lea.hbm %s3185_s9, 32  ;;  %p3192_p6 = scmp.lt.s32.totalorder %s3185_s9, %s4451_s3 }
  0x53   : > { %p3187_p3 = scmp.ne.s32.totalorder %s3185_s9, %s3186_s15  ;;  %p3193_p9 = scmp.lt.s32.totalorder %s3191_s2, %s3186_s15 }
  0x55   : > { %p3189_p4 = pnand %p3187_p3, %p3128_p13  ;;  %p3194_p10 = por %p3193_p9, %p3192_p6 }
  0x57   : > { %p3190_p5 = pneg %p3189_p4 }
  0x59   : > { %p3195_p12 = pnand %p3194_p10, %p3190_p5 }
  0x5b   : > { %3198 = shalt.err (!%p3195_p12)
}
  0x5c   : > { %2892 = dma.hbm_to_vmem [thread:$0]  (!%p3418_p8), %s462_s16, 512, %s464_s11, %s3434_s30, %s3288_s20, %s3288_s20, %s3289_s14  }
  0x5d   : > { %s500_s25 = scalar_lea.hbm %s4409_s7, %s3457_s0  ;;  %s495_s28 = scalar_lea.vmem [#allocation7], %s3454_s21 }
  0x5e   : > { %s503_s13 = sshll.u32 %s495_s28, 4  ;;  %s501_s9 = sshll.u32 %s500_s25, 4  ;;  %s504_s13 = int_to_ptr.vmem [resolvable:$true] %s503_s13  ;;  %s502_s9 = int_to_ptr.hbm [resolvable:$true] %s501_s9 }
  0x5f   : > { %s492_s15 = scalar_lea.sflag [#allocation8], %s3416_s18  ;;  %s3214_s22 = sshra.s32 %s502_s9, 4  ;;  %s3215_s22 = int_to_ptr.hbm [resolvable:$true] %s3214_s22 }
  0x60   : > { %s3216_s2 = scalar_lea.hbm %s3215_s22, 32  ;;  %s3221_s16 = scalar_lea.hbm %s4409_s7, 64 }
  0x61   : > { %p3217_p0 = scmp.ne.s32.totalorder %s3215_s22, %s3216_s2  ;;  %p3222_p3 = scmp.lt.s32.totalorder %s3215_s22, %s4409_s7 }
  0x62   : > { %p3223_p4 = scmp.lt.s32.totalorder %s3221_s16, %s3216_s2 }
  0x63   : > { %p3219_p1 = pnand %p3217_p0, %p3128_p13 }
  0x64   : > { %p3224_p5 = por %p3223_p4, %p3222_p3 }
  0x65   : > { %p3220_p2 = pneg %p3219_p1 }
  0x67   : > { %p3225_p6 = pnand %p3224_p5, %p3220_p2 }
  0x69   : > { %3228 = shalt.err (!%p3225_p6)
}
  0x6a   : > { %2895 = dma.hbm_to_vmem [thread:$0]  (!%p3418_p8), %s502_s9, 512, %s504_s13, %s492_s15, %s3288_s20, %s3288_s20, %s3289_s14  }
  0x6b   : > { %547 = sbr.rel (%p3430_p11) target bundleno = 3441 (0xd71), region = 72  ;;  %s549_s18 = sand.u32 (!%p3430_p11), 1, %s3278_s26  }
  0x6c   : > { %s2750_s21 = sshll.u32 (!%p3430_p11), %s549_s18, 5  ;;  %s550_s24 = scalar_lea.sflag (!%p3430_p11), [#allocation3], %s549_s18 }
  0x6d   : > { %s3522_s1 = scalar_lea.vmem (!%p3430_p11), [#allocation2], %s2750_s21 }
  0x70   : > { %3261 = dma.done.wait (%p3411_p7), %s550_s24, 512  }
  0x71   : > { %3263 = vsyncadd (%p3411_p7), %s550_s24, 4294966784  ;;  %s559_s19 = sand.u32 1, %s3394_s29   ;;  %s2874_s23 = smul.u32 24, %s549_s18 }
  0x72   : > { %s560_s20 = scalar_lea.sflag [#allocation5], %s559_s19 }
  0x73   : > { %s3529_s14 = scalar_lea.vmem [#allocation4], %s2874_s23 }
  0x74   : > { %3265 = dma.done.wait (%p3411_p7), %s560_s20, 896  }
  0x75   : > { %3267 = vsyncadd (%p3411_p7), %s560_s20, 4294966400  ;;  %s3535_s27 = scalar_lea.vmem [#allocation6], %s2750_s21  ;;  %s580_s25 = scalar_lea.sflag [#allocation8], %s549_s18 }
  0x76   : > { %s3537_s28 = scalar_lea.vmem [#allocation7], %s2750_s21 }
  0x77   : > { %3269 = dma.done.wait (%p3411_p7), %s580_s25, 512  }
  0x78   : > { %3271 = vsyncadd (%p3411_p7), %s580_s25, 4294966784  ;;  %p663_p8 = scmp.lt.s32.totalorder %s3394_s29, 1  ;;  %s4452_s4 = sld [smem:[#allocation19_spill]] }
  0x79   : > { %s4453_s5 = sld [smem:[#allocation20_spill]]  ;;  %p2755_p7 = scmp.ne.s32.totalorder %s3394_s29, 0 }
  0x7a   : > { %s664_s13 = scalar_select %p663_p8, %s3394_s29, 1 }
  0x7b   : > { %s4454_s6 = sld [smem:[#allocation21_spill]] }
  0x7c   : > { %s3563_s21 = scalar_lea.vmem %s4410_s8, %s664_s13  ;;  %s2871_s24 = sshll.u32 %s664_s13, 6 }
  0x7d   : > { %s3568_s20 = scalar_lea.vmem %s4412_s10, %s664_s13  ;;  %s4455_s15 = sld [smem:[#allocation22_spill]] }
  0x7e   : > { %s3548_s22 = scalar_lea.vmem %s4452_s4, %s664_s13  ;;  %s4456_s11 = sld [smem:[#allocation23_spill]] }
  0x7f   : > { %s3553_s30 = scalar_lea.vmem %s4453_s5, %s664_s13  ;;  %s4457_s18 = sld [smem:[#allocation24_spill]] }
  0x80   : > { %s4459_s12 = sld [smem:[#allocation25_spill]] (!%p2755_p7) }
  0x81   : > { %s3558_s0 = scalar_lea.vmem %s4454_s6, %s664_s13  ;;  %692 = sbr.rel (%p2755_p7) target bundleno = 143 (0x8f), region = 92 }
  0x82   : > { %s4458_s6 = sld [smem:[#allocation15_spill]] (!%p2755_p7) }
  0x83   : > { %s3573_s2 = scalar_lea.vmem %s4455_s15, %s2871_s24 }
  0x84   : > { %s3578_s3 = scalar_lea.vmem %s4456_s11, %s664_s13 }
  0x85   : > { %s3583_s5 = scalar_lea.vmem %s4457_s18, %s664_s13 }
  0x86   : > { %vm699_vm0 = vcmask 261120   ;;  %vm702_vm1 = vcmask 256000  }
  0x88   : > { %v693_v0 = vld [vmem:[%s4458_s6] sm:$0xff]  ;;  %v694_v1 = vld [vmem:[%s4458_s6 + $0x8] sm:$0xff]  ;;  %v695_v2 = vld [vmem:[%s4458_s6 + $0x10] sm:$0x7] }
  0x89   : > { %700 = vst.msk [vmem:[%s4459_s12] sm:$0xff] %vm699_vm0, %v693_v0  ;;  %v696_v3 = vld [vmem:[%s4458_s6 + $0x18] sm:$0xff]  ;;  %v697_v4 = vld [vmem:[%s4458_s6 + $0x20] sm:$0xff]  ;;  %v698_v5 = vld [vmem:[%s4458_s6 + $0x28] sm:$0x7] }
  0x8a   : > { %701 = vst.msk [vmem:[%s4459_s12 + $0x8] sm:$0xff] %vm699_vm0, %v694_v1 }
  0x8b   : > { %703 = vst.msk [vmem:[%s4459_s12 + $0x10] sm:$0x7] %vm702_vm1, %v695_v2 }
  0x8c   : > { %704 = vst.msk [vmem:[%s4459_s12 + $0x18] sm:$0xff] %vm699_vm0, %v696_v3 }
  0x8d   : > { %705 = vst.msk [vmem:[%s4459_s12 + $0x20] sm:$0xff] %vm699_vm0, %v697_v4 }
  0x8e   : > { %706 = vst.msk [vmem:[%s4459_s12 + $0x28] sm:$0x7] %vm702_vm1, %v698_v5 }
  0x8f PF: > { %v3623_v6 = vld [vmem:[%s3522_s1 + $0x18] sm:$0xff]  ;;  %v3626_v7 = vld [vmem:[%s3522_s1 + $0x10] sm:$0xff]  ;;  %v3630_v8 = vld [vmem:[%s3522_s1 + $0x8] sm:$0xff]  ;;  %vm740_vm2 = vcmask 261120   ;;  %s4460_s18 = sld [smem:[#allocation25_spill]]  ;;  %s3290_s25 = smov 96  }
  0x90   : > { %762 = vmatpush.msra.mxu0 %v3623_v6  ;;  %v3633_v9 = vld [vmem:[%s3522_s1] sm:$0xff]  ;;  %s3291_s9 = smov 88   ;;  %v716_v19 = vld [vmem:[%s3529_s14 + $0x10] sm:$0x7]  ;;  %s3292_s15 = smov 72   ;;  %vm785_vm3 = vcmask 64512  }
  0x91   : > { %v3660_v13 = vld [vmem:[%s3529_s14] sm:$0xff]  ;;  %v3668_v16 = vld [vmem:[%s3529_s14 + $0x8] sm:$0xff]  ;;  %s3293_s4 = smov 120   ;;  %s3294_s13 = smov 80   ;;  %vm879_vm4 = vcmask 1042432   ;;  %vm827_vm5 = vcmask 154624  }
  0x92   : > { %763 = vmatpush.msra.mxu0 %v3626_v7  ;;  %s3295_s29 = smov 104   ;;  %s3296_s16 = smov 112   ;;  %vm834_vm6 = vcmask 149504   ;;  %vm1340_vm7 = vcmask 130048   ;;  %vm1344_vm8 = vcmask 195584   ;;  %vm1395_vm9 = vcmask 256000  }
  0x93   : > { %s3297_s11 = smov 64   ;;  %s3298_s12 = smov 56  }
  0x94   : > { %764 = vmatpush.msra.mxu0 %v3630_v8  ;;  %s4430_s17 = smov 40   ;;  %s4428_s19 = smov 48  }
  0x95   : > { %v3639_v10 = vld [vmem:[%s4460_s18] sm:$0xff]  ;;  %v3648_v11 = vld [vmem:[%s4460_s18 + $0x8] sm:$0xff]  ;;  %v3655_v12 = vld [vmem:[%s4460_s18 + $0x10] sm:$0x7]  ;;  %s4422_s1 = smov 16   ;;  %s4426_s23 = smov 8  }
  0x96   : > { %765 = vmatpush.msra.mxu0 %v3633_v9  ;;  %s4424_s24 = smov 24  }
  0x97   : > { %2756 = vmatmul.msk.f32.vlgmr.msra.gmra.mxu0 %vm740_vm2, %v3639_v10 }
  0x9f   : > { %2757 = vmatmul.msk.f32.gmra.mxu0 %vm740_vm2, %v3648_v11 }
  0xa7   : > { %2758 = vmatmul.msk.f32.gmra.mxu0 %vm740_vm2, %v3655_v12 }
 0x114   : > { %v767_v14 = vpop.f32.mrf.mxu0 }
 0x115   : > { %v3663_v15 = vadd.f32 %v767_v14, %v3660_v13 }
 0x117   : > { %779 = vrot.lane.b32.xlu1 %v3663_v15, %s3290_s25 }
 0x11c   : > { %v770_v17 = vpop.f32.mrf.mxu0 }
 0x11d   : > { %v3671_v18 = vadd.f32 %v770_v17, %v3668_v16 }
 0x11f   : > { %916 = vrot.lane.b32.xlu2 %v3671_v18, %s3291_s9  ;;  %v3750_v50 = vpack.i.bf16 %v3663_v15, %v3671_v18 }
 0x124   : > { %v773_v20 = vpop.f32.mrf.mxu0 }
 0x125   : > { %v3676_v21 = vadd.f32 %v773_v20, %v716_v19 }
 0x127   : > { %783 = vrot.lane.b32.xlu0 %v3676_v21, %s3290_s25  ;;  %914 = vrot.lane.b32.xlu2 %v3663_v15, %s3291_s9 }
 0x128   : > { %918 = vrot.lane.b32.xlu1 %v3676_v21, %s3291_s9 }
 0x12f   : > { %781 = vrot.lane.b32.xlu0 %v3671_v18, %s3290_s25  ;;  %1176 = vrot.lane.b32.xlu2 %v3663_v15, %s3292_s15 }
 0x130   : > { %910 = vrot.lane.b32.xlu1 %v3671_v18, %s3293_s4 }
 0x137   : > { %908 = vrot.lane.b32.xlu0 %v3663_v15, %s3293_s4  ;;  %1047 = vrot.lane.b32.xlu2 %v3671_v18, %s3294_s13 }
 0x138   : > { %1178 = vrot.lane.b32.xlu1 %v3671_v18, %s3292_s15 }
 0x13f   : > { %912 = vrot.lane.b32.xlu0 %v3676_v21, %s3293_s4  ;;  %1180 = vrot.lane.b32.xlu2 %v3676_v21, %s3292_s15 }
 0x140   : > { %1170 = vrot.lane.b32.xlu1 %v3663_v15, %s3295_s29 }
 0x147   : > { %1049 = vrot.lane.b32.xlu0 %v3676_v21, %s3294_s13  ;;  %1039 = vrot.lane.b32.xlu2 %v3663_v15, %s3296_s16 }
 0x148   : > { %1172 = vrot.lane.b32.xlu1 %v3671_v18, %s3295_s29 }
 0x14f   : > { %1045 = vrot.lane.b32.xlu0 %v3663_v15, %s3294_s13  ;;  %1043 = vrot.lane.b32.xlu2 %v3676_v21, %s3296_s16 }
 0x150   : > { %1041 = vrot.lane.b32.xlu1 %v3671_v18, %s3296_s16 }
 0x157   : > { %1174 = vrot.lane.b32.xlu0 %v3676_v21, %s3295_s29 }
 0x15f   : > { %866 = vrot.lane.b32.xlu0 %v3676_v21, %s3297_s11 }
 0x179   : > { %v917_v22 = vpop.permute.xlu2 %916 }
 0x181   : > { %v915_v23 = vpop.permute.xlu2 %914 }
 0x189   : > { %v1177_v24 = vpop.permute.xlu2 %1176  ;;  %v780_v25 = vpop.permute.xlu1 %779 }
 0x191   : > { %v1048_v26 = vpop.permute.xlu2 %1047 }
 0x199   : > { %v784_v27 = vpop.permute.xlu0 %783  ;;  %v1181_v31 = vpop.permute.xlu2 %1180 }
 0x19a   : > { %v919_v28 = vpop.permute.xlu1 %918  ;;  %2759 = vmatpush.xpose.msk.msra.mxu1 %vm785_vm3, %v784_v27 }
 0x19b   : > { %2769 = vmatpush.xpose.msk.msra.mxu3 %vm785_vm3, %v919_v28 }
 0x19f   : > { %2770 = vmatpush.xpose.msk.msra.mxu3 %vm785_vm3, %v917_v22 }
 0x1a1   : > { %v782_v29 = vpop.permute.xlu0 %781  ;;  %v1040_v39 = vpop.permute.xlu2 %1039 }
 0x1a2   : > { %v911_v30 = vpop.permute.xlu1 %910  ;;  %2760 = vmatpush.xpose.msk.msra.mxu1 %vm785_vm3, %v782_v29 }
 0x1a3   : > { %2771 = vmatpush.xpose.msk.msra.mxu3 %vm785_vm3, %v915_v23 }
 0x1a6   : > { %2761 = vmatpush.xpose.msk.msra.mxu1 %vm785_vm3, %v780_v25 }
 0x1a7   : > { %2789 = vmatpush.xpose.msk.msrb.mxu3 %vm785_vm3, %v1181_v31 }
 0x1a9   : > { %v909_v32 = vpop.permute.xlu0 %908  ;;  %2762 = vmatmul.msk.f32.vlgmr.msra.gmra.mxu1 %vm785_vm3, %v3663_v15  ;;  %v1044_v43 = vpop.permute.xlu2 %1043 }
 0x1aa   : > { %v1179_v33 = vpop.permute.xlu1 %1178  ;;  %2772 = vmatmul.msk.f32.vlgmr.msra.gmra.mxu3 %vm785_vm3, %v909_v32 }
 0x1ab   : > { %2790 = vmatpush.xpose.msk.msrb.mxu3 %vm785_vm3, %v1179_v33 }
 0x1af   : > { %2791 = vmatpush.xpose.msk.msrb.mxu3 %vm785_vm3, %v1177_v24 }
 0x1b1   : > { %v913_v34 = vpop.permute.xlu0 %912  ;;  %2763 = vmatmul.msk.f32.gmra.mxu1 %vm785_vm3, %v3671_v18 }
 0x1b2   : > { %2773 = vmatmul.msk.f32.gmra.mxu3 %vm785_vm3, %v911_v30  ;;  %v1171_v35 = vpop.permute.xlu1 %1170 }
 0x1b9   : > { %v1050_v36 = vpop.permute.xlu0 %1049  ;;  %2764 = vmatmul.msk.f32.gmra.mxu1 %vm785_vm3, %v3676_v21 }
 0x1ba   : > { %2774 = vmatmul.msk.f32.gmra.mxu3 %vm785_vm3, %v913_v34  ;;  %2779 = vmatpush.xpose.msk.msrb.mxu0 %vm785_vm3, %v1050_v36  ;;  %v1173_v38 = vpop.permute.xlu1 %1172 }
 0x1be   : > { %2780 = vmatpush.xpose.msk.msrb.mxu0 %vm785_vm3, %v1048_v26 }
 0x1c1   : > { %v1046_v37 = vpop.permute.xlu0 %1045 }
 0x1c2   : > { %2781 = vmatpush.xpose.msk.msrb.mxu0 %vm785_vm3, %v1046_v37  ;;  %2792 = vmatmul.msk.f32.vlgmr.msrb.gmra.mxu3 %vm785_vm3, %v1171_v35  ;;  %v1042_v41 = vpop.permute.xlu1 %1041 }
 0x1c5   : > { %2782 = vmatmul.msk.f32.vlgmr.msrb.gmra.mxu0 %vm785_vm3, %v1040_v39 }
 0x1c9   : > { %v1175_v40 = vpop.permute.xlu0 %1174 }
 0x1ca   : > { %2793 = vmatmul.msk.f32.gmra.mxu3 %vm785_vm3, %v1173_v38 }
 0x1cd   : > { %2783 = vmatmul.msk.f32.gmra.mxu0 %vm785_vm3, %v1042_v41 }
 0x1d1   : > { %v867_v42 = vpop.permute.xlu0 %866 }
 0x1d2   : > { %2765 = vmatpush.msk.msra.mxu2 %vm879_vm4, %v867_v42  ;;  %2794 = vmatmul.msk.f32.gmra.mxu3 %vm785_vm3, %v1175_v40 }
 0x1d5   : > { %2784 = vmatmul.msk.f32.gmra.mxu0 %vm785_vm3, %v1044_v43 }
 0x226   : > { %v815_v44 = vpop.f32.mrf.mxu1 }
 0x227   : > { %v824_v45 = vmul.f32 0.35355338, %v815_v44 }
 0x229   : > { %v828_v46 = vsel %vm827_vm5, %v824_v45, -inf }
 0x22a   : > { %829 = vmax.xlane.f32.xlu0 %v828_v46 }
 0x22d   : > { %v949_v47 = vpop.f32.mrf.mxu3 }
 0x22e   : > { %v958_v48 = vmul.f32 0.35355338, %v949_v47  ;;  %v818_v55 = vpop.f32.mrf.mxu1 }
 0x22f   : > { %v825_v56 = vmul.f32 0.35355338, %v818_v55 }
 0x230   : > { %v961_v49 = vsel %vm827_vm5, %v958_v48, -inf }
 0x231   : > { %962 = vmax.xlane.f32.xlu2 %v961_v49  ;;  %v831_v58 = vsel %vm827_vm5, %v825_v56, -inf }
 0x235   : > { %v952_v51 = vpop.f32.mrf.mxu3 }
 0x236   : > { %v3758_v61 = vmul.f32 0.35355338, %v952_v51  ;;  %v821_v5 = vpop.f32.mrf.mxu1 }
 0x237   : > { %v3772_v14 = vmul.f32 0.35355338, %v821_v5 }
 0x238   : > { %v964_v62 = vsel %vm827_vm5, %v3758_v61, -inf }
 0x239   : > { %v835_v15 = vsel %vm834_vm6, %v3772_v14, -inf }
 0x23d   : > { %v955_v57 = vpop.f32.mrf.mxu3 }
 0x23e   : > { %2952 = vrot.lane.b32.xlu0 %v3750_v50, %s3298_s12  ;;  %v3782_v20 = vmul.f32 0.35355338, %v955_v57 }
 0x240   : > { %v967_v22 = vsel %vm834_vm6, %v3782_v20, -inf }
 0x242   : > { %v1080_v52 = vpop.f32.mrf.mxu0 }
 0x243   : > { %v1089_v53 = vmul.f32 0.35355338, %v1080_v52 }
 0x245   : > { %v1092_v54 = vsel %vm827_vm5, %v1089_v53, -inf  ;;  %v1211_v59 = vpop.f32.mrf.mxu3 }
 0x246   : > { %1093 = vmax.xlane.f32.xlu1 %v1092_v54  ;;  %v3792_v28 = vmul.f32 0.35355338, %v1211_v59 }
 0x248   : > { %v1223_v33 = vsel %vm827_vm5, %v3792_v28, -inf }
 0x249   : > { %998 = vrot.lane.b32.xlu2 %v3676_v21, %s3298_s12 }
 0x24a   : > { %v1083_v0 = vpop.f32.mrf.mxu0 }
 0x24b   : > { %v3766_v2 = vmul.f32 0.35355338, %v1083_v0 }
 0x24d   : > { %v1214_v60 = vpop.f32.mrf.mxu3  ;;  %v1095_v4 = vsel %vm827_vm5, %v3766_v2, -inf }
 0x24e   : > { %832 = vmax.xlane.f32.xlu1 %v831_v58  ;;  %v3796_v36 = vmul.f32 0.35355338, %v1214_v60 }
 0x250   : > { %v1226_v39 = vsel %vm827_vm5, %v3796_v36, -inf }
 0x252   : > { %v1086_v17 = vpop.f32.mrf.mxu0 }
 0x253   : > { %v3776_v18 = vmul.f32 0.35355338, %v1086_v17 }
 0x255   : > { %v1217_v63 = vpop.f32.mrf.mxu3  ;;  %v1098_v19 = vsel %vm834_vm6, %v3776_v18, -inf }
 0x256   : > { %v3764_v1 = vmul.f32 0.35355338, %v1217_v63 }
 0x258   : > { %v1229_v3 = vsel %vm834_vm6, %v3764_v1, -inf }
 0x267   : > { %2947 = vrot.lane.b32.xlu1 %v3750_v50, %s3297_s11 }
 0x268   : > { %965 = vmax.xlane.f32.xlu0 %v964_v62 }
 0x270   : > { %1230 = vmax.xlane.f32.xlu0 %v1229_v3 }
 0x272   : > { %1096 = vmax.xlane.f32.xlu2 %v1095_v4 }
 0x27a   : > { %836 = vmax.xlane.f32.xlu2 %v835_v15 }
 0x291   : > { %1099 = vmax.xlane.f32.xlu1 %v1098_v19 }
 0x292   : > { %2957 = vrot.lane.b32.xlu2 %v3750_v50, %s4430_s17 }
 0x299   : > { %968 = vmax.xlane.f32.xlu1 %v967_v22 }
 0x29d   : > { %v830_v23 = vpop.xlane.xlu0 %829 }
 0x29e   : > { %v838_v24 = vsub.f32 %v824_v45, %v830_v23 }
 0x2a0   : > { %v841_v25 = vmul.f32 1.442695, %v838_v24 }
 0x2a2   : > { %3000 = vpow2.f32 %v841_v25 }
 0x2a4   : > { %v963_v29 = vpop.xlane.xlu2 %962 }
 0x2a5   : > { %v970_v30 = vsub.f32 %v958_v48, %v963_v29 }
 0x2a7   : > { %v973_v35 = vmul.f32 1.442695, %v970_v30 }
 0x2a8   : > { %v3786_v26 = vpop.eup %3000 }
 0x2a9   : > { %v847_v27 = vsel %vm827_vm5, %v3786_v26, 0.0 }
 0x2aa   : > { %848 = vadd.xlane.f32.xlu0 %v847_v27 }
 0x2ac   : > { %v999_v54 = vpop.permute.xlu2 %998 }
 0x2b0   : > { %v2953_v47 = vpop.permute.xlu0 %2952 }
 0x2b1   : > { %v2955_v57 = vunpack.i.h.bf16 %v2953_v47 }
 0x2b2   : > { %1260 = vrot.lane.b32.xlu1 %v3676_v21, %s4430_s17 }
 0x2b9   : > { %v1094_v31 = vpop.xlane.xlu1 %1093 }
 0x2ba   : > { %v1101_v32 = vsub.f32 %v1089_v53, %v1094_v31 }
 0x2bb   : > { %1224 = vmax.xlane.f32.xlu2 %v1223_v33 }
 0x2bc   : > { %v1104_v34 = vmul.f32 1.442695, %v1101_v32 }
 0x2be   : > { %3002 = vpow2.f32 %v1104_v34 }
 0x2bf   : > { %3004 = vpow2.f32 %v973_v35 }
 0x2c1   : > { %v833_v37 = vpop.xlane.xlu1 %832 }
 0x2c2   : > { %v839_v38 = vsub.f32 %v825_v56, %v833_v37  ;;  %v2954_v56 = vunpack.i.l.bf16 %v2953_v47 }
 0x2c3   : > { %1227 = vmax.xlane.f32.xlu2 %v1226_v39 }
 0x2c4   : > { %v3800_v40 = vpop.eup %3002  ;;  %v843_v41 = vmul.f32 1.442695, %v839_v38 }
 0x2c5   : > { %v1110_v42 = vsel %vm827_vm5, %v3800_v40, 0.0  ;;  %v3804_v43 = vpop.eup %3004 }
 0x2c6   : > { %1111 = vadd.xlane.f32.xlu0 %v1110_v42  ;;  %3006 = vpow2.f32 %v843_v41  ;;  %v979_v44 = vsel %vm827_vm5, %v3804_v43, 0.0 }
 0x2cb   : > { %980 = vadd.xlane.f32.xlu2 %v979_v44 }
 0x2cc   : > { %v3808_v45 = vpop.eup %3006 }
 0x2cd   : > { %v850_v46 = vsel %vm827_vm5, %v3808_v45, 0.0 }
 0x2d3   : > { %851 = vadd.xlane.f32.xlu2 %v850_v46 }
 0x2d9   : > { %v2948_v48 = vpop.permute.xlu1 %2947 }
 0x2da   : > { %1129 = vrot.lane.b32.xlu0 %v3676_v21, %s4428_s19  ;;  %v2949_v49 = vunpack.i.l.bf16 %v2948_v48  ;;  %v2950_v53 = vunpack.i.h.bf16 %v2948_v48 }
 0x2db   : > { %v966_v51 = vpop.xlane.xlu0 %965 }
 0x2dc   : > { %v971_v52 = vsub.f32 %v3758_v61, %v966_v51  ;;  %896 = vmatpush.msra.mxu2 %v2949_v49 }
 0x2de   : > { %v975_v55 = vmul.f32 1.442695, %v971_v52  ;;  %897 = vmatpush.msra.mxu2 %v2950_v53 }
 0x2e0   : > { %2775 = vmatpush.msk.msrb.mxu2 %vm879_vm4, %v999_v54  ;;  %3008 = vpow2.f32 %v975_v55 }
 0x2e2   : > { %1027 = vmatpush.msrb.mxu2 %v2954_v56 }
 0x2e3   : > { %v1231_v62 = vpop.xlane.xlu0 %1230 }
 0x2e4   : > { %1028 = vmatpush.msrb.mxu2 %v2955_v57  ;;  %v1234_v0 = vsub.f32 %v3764_v1, %v1231_v62 }
 0x2e5   : > { %v1097_v58 = vpop.xlane.xlu2 %1096 }
 0x2e6   : > { %v3816_v59 = vpop.eup %3008  ;;  %v1239_v3 = vmul.f32 1.442695, %v1234_v0 }
 0x2e7   : > { %v982_v21 = vsel %vm827_vm5, %v3816_v59, 0.0 }
 0x2e8   : > { %983 = vadd.xlane.f32.xlu2 %v982_v21 }
 0x2ed   : > { %v837_v60 = vpop.xlane.xlu2 %836 }
 0x2ee   : > { %v840_v61 = vsub.f32 %v3772_v14, %v837_v60 }
 0x2f0   : > { %v845_v63 = vmul.f32 1.442695, %v840_v61 }
 0x2f2   : > { %3010 = vpow2.f32 %v845_v63 }
 0x2f3   : > { %3012 = vpow2.f32 %v1239_v3 }
 0x2f5   : > { %v2958_v29 = vpop.permute.xlu2 %2957 }
 0x2f6   : > { %v2960_v32 = vunpack.i.h.bf16 %v2958_v29 }
 0x2f8   : > { %v3822_v4 = vpop.eup %3010 }
 0x2f9   : > { %v853_v5 = vsel %vm834_vm6, %v3822_v4, 0.0  ;;  %v3826_v15 = vpop.eup %3012 }
 0x2fa   : > { %854 = vadd.xlane.f32.xlu2 %v853_v5  ;;  %v1247_v17 = vsel %vm834_vm6, %v3826_v15, 0.0 }
 0x304   : > { %1248 = vadd.xlane.f32.xlu0 %v1247_v17  ;;  %v1100_v14 = vpop.xlane.xlu1 %1099 }
 0x305   : > { %v1103_v42 = vsub.f32 %v3776_v18, %v1100_v14 }
 0x30c   : > { %v969_v19 = vpop.xlane.xlu1 %968 }
 0x30d   : > { %v972_v22 = vsub.f32 %v3782_v20, %v969_v19  ;;  %v2959_v20 = vunpack.i.l.bf16 %v2958_v29 }
 0x30f   : > { %v977_v1 = vmul.f32 1.442695, %v972_v22 }
 0x311   : > { %3014 = vpow2.f32 %v977_v1 }
 0x312   : > { %2962 = vrot.lane.b32.xlu2 %v3750_v50, %s4428_s19  ;;  %v1102_v50 = vsub.f32 %v3766_v2, %v1097_v58 }
 0x314   : > { %v1106_v33 = vmul.f32 1.442695, %v1102_v50 }
 0x317   : > { %v3833_v23 = vpop.eup %3014 }
 0x318   : > { %v985_v24 = vsel %vm834_vm6, %v3833_v23, 0.0 }
 0x319   : > { %986 = vadd.xlane.f32.xlu1 %v985_v24 }
 0x31d   : > { %v849_v25 = vpop.xlane.xlu0 %848 }
 0x31e   : > { %3016 = vrcp.f32 %v849_v25 }
 0x31f   : > { %3018 = vpow2.f32 %v1106_v33 }
 0x324   : > { %v3017_v27 = vpop.eup %3016  ;;  %v1261_v31 = vpop.permute.xlu1 %1260 }
 0x325   : > { %v859_v30 = vmul.f32 %v3017_v27, %v3786_v26  ;;  %v3842_v26 = vpop.eup %3018 }
 0x326   : > { %v1113_v44 = vsel %vm827_vm5, %v3842_v26, 0.0 }
 0x327   : > { %2766 = vmatmul.msk.f32.vlgmr.msra.gmra.mxu2 %vm827_vm5, %v859_v30 }
 0x328   : > { %2795 = vmatpush.msk.msra.mxu2 %vm879_vm4, %v1261_v31 }
 0x32a   : > { %1289 = vmatpush.msra.mxu2 %v2959_v20 }
 0x32c   : > { %1290 = vmatpush.msra.mxu2 %v2960_v32 }
 0x32e   : > { %v1225_v34 = vpop.xlane.xlu2 %1224 }
 0x32f   : > { %v1232_v35 = vsub.f32 %v3792_v28, %v1225_v34  ;;  %v1108_v28 = vmul.f32 1.442695, %v1103_v42  ;;  %v3897_v42 = vld [vmem:[%s3535_s27 + $0x10] sm:$0xff] }
 0x331   : > { %v1235_v37 = vmul.f32 1.442695, %v1232_v35 }
 0x333   : > { %3020 = vpow2.f32 %v1235_v37 }
 0x336   : > { %v1228_v38 = vpop.xlane.xlu2 %1227 }
 0x337   : > { %v1233_v39 = vsub.f32 %v3796_v36, %v1228_v38 }
 0x339   : > { %v3845_v41 = vpop.eup %3020  ;;  %v1237_v2 = vmul.f32 1.442695, %v1233_v39  ;;  %v1112_v18 = vpop.xlane.xlu0 %1111 }
 0x33a   : > { %v1241_v46 = vsel %vm827_vm5, %v3845_v41, 0.0 }
 0x33b   : > { %3022 = vpow2.f32 %v1237_v2  ;;  %1114 = vadd.xlane.f32.xlu2 %v1113_v44  ;;  %1242 = vadd.xlane.f32.xlu1 %v1241_v46  ;;  %v3900_v2 = vld [vmem:[%s3535_s27 + $0x8] sm:$0xff]  ;;  %v3905_v44 = vld [vmem:[%s3535_s27] sm:$0xff] }
 0x33c   : > { %3024 = vpow2.f32 %v1108_v28 }
 0x33e   : > { %v981_v47 = vpop.xlane.xlu2 %980 }
 0x341   : > { %v3852_v48 = vpop.eup %3022 }
 0x342   : > { %v1244_v36 = vsel %vm827_vm5, %v3852_v48, 0.0  ;;  %v3025_v51 = vpop.eup %3024 }
 0x343   : > { %1245 = vadd.xlane.f32.xlu1 %v1244_v36  ;;  %v1116_v52 = vsel %vm834_vm6, %v3025_v51, 0.0 }
 0x346   : > { %v852_v49 = vpop.xlane.xlu2 %851 }
 0x347   : > { %3026 = vrcp.f32 %v852_v49 }
 0x34b   : > { %1117 = vadd.xlane.f32.xlu1 %v1116_v52 }
 0x34c   : > { %v1130_v53 = vpop.permute.xlu0 %1129 }
 0x34d   : > { %v3027_v54 = vpop.eup %3026  ;;  %2785 = vmatpush.msk.msrb.mxu1 %vm879_vm4, %v1130_v53 }
 0x34e   : > { %v860_v55 = vmul.f32 %v3027_v54, %v3808_v45 }
 0x350   : > { %2767 = vmatmul.msk.f32.gmra.mxu2 %vm827_vm5, %v860_v55 }
 0x35b   : > { %v984_v56 = vpop.xlane.xlu2 %983 }
 0x36d   : > { %v855_v57 = vpop.xlane.xlu2 %854 }
 0x36e   : > { %3028 = vrcp.f32 %v855_v57 }
 0x36f   : > { %3030 = vrcp.f32 %v1112_v18 }
 0x370   : > { %3032 = vrcp.f32 %v981_v47 }
 0x371   : > { %3034 = vrcp.f32 %v984_v56 }
 0x374   : > { %v3029_v58 = vpop.eup %3028 }
 0x375   : > { %v2963_v21 = vpop.permute.xlu2 %2962  ;;  %v861_v60 = vmul.f32 %v3029_v58, %v3822_v4  ;;  %v3031_v61 = vpop.eup %3030 }
 0x376   : > { %v2964_v62 = vunpack.i.l.bf16 %v2963_v21  ;;  %v2965_v63 = vunpack.i.h.bf16 %v2963_v21  ;;  %v1122_v0 = vmul.f32 %v3031_v61, %v3800_v40  ;;  %v3033_v45 = vpop.eup %3032 }
 0x377   : > { %2768 = vmatmul.msk.f32.gmra.mxu2 %vm827_vm5, %v861_v60  ;;  %v991_v3 = vmul.f32 %v3033_v45, %v3804_v43  ;;  %v3035_v4 = vpop.eup %3034  ;;  %v1249_v22 = vpop.xlane.xlu0 %1248  ;;  %v2986_v45 = vld [vmem:[%s3548_s22] ss:$0 sm:$0xff] }
 0x378   : > { %1158 = vmatpush.msrb.mxu1 %v2964_v62  ;;  %v992_v5 = vmul.f32 %v3035_v4, %v3816_v59  ;;  %v3923_v62 = vld [vmem:[%s4460_s18 + $0x18] sm:$0xff] }
 0x37a   : > { %1159 = vmatpush.msrb.mxu1 %v2965_v63  ;;  %v2809_v63 = vld [vmem:[%s4460_s18 + $0x20] sm:$0xff] }
 0x37b   : > { %2786 = vmatmul.msk.f32.vlgmr.msrb.gmra.mxu1 %vm827_vm5, %v1122_v0  ;;  %v2810_v0 = vld [vmem:[%s4460_s18 + $0x28] sm:$0x7] }
 0x37f   : > { %2776 = vmatmul.msk.f32.vlgmr.msrb.gmra.mxu2 %vm827_vm5, %v991_v3 }
 0x380   : > { %1694 = vmatpush.msrb.mxu2 %v3623_v6 }
 0x382   : > { %1695 = vmatpush.msrb.mxu2 %v3626_v7 }
 0x384   : > { %1696 = vmatpush.msrb.mxu2 %v3630_v8 }
 0x386   : > { %1697 = vmatpush.msrb.mxu2 %v3633_v9 }
 0x387   : > { %2777 = vmatmul.msk.f32.gmra.mxu2 %vm827_vm5, %v992_v5 }
 0x38c   : > { %v987_v40 = vpop.xlane.xlu1 %986 }
 0x38d   : > { %3036 = vrcp.f32 %v987_v40 }
 0x393   : > { %v3037_v17 = vpop.eup %3036 }
 0x394   : > { %v993_v43 = vmul.f32 %v3037_v17, %v3833_v23 }
 0x396   : > { %2778 = vmatmul.msk.f32.gmra.mxu2 %vm827_vm5, %v993_v43 }
 0x3aa   : > { %v899_v31 = vpop.f32.mrf.mxu2 }
 0x3ae   : > { %v1115_v14 = vpop.xlane.xlu2 %1114  ;;  %v1243_v6 = vpop.xlane.xlu1 %1242 }
 0x3af   : > { %3038 = vrcp.f32 %v1115_v14 }
 0x3b0   : > { %3040 = vrcp.f32 %v1243_v6 }
 0x3b5   : > { %v3039_v7 = vpop.eup %3038 }
 0x3b6   : > { %v3041_v19 = vpop.eup %3040  ;;  %v1246_v8 = vpop.xlane.xlu1 %1245  ;;  %v1123_v59 = vmul.f32 %v3039_v7, %v3842_v26 }
 0x3b7   : > { %v1253_v9 = vmul.f32 %v3041_v19, %v3845_v41  ;;  %3042 = vrcp.f32 %v1246_v8  ;;  %v3893_v41 = vld [vmem:[%s3535_s27 + $0x18] sm:$0xff] }
 0x3b8   : > { %2787 = vmatmul.msk.f32.gmra.mxu1 %vm827_vm5, %v1123_v59  ;;  %3044 = vrcp.f32 %v1249_v22  ;;  %1372 = vmatpush.msra.mxu0 %v3893_v41 }
 0x3b9   : > { %2796 = vmatmul.msk.f32.vlgmr.msra.gmra.mxu2 %vm827_vm5, %v1253_v9  ;;  %v3304_v9 = vmov 32.0  }
 0x3ba   : > { %1373 = vmatpush.msra.mxu0 %v3897_v42 }
 0x3bc   : > { %1374 = vmatpush.msra.mxu0 %v3900_v2 }
 0x3bd   : > { %v3043_v1 = vpop.eup %3042 }
 0x3be   : > { %v1118_v23 = vpop.xlane.xlu1 %1117  ;;  %v1254_v24 = vmul.f32 %v3043_v1, %v3852_v48  ;;  %v3045_v25 = vpop.eup %3044  ;;  %1375 = vmatpush.msra.mxu0 %v3905_v44 }
 0x3bf   : > { %3046 = vrcp.f32 %v1118_v23  ;;  %v1255_v30 = vmul.f32 %v3045_v25, %v3826_v15 }
 0x3c0   : > { %3048 = vrcp.f32 %v3304_v9 }
 0x3c1   : > { %2797 = vmatmul.msk.f32.gmra.mxu2 %vm827_vm5, %v1254_v24 }
 0x3c5   : > { %v3047_v27 = vpop.eup %3046 }
 0x3c6   : > { %v1124_v29 = vmul.f32 %v3047_v27, %v3025_v51 }
 0x3c8   : > { %2788 = vmatmul.msk.f32.gmra.mxu1 %vm827_vm5, %v1124_v29 }
 0x3c9   : > { %2798 = vmatmul.msk.f32.gmra.mxu2 %vm827_vm5, %v1255_v30 }
 0x3d1   : > { %2811 = vmatmul.msk.f32.vlgmr.msrb.gmra.mxu2 %vm740_vm2, %v3923_v62 }
 0x3d3   : > { %v902_v20 = vpop.f32.mrf.mxu2 }
 0x3d9   : > { %2812 = vmatmul.msk.f32.gmra.mxu2 %vm740_vm2, %v2809_v63 }
 0x3e1   : > { %2813 = vmatmul.msk.f32.gmra.mxu2 %vm740_vm2, %v2810_v0 }
 0x3f8   : > { %v1161_v50 = vpop.f32.mrf.mxu1 }
 0x3f9   : > { %1316 = vrot.lane.b32.xlu2 %v1161_v50, %s4422_s1 }
 0x3fa   : > { %v905_v32 = vpop.f32.mrf.mxu2 }
 0x402   : > { %v1030_v33 = vpop.f32.mrf.mxu2 }
 0x403   : > { %1304 = vrot.lane.b32.xlu1 %v1030_v33, %s4426_s23 }
 0x40a   : > { %v1033_v34 = vpop.f32.mrf.mxu2 }
 0x40b   : > { %1306 = vrot.lane.b32.xlu0 %v1033_v34, %s4426_s23 }
 0x419   : > { %v1036_v15 = vpop.f32.mrf.mxu2 }
 0x41a   : > { %1308 = vrot.lane.b32.xlu2 %v1036_v15, %s4426_s23 }
 0x435   : > { %v1164_v35 = vpop.f32.mrf.mxu1 }
 0x436   : > { %1318 = vrot.lane.b32.xlu1 %v1164_v35, %s4422_s1 }
 0x43c   : > { %v1292_v37 = vpop.f32.mrf.mxu2 }
 0x43e   : > { %1328 = vrot.lane.b32.xlu1 %v1292_v37, %s4424_s24 }
 0x444   : > { %v1295_v38 = vpop.f32.mrf.mxu2 }
 0x445   : > { %v1167_v26 = vpop.f32.mrf.mxu1 }
 0x446   : > { %1320 = vrot.lane.b32.xlu0 %v1167_v26, %s4422_s1  ;;  %1330 = vrot.lane.b32.xlu1 %v1295_v38, %s4424_s24 }
 0x44c   : > { %v1298_v39 = vpop.f32.mrf.mxu2 }
 0x44e   : > { %1332 = vrot.lane.b32.xlu1 %v1298_v39, %s4424_s24 }
 0x453   : > { %v1317_v48 = vpop.permute.xlu2 %1316 }
 0x454   : > { %v1699_v30 = vpop.f32.mrf.mxu2 }
 0x45c   : > { %v1702_v15 = vpop.f32.mrf.mxu2 }
 0x474   : > { %v1309_v56 = vpop.permute.xlu2 %1308 }
 0x475   : > { %v1305_v46 = vpop.permute.xlu1 %1304  ;;  %v1339_v58 = vsel %vm785_vm3, %v905_v32, %v1309_v56  ;;  %v4049_v56 = vld [vmem:[%s3573_s2 + $0x10] sm:$0xff] }
 0x476   : > { %v1337_v47 = vsel %vm785_vm3, %v899_v31, %v1305_v46  ;;  %v1649_v46 = vld [vmem:[%s3529_s14 + $0x10] sm:$0x7]  ;;  %s4461_s14 = smov 40  }
 0x477   : > { %v1341_v36 = vsel %vm1340_vm7, %v1337_v47, %v1317_v48  ;;  %v3966_v48 = vadd.f32 %v1702_v15, %v3668_v16  ;;  %v4018_v16 = vld [vmem:[%s3573_s2 + $0x30] sm:$0xff] }
 0x47d   : > { %v1307_v51 = vpop.permute.xlu0 %1306 }
 0x47e   : > { %v1338_v52 = vsel %vm785_vm3, %v902_v20, %v1307_v51  ;;  %v4030_v51 = vld [vmem:[%s3537_s28 + $0x10] sm:$0xff] }
 0x4a8   : > { %v1319_v28 = vpop.permute.xlu1 %1318 }
 0x4a9   : > { %v1342_v53 = vsel %vm1340_vm7, %v1338_v52, %v1319_v28  ;;  %v1705_v28 = vpop.f32.mrf.mxu2  ;;  %v4033_v52 = vld [vmem:[%s3573_s2 + $0x20] sm:$0xff] }
 0x4aa   : > { %v3963_v47 = vadd.f32 %v1705_v28, %v1649_v46 }
 0x4b0   : > { %v1329_v18 = vpop.permute.xlu1 %1328 }
 0x4b1   : > { %v1345_v49 = vsel %vm1344_vm8, %v1341_v36, %v1329_v18  ;;  %v3973_v36 = vadd.f32 %v1699_v30, %v3660_v13  ;;  %v4014_v13 = vld [vmem:[%s3573_s2 + $0x38] sm:$0xff]  ;;  %v4022_v18 = vld [vmem:[%s3537_s28 + $0x18] sm:$0xff] }
 0x4b2   : > { %2799 = vmatmul.msk.f32.vlgmr.msra.gmra.mxu0 %vm740_vm2, %v1345_v49  ;;  %1537 = vmatpush.msra.mxu3 %v4014_v13  ;;  %v4025_v49 = vld [vmem:[%s3573_s2 + $0x28] sm:$0xff] }
 0x4b3   : > { %1499 = vmatpush.msra.mxu1 %v4022_v18 }
 0x4b4   : > { %1538 = vmatpush.msra.mxu3 %v4018_v16 }
 0x4b5   : > { %1500 = vmatpush.msra.mxu1 %v4030_v51 }
 0x4b6   : > { %1539 = vmatpush.msra.mxu3 %v4025_v49 }
 0x4b8   : > { %v1331_v54 = vpop.permute.xlu1 %1330  ;;  %v1321_v57 = vpop.permute.xlu0 %1320  ;;  %1540 = vmatpush.msra.mxu3 %v4033_v52 }
 0x4b9   : > { %v1346_v55 = vsel %vm1344_vm8, %v1342_v53, %v1331_v54  ;;  %v1343_v21 = vsel %vm1340_vm7, %v1339_v58, %v1321_v57  ;;  %v4038_v53 = vld [vmem:[%s3537_s28 + $0x8] sm:$0xff]  ;;  %v4054_v57 = vld [vmem:[%s3573_s2 + $0x8] sm:$0xff] }
 0x4ba   : > { %2800 = vmatmul.msk.f32.gmra.mxu0 %vm740_vm2, %v1346_v55  ;;  %v4041_v54 = vld [vmem:[%s3573_s2 + $0x18] sm:$0xff]  ;;  %1501 = vmatpush.msra.mxu1 %v4038_v53  ;;  %v4046_v55 = vld [vmem:[%s3537_s28] sm:$0xff]  ;;  %s4462_s28 = smov 48  }
 0x4bb   : > { %1541 = vmatpush.msra.mxu3 %v4041_v54 }
 0x4bc   : > { %1502 = vmatpush.msra.mxu1 %v4046_v55 }
 0x4bd   : > { %1542 = vmatpush.msra.mxu3 %v4049_v56 }
 0x4bf   : > { %1543 = vmatpush.msra.mxu3 %v4054_v57 }
 0x4c0   : > { %v1333_v60 = vpop.permute.xlu1 %1332 }
 0x4c1   : > { %v1347_v61 = vsel %vm1344_vm8, %v1343_v21, %v1333_v60  ;;  %v4058_v21 = vld [vmem:[%s3573_s2] sm:$0xff]  ;;  %s4463_s2 = smov 8  }
 0x4c2   : > { %2801 = vmatmul.msk.f32.gmra.mxu0 %vm740_vm2, %v1347_v61  ;;  %1544 = vmatpush.msra.mxu3 %v4058_v21 }
 0x52f   : > { %v1377_v3 = vpop.f32.mrf.mxu0 }
 0x530   : > { %v1378_v4 = vadd.f32 %v2986_v45, %v1377_v3 }
 0x532   : > { %v1386_v5 = vadd.f32 %v1378_v4, %v3639_v10  ;;  %v3049_v10 = vpop.eup %3048 }
 0x533   : > { %v1400_v22 = vmul.f32 32.0, %v3049_v10  ;;  %vm1404_vm10 = vweird.f32 %v3049_v10 }
 0x534   : > { %v1389_v40 = vsel %vm740_vm2, %v1386_v5, 0.0 }
 0x535   : > { %1390 = vadd.xlane.f32.xlu2 %v1389_v40  ;;  %v1401_v1 = vsub.f32 1.0, %v1400_v22 }
 0x537   : > { %v1380_v17 = vpop.f32.mrf.mxu0  ;;  %v1402_v23 = vmul.f32 %v3049_v10, %v1401_v1 }
 0x538   : > { %v1381_v43 = vadd.f32 %v2986_v45, %v1380_v17 }
 0x539   : > { %v1403_v24 = vadd.f32 %v3049_v10, %v1402_v23 }
 0x53a   : > { %v1387_v14 = vadd.f32 %v1381_v43, %v3648_v11 }
 0x53b   : > { %v3942_v11 = vsel %vm1404_vm10, %v3049_v10, %v1403_v24  ;;  %v2987_v10 = vld [vmem:[%s3553_s30] ss:$0 sm:$0xff] }
 0x53c   : > { %v1392_v6 = vsel %vm740_vm2, %v1387_v14, 0.0  ;;  %v2988_v24 = vld [vmem:[%s3558_s0] ss:$0 sm:$0xff] }
 0x53d   : > { %1393 = vadd.xlane.f32.xlu0 %v1392_v6 }
 0x53f   : > { %v1383_v7 = vpop.f32.mrf.mxu0 }
 0x540   : > { %v1384_v19 = vadd.f32 %v2986_v45, %v1383_v7 }
 0x542   : > { %v1388_v8 = vadd.f32 %v1384_v19, %v3655_v12 }
 0x544   : > { %v1396_v59 = vsel %vm1395_vm9, %v1388_v8, 0.0 }
 0x545   : > { %1397 = vadd.xlane.f32.xlu1 %v1396_v59 }
 0x5a8   : > { %v1391_v25 = vpop.xlane.xlu2 %1390 }
 0x5a9   : > { %v1406_v27 = vmul.f32 %v3942_v11, %v1391_v25 }
 0x5ab   : > { %v3945_v29 = vsub.f32 %v1386_v5, %v1406_v27 }
 0x5ad   : > { %v1412_v12 = vmul.f32 %v3945_v29, %v3945_v29 }
 0x5af   : > { %v1415_v31 = vsel %vm740_vm2, %v1412_v12, 0.0 }
 0x5b0   : > { %1416 = vadd.xlane.f32.xlu2 %v1415_v31  ;;  %v1394_v20 = vpop.xlane.xlu0 %1393 }
 0x5b1   : > { %v1407_v50 = vmul.f32 %v3942_v11, %v1394_v20 }
 0x5b3   : > { %v3951_v32 = vsub.f32 %v1387_v14, %v1407_v50 }
 0x5b5   : > { %v1413_v33 = vmul.f32 %v3951_v32, %v3951_v32 }
 0x5b7   : > { %v1418_v34 = vsel %vm740_vm2, %v1413_v33, 0.0 }
 0x5b8   : > { %1419 = vadd.xlane.f32.xlu0 %v1418_v34  ;;  %v1398_v35 = vpop.xlane.xlu1 %1397 }
 0x5b9   : > { %v1408_v37 = vmul.f32 %v3942_v11, %v1398_v35 }
 0x5bb   : > { %v3957_v38 = vsub.f32 %v1388_v8, %v1408_v37 }
 0x5bd   : > { %v1414_v26 = vmul.f32 %v3957_v38, %v3957_v38 }
 0x5bf   : > { %v1421_v39 = vsel %vm1395_vm9, %v1414_v26, 0.0 }
 0x5c0   : > { %1422 = vadd.xlane.f32.xlu1 %v1421_v39 }
 0x5c8   : > { %1846 = vrot.lane.b32.xlu2 %v3963_v47, %s3291_s9 }
 0x5cc   : > { %1844 = vrot.lane.b32.xlu0 %v3966_v48, %s3291_s9 }
 0x5d0   : > { %1715 = vrot.lane.b32.xlu2 %v3963_v47, %s3290_s25 }
 0x5d4   : > { %1836 = vrot.lane.b32.xlu0 %v3973_v36, %s3293_s4 }
 0x5d8   : > { %1711 = vrot.lane.b32.xlu2 %v3973_v36, %s3290_s25 }
 0x5d9   : > { %1842 = vrot.lane.b32.xlu1 %v3973_v36, %s3291_s9  ;;  %s4465_s9 = smov 16  }
 0x5dc   : > { %1838 = vrot.lane.b32.xlu0 %v3966_v48, %s3293_s4 }
 0x5e0   : > { %1840 = vrot.lane.b32.xlu2 %v3963_v47, %s3293_s4 }
 0x5e1   : > { %1713 = vrot.lane.b32.xlu1 %v3966_v48, %s3290_s25  ;;  %s4464_s25 = smov 24  }
 0x5e4   : > { %2106 = vrot.lane.b32.xlu0 %v3966_v48, %s3292_s15 }
 0x5e8   : > { %1977 = vrot.lane.b32.xlu2 %v3963_v47, %s3294_s13 }
 0x5e9   : > { %2108 = vrot.lane.b32.xlu1 %v3963_v47, %s3292_s15 }
 0x5ec   : > { %2098 = vrot.lane.b32.xlu0 %v3973_v36, %s3295_s29 }
 0x5f0   : > { %1973 = vrot.lane.b32.xlu2 %v3973_v36, %s3294_s13 }
 0x5f1   : > { %2104 = vrot.lane.b32.xlu1 %v3973_v36, %s3292_s15 }
 0x5f4   : > { %2100 = vrot.lane.b32.xlu0 %v3966_v48, %s3295_s29 }
 0x5f8   : > { %2102 = vrot.lane.b32.xlu2 %v3963_v47, %s3295_s29 }
 0x5f9   : > { %1975 = vrot.lane.b32.xlu1 %v3966_v48, %s3294_s13 }
 0x5fc   : > { %1969 = vrot.lane.b32.xlu0 %v3966_v48, %s3296_s16 }
 0x601   : > { %1967 = vrot.lane.b32.xlu1 %v3973_v36, %s3296_s16 }
 0x609   : > { %1971 = vrot.lane.b32.xlu1 %v3963_v47, %s3296_s16 }
 0x623   : > { %v1417_v58 = vpop.xlane.xlu2 %1416 }
 0x624   : > { %v1424_v60 = vmul.f32 %v1417_v58, %v3942_v11 }
 0x626   : > { %v1427_v61 = vadd.f32 1e-05, %v1424_v60 }
 0x628   : > { %3050 = vrsqrt.f32 %v1427_v61  ;;  %vm1436_vm12 = vweird.f32 %v1427_v61 }
 0x62b   : > { %v1420_v63 = vpop.xlane.xlu0 %1419  ;;  %v1847_v0 = vpop.permute.xlu2 %1846 }
 0x62c   : > { %v1425_v45 = vmul.f32 %v1420_v63, %v3942_v11  ;;  %2824 = vmatpush.xpose.msk.msrb.mxu3 %vm785_vm3, %v1847_v0 }
 0x62e   : > { %v3051_v3 = vpop.eup %3050  ;;  %v1428_v4 = vadd.f32 1e-05, %v1425_v45 }
 0x62f   : > { %v1431_v5 = vmul.f32 %v3051_v3, %v1427_v61  ;;  %vm1437_vm11 = vweird.f32 %v3051_v3 }
 0x630   : > { %3052 = vrsqrt.f32 %v1428_v4  ;;  %vm1438_vm13 = vmor %vm1436_vm12, %vm1437_vm11  ;;  %vm1446_vm15 = vweird.f32 %v1428_v4  ;;  %vm1519_vm12 = vcmask 523264  }
 0x631   : > { %v1432_v40 = vmul.f32 %v3051_v3, %v1431_v5 }
 0x633   : > { %v1433_v17 = vmul.f32 0.5, %v1432_v40  ;;  %v1423_v43 = vpop.xlane.xlu1 %1422  ;;  %v1716_v14 = vpop.permute.xlu2 %1715 }
 0x634   : > { %v1426_v6 = vmul.f32 %v1423_v43, %v3942_v11  ;;  %2814 = vmatpush.xpose.msk.msrb.mxu0 %vm785_vm3, %v1716_v14 }
 0x635   : > { %v1434_v7 = vsub.f32 1.5, %v1433_v17 }
 0x636   : > { %v3053_v19 = vpop.eup %3052  ;;  %v1429_v8 = vadd.f32 1e-05, %v1426_v6 }
 0x637   : > { %v1435_v59 = vmul.f32 %v3051_v3, %v1434_v7  ;;  %v1441_v9 = vmul.f32 %v3053_v19, %v1428_v4  ;;  %vm1447_vm14 = vweird.f32 %v3053_v19 }
 0x638   : > { %3054 = vrsqrt.f32 %v1429_v8  ;;  %vm1448_vm0 = vmor %vm1446_vm15, %vm1447_vm14  ;;  %vm1456_vm10 = vweird.f32 %v1429_v8 }
 0x639   : > { %v1439_v22 = vsel %vm1438_vm13, %v3051_v3, %v1435_v59  ;;  %v1442_v1 = vmul.f32 %v3053_v19, %v1441_v9  ;;  %v2989_v9 = vld [vmem:[%s3563_s21] ss:$0 sm:$0xff] }
 0x63a   : > { %v1460_v23 = vmul.f32 %v1439_v22, %v3945_v29 }
 0x63b   : > { %v1443_v25 = vmul.f32 0.5, %v1442_v1  ;;  %v1712_v37 = vpop.permute.xlu2 %1711 }
 0x63c   : > { %v1466_v27 = vmul.f32 %v2987_v10, %v1460_v23 }
 0x63d   : > { %v1444_v12 = vsub.f32 1.5, %v1443_v25 }
 0x63e   : > { %v3055_v30 = vpop.eup %3054  ;;  %v1845_v31 = vpop.permute.xlu0 %1844  ;;  %v4069_v20 = vadd.f32 %v2988_v24, %v1466_v27 }
 0x63f   : > { %v1445_v50 = vmul.f32 %v3053_v19, %v1444_v12  ;;  %v1451_v33 = vmul.f32 %v3055_v30, %v1429_v8  ;;  %2825 = vmatpush.xpose.msk.msrb.mxu3 %vm785_vm3, %v1845_v31  ;;  %vm1457_vm1 = vweird.f32 %v3055_v30 }
 0x640   : > { %2802 = vmatmul.msk.f32.vlgmr.msra.gmra.mxu1 %vm740_vm2, %v4069_v20  ;;  %vm1458_vm11 = vmor %vm1456_vm10, %vm1457_vm1 }
 0x641   : > { %v1449_v34 = vsel %vm1448_vm0, %v3053_v19, %v1445_v50  ;;  %v1452_v29 = vmul.f32 %v3055_v30, %v1451_v33 }
 0x642   : > { %v1461_v15 = vmul.f32 %v1449_v34, %v3951_v32 }
 0x643   : > { %v1453_v35 = vmul.f32 0.5, %v1452_v29  ;;  %v4081_v0 = vpop.permute.xlu2 %1840 }
 0x644   : > { %v1467_v26 = vmul.f32 %v2987_v10, %v1461_v15 }
 0x645   : > { %v1454_v39 = vsub.f32 1.5, %v1453_v35 }
 0x646   : > { %v4075_v46 = vadd.f32 %v2988_v24, %v1467_v26  ;;  %v1837_v60 = vpop.permute.xlu0 %1836 }
 0x647   : > { %v1455_v28 = vmul.f32 %v3055_v30, %v1454_v39 }
 0x648   : > { %2803 = vmatmul.msk.f32.gmra.mxu1 %vm740_vm2, %v4075_v46 }
 0x649   : > { %v1459_v58 = vsel %vm1458_vm11, %v3055_v30, %v1455_v28 }
 0x64a   : > { %v1462_v61 = vmul.f32 %v1459_v58, %v3957_v38 }
 0x64b   : > { %v1843_v63 = vpop.permute.xlu1 %1842  ;;  %v1978_v5 = vpop.permute.xlu2 %1977 }
 0x64c   : > { %2826 = vmatpush.xpose.msk.msrb.mxu3 %vm785_vm3, %v1843_v63  ;;  %v1468_v32 = vmul.f32 %v2987_v10, %v1462_v61 }
 0x64e   : > { %v4083_v45 = vadd.f32 %v2988_v24, %v1468_v32  ;;  %v1839_v3 = vpop.permute.xlu0 %1838 }
 0x650   : > { %2804 = vmatmul.msk.f32.gmra.mxu1 %vm740_vm2, %v4083_v45 }
 0x653   : > { %v1714_v4 = vpop.permute.xlu1 %1713  ;;  %v1974_v6 = vpop.permute.xlu2 %1973 }
 0x654   : > { %2815 = vmatpush.xpose.msk.msrb.mxu0 %vm785_vm3, %v1714_v4 }
 0x656   : > { %v2107_v40 = vpop.permute.xlu0 %2106 }
 0x658   : > { %2816 = vmatpush.xpose.msk.msrb.mxu0 %vm785_vm3, %v1712_v37  ;;  %v4143_v37 = vpack.i.bf16 %v3973_v36, %v3966_v48 }
 0x65b   : > { %2817 = vmatmul.msk.f32.vlgmr.msrb.gmra.mxu0 %vm785_vm3, %v3973_v36  ;;  %v2109_v38 = vpop.permute.xlu1 %2108 }
 0x65c   : > { %2834 = vmatpush.xpose.msk.msra.mxu0 %vm785_vm3, %v1978_v5 }
 0x65e   : > { %v2099_v43 = vpop.permute.xlu0 %2098 }
 0x663   : > { %2818 = vmatmul.msk.f32.gmra.mxu0 %vm785_vm3, %v3966_v48  ;;  %v2105_v17 = vpop.permute.xlu1 %2104 }
 0x666   : > { %v2101_v7 = vpop.permute.xlu0 %2100 }
 0x66b   : > { %2819 = vmatmul.msk.f32.gmra.mxu0 %vm785_vm3, %v3963_v47  ;;  %v1976_v14 = vpop.permute.xlu1 %1975 }
 0x66c   : > { %2835 = vmatpush.xpose.msk.msra.mxu0 %vm785_vm3, %v1976_v14 }
 0x66e   : > { %v1970_v8 = vpop.permute.xlu0 %1969 }
 0x670   : > { %2836 = vmatpush.xpose.msk.msra.mxu0 %vm785_vm3, %v1974_v6 }
 0x673   : > { %v1968_v19 = vpop.permute.xlu1 %1967 }
 0x674   : > { %2298 = vmatpush.msrb.mxu0 %v3893_v41 }
 0x675   : > { %2837 = vmatmul.msk.f32.vlgmr.msra.gmra.mxu0 %vm785_vm3, %v1968_v19 }
 0x676   : > { %2299 = vmatpush.msrb.mxu0 %v3897_v42 }
 0x678   : > { %2300 = vmatpush.msrb.mxu0 %v3900_v2 }
 0x67a   : > { %2301 = vmatpush.msrb.mxu0 %v3905_v44 }
 0x67b   : > { %v1972_v59 = vpop.permute.xlu1 %1971 }
 0x67d   : > { %2838 = vmatmul.msk.f32.gmra.mxu0 %vm785_vm3, %v1970_v8 }
 0x685   : > { %2839 = vmatmul.msk.f32.gmra.mxu0 %vm785_vm3, %v1972_v59 }
 0x6bd   : > { %v1504_v10 = vpop.f32.mrf.mxu1 }
 0x6be   : > { %v1505_v22 = vadd.f32 %v2989_v9, %v1504_v10 }
 0x6c0   : > { %v1513_v41 = vmax.f32 %v1505_v22, 0.0 }
 0x6c2   : > { %2805 = vmatmul.msk.f32.vlgmr.msra.gmra.mxu3 %vm1519_vm12, %v1513_v41 }
 0x6c3   : > { %2844 = vmatpush.xpose.msk.msra.mxu3 %vm785_vm3, %v2109_v38 }
 0x6c5   : > { %v1507_v42 = vpop.f32.mrf.mxu1 }
 0x6c6   : > { %v1508_v1 = vadd.f32 %v2989_v9, %v1507_v42 }
 0x6c7   : > { %2845 = vmatpush.xpose.msk.msra.mxu3 %vm785_vm3, %v2107_v40 }
 0x6c8   : > { %v1514_v2 = vmax.f32 %v1508_v1, 0.0 }
 0x6ca   : > { %2806 = vmatmul.msk.f32.gmra.mxu3 %vm1519_vm12, %v1514_v2 }
 0x6cb   : > { %2846 = vmatpush.xpose.msk.msra.mxu3 %vm785_vm3, %v2105_v17 }
 0x6cd   : > { %v1510_v44 = vpop.f32.mrf.mxu1 }
 0x6ce   : > { %v1511_v23 = vadd.f32 %v2989_v9, %v1510_v44 }
 0x6d0   : > { %v1515_v24 = vmax.f32 %v1511_v23, 0.0 }
 0x6d2   : > { %2807 = vmatmul.msk.f32.gmra.mxu3 %vm1519_vm12, %v1515_v24 }
 0x6d8   : > { %v1746_v25 = vpop.f32.mrf.mxu0 }
 0x6d9   : > { %v1755_v27 = vmul.f32 0.35355338, %v1746_v25 }
 0x6da   : > { %2827 = vmatmul.msk.f32.vlgmr.msrb.gmra.mxu3 %vm785_vm3, %v1837_v60 }
 0x6db   : > { %v1758_v12 = vsel %vm827_vm5, %v1755_v27, -inf  ;;  %2454 = vmatpush.msrb.mxu3 %v4014_v13 }
 0x6dc   : > { %1759 = vmax.xlane.f32.xlu0 %v1758_v12 }
 0x6dd   : > { %2455 = vmatpush.msrb.mxu3 %v4018_v16 }
 0x6df   : > { %2456 = vmatpush.msrb.mxu3 %v4025_v49 }
 0x6e0   : > { %v1749_v30 = vpop.f32.mrf.mxu0 }
 0x6e1   : > { %v1756_v31 = vmul.f32 0.35355338, %v1749_v30  ;;  %2457 = vmatpush.msrb.mxu3 %v4033_v52 }
 0x6e2   : > { %2828 = vmatmul.msk.f32.gmra.mxu3 %vm785_vm3, %v1839_v3 }
 0x6e3   : > { %v1761_v50 = vsel %vm827_vm5, %v1756_v31, -inf  ;;  %2458 = vmatpush.msrb.mxu3 %v4041_v54 }
 0x6e4   : > { %1762 = vmax.xlane.f32.xlu2 %v1761_v50 }
 0x6e5   : > { %2459 = vmatpush.msrb.mxu3 %v4049_v56 }
 0x6e7   : > { %2460 = vmatpush.msrb.mxu3 %v4054_v57 }
 0x6e8   : > { %v1752_v13 = vpop.f32.mrf.mxu0 }
 0x6e9   : > { %v1757_v33 = vmul.f32 0.35355338, %v1752_v13  ;;  %2461 = vmatpush.msrb.mxu3 %v4058_v21  ;;  %v2103_v21 = vpop.permute.xlu2 %2102 }
 0x6ea   : > { %2829 = vmatmul.msk.f32.gmra.mxu3 %vm785_vm3, %v4081_v0 }
 0x6eb   : > { %v1764_v16 = vsel %vm834_vm6, %v1757_v33, -inf }
 0x6ec   : > { %1765 = vmax.xlane.f32.xlu2 %v1764_v16 }
 0x6f2   : > { %v2008_v49 = vpop.f32.mrf.mxu0  ;;  %2847 = vmatmul.msk.f32.vlgmr.msra.gmra.mxu3 %vm785_vm3, %v2099_v43 }
 0x6f3   : > { %v2017_v52 = vmul.f32 0.35355338, %v2008_v49 }
 0x6f5   : > { %v2020_v54 = vsel %vm827_vm5, %v2017_v52, -inf }
 0x6f6   : > { %2021 = vmax.xlane.f32.xlu0 %v2020_v54 }
 0x6fa   : > { %v2011_v56 = vpop.f32.mrf.mxu0  ;;  %2848 = vmatmul.msk.f32.gmra.mxu3 %vm785_vm3, %v2101_v7 }
 0x6fb   : > { %v4129_v34 = vmul.f32 0.35355338, %v2011_v56 }
 0x6fd   : > { %v2023_v57 = vsel %vm827_vm5, %v4129_v34, -inf }
 0x6fe   : > { %2024 = vmax.xlane.f32.xlu1 %v2023_v57 }
 0x702   : > { %v2014_v29 = vpop.f32.mrf.mxu0  ;;  %2849 = vmatmul.msk.f32.gmra.mxu3 %vm785_vm3, %v2103_v21 }
 0x703   : > { %v4134_v15 = vmul.f32 0.35355338, %v2014_v29 }
 0x705   : > { %v2026_v35 = vsel %vm834_vm6, %v4134_v15, -inf }
 0x706   : > { %2027 = vmax.xlane.f32.xlu2 %v2026_v35 }
 0x70a   : > { %1795 = vrot.lane.b32.xlu0 %v3963_v47, %s3297_s11 }
 0x717   : > { %2967 = vrot.lane.b32.xlu1 %v4143_v37, %s3298_s12 }
 0x71e   : > { %1926 = vrot.lane.b32.xlu2 %v3963_v47, %s3298_s12 }
 0x726   : > { %2972 = vrot.lane.b32.xlu2 %v4143_v37, %s3297_s11 }
 0x745   : > { %v4151_v26 = vpop.f32.mrf.mxu3 }
 0x74d   : > { %v4153_v39 = vpop.f32.mrf.mxu3 }
 0x74f   : > { %v1760_v28 = vpop.xlane.xlu0 %1759 }
 0x750   : > { %v1767_v58 = vsub.f32 %v1755_v27, %v1760_v28 }
 0x752   : > { %v1770_v60 = vmul.f32 1.442695, %v1767_v58 }
 0x754   : > { %3056 = vpow2.f32 %v1770_v60 }
 0x755   : > { %v4155_v61 = vpop.f32.mrf.mxu3 }
 0x757   : > { %v1763_v48 = vpop.xlane.xlu2 %1762 }
 0x758   : > { %v1768_v36 = vsub.f32 %v1756_v31, %v1763_v48 }
 0x75a   : > { %v4157_v63 = vpop.eup %3056  ;;  %v1772_v32 = vmul.f32 1.442695, %v1768_v36 }
 0x75b   : > { %v1776_v0 = vsel %vm827_vm5, %v4157_v63, 0.0 }
 0x75c   : > { %3058 = vpow2.f32 %v1772_v32  ;;  %1777 = vadd.xlane.f32.xlu0 %v1776_v0 }
 0x75d   : > { %v1877_v3 = vpop.f32.mrf.mxu3 }
 0x75e   : > { %v1886_v22 = vmul.f32 0.35355338, %v1877_v3 }
 0x75f   : > { %v1766_v4 = vpop.xlane.xlu2 %1765 }
 0x760   : > { %v1769_v5 = vsub.f32 %v1757_v33, %v1766_v4  ;;  %v1889_v42 = vsel %vm827_vm5, %v1886_v22, -inf }
 0x762   : > { %v4161_v38 = vpop.eup %3058  ;;  %v1774_v40 = vmul.f32 1.442695, %v1769_v5 }
 0x763   : > { %v1779_v17 = vsel %vm827_vm5, %v4161_v38, 0.0 }
 0x764   : > { %3060 = vpow2.f32 %v1774_v40  ;;  %1780 = vadd.xlane.f32.xlu1 %v1779_v17 }
 0x765   : > { %v1880_v43 = vpop.f32.mrf.mxu3 }
 0x766   : > { %v4165_v14 = vmul.f32 0.35355338, %v1880_v43 }
 0x768   : > { %v1892_v59 = vsel %vm827_vm5, %v4165_v14, -inf }
 0x769   : > { %v2022_v6 = vpop.xlane.xlu0 %2021 }
 0x76a   : > { %v2029_v7 = vsub.f32 %v2017_v52, %v2022_v6  ;;  %v4167_v19 = vpop.eup %3060 }
 0x76b   : > { %v1782_v9 = vsel %vm834_vm6, %v4167_v19, 0.0 }
 0x76c   : > { %v2032_v8 = vmul.f32 1.442695, %v2029_v7  ;;  %1893 = vmax.xlane.f32.xlu1 %v1892_v59  ;;  %1783 = vadd.xlane.f32.xlu2 %v1782_v9 }
 0x76d   : > { %v1883_v10 = vpop.f32.mrf.mxu3 }
 0x76e   : > { %3062 = vpow2.f32 %v2032_v8  ;;  %v4178_v23 = vmul.f32 0.35355338, %v1883_v10 }
 0x770   : > { %v1895_v12 = vsel %vm834_vm6, %v4178_v23, -inf }
 0x771   : > { %v4186_v31 = vpop.xlane.xlu1 %2024 }
 0x774   : > { %v4173_v41 = vpop.eup %3062  ;;  %1890 = vmax.xlane.f32.xlu2 %v1889_v42 }
 0x775   : > { %v2038_v1 = vsel %vm827_vm5, %v4173_v41, 0.0  ;;  %v2139_v2 = vpop.f32.mrf.mxu3 }
 0x776   : > { %2039 = vadd.xlane.f32.xlu0 %v2038_v1  ;;  %v2148_v44 = vmul.f32 0.35355338, %v2139_v2 }
 0x778   : > { %v2151_v25 = vsel %vm827_vm5, %v2148_v44, -inf }
 0x779   : > { %v4180_v24 = vpop.xlane.xlu2 %2027  ;;  %2152 = vmax.xlane.f32.xlu1 %v2151_v25 }
 0x77c   : > { %v1796_v27 = vpop.permute.xlu0 %1795 }
 0x77d   : > { %2820 = vmatpush.msk.msrb.mxu1 %vm879_vm4, %v1796_v27  ;;  %v2142_v30 = vpop.f32.mrf.mxu3 }
 0x77e   : > { %1896 = vmax.xlane.f32.xlu0 %v1895_v12  ;;  %v2149_v29 = vmul.f32 0.35355338, %v2142_v30 }
 0x780   : > { %v2154_v35 = vsel %vm827_vm5, %v2149_v29, -inf }
 0x781   : > { %v1927_v50 = vpop.permute.xlu2 %1926 }
 0x782   : > { %2830 = vmatpush.msk.msra.mxu2 %vm879_vm4, %v1927_v50 }
 0x785   : > { %v2145_v13 = vpop.f32.mrf.mxu3 }
 0x786   : > { %v4189_v33 = vmul.f32 0.35355338, %v2145_v13 }
 0x788   : > { %v2157_v52 = vsel %vm834_vm6, %v4189_v33, -inf }
 0x789   : > { %v2973_v16 = vpop.permute.xlu2 %2972  ;;  %v2968_v49 = vpop.permute.xlu1 %2967  ;;  %2158 = vmax.xlane.f32.xlu0 %v2157_v52 }
 0x78a   : > { %v2974_v54 = vunpack.i.l.bf16 %v2973_v16  ;;  %v2969_v56 = vunpack.i.l.bf16 %v2968_v49  ;;  %v2975_v57 = vunpack.i.h.bf16 %v2973_v16  ;;  %v2970_v21 = vunpack.i.h.bf16 %v2968_v49 }
 0x78c   : > { %1824 = vmatpush.msrb.mxu1 %v2974_v54  ;;  %1955 = vmatpush.msra.mxu2 %v2969_v56  ;;  %v2030_v56 = vsub.f32 %v4129_v34, %v4186_v31 }
 0x78d   : > { %2188 = vrot.lane.b32.xlu2 %v3963_v47, %s4461_s14 }
 0x78e   : > { %1825 = vmatpush.msrb.mxu1 %v2975_v57  ;;  %1956 = vmatpush.msra.mxu2 %v2970_v21  ;;  %v2034_v57 = vmul.f32 1.442695, %v2030_v56 }
 0x7b6   : > { %2155 = vmax.xlane.f32.xlu2 %v2154_v35 }
 0x7ce   : > { %2982 = vrot.lane.b32.xlu2 %v4143_v37, %s4462_s28 }
 0x7cf   : > { %v1778_v28 = vpop.xlane.xlu0 %1777 }
 0x7d0   : > { %3064 = vrcp.f32 %v1778_v28 }
 0x7d6   : > { %v3065_v58 = vpop.eup %3064 }
 0x7d7   : > { %v1788_v60 = vmul.f32 %v3065_v58, %v4157_v63  ;;  %v1781_v48 = vpop.xlane.xlu1 %1780 }
 0x7d8   : > { %3066 = vrcp.f32 %v1781_v48 }
 0x7d9   : > { %2821 = vmatmul.msk.f32.vlgmr.msrb.gmra.mxu1 %vm827_vm5, %v1788_v60 }
 0x7de   : > { %v3067_v36 = vpop.eup %3066 }
 0x7df   : > { %v1784_v32 = vpop.xlane.xlu2 %1783  ;;  %v1894_v0 = vpop.xlane.xlu1 %1893  ;;  %v1789_v3 = vmul.f32 %v3067_v36, %v4161_v38 }
 0x7e0   : > { %3068 = vrcp.f32 %v1784_v32  ;;  %v1899_v4 = vsub.f32 %v4165_v14, %v1894_v0 }
 0x7e1   : > { %2822 = vmatmul.msk.f32.gmra.mxu1 %vm827_vm5, %v1789_v3 }
 0x7e2   : > { %v1903_v5 = vmul.f32 1.442695, %v1899_v4 }
 0x7e4   : > { %3070 = vpow2.f32 %v1903_v5 }
 0x7e6   : > { %v3069_v40 = vpop.eup %3068 }
 0x7e7   : > { %v1891_v17 = vpop.xlane.xlu2 %1890  ;;  %v1790_v63 = vmul.f32 %v3069_v40, %v4167_v19 }
 0x7e8   : > { %v1898_v43 = vsub.f32 %v1886_v22, %v1891_v17 }
 0x7e9   : > { %v4204_v6 = vpop.xlane.xlu0 %2039  ;;  %2823 = vmatmul.msk.f32.gmra.mxu1 %vm827_vm5, %v1790_v63 }
 0x7ea   : > { %v3071_v7 = vpop.eup %3070  ;;  %v1901_v8 = vmul.f32 1.442695, %v1898_v43 }
 0x7eb   : > { %v1910_v38 = vsel %vm827_vm5, %v3071_v7, 0.0 }
 0x7ec   : > { %3072 = vpow2.f32 %v1901_v8  ;;  %1911 = vadd.xlane.f32.xlu0 %v1910_v38  ;;  %v2153_v14 = vpop.xlane.xlu1 %2152 }
 0x7ed   : > { %v2160_v59 = vsub.f32 %v2148_v44, %v2153_v14 }
 0x7ef   : > { %v2163_v9 = vmul.f32 1.442695, %v2160_v59  ;;  %v2189_v10 = vpop.permute.xlu2 %2188 }
 0x7f0   : > { %2850 = vmatpush.msk.msrb.mxu2 %vm879_vm4, %v2189_v10 }
 0x7f1   : > { %v1897_v42 = vpop.xlane.xlu0 %1896  ;;  %3074 = vpow2.f32 %v2163_v9 }
 0x7f2   : > { %v1900_v19 = vsub.f32 %v4178_v23, %v1897_v42  ;;  %v3073_v22 = vpop.eup %3072 }
 0x7f3   : > { %v1907_v2 = vsel %vm827_vm5, %v3073_v22, 0.0 }
 0x7f4   : > { %v1905_v1 = vmul.f32 1.442695, %v1900_v19  ;;  %1908 = vadd.xlane.f32.xlu1 %v1907_v2 }
 0x7f6   : > { %3076 = vpow2.f32 %v1905_v1 }
 0x7f7   : > { %v3075_v25 = vpop.eup %3074 }
 0x7f8   : > { %v2169_v12 = vsel %vm827_vm5, %v3075_v25, 0.0 }
 0x7fc   : > { %v3077_v27 = vpop.eup %3076  ;;  %v2159_v30 = vpop.xlane.xlu0 %2158  ;;  %2170 = vadd.xlane.f32.xlu1 %v2169_v12 }
 0x7fd   : > { %v1913_v44 = vsel %vm834_vm6, %v3077_v27, 0.0  ;;  %v2162_v50 = vsub.f32 %v4189_v33, %v2159_v30 }
 0x7fe   : > { %1914 = vadd.xlane.f32.xlu0 %v1913_v44 }
 0x7ff   : > { %v2167_v13 = vmul.f32 1.442695, %v2162_v50 }
 0x801   : > { %3078 = vpow2.f32 %v2167_v13 }
 0x807   : > { %v3079_v23 = vpop.eup %3078 }
 0x808   : > { %v2175_v16 = vsel %vm834_vm6, %v3079_v23, 0.0 }
 0x809   : > { %2176 = vadd.xlane.f32.xlu2 %v2175_v16 }
 0x815   : > { %2977 = vrot.lane.b32.xlu1 %v4143_v37, %s4461_s14  ;;  %v2031_v37 = vsub.f32 %v4134_v15, %v4180_v24 }
 0x829   : > { %v2156_v49 = vpop.xlane.xlu2 %2155 }
 0x82a   : > { %v2161_v52 = vsub.f32 %v2149_v29, %v2156_v49  ;;  %v2036_v29 = vmul.f32 1.442695, %v2031_v37 }
 0x82c   : > { %v2165_v54 = vmul.f32 1.442695, %v2161_v52 }
 0x82e   : > { %3080 = vpow2.f32 %v2165_v54 }
 0x82f   : > { %3082 = vpow2.f32 %v2034_v57 }
 0x831   : > { %v2983_v43 = vpop.permute.xlu2 %2982 }
 0x832   : > { %v2985_v1 = vunpack.i.h.bf16 %v2983_v43 }
 0x834   : > { %v3081_v21 = vpop.eup %3080 }
 0x835   : > { %v2172_v33 = vsel %vm827_vm5, %v3081_v21, 0.0  ;;  %v3083_v35 = vpop.eup %3082 }
 0x836   : > { %2173 = vadd.xlane.f32.xlu0 %v2172_v33  ;;  %v2041_v28 = vsel %vm827_vm5, %v3083_v35, 0.0 }
 0x83f   : > { %2042 = vadd.xlane.f32.xlu1 %v2041_v28 }
 0x84a   : > { %2057 = vrot.lane.b32.xlu0 %v3963_v47, %s4462_s28 }
 0x85f   : > { %v1912_v34 = vpop.xlane.xlu0 %1911 }
 0x867   : > { %v1909_v58 = vpop.xlane.xlu1 %1908 }
 0x868   : > { %3084 = vrcp.f32 %v1909_v58 }
 0x869   : > { %3086 = vpow2.f32 %v2036_v29 }
 0x86a   : > { %3088 = vrcp.f32 %v1912_v34 }
 0x86e   : > { %v3085_v31 = vpop.eup %3084 }
 0x86f   : > { %v3087_v60 = vpop.eup %3086  ;;  %v1919_v48 = vmul.f32 %v3085_v31, %v3073_v22  ;;  %v2171_v24 = vpop.xlane.xlu1 %2170  ;;  %v2984_v22 = vunpack.i.l.bf16 %v2983_v43 }
 0x870   : > { %v2044_v36 = vsel %vm834_vm6, %v3087_v60, 0.0  ;;  %v3089_v0 = vpop.eup %3088 }
 0x871   : > { %2831 = vmatmul.msk.f32.vlgmr.msra.gmra.mxu2 %vm827_vm5, %v1919_v48  ;;  %v1915_v32 = vpop.xlane.xlu0 %1914  ;;  %v1920_v47 = vmul.f32 %v3089_v0, %v3071_v7 }
 0x872   : > { %3090 = vrcp.f32 %v1915_v32 }
 0x873   : > { %3092 = vrcp.f32 %v2171_v24 }
 0x874   : > { %2045 = vadd.xlane.f32.xlu0 %v2044_v36 }
 0x878   : > { %v3091_v15 = vpop.eup %3090 }
 0x879   : > { %2832 = vmatmul.msk.f32.gmra.mxu2 %vm827_vm5, %v1920_v47  ;;  %v1921_v3 = vmul.f32 %v3091_v15, %v3077_v27  ;;  %v3093_v5 = vpop.eup %3092  ;;  %v2991_v15 = vld [vmem:[%s3548_s22] ss:$0 sm:$0xff] }
 0x87a   : > { %v2181_v63 = vmul.f32 %v3093_v5, %v3075_v25 }
 0x87c   : > { %v2177_v7 = vpop.xlane.xlu2 %2176 }
 0x881   : > { %2833 = vmatmul.msk.f32.gmra.mxu2 %vm827_vm5, %v1921_v3 }
 0x887   : > { %v2978_v4 = vpop.permute.xlu1 %2977 }
 0x888   : > { %v2979_v40 = vunpack.i.l.bf16 %v2978_v4  ;;  %v2980_v17 = vunpack.i.h.bf16 %v2978_v4 }
 0x88a   : > { %2217 = vmatpush.msrb.mxu2 %v2979_v40 }
 0x88c   : > { %2218 = vmatpush.msrb.mxu2 %v2980_v17 }
 0x88d   : > { %2851 = vmatmul.msk.f32.vlgmr.msrb.gmra.mxu2 %vm827_vm5, %v2181_v63  ;;  %v3122_v63 = vld [vmem:[%s4460_s18 + $0x20] sm:$0xff] }
 0x8a9   : > { %v2174_v8 = vpop.xlane.xlu0 %2173 }
 0x8aa   : > { %3094 = vrcp.f32 %v2174_v8 }
 0x8ab   : > { %3096 = vrcp.f32 %v2177_v7 }
 0x8ac   : > { %3098 = vrcp.f32 %v4204_v6 }
 0x8b0   : > { %v3095_v38 = vpop.eup %3094 }
 0x8b1   : > { %v2182_v14 = vmul.f32 %v3095_v38, %v3081_v21  ;;  %v3097_v59 = vpop.eup %3096 }
 0x8b2   : > { %v2183_v9 = vmul.f32 %v3097_v59, %v3079_v23  ;;  %v2043_v10 = vpop.xlane.xlu1 %2042  ;;  %v3099_v19 = vpop.eup %3098 }
 0x8b3   : > { %2852 = vmatmul.msk.f32.gmra.mxu2 %vm827_vm5, %v2182_v14  ;;  %3100 = vrcp.f32 %v2043_v10  ;;  %v2050_v2 = vmul.f32 %v3099_v19, %v4173_v41 }
 0x8b9   : > { %v3101_v6 = vpop.eup %3100 }
 0x8ba   : > { %v2051_v25 = vmul.f32 %v3101_v6, %v3083_v35 }
 0x8bb   : > { %2853 = vmatmul.msk.f32.gmra.mxu2 %vm827_vm5, %v2183_v9 }
 0x8bc   : > { %v2058_v42 = vpop.permute.xlu0 %2057 }
 0x8bd   : > { %2840 = vmatpush.msk.msra.mxu1 %vm879_vm4, %v2058_v42  ;;  %v2990_v42 = vld [vmem:[%s3568_s20] ss:$0 sm:$0xff] }
 0x8bf   : > { %2086 = vmatpush.msra.mxu1 %v2984_v22 }
 0x8c1   : > { %2087 = vmatpush.msra.mxu1 %v2985_v1  ;;  %v1547_v1 = vadd.f32 %v2990_v42, %v4151_v26 }
 0x8c2   : > { %2841 = vmatmul.msk.f32.vlgmr.msra.gmra.mxu1 %vm827_vm5, %v2050_v2 }
 0x8c3   : > { %2417 = vmatpush.msrb.mxu1 %v4022_v18  ;;  %v4279_v6 = vadd.f32 %v1547_v1, %v4069_v20 }
 0x8c5   : > { %2418 = vmatpush.msrb.mxu1 %v4030_v51 }
 0x8c7   : > { %2419 = vmatpush.msrb.mxu1 %v4038_v53 }
 0x8c9   : > { %2420 = vmatpush.msrb.mxu1 %v4046_v55  ;;  %v1827_v55 = vpop.f32.mrf.mxu1 }
 0x8ca   : > { %2842 = vmatmul.msk.f32.gmra.mxu1 %vm827_vm5, %v2051_v25 }
 0x8d1   : > { %v1830_v44 = vpop.f32.mrf.mxu1 }
 0x8d9   : > { %v1833_v13 = vpop.f32.mrf.mxu1 }
 0x8e7   : > { %v2046_v27 = vpop.xlane.xlu0 %2045 }
 0x8e8   : > { %3102 = vrcp.f32 %v2046_v27 }
 0x8ee   : > { %v3103_v12 = vpop.eup %3102 }
 0x8ef   : > { %v2052_v30 = vmul.f32 %v3103_v12, %v3087_v60  ;;  %v1558_v12 = vsel %vm740_vm2, %v4279_v6, 0.0 }
 0x8f1   : > { %2843 = vmatmul.msk.f32.gmra.mxu1 %vm827_vm5, %v2052_v30 }
 0x8f4   : > { %v1958_v41 = vpop.f32.mrf.mxu2 }
 0x8f5   : > { %2232 = vrot.lane.b32.xlu1 %v1958_v41, %s4463_s2 }
 0x8fc   : > { %v1961_v18 = vpop.f32.mrf.mxu2 }
 0x8fd   : > { %2234 = vrot.lane.b32.xlu1 %v1961_v18, %s4463_s2  ;;  %v1550_v18 = vadd.f32 %v2990_v42, %v4153_v39 }
 0x8ff   : > { %v4287_v26 = vadd.f32 %v1550_v18, %v4075_v46 }
 0x901   : > { %v1561_v20 = vsel %vm740_vm2, %v4287_v26, 0.0 }
 0x904   : > { %v1964_v51 = vpop.f32.mrf.mxu2 }
 0x905   : > { %2236 = vrot.lane.b32.xlu1 %v1964_v51, %s4463_s2 }
 0x910   : > { %v2220_v53 = vpop.f32.mrf.mxu2 }
 0x911   : > { %2256 = vrot.lane.b32.xlu0 %v2220_v53, %s4464_s25 }
 0x936   : > { %v2223_v50 = vpop.f32.mrf.mxu2 }
 0x937   : > { %2258 = vrot.lane.b32.xlu0 %v2223_v50, %s4464_s25 }
 0x93e   : > { %v2226_v23 = vpop.f32.mrf.mxu2 }
 0x93f   : > { %v2089_v16 = vpop.f32.mrf.mxu1  ;;  %2260 = vrot.lane.b32.xlu0 %v2226_v23, %s4464_s25 }
 0x940   : > { %2244 = vrot.lane.b32.xlu2 %v2089_v16, %s4465_s9 }
 0x947   : > { %v2092_v49 = vpop.f32.mrf.mxu1 }
 0x948   : > { %2246 = vrot.lane.b32.xlu2 %v2092_v49, %s4465_s9 }
 0x967   : > { %v2233_v54 = vpop.permute.xlu1 %2232 }
 0x968   : > { %v2265_v56 = vsel %vm785_vm3, %v1827_v55, %v2233_v54 }
 0x96e   : > { %v2095_v52 = vpop.f32.mrf.mxu1 }
 0x96f   : > { %2248 = vrot.lane.b32.xlu2 %v2095_v52, %s4465_s9  ;;  %v2235_v28 = vpop.permute.xlu1 %2234 }
 0x970   : > { %v2266_v29 = vsel %vm785_vm3, %v1830_v44, %v2235_v28 }
 0x977   : > { %v2237_v60 = vpop.permute.xlu1 %2236 }
 0x978   : > { %v2267_v48 = vsel %vm785_vm3, %v1833_v13, %v2237_v60  ;;  %v1553_v13 = vadd.f32 %v2990_v42, %v4155_v61 }
 0x97a   : > { %v4295_v39 = vadd.f32 %v1553_v13, %v4083_v45 }
 0x97c   : > { %v1564_v46 = vsel %vm1395_vm9, %v4295_v39, 0.0 }
 0x983   : > { %v2257_v21 = vpop.permute.xlu0 %2256 }
 0x99a   : > { %v2245_v57 = vpop.permute.xlu2 %2244 }
 0x99b   : > { %v2268_v33 = vsel %vm1340_vm7, %v2265_v56, %v2245_v57 }
 0x99c   : > { %v2271_v35 = vsel %vm1344_vm8, %v2268_v33, %v2257_v21 }
 0x99d   : > { %2854 = vmatmul.msk.f32.vlgmr.msrb.gmra.mxu0 %vm740_vm2, %v2271_v35 }
 0x9a2   : > { %v2247_v37 = vpop.permute.xlu2 %2246 }
 0x9a3   : > { %v2269_v58 = vsel %vm1340_vm7, %v2266_v29, %v2247_v37  ;;  %v2992_v37 = vld [vmem:[%s3553_s30] ss:$0 sm:$0xff] }
 0x9a9   : > { %v2259_v34 = vpop.permute.xlu0 %2258 }
 0x9aa   : > { %v2272_v31 = vsel %vm1344_vm8, %v2269_v58, %v2259_v34  ;;  %v2993_v34 = vld [vmem:[%s3558_s0] ss:$0 sm:$0xff] }
 0x9ab   : > { %2855 = vmatmul.msk.f32.gmra.mxu0 %vm740_vm2, %v2272_v31 }
 0x9b1   : > { %v2261_v32 = vpop.permute.xlu0 %2260 }
 0x9c9   : > { %v2249_v36 = vpop.permute.xlu2 %2248 }
 0x9ca   : > { %v2270_v0 = vsel %vm1340_vm7, %v2267_v48, %v2249_v36 }
 0x9cb   : > { %v2273_v47 = vsel %vm1344_vm8, %v2270_v0, %v2261_v32 }
 0x9cc   : > { %2856 = vmatmul.msk.f32.gmra.mxu0 %vm740_vm2, %v2273_v47 }
 0xa1a   : > { %v2303_v24 = vpop.f32.mrf.mxu0 }
 0xa1b   : > { %v2304_v3 = vadd.f32 %v2991_v15, %v2303_v24 }
 0xa1d   : > { %v2312_v4 = vadd.f32 %v3923_v62, %v2304_v3  ;;  %v3123_v62 = vld [vmem:[%s4460_s18 + $0x28] sm:$0x7] }
 0xa1f   : > { %v2315_v5 = vsel %vm740_vm2, %v2312_v4, 0.0 }
 0xa20   : > { %2316 = vadd.xlane.f32.xlu1 %v2315_v5 }
 0xa28   : > { %v2306_v40 = vpop.f32.mrf.mxu0 }
 0xa29   : > { %v2307_v17 = vadd.f32 %v2991_v15, %v2306_v40 }
 0xa2b   : > { %v2313_v43 = vadd.f32 %v3122_v63, %v2307_v17 }
 0xa2d   : > { %v2318_v8 = vsel %vm740_vm2, %v2313_v43, 0.0 }
 0xa2e   : > { %2319 = vadd.xlane.f32.xlu2 %v2318_v8 }
 0xa49   : > { %v2309_v7 = vpop.f32.mrf.mxu0 }
 0xa4a   : > { %v2310_v38 = vadd.f32 %v2991_v15, %v2309_v7 }
 0xa4c   : > { %v2314_v14 = vadd.f32 %v3123_v62, %v2310_v38 }
 0xa4e   : > { %v2321_v59 = vsel %vm1395_vm9, %v2314_v14, 0.0 }
 0xa4f   : > { %2322 = vadd.xlane.f32.xlu0 %v2321_v59 }
 0xa93   : > { %v2317_v9 = vpop.xlane.xlu1 %2316 }
 0xa94   : > { %v2324_v10 = vmul.f32 %v2317_v9, %v3942_v11 }
 0xa96   : > { %v2327_v19 = vsub.f32 %v2312_v4, %v2324_v10 }
 0xa98   : > { %v2330_v22 = vmul.f32 %v2327_v19, %v2327_v19 }
 0xa9a   : > { %v2333_v2 = vsel %vm740_vm2, %v2330_v22, 0.0 }
 0xa9b   : > { %2334 = vadd.xlane.f32.xlu1 %v2333_v2 }
 0xaa1   : > { %v2320_v25 = vpop.xlane.xlu2 %2319 }
 0xaa2   : > { %v2325_v27 = vmul.f32 %v2320_v25, %v3942_v11 }
 0xaa3   : > { %1559 = vadd.xlane.f32.xlu1 %v1558_v12 }
 0xaa4   : > { %v2328_v30 = vsub.f32 %v2313_v43, %v2325_v27 }
 0xaa6   : > { %v2331_v41 = vmul.f32 %v2328_v30, %v2328_v30 }
 0xaa8   : > { %v2336_v51 = vsel %vm740_vm2, %v2331_v41, 0.0 }
 0xaa9   : > { %2337 = vadd.xlane.f32.xlu2 %v2336_v51  ;;  %v2995_v51 = vld [vmem:[%s3568_s20] ss:$0 sm:$0xff] }
 0xab1   : > { %1562 = vadd.xlane.f32.xlu2 %v1561_v20 }
 0xac2   : > { %v2323_v53 = vpop.xlane.xlu0 %2322 }
 0xac3   : > { %v2326_v55 = vmul.f32 %v2323_v53, %v3942_v11 }
 0xac5   : > { %v2329_v44 = vsub.f32 %v2314_v14, %v2326_v55 }
 0xac7   : > { %v2332_v50 = vmul.f32 %v2329_v44, %v2329_v44 }
 0xac9   : > { %v2339_v23 = vsel %vm1395_vm9, %v2332_v50, 0.0 }
 0xaca   : > { %2340 = vadd.xlane.f32.xlu0 %v2339_v23 }
 0xad2   : > { %1565 = vadd.xlane.f32.xlu0 %v1564_v46 }
 0xb0e   : > { %v2335_v16 = vpop.xlane.xlu1 %2334 }
 0xb0f   : > { %v2342_v49 = vmul.f32 %v2335_v16, %v3942_v11 }
 0xb11   : > { %v2345_v52 = vadd.f32 1e-05, %v2342_v49 }
 0xb13   : > { %3104 = vrsqrt.f32 %v2345_v52  ;;  %vm2354_vm4 = vweird.f32 %v2345_v52 }
 0xb16   : > { %v1560_v20 = vpop.xlane.xlu1 %1559 }
 0xb17   : > { %v1567_v55 = vmul.f32 %v1560_v20, %v3942_v11 }
 0xb19   : > { %v3105_v54 = vpop.eup %3104  ;;  %v1570_v13 = vsub.f32 %v4279_v6, %v1567_v55 }
 0xb1a   : > { %v2349_v56 = vmul.f32 %v3105_v54, %v2345_v52  ;;  %vm2355_vm3 = vweird.f32 %v3105_v54 }
 0xb1b   : > { %vm2356_vm5 = vmor %vm2354_vm4, %vm2355_vm3  ;;  %v1573_v46 = vmul.f32 %v1570_v13, %v1570_v13 }
 0xb1c   : > { %v2350_v61 = vmul.f32 %v3105_v54, %v2349_v56  ;;  %v2338_v57 = vpop.xlane.xlu2 %2337 }
 0xb1d   : > { %v2343_v21 = vmul.f32 %v2338_v57, %v3942_v11  ;;  %v1576_v49 = vsel %vm740_vm2, %v1573_v46, 0.0 }
 0xb1e   : > { %v2351_v33 = vmul.f32 0.5, %v2350_v61 }
 0xb1f   : > { %v2346_v45 = vadd.f32 1e-05, %v2343_v21 }
 0xb20   : > { %v2352_v35 = vsub.f32 1.5, %v2351_v33 }
 0xb21   : > { %3106 = vrsqrt.f32 %v2346_v45  ;;  %vm2364_vm7 = vweird.f32 %v2346_v45 }
 0xb22   : > { %v2353_v28 = vmul.f32 %v3105_v54, %v2352_v35 }
 0xb24   : > { %v2357_v29 = vsel %vm2356_vm5, %v3105_v54, %v2353_v28  ;;  %v1563_v16 = vpop.xlane.xlu2 %1562 }
 0xb25   : > { %v2378_v58 = vmul.f32 %v2357_v29, %v2327_v19  ;;  %v2994_v19 = vld [vmem:[%s3563_s21] ss:$0 sm:$0xff]  ;;  %v1568_v54 = vmul.f32 %v1563_v16, %v3942_v11 }
 0xb27   : > { %v3107_v31 = vpop.eup %3106  ;;  %v2384_v60 = vmul.f32 %v2992_v37, %v2378_v58  ;;  %v4318_v57 = vsub.f32 %v4287_v26, %v1568_v54 }
 0xb28   : > { %v2359_v48 = vmul.f32 %v3107_v31, %v2346_v45  ;;  %vm2365_vm6 = vweird.f32 %v3107_v31 }
 0xb29   : > { %v2390_v36 = vadd.f32 %v2993_v34, %v2384_v60  ;;  %vm2366_vm8 = vmor %vm2364_vm7, %vm2365_vm6  ;;  %v1574_v6 = vmul.f32 %v4318_v57, %v4318_v57 }
 0xb2a   : > { %v2360_v32 = vmul.f32 %v3107_v31, %v2359_v48 }
 0xb2b   : > { %2857 = vmatmul.msk.f32.vlgmr.msrb.gmra.mxu1 %vm740_vm2, %v2390_v36  ;;  %v1579_v33 = vsel %vm740_vm2, %v1574_v6, 0.0 }
 0xb2c   : > { %v2361_v0 = vmul.f32 0.5, %v2360_v32 }
 0xb2e   : > { %v2362_v47 = vsub.f32 1.5, %v2361_v0 }
 0xb30   : > { %v2363_v15 = vmul.f32 %v3107_v31, %v2362_v47 }
 0xb32   : > { %v2367_v24 = vsel %vm2366_vm8, %v3107_v31, %v2363_v15 }
 0xb33   : > { %v2379_v3 = vmul.f32 %v2367_v24, %v2328_v30 }
 0xb35   : > { %v2385_v4 = vmul.f32 %v2992_v37, %v2379_v3 }
 0xb37   : > { %v2391_v5 = vadd.f32 %v2993_v34, %v2385_v4 }
 0xb39   : > { %2858 = vmatmul.msk.f32.gmra.mxu1 %vm740_vm2, %v2391_v5 }
 0xb3d   : > { %v2341_v40 = vpop.xlane.xlu0 %2340 }
 0xb3e   : > { %v2344_v17 = vmul.f32 %v2341_v40, %v3942_v11 }
 0xb40   : > { %v2347_v63 = vadd.f32 1e-05, %v2344_v17 }
 0xb42   : > { %3108 = vrsqrt.f32 %v2347_v63  ;;  %vm2374_vm14 = vweird.f32 %v2347_v63 }
 0xb45   : > { %v1566_v45 = vpop.xlane.xlu0 %1565 }
 0xb46   : > { %v1569_v28 = vmul.f32 %v1566_v45, %v3942_v11 }
 0xb48   : > { %v3109_v43 = vpop.eup %3108  ;;  %v4326_v58 = vsub.f32 %v4295_v39, %v1569_v28 }
 0xb49   : > { %v2369_v8 = vmul.f32 %v3109_v43, %v2347_v63  ;;  %vm2375_vm13 = vweird.f32 %v3109_v43 }
 0xb4a   : > { %vm2376_vm15 = vmor %vm2374_vm14, %vm2375_vm13 }
 0xb4b   : > { %v2370_v7 = vmul.f32 %v3109_v43, %v2369_v8 }
 0xb4d   : > { %v2371_v38 = vmul.f32 0.5, %v2370_v7 }
 0xb4f   : > { %v2372_v62 = vsub.f32 1.5, %v2371_v38 }
 0xb51   : > { %v2373_v14 = vmul.f32 %v3109_v43, %v2372_v62 }
 0xb53   : > { %v2377_v59 = vsel %vm2376_vm15, %v3109_v43, %v2373_v14 }
 0xb54   : > { %v2380_v9 = vmul.f32 %v2377_v59, %v2329_v44 }
 0xb56   : > { %v2386_v10 = vmul.f32 %v2992_v37, %v2380_v9  ;;  %v2996_v9 = vld [vmem:[%s3578_s3] ss:$0 sm:$0xff] }
 0xb58   : > { %v2392_v42 = vadd.f32 %v2993_v34, %v2386_v10  ;;  %v1575_v34 = vmul.f32 %v4326_v58, %v4326_v58 }
 0xb5a   : > { %2859 = vmatmul.msk.f32.gmra.mxu1 %vm740_vm2, %v2392_v42  ;;  %v1582_v31 = vsel %vm1395_vm9, %v1575_v34, 0.0 }
 0xba8   : > { %v2422_v22 = vpop.f32.mrf.mxu1 }
 0xba9   : > { %v2423_v1 = vadd.f32 %v2994_v19, %v2422_v22 }
 0xbab   : > { %v2431_v2 = vmax.f32 %v2423_v1, 0.0 }
 0xbad   : > { %2860 = vmatmul.msk.f32.vlgmr.msrb.gmra.mxu3 %vm1519_vm12, %v2431_v2 }
 0xbb6   : > { %v2425_v25 = vpop.f32.mrf.mxu1 }
 0xbb7   : > { %v2426_v27 = vadd.f32 %v2994_v19, %v2425_v25 }
 0xbb9   : > { %v2432_v12 = vmax.f32 %v2426_v27, 0.0 }
 0xbbb   : > { %2861 = vmatmul.msk.f32.gmra.mxu3 %vm1519_vm12, %v2432_v12 }
 0xbd7   : > { %v2428_v30 = vpop.f32.mrf.mxu1 }
 0xbd8   : > { %v2429_v41 = vadd.f32 %v2994_v19, %v2428_v30 }
 0xbda   : > { %v2433_v18 = vmax.f32 %v2429_v41, 0.0 }
 0xbdc   : > { %2862 = vmatmul.msk.f32.gmra.mxu3 %vm1519_vm12, %v2433_v18 }
 0xc30   : > { %v2463_v53 = vpop.f32.mrf.mxu3 }
 0xc31   : > { %v2464_v44 = vadd.f32 %v2995_v51, %v2463_v53 }
 0xc33   : > { %v2472_v50 = vadd.f32 %v2464_v44, %v2390_v36 }
 0xc35   : > { %v2475_v23 = vsel %vm740_vm2, %v2472_v50, 0.0 }
 0xc36   : > { %2476 = vadd.xlane.f32.xlu1 %v2475_v23 }
 0xc3e   : > { %1577 = vadd.xlane.f32.xlu1 %v1576_v49  ;;  %v2466_v52 = vpop.f32.mrf.mxu3 }
 0xc3f   : > { %v2467_v56 = vadd.f32 %v2995_v51, %v2466_v52 }
 0xc41   : > { %v2473_v61 = vadd.f32 %v2467_v56, %v2391_v5 }
 0xc43   : > { %v2478_v21 = vsel %vm740_vm2, %v2473_v61, 0.0 }
 0xc44   : > { %2479 = vadd.xlane.f32.xlu2 %v2478_v21 }
 0xc4c   : > { %1580 = vadd.xlane.f32.xlu2 %v1579_v33 }
 0xc5f   : > { %v2469_v35 = vpop.f32.mrf.mxu3 }
 0xc60   : > { %v2470_v37 = vadd.f32 %v2995_v51, %v2469_v35 }
 0xc62   : > { %v2474_v29 = vadd.f32 %v2470_v37, %v2392_v42  ;;  %v2997_v42 = vld [vmem:[%s3583_s5] ss:$0 sm:$0xff] }
 0xc64   : > { %v2481_v26 = vsel %vm1395_vm9, %v2474_v29, 0.0 }
 0xc65   : > { %2482 = vadd.xlane.f32.xlu0 %v2481_v26 }
 0xc6d   : > { %1583 = vadd.xlane.f32.xlu0 %v1582_v31 }
 0xca9   : > { %v2477_v60 = vpop.xlane.xlu1 %2476 }
 0xcaa   : > { %v2484_v48 = vmul.f32 %v2477_v60, %v3942_v11 }
 0xcac   : > { %v4333_v36 = vsub.f32 %v2472_v50, %v2484_v48 }
 0xcae   : > { %v2490_v32 = vmul.f32 %v4333_v36, %v4333_v36 }
 0xcb0   : > { %v2493_v39 = vsel %vm740_vm2, %v2490_v32, 0.0 }
 0xcb1   : > { %2494 = vadd.xlane.f32.xlu1 %v2493_v39  ;;  %v1578_v0 = vpop.xlane.xlu1 %1577 }
 0xcb2   : > { %v1585_v47 = vmul.f32 %v1578_v0, %v3942_v11 }
 0xcb4   : > { %v1588_v15 = vadd.f32 1e-05, %v1585_v47  ;;  %v2998_v47 = vld [vmem:[%s3578_s3] ss:$0 sm:$0xff] }
 0xcb6   : > { %3110 = vrsqrt.f32 %v1588_v15  ;;  %vm1597_vm1 = vweird.f32 %v1588_v15 }
 0xcb7   : > { %v2480_v24 = vpop.xlane.xlu2 %2479 }
 0xcb8   : > { %v2485_v3 = vmul.f32 %v2480_v24, %v3942_v11  ;;  %v2999_v24 = vld [vmem:[%s3583_s5] ss:$0 sm:$0xff] }
 0xcba   : > { %v4340_v4 = vsub.f32 %v2473_v61, %v2485_v3 }
 0xcbc   : > { %v3111_v5 = vpop.eup %3110  ;;  %v2491_v40 = vmul.f32 %v4340_v4, %v4340_v4 }
 0xcbd   : > { %v1592_v17 = vmul.f32 %v3111_v5, %v1588_v15  ;;  %vm1598_vm0 = vweird.f32 %v3111_v5 }
 0xcbe   : > { %v2496_v63 = vsel %vm740_vm2, %v2491_v40, 0.0  ;;  %vm1599_vm10 = vmor %vm1597_vm1, %vm1598_vm0 }
 0xcbf   : > { %v1593_v43 = vmul.f32 %v3111_v5, %v1592_v17  ;;  %2497 = vadd.xlane.f32.xlu2 %v2496_v63  ;;  %v1581_v8 = vpop.xlane.xlu2 %1580 }
 0xcc0   : > { %v1586_v7 = vmul.f32 %v1581_v8, %v3942_v11 }
 0xcc1   : > { %v1594_v38 = vmul.f32 0.5, %v1593_v43 }
 0xcc2   : > { %v1589_v62 = vadd.f32 1e-05, %v1586_v7 }
 0xcc3   : > { %v1595_v14 = vsub.f32 1.5, %v1594_v38 }
 0xcc4   : > { %3112 = vrsqrt.f32 %v1589_v62  ;;  %vm1607_vm12 = vweird.f32 %v1589_v62 }
 0xcc5   : > { %v1596_v59 = vmul.f32 %v3111_v5, %v1595_v14 }
 0xcc7   : > { %v1600_v10 = vsel %vm1599_vm10, %v3111_v5, %v1596_v59 }
 0xcc8   : > { %v1621_v19 = vmul.f32 %v1600_v10, %v1570_v13 }
 0xcca   : > { %v3113_v22 = vpop.eup %3112  ;;  %v1627_v1 = vmul.f32 %v2996_v9, %v1621_v19 }
 0xccb   : > { %v1602_v2 = vmul.f32 %v3113_v22, %v1589_v62  ;;  %vm1608_vm11 = vweird.f32 %v3113_v22 }
 0xccc   : > { %v1633_v25 = vadd.f32 %v2997_v42, %v1627_v1  ;;  %vm1609_vm3 = vmor %vm1607_vm12, %vm1608_vm11 }
 0xccd   : > { %v1603_v27 = vmul.f32 %v3113_v22, %v1602_v2 }
 0xcce   : > { %1636 = vst.msk [vmem:[%s4460_s18] sm:$0xff] %vm740_vm2, %v1633_v25 }
 0xccf   : > { %v1604_v12 = vmul.f32 0.5, %v1603_v27 }
 0xcd1   : > { %v1605_v30 = vsub.f32 1.5, %v1604_v12 }
 0xcd3   : > { %v1606_v41 = vmul.f32 %v3113_v22, %v1605_v30 }
 0xcd5   : > { %v1610_v18 = vsel %vm1609_vm3, %v3113_v22, %v1606_v41 }
 0xcd6   : > { %v1622_v51 = vmul.f32 %v1610_v18, %v4318_v57 }
 0xcd8   : > { %v1628_v20 = vmul.f32 %v2996_v9, %v1622_v51  ;;  %v2483_v53 = vpop.xlane.xlu0 %2482 }
 0xcd9   : > { %v2486_v55 = vmul.f32 %v2483_v53, %v3942_v11 }
 0xcda   : > { %v1634_v44 = vadd.f32 %v2997_v42, %v1628_v20 }
 0xcdb   : > { %v4354_v50 = vsub.f32 %v2474_v29, %v2486_v55 }
 0xcdc   : > { %1637 = vst.msk [vmem:[%s4460_s18 + $0x8] sm:$0xff] %vm740_vm2, %v1634_v44 }
 0xcdd   : > { %v2492_v13 = vmul.f32 %v4354_v50, %v4354_v50 }
 0xcdf   : > { %v2499_v23 = vsel %vm1395_vm9, %v2492_v13, 0.0 }
 0xce0   : > { %2500 = vadd.xlane.f32.xlu0 %v2499_v23  ;;  %v1584_v46 = vpop.xlane.xlu0 %1583 }
 0xce1   : > { %v1587_v16 = vmul.f32 %v1584_v46, %v3942_v11 }
 0xce3   : > { %v1590_v49 = vadd.f32 1e-05, %v1587_v16 }
 0xce5   : > { %3114 = vrsqrt.f32 %v1590_v49  ;;  %vm1617_vm5 = vweird.f32 %v1590_v49 }
 0xceb   : > { %v3115_v52 = vpop.eup %3114 }
 0xcec   : > { %v1612_v54 = vmul.f32 %v3115_v52, %v1590_v49  ;;  %vm1618_vm4 = vweird.f32 %v3115_v52 }
 0xced   : > { %vm1619_vm6 = vmor %vm1617_vm5, %vm1618_vm4 }
 0xcee   : > { %v1613_v56 = vmul.f32 %v3115_v52, %v1612_v54 }
 0xcf0   : > { %v1614_v61 = vmul.f32 0.5, %v1613_v56 }
 0xcf2   : > { %v1615_v57 = vsub.f32 1.5, %v1614_v61 }
 0xcf4   : > { %v1616_v21 = vmul.f32 %v3115_v52, %v1615_v57 }
 0xcf6   : > { %v1620_v6 = vsel %vm1619_vm6, %v3115_v52, %v1616_v21 }
 0xcf7   : > { %v1623_v33 = vmul.f32 %v1620_v6, %v4326_v58 }
 0xcf9   : > { %v1629_v45 = vmul.f32 %v2996_v9, %v1623_v33 }
 0xcfb   : > { %v1635_v35 = vadd.f32 %v2997_v42, %v1629_v45 }
 0xcfd   : > { %1638 = vst.msk [vmem:[%s4460_s18 + $0x10] sm:$0x7] %vm1395_vm9, %v1635_v35 }
 0xd24   : > { %v2495_v28 = vpop.xlane.xlu1 %2494 }
 0xd25   : > { %v2502_v37 = vmul.f32 %v2495_v28, %v3942_v11 }
 0xd27   : > { %v2505_v29 = vadd.f32 1e-05, %v2502_v37 }
 0xd29   : > { %3116 = vrsqrt.f32 %v2505_v29  ;;  %vm2514_vm8 = vweird.f32 %v2505_v29 }
 0xd2f   : > { %v3117_v26 = vpop.eup %3116 }
 0xd30   : > { %v2509_v34 = vmul.f32 %v3117_v26, %v2505_v29  ;;  %vm2515_vm7 = vweird.f32 %v3117_v26 }
 0xd31   : > { %vm2516_vm13 = vmor %vm2514_vm8, %vm2515_vm7 }
 0xd32   : > { %v2510_v31 = vmul.f32 %v3117_v26, %v2509_v34  ;;  %v2498_v60 = vpop.xlane.xlu2 %2497 }
 0xd33   : > { %v2503_v58 = vmul.f32 %v2498_v60, %v3942_v11 }
 0xd34   : > { %v2511_v48 = vmul.f32 0.5, %v2510_v31 }
 0xd35   : > { %v2506_v32 = vadd.f32 1e-05, %v2503_v58 }
 0xd36   : > { %v2512_v39 = vsub.f32 1.5, %v2511_v48 }
 0xd37   : > { %3118 = vrsqrt.f32 %v2506_v32  ;;  %vm2524_vm15 = vweird.f32 %v2506_v32 }
 0xd38   : > { %v2513_v0 = vmul.f32 %v3117_v26, %v2512_v39 }
 0xd3a   : > { %v2517_v15 = vsel %vm2516_vm13, %v3117_v26, %v2513_v0 }
 0xd3b   : > { %v2538_v3 = vmul.f32 %v2517_v15, %v4333_v36 }
 0xd3d   : > { %v3119_v5 = vpop.eup %3118  ;;  %v2544_v40 = vmul.f32 %v2998_v47, %v2538_v3 }
 0xd3e   : > { %v2519_v17 = vmul.f32 %v3119_v5, %v2506_v32  ;;  %vm2525_vm14 = vweird.f32 %v3119_v5 }
 0xd3f   : > { %v2550_v63 = vadd.f32 %v2999_v24, %v2544_v40  ;;  %vm2526_vm0 = vmor %vm2524_vm15, %vm2525_vm14 }
 0xd40   : > { %v2520_v43 = vmul.f32 %v3119_v5, %v2519_v17 }
 0xd41   : > { %2863 = vst.msk [vmem:[%s4460_s18 + $0x18] sm:$0xff] %vm740_vm2, %v2550_v63 }
 0xd42   : > { %v2521_v8 = vmul.f32 0.5, %v2520_v43 }
 0xd44   : > { %v2522_v7 = vsub.f32 1.5, %v2521_v8 }
 0xd46   : > { %v2523_v38 = vmul.f32 %v3119_v5, %v2522_v7 }
 0xd48   : > { %v2527_v62 = vsel %vm2526_vm0, %v3119_v5, %v2523_v38 }
 0xd49   : > { %v2539_v14 = vmul.f32 %v2527_v62, %v4340_v4 }
 0xd4b   : > { %v2545_v36 = vmul.f32 %v2998_v47, %v2539_v14 }
 0xd4d   : > { %v2551_v59 = vadd.f32 %v2999_v24, %v2545_v36 }
 0xd4f   : > { %2864 = vst.msk [vmem:[%s4460_s18 + $0x20] sm:$0xff] %vm740_vm2, %v2551_v59 }
 0xd53   : > { %v2501_v9 = vpop.xlane.xlu0 %2500 }
 0xd54   : > { %v2504_v10 = vmul.f32 %v2501_v9, %v3942_v11 }
 0xd56   : > { %v2507_v42 = vadd.f32 1e-05, %v2504_v10 }
 0xd58   : > { %3120 = vrsqrt.f32 %v2507_v42  ;;  %vm2534_vm10 = vweird.f32 %v2507_v42 }
 0xd5e   : > { %v3121_v19 = vpop.eup %3120 }
 0xd5f   : > { %v2529_v22 = vmul.f32 %v3121_v19, %v2507_v42  ;;  %vm2535_vm1 = vweird.f32 %v3121_v19 }
 0xd60   : > { %vm2536_vm11 = vmor %vm2534_vm10, %vm2535_vm1 }
 0xd61   : > { %v2530_v1 = vmul.f32 %v3121_v19, %v2529_v22 }
 0xd63   : > { %v2531_v2 = vmul.f32 0.5, %v2530_v1 }
 0xd65   : > { %v2532_v25 = vsub.f32 1.5, %v2531_v2 }
 0xd67   : > { %v2533_v27 = vmul.f32 %v3121_v19, %v2532_v25 }
 0xd69   : > { %v2537_v4 = vsel %vm2536_vm11, %v3121_v19, %v2533_v27 }
 0xd6a   : > { %v2540_v12 = vmul.f32 %v2537_v4, %v4354_v50 }
 0xd6c   : > { %v2546_v30 = vmul.f32 %v2998_v47, %v2540_v12 }
 0xd6e   : > { %v2552_v41 = vadd.f32 %v2999_v24, %v2546_v30 }
 0xd70   : > { %2865 = vst.msk [vmem:[%s4460_s18 + $0x28] sm:$0x7] %vm1395_vm9, %v2552_v41 }
 0xd71 PF: > { %s4466_s28 = sld [smem:[#allocation13_spill]]  ;;  %s4469_s25 = smov %s3278_s26 }
 0xd72   : > { %s4467_s1 = sld [smem:[#allocation12_spill]] }
 0xd73   : > { %s4468_s27 = sld [smem:[#allocation14_spill]] }
 0xd77   : > { %p29_p11 = scmp.ge.s32.totalorder %s4466_s28, 4  }
 0xd78   : > { %s4470_s26 = smov %s4467_s1 }
 0xd79   :  { %31 = sbr.rel (!%p29_p11) target bundleno = 19 (0x13), region = 174 }
 0xd7e   :  { %2567 = vsyncpa [#allocation3], 1 }
 0xd7f   :  { %2569 = vsyncpa [#allocation3 + $0x1], 1 }
 0xd80   :  { %2570 = vsyncpa [#allocation5], 1 }
 0xd81   :  { %2572 = vsyncpa [#allocation5 + $0x1], 1 }
 0xd82   :  { %2573 = vsyncpa [#allocation8], 1 }
 0xd83   :  { %2575 = vsyncpa [#allocation8 + $0x1], 1 }

// kernel: _lambda_.7
= control target key start
LH: loop header
LB: loop body
LE: loop exit
PB: predicated region body
PF: predicated region fallthrough
CT: control target
= control target key end

     0   :  { %s5037_s0 = inlined_call_operand.vmem [shape: f32[2,19,32], index: 0, kind: input, shape index: {}]   ;;  %s5038_s1 = inlined_call_operand.vmem [shape: f32[2,32,96], index: 1, kind: input, shape index: {}]   ;;  %s5039_s2 = inlined_call_operand.vmem [shape: f32[2,8,96], index: 2, kind: input, shape index: {}]   ;;  %s5040_s3 = inlined_call_operand.hbm [shape: f32[2,32,32], index: 3, kind: input, shape index: {}]   ;;  %s5041_s4 = inlined_call_operand.vmem [shape: f32[2,1,32], index: 4, kind: input, shape index: {}, may-alias: {4,6,12,14,18,20}]   ;;  %s5042_s5 = inlined_call_operand.vmem [shape: f32[2,1,32], index: 5, kind: input, shape index: {}, may-alias: {5,13,19}]   ;;  %s5043_s6 = inlined_call_operand.vmem [shape: f32[2,1,32], index: 6, kind: input, shape index: {}, may-alias: {4,6,12,14,18,20}]   ;;  %s5044_s7 = inlined_call_operand.vmem [shape: f32[2,32,32], index: 7, kind: input, shape index: {}]   ;;  %s5045_s8 = inlined_call_operand.vmem [shape: f32[2,8,32], index: 8, kind: input, shape index: {}]   ;;  %s5046_s9 = inlined_call_operand.vmem [shape: f32[2,32,64], index: 9, kind: input, shape index: {}]   ;;  %s5047_s10 = inlined_call_operand.hbm [shape: f32[2,19,64], index: 10, kind: input, shape index: {}]   ;;  %s5048_s11 = inlined_call_operand.hbm [shape: f32[2,32,32], index: 11, kind: input, shape index: {}]   ;;  %s5049_s12 = inlined_call_operand.vmem [shape: f32[2,1,32], index: 12, kind: input, shape index: {}, may-alias: {4,6,12,14,18,20}]   ;;  %s5050_s13 = inlined_call_operand.vmem [shape: f32[2,1,32], index: 13, kind: input, shape index: {}, may-alias: {5,13,19}]   ;;  %s5051_s14 = inlined_call_operand.vmem [shape: f32[2,1,32], index: 14, kind: input, shape index: {}, may-alias: {4,6,12,14,18,20}]   ;;  %s5052_s15 = inlined_call_operand.hbm [shape: f32[2,32,64], index: 15, kind: input, shape index: {}]   ;;  %s5053_s16 = inlined_call_operand.vmem [shape: f32[2,1,64], index: 16, kind: input, shape index: {}]   ;;  %s5054_s17 = inlined_call_operand.vmem [shape: f32[2,64,32], index: 17, kind: input, shape index: {}]   ;;  %s5055_s18 = inlined_call_operand.vmem [shape: f32[2,1,32], index: 18, kind: input, shape index: {}, may-alias: {4,6,12,14,18,20}]   ;;  %s5056_s19 = inlined_call_operand.vmem [shape: f32[2,1,32], index: 19, kind: input, shape index: {}, may-alias: {5,13,19}]   ;;  %s5057_s20 = inlined_call_operand.vmem [shape: f32[2,1,32], index: 20, kind: input, shape index: {}, may-alias: {4,6,12,14,18,20}]   ;;  %s5058_s21 = inlined_call_operand.vmem [shape: f32[1,32], index: 21, kind: input, shape index: {}]   ;;  %s5059_s22 = inlined_call_operand.vmem [shape: f32[1,32], index: 22, kind: input, shape index: {}]   ;;  %s5060_s23 = inlined_call_operand.hbm [shape: f32[32,8], index: 23, kind: input, shape index: {}]   ;;  %s5061_s24 = inlined_call_operand.vmem [shape: f32[1,8], index: 24, kind: input, shape index: {}]   ;;  %s5062_s25 = inlined_call_operand.hbm [shape: f32[2,8,8], index: 25, kind: output, shape index: {}]  }
   0x1   :  { %5094 = sst [smem:[#allocation26_spill]] %s5037_s0 }
   0x2   :  { %5095 = sst [smem:[#allocation27_spill]] %s5038_s1 }
   0x3   :  { %5096 = sst [smem:[#allocation28_spill]] %s5039_s2 }
   0x4   :  { %5097 = sst [smem:[#allocation29_spill]] %s5040_s3 }
   0x5   :  { %5098 = sst [smem:[#allocation30_spill]] %s5041_s4 }
   0x6   :  { %5099 = sst [smem:[#allocation31_spill]] %s5042_s5 }
   0x7   :  { %5100 = sst [smem:[#allocation32_spill]] %s5043_s6 }
   0x8   :  { %5101 = sst [smem:[#allocation33_spill]] %s5044_s7 }
   0x9   :  { %5102 = sst [smem:[#allocation34_spill]] %s5045_s8 }
   0xa   :  { %5103 = sst [smem:[#allocation35_spill]] %s5046_s9 }
   0xb   :  { %5104 = sst [smem:[#allocation36_spill]] %s5047_s10 }
   0xc   :  { %5105 = sst [smem:[#allocation37_spill]] %s5048_s11 }
   0xd   :  { %5106 = sst [smem:[#allocation38_spill]] %s5049_s12 }
   0xe   :  { %5107 = sst [smem:[#allocation39_spill]] %s5050_s13 }
   0xf   :  { %5108 = sst [smem:[#allocation40_spill]] %s5051_s14 }
  0x10   :  { %5109 = sst [smem:[#allocation41_spill]] %s5052_s15 }
  0x11   :  { %5110 = sst [smem:[#allocation42_spill]] %s5053_s16 }
  0x12   :  { %5111 = sst [smem:[#allocation43_spill]] %s5054_s17 }
  0x13   :  { %5112 = sst [smem:[#allocation44_spill]] %s5055_s18 }
  0x14   :  { %5113 = sst [smem:[#allocation45_spill]] %s5056_s19 }
  0x15   :  { %5114 = sst [smem:[#allocation46_spill]] %s5057_s20 }
  0x16   :  { %5115 = sst [smem:[#allocation47_spill]] %s5058_s21 }
  0x17   :  { %5116 = sst [smem:[#allocation48_spill]] %s5059_s22 }
  0x18   :  { %5117 = sst [smem:[#allocation49_spill]] %s5060_s23 }
  0x19   :  { %5118 = sst [smem:[#allocation50_spill]] %s5061_s24 }
  0x1a   :  { %5119 = sst [smem:[#allocation51_spill]] %s5062_s25 }
  0x1b   :  { %30 = vsyncpa [#allocation4], 0 }
  0x1c   :  { %32 = vsyncpa [#allocation4 + $0x1], 0 }
  0x1d   :  { %33 = vsyncpa [#allocation7], 0 }
  0x1e   :  { %35 = vsyncpa [#allocation7 + $0x1], 0 }
  0x1f   :  { %36 = vsyncpa [#allocation10], 0 }
  0x20   :  { %38 = vsyncpa [#allocation10 + $0x1], 0 }
  0x21   :  { %39 = vsyncpa [#allocation5], 0  ;;  %s4272_s29 = smov 0   ;;  %s4274_s2 = smov 0  }
  0x22   :  { %s4276_s6 = smov 0   ;;  %s4278_s30 = smov 0  }
  0x23 LB: > { %5120 = sst [smem:[#allocation18_spill]] %s4111_s2  ;;  %s4291_s7 = sadd.s32 4294967295, %s4119_s30   ;;  %s4119_s30 = sphi %s4278_s30, %s5183_s30   ;;  %s4115_s6 = sphi %s4276_s6, %s5186_s6   ;;  %s4111_s2 = sphi %s4274_s2, %s5185_s2   ;;  %s4107_s29 = sphi %s4272_s29, %s5184_s29  }
  0x24   : > { %5121 = sst [smem:[#allocation19_spill]] %s4115_s6  ;;  %p138_p0 = scmp.ne.s32.totalorder %s4111_s2, %s4107_s29 }
  0x25   : > { %p139_p1 = scmp.eq.s32.totalorder %s4291_s7, 0  ;;  %p3512_p2 = scmp.ge.s32.totalorder %s4119_s30, 1 }
  0x26   : > { %p696_p3 = scmp.lt.s32.totalorder %s4119_s30, 3  ;;  %p3513_p4 = scmp.ne.s32.totalorder %s4291_s7, 0 }
  0x27   : > { %p4300_p5 = por %p139_p1, %p138_p0  ;;  %s5123_s23 = sld [smem:[#allocation49_spill]] }
  0x28   : > { %p4307_p6 = pnand %p3512_p2, %p696_p3  ;;  %s4121_s4 = smov [#allocation11]  }
  0x29   : > { %s718_s28 = sshll.u32 %s4121_s4, 4  ;;  %s4316_s9 = sadd.s32 1, %s4119_s30   ;;  %s719_s28 = int_to_ptr.vmem [resolvable:$true] %s718_s28 }
  0x2a   : > { %p3668_p7 = pneg %p4307_p6  ;;  %5125 = sst [smem:[#allocation20_spill]] %s4316_s9 }
  0x2b   : > { %s5066_s5 = smov 128   ;;  %s5068_s0 = smov 8  }
  0x2c   : > { %p3669_p8 = pnand %p3668_p7, %p139_p1  ;;  %s122_s29 = ssub.s32 %s4119_s30, %s4316_s9 }
  0x2d   : > { %s716_s8 = sshll.u32 %s5123_s23, 4  ;;  %s125_s26 = sadd.s32 1, %s4115_s6  ;;  %s717_s8 = int_to_ptr.hbm [resolvable:$true] %s716_s8 }
  0x2e   : > { %3671 = dma.hbm_to_vmem [thread:$0]  (!%p3669_p8), %s717_s8, 512, %s719_s28, [#allocation10], %s5066_s5, %s5066_s5, %s5068_s0  }
  0x2f   : > { %p123_p9 = scmp.eq.s32.totalorder %s122_s29, 0  ;;  %p132_p10 = scmp.ne.s32.totalorder %s4115_s6, %s4111_s2 }
  0x30   : > { %p133_p11 = scmp.eq.s32.totalorder %s4119_s30, 0  ;;  %p3686_p12 = scmp.lt.s32.totalorder %s4119_s30, 2 }
  0x31   : > { %s4329_s1 = scalar_select %p123_p9, %s4115_s6, %s125_s26  }
  0x32   : > { %p134_p13 = por %p133_p11, %p132_p10  ;;  %s4332_s4 = sand.u32 1, %s4115_s6  }
  0x33   : > { %5126 = sst [smem:[#allocation21_spill]] %s4329_s1  ;;  %s5073_s23 = sand.u32 1, %s4119_s30  }
  0x34   : > { %s3649_s25 = smul.u32 24, %s4332_s4  ;;  %p4336_p0 = pnand %p3686_p12, %p134_p13 }
  0x35   : > { %s3650_s8 = smul.u32 24, %s4119_s30  ;;  %s5128_s10 = sld [smem:[#allocation36_spill]] }
  0x36   : > { %s817_s28 = scalar_lea.vmem [#allocation6], %s3649_s25  ;;  %s4346_s6 = scalar_lea.sflag [#allocation7], %s5073_s23 }
  0x37   : > { %s825_s29 = sshll.u32 %s817_s28, 4  ;;  %p3925_p3 = pneg %p4336_p0  ;;  %s826_s29 = int_to_ptr.vmem [resolvable:$true] %s825_s29 }
  0x3b   : > { %s822_s26 = scalar_lea.hbm %s5128_s10, %s3650_s8  ;;  %s3928_s5 = scalar_lea.hbm %s5128_s10, 48 }
  0x3c   : > { %s823_s1 = sshll.u32 %s822_s26, 4  ;;  %s824_s1 = int_to_ptr.hbm [resolvable:$true] %s823_s1 }
  0x3d   : > { %s3921_s9 = sshra.s32 %s824_s1, 4  ;;  %s3922_s9 = int_to_ptr.hbm [resolvable:$true] %s3921_s9 }
  0x3e   : > { %s3923_s22 = scalar_lea.hbm %s3922_s9, 24  ;;  %p3929_p9 = scmp.lt.s32.totalorder %s3922_s9, %s5128_s10 }
  0x3f   : > { %p3924_p2 = scmp.ne.s32.totalorder %s3922_s9, %s3923_s22  ;;  %p3930_p10 = scmp.lt.s32.totalorder %s3928_s5, %s3923_s22 }
  0x41   : > { %p3926_p7 = pnand %p3925_p3, %p3924_p2  ;;  %p3931_p11 = por %p3930_p10, %p3929_p9 }
  0x43   : > { %p3927_p8 = pneg %p3926_p7 }
  0x45   : > { %p3932_p12 = pnand %p3931_p11, %p3927_p8 }
  0x47   : > { %3935 = shalt.err (!%p3932_p12)
}
  0x48   : > { %s5129_s26 = smov 8   ;;  %s5130_s23 = smov 128  }
  0x49   : > { %3678 = dma.hbm_to_vmem [thread:$0]  (!%p4336_p0), %s824_s1, 384, %s826_s29, %s4346_s6, %s5130_s23, %s5130_s23, %s5129_s26  }
  0x4a   : > { %s4366_s25 = sshll.u32 %s4332_s4, 5  ;;  %s4369_s28 = sshll.u32 %s4119_s30, 5 }
  0x4b   : > { %s5131_s5 = sld [smem:[#allocation29_spill]]  ;;  %s754_s10 = scalar_lea.vmem [#allocation3], %s4366_s25 }
  0x4c   : > { %s762_s21 = sshll.u32 %s754_s10, 4  ;;  %s751_s20 = scalar_lea.sflag [#allocation4], %s4332_s4  ;;  %s763_s21 = int_to_ptr.vmem [resolvable:$true] %s762_s21 }
  0x51   : > { %s759_s0 = scalar_lea.hbm %s5131_s5, %s4369_s28  ;;  %s3958_s18 = scalar_lea.hbm %s5131_s5, 64 }
  0x52   : > { %s760_s8 = sshll.u32 %s759_s0, 4  ;;  %s761_s8 = int_to_ptr.hbm [resolvable:$true] %s760_s8 }
  0x53   : > { %s3951_s19 = sshra.s32 %s761_s8, 4  ;;  %s3952_s19 = int_to_ptr.hbm [resolvable:$true] %s3951_s19 }
  0x54   : > { %s3953_s17 = scalar_lea.hbm %s3952_s19, 32  ;;  %p3959_p8 = scmp.lt.s32.totalorder %s3952_s19, %s5131_s5 }
  0x55   : > { %p3954_p13 = scmp.ne.s32.totalorder %s3952_s19, %s3953_s17  ;;  %p3960_p9 = scmp.lt.s32.totalorder %s3958_s18, %s3953_s17 }
  0x57   : > { %p3956_p2 = pnand %p3954_p13, %p3925_p3  ;;  %p3961_p10 = por %p3960_p9, %p3959_p8 }
  0x59   : > { %p3957_p7 = pneg %p3956_p2 }
  0x5b   : > { %p3962_p11 = pnand %p3961_p10, %p3957_p7 }
  0x5d   : > { %3965 = shalt.err (!%p3962_p11)
}
  0x5e   : > { %3675 = dma.hbm_to_vmem [thread:$0]  (!%p4336_p0), %s761_s8, 512, %s763_s21, %s751_s20, %s5130_s23, %s5130_s23, %s5129_s26  }
  0x5f   : > { %s5132_s11 = sld [smem:[#allocation37_spill]]  ;;  %s839_s29 = scalar_lea.vmem [#allocation8], %s4366_s25 }
  0x60   : > { %s847_s19 = sshll.u32 %s839_s29, 4  ;;  %s848_s19 = int_to_ptr.vmem [resolvable:$true] %s847_s19 }
  0x65   : > { %s844_s0 = scalar_lea.hbm %s5132_s11, %s4369_s28  ;;  %s3988_s20 = scalar_lea.hbm %s5132_s11, 64 }
  0x66   : > { %s845_s1 = sshll.u32 %s844_s0, 4  ;;  %s846_s1 = int_to_ptr.hbm [resolvable:$true] %s845_s1 }
  0x67   : > { %s3981_s17 = sshra.s32 %s846_s1, 4  ;;  %s3982_s17 = int_to_ptr.hbm [resolvable:$true] %s3981_s17 }
  0x68   : > { %s3983_s18 = scalar_lea.hbm %s3982_s17, 32  ;;  %p3989_p7 = scmp.lt.s32.totalorder %s3982_s17, %s5132_s11 }
  0x69   : > { %p3984_p12 = scmp.ne.s32.totalorder %s3982_s17, %s3983_s18  ;;  %p3990_p8 = scmp.lt.s32.totalorder %s3988_s20, %s3983_s18 }
  0x6b   : > { %p3986_p13 = pnand %p3984_p12, %p3925_p3  ;;  %p3991_p9 = por %p3990_p8, %p3989_p7 }
  0x6d   : > { %p3987_p2 = pneg %p3986_p13 }
  0x6f   : > { %p3992_p10 = pnand %p3991_p9, %p3987_p2 }
  0x71   : > { %3995 = shalt.err (!%p3992_p10)
}
  0x72   : > { %3681 = dma.hbm_to_vmem [thread:$0]  (!%p4336_p0), %s846_s1, 512, %s848_s19, %s4346_s6, %s5130_s23, %s5130_s23, %s5129_s26  }
  0x73   : > { %s5133_s15 = sld [smem:[#allocation41_spill]]  ;;  %s879_s17 = scalar_lea.vmem [#allocation9], %s4366_s25 }
  0x74   : > { %s887_s18 = sshll.u32 %s879_s17, 4  ;;  %s5134_s22 = sand.u32 1, %s4119_s30   ;;  %s888_s18 = int_to_ptr.vmem [resolvable:$true] %s887_s18 }
  0x75   : > { %s876_s9 = scalar_lea.sflag [#allocation10], %s5134_s22 }
  0x79   : > { %s884_s0 = scalar_lea.hbm %s5133_s15, %s4369_s28  ;;  %s4018_s19 = scalar_lea.hbm %s5133_s15, 64 }
  0x7a   : > { %s885_s29 = sshll.u32 %s884_s0, 4  ;;  %s886_s29 = int_to_ptr.hbm [resolvable:$true] %s885_s29 }
  0x7b   : > { %s4011_s20 = sshra.s32 %s886_s29, 4  ;;  %s4012_s20 = int_to_ptr.hbm [resolvable:$true] %s4011_s20 }
  0x7c   : > { %s4013_s21 = scalar_lea.hbm %s4012_s20, 32  ;;  %p4019_p2 = scmp.lt.s32.totalorder %s4012_s20, %s5133_s15 }
  0x7d   : > { %p4014_p11 = scmp.ne.s32.totalorder %s4012_s20, %s4013_s21  ;;  %p4020_p7 = scmp.lt.s32.totalorder %s4018_s19, %s4013_s21 }
  0x7f   : > { %p4016_p12 = pnand %p4014_p11, %p3925_p3  ;;  %p4021_p8 = por %p4020_p7, %p4019_p2 }
  0x81   : > { %p4017_p13 = pneg %p4016_p12 }
  0x83   : > { %p4022_p9 = pnand %p4021_p8, %p4017_p13 }
  0x85   : > { %4025 = shalt.err (!%p4022_p9)
}
  0x86   : > { %3684 = dma.hbm_to_vmem [thread:$0]  (!%p4336_p0), %s886_s29, 512, %s888_s18, %s876_s9, %s5130_s23, %s5130_s23, %s5129_s26  }
  0x87   : > { %931 = sbr.rel (%p4307_p6) target bundleno = 7278 (0x1c6e), region = 120 }
  0x8c   : > { %s933_s30 = sand.u32 1, %s4111_s2  }
  0x8d   : > { %s3526_s25 = sshll.u32 %s933_s30, 5  ;;  %s934_s10 = scalar_lea.sflag [#allocation4], %s933_s30 }
  0x8e   : > { %s4435_s4 = scalar_lea.vmem [#allocation3], %s3526_s25 }
  0x8f   : > { %4086 = dma.done.wait (%p4300_p5), %s934_s10, 512  }
  0x90   : > { %4088 = vsyncadd (%p4300_p5), %s934_s10, 4294966784  ;;  %s943_s24 = sand.u32 1, %s4291_s7   ;;  %s3651_s0 = smul.u32 24, %s933_s30 }
  0x91   : > { %s944_s23 = scalar_lea.sflag [#allocation7], %s943_s24 }
  0x92   : > { %s4442_s26 = scalar_lea.vmem [#allocation6], %s3651_s0 }
  0x93   : > { %4090 = dma.done.wait (%p4300_p5), %s944_s23, 896  }
  0x94   : > { %4092 = vsyncadd (%p4300_p5), %s944_s23, 4294966400  ;;  %s4448_s27 = scalar_lea.vmem [#allocation8], %s3526_s25  ;;  %s964_s29 = scalar_lea.sflag [#allocation10], %s943_s24 }
  0x95   : > { %5135 = sst [smem:[#allocation22_spill]] %s4448_s27  ;;  %s4450_s17 = scalar_lea.vmem [#allocation9], %s3526_s25 }
  0x96   : > { %5136 = sst [smem:[#allocation23_spill]] %s4450_s17 }
  0x97   : > { %4094 = dma.done.wait (%p4300_p5), %s964_s29, 512  }
  0x98   : > { %4096 = vsyncadd (%p4300_p5), %s964_s29, 4294966784 }
  0x99   : > { %4098 = dma.done.wait (%p139_p1), [#allocation10], 512  }
  0x9a   : > { %4100 = vsyncadd (%p139_p1), [#allocation10], 4294966784  ;;  %p1108_p6 = scmp.lt.s32.totalorder %s4291_s7, 1  ;;  %s5137_s6 = sld [smem:[#allocation27_spill]] }
  0x9b   : > { %s5138_s28 = sld [smem:[#allocation28_spill]] }
  0x9c   : > { %s1109_s18 = scalar_select %p1108_p6, %s4291_s7, 1 }
  0x9d   : > { %s5139_s10 = sld [smem:[#allocation30_spill]] }
  0x9e   : > { %s3645_s22 = sshll.u32 %s1109_s18, 5  ;;  %s3532_s9 = sshll.u32 %s1109_s18, 3 }
  0x9f   : > { %s5140_s29 = sld [smem:[#allocation31_spill]] }
  0xa0   : > { %s4465_s1 = scalar_lea.vmem %s5137_s6, %s3645_s22  ;;  %s5142_s20 = sld [smem:[#allocation32_spill]] }
  0xa1   : > { %s4470_s8 = scalar_lea.vmem %s5138_s28, %s3532_s9  ;;  %s5143_s19 = sld [smem:[#allocation33_spill]] }
  0xa2   : > { %s5144_s30 = sld [smem:[#allocation34_spill]] }
  0xa3   : > { %s4475_s24 = scalar_lea.vmem %s5139_s10, %s1109_s18  ;;  %s5145_s0 = sld [smem:[#allocation35_spill]] }
  0xa4   : > { %s5146_s12 = sld [smem:[#allocation38_spill]] }
  0xa5   : > { %s4480_s5 = scalar_lea.vmem %s5140_s29, %s1109_s18  ;;  %s5147_s13 = sld [smem:[#allocation39_spill]] }
  0xa6   : > { %5141 = sst [smem:[#allocation24_spill]] %s4480_s5  ;;  %s4485_s21 = scalar_lea.vmem %s5142_s20, %s1109_s18 }
  0xa7   : > { %s4490_s3 = scalar_lea.vmem %s5143_s19, %s3645_s22  ;;  %s5148_s14 = sld [smem:[#allocation40_spill]] }
  0xa8   : > { %s4495_s25 = scalar_lea.vmem %s5144_s30, %s3532_s9  ;;  %s5150_s16 = sld [smem:[#allocation42_spill]] }
  0xa9   : > { %s4500_s23 = scalar_lea.vmem %s5145_s0, %s3645_s22  ;;  %s3648_s22 = sshll.u32 %s1109_s18, 6 }
  0xaa   : > { %s4505_s11 = scalar_lea.vmem %s5146_s12, %s1109_s18  ;;  %s5151_s10 = sld [smem:[#allocation44_spill]] }
  0xab   : > { %s4510_s2 = scalar_lea.vmem %s5147_s13, %s1109_s18  ;;  %s5152_s20 = sld [smem:[#allocation43_spill]] }
  0xac   : > { %s5153_s19 = sld [smem:[#allocation45_spill]] }
  0xad   : > { %s4515_s17 = scalar_lea.vmem %s5148_s14, %s1109_s18  ;;  %s5154_s28 = sld [smem:[#allocation46_spill]] }
  0xae   : > { %5149 = sst [smem:[#allocation25_spill]] %s4515_s17  ;;  %s4520_s27 = scalar_lea.vmem %s5150_s16, %s1109_s18 }
  0xaf   : > { %1169 = sbr.rel (%p3513_p4) target bundleno = 183 (0xb7), region = 144 }
  0xb0   : > { %s4525_s0 = scalar_lea.vmem %s5151_s10, %s1109_s18 }
  0xb1   : > { %s4530_s12 = scalar_lea.vmem %s5152_s20, %s3648_s22 }
  0xb2   : > { %s4535_s14 = scalar_lea.vmem %s5153_s19, %s1109_s18 }
  0xb3   : > { %s4540_s16 = scalar_lea.vmem %s5154_s28, %s1109_s18 }
  0xb4   : > { %vm1170_vm0 = vcmask 261120   ;;  %v4124_v0 = vmov 0.0  }
  0xb5   : > { %1171 = vst.msk [vmem:[#allocation2] sm:$0xff] %vm1170_vm0, %v4124_v0 }
  0xb6   : > { %1172 = vst.msk [vmem:[#allocation2 + $0x8] sm:$0xff] %vm1170_vm0, %v4124_v0 }
  0xb7 PF: > { %v1180_v1 = vld [vmem:[%s4465_s1 + $0x18] sm:$0xff]  ;;  %v1179_v2 = vld [vmem:[%s4465_s1 + $0x10] sm:$0xff]  ;;  %v1178_v3 = vld [vmem:[%s4465_s1 + $0x8] sm:$0xff]  ;;  %vm1182_vm1 = vcmask 261120   ;;  %s4125_s13 = smov 72   ;;  %s4126_s18 = smov 120  }
  0xb8   : > { %1198 = vmatpush.msra.mxu0 %v1180_v1  ;;  %v1177_v4 = vld [vmem:[%s4465_s1] sm:$0xff]  ;;  %s4127_s17 = smov 96   ;;  %s4128_s22 = smov 112   ;;  %vm1209_vm2 = vcmask 64512   ;;  %vm1483_vm3 = vcmask 130048   ;;  %vm1485_vm4 = vcmask 195584  }
  0xb9   : > { %v1181_v6 = vld [vmem:[%s4470_s8] sm:$0xff]  ;;  %s4129_s30 = smov 80   ;;  %s5092_s5 = smov 88   ;;  %vm1661_vm9 = vcmask 154624   ;;  %vm1684_vm10 = vcmask 1042432   ;;  %vm2073_vm14 = vcmask 523264  }
  0xba   : > { %1199 = vmatpush.msra.mxu0 %v1179_v2  ;;  %s5090_s10 = smov 104   ;;  %s5083_s29 = smov 64  }
  0xbb   : > { %s5082_s15 = smov 40   ;;  %s5081_s20 = smov 56  }
  0xbc   : > { %1200 = vmatpush.msra.mxu0 %v1178_v3  ;;  %v4548_v5 = vld [vmem:[#allocation2] sm:$0xff]  ;;  %s5080_s6 = smov 48   ;;  %s5084_s19 = smov 16  }
  0xbd   : > { %s5088_s9 = smov 8   ;;  %s5086_s28 = smov 24  }
  0xbe   : > { %1201 = vmatpush.msra.mxu0 %v1177_v4  ;;  %v1490_v4 = vld [vmem:[%s4435_s4 + $0x18] sm:$0xff]  ;;  %p3586_p1 = scmp.ne.s32.totalorder %s4291_s7, 1 }
  0xbf   : > { %3541 = vmatmul.msk.f32.vlgmr.msra.gmra.mxu0 %vm1182_vm1, %v4548_v5 }
 0x13c   : > { %v1203_v7 = vpop.f32.mrf.mxu0 }
 0x13d   : > { %v4553_v8 = vadd.f32 %v1203_v7, %v1181_v6  ;;  %v1489_v6 = vld [vmem:[%s4435_s4 + $0x10] sm:$0xff]  ;;  %v1488_v7 = vld [vmem:[%s4435_s4 + $0x8] sm:$0xff] }
 0x13f   : > { %1406 = vrot.lane.b32.xlu2 %v4553_v8, %s4125_s13  ;;  %1272 = vrot.lane.b32.xlu1 %v4553_v8, %s4126_s18 }
 0x140   : > { %1207 = vrot.lane.b32.xlu0 %v4553_v8, %s4127_s17 }
 0x147   : > { %1338 = vrot.lane.b32.xlu2 %v4553_v8, %s4128_s22  ;;  %1340 = vrot.lane.b32.xlu1 %v4553_v8, %s4129_s30 }
 0x148   : > { %1274 = vrot.lane.b32.xlu0 %v4553_v8, %s5092_s5 }
 0x150   : > { %1404 = vrot.lane.b32.xlu0 %v4553_v8, %s5090_s10 }
 0x199   : > { %v1407_v10 = vpop.permute.xlu2 %1406 }
 0x1a1   : > { %v1339_v14 = vpop.permute.xlu2 %1338 }
 0x1b1   : > { %v1273_v9 = vpop.permute.xlu1 %1272 }
 0x1b2   : > { %v1208_v11 = vpop.permute.xlu0 %1207 }
 0x1b3   : > { %3542 = vmatpush.xpose.msk.msrb.mxu0 %vm1209_vm2, %v1208_v11 }
 0x1b6   : > { %3543 = vmatmul.msk.f32.vlgmr.msrb.gmra.mxu0 %vm1209_vm2, %v4553_v8 }
 0x1b7   : > { %3551 = vmatpush.xpose.msk.msra.mxu0 %vm1209_vm2, %v1407_v10 }
 0x1b9   : > { %v1341_v12 = vpop.permute.xlu1 %1340 }
 0x1ba   : > { %v1275_v13 = vpop.permute.xlu0 %1274  ;;  %3548 = vmatpush.xpose.msk.msra.mxu1 %vm1209_vm2, %v1341_v12 }
 0x1bb   : > { %3545 = vmatpush.xpose.msk.msra.mxu3 %vm1209_vm2, %v1275_v13 }
 0x1bd   : > { %3549 = vmatmul.msk.f32.vlgmr.msra.gmra.mxu1 %vm1209_vm2, %v1339_v14 }
 0x1be   : > { %3546 = vmatmul.msk.f32.vlgmr.msra.gmra.mxu3 %vm1209_vm2, %v1273_v9  ;;  %1510 = vmatpush.msrb.mxu1 %v1490_v4 }
 0x1c0   : > { %1511 = vmatpush.msrb.mxu1 %v1489_v6 }
 0x1c2   : > { %v1405_v15 = vpop.permute.xlu0 %1404  ;;  %1512 = vmatpush.msrb.mxu1 %v1488_v7  ;;  %v1562_v7 = vld [vmem:[%s4495_s25] sm:$0xff] }
 0x1c3   : > { %3552 = vmatmul.msk.f32.vlgmr.msra.gmra.mxu0 %vm1209_vm2, %v1405_v15  ;;  %v3763_v15 = vld [vmem:[%s4475_s24] ss:$0 sm:$0xff] }
 0x233   : > { %v1231_v16 = vpop.f32.mrf.mxu0 }
 0x234   : > { %v1234_v17 = vmul.f32 0.35355338, %v1231_v16 }
 0x236   : > { %v1235_v18 = vsel %vm1209_vm2, %v1234_v17, -inf }
 0x237   : > { %1236 = vmax.xlane.f32.xlu1 %v1235_v18 }
 0x23a   : > { %v1363_v19 = vpop.f32.mrf.mxu1 }
 0x23b   : > { %v1366_v20 = vmul.f32 0.35355338, %v1363_v19 }
 0x23d   : > { %v1367_v21 = vsel %vm1209_vm2, %v1366_v20, -inf }
 0x23e   : > { %1368 = vmax.xlane.f32.xlu0 %v1367_v21  ;;  %v1589_v21 = vld [vmem:[%s4500_s23 + $0x18] sm:$0xff] }
 0x23f   : > { %1614 = vmatpush.msrb.mxu0 %v1589_v21 }
 0x240   : > { %v1429_v25 = vpop.f32.mrf.mxu0 }
 0x241   : > { %v1297_v22 = vpop.f32.mrf.mxu3  ;;  %v1432_v26 = vmul.f32 0.35355338, %v1429_v25  ;;  %v1586_v25 = vld [vmem:[%s4500_s23] sm:$0xff] }
 0x242   : > { %v1300_v23 = vmul.f32 0.35355338, %v1297_v22  ;;  %v1588_v22 = vld [vmem:[%s4500_s23 + $0x10] sm:$0xff] }
 0x243   : > { %v1433_v27 = vsel %vm1209_vm2, %v1432_v26, -inf  ;;  %1615 = vmatpush.msrb.mxu0 %v1588_v22 }
 0x244   : > { %v1301_v24 = vsel %vm1209_vm2, %v1300_v23, -inf }
 0x245   : > { %1302 = vmax.xlane.f32.xlu2 %v1301_v24 }
 0x24d   : > { %1434 = vmax.xlane.f32.xlu2 %v1433_v27 }
 0x252   : > { %1246 = vrot.lane.b32.xlu0 %v4553_v8, %s5083_s29  ;;  %s5156_s29 = sld [smem:[#allocation24_spill]] }
 0x25a   : > { %1444 = vrot.lane.b32.xlu0 %v4553_v8, %s5082_s15  ;;  %s5155_s15 = sld [smem:[#allocation26_spill]] }
 0x2aa   : > { %v1237_v28 = vpop.xlane.xlu1 %1236 }
 0x2ab   : > { %v1238_v29 = vsub.f32 %v1234_v17, %v1237_v28  ;;  %v1175_v28 = vld [vmem:[%s5155_s15 + $0x8] sm:$0xff] }
 0x2ad   : > { %v1239_v30 = vmul.f32 1.442695, %v1238_v29 }
 0x2af   : > { %3773 = vpow2.f32 %v1239_v30 }
 0x2b1   : > { %v1369_v31 = vpop.xlane.xlu0 %1368 }
 0x2b2   : > { %v1370_v32 = vsub.f32 %v1366_v20, %v1369_v31  ;;  %v4139_v20 = vmov 32.0   ;;  %v1176_v31 = vld [vmem:[%s5155_s15 + $0x10] sm:$0x7] }
 0x2b4   : > { %v1371_v33 = vmul.f32 1.442695, %v1370_v32 }
 0x2b5   : > { %v3774_v34 = vpop.eup %3773 }
 0x2b6   : > { %3775 = vpow2.f32 %v1371_v33  ;;  %v1241_v35 = vsel %vm1209_vm2, %v3774_v34, 0.0 }
 0x2b7   : > { %1242 = vadd.xlane.f32.xlu1 %v1241_v35 }
 0x2b8   : > { %v1303_v36 = vpop.xlane.xlu2 %1302 }
 0x2b9   : > { %v1304_v37 = vsub.f32 %v1300_v23, %v1303_v36  ;;  %v1587_v23 = vld [vmem:[%s4500_s23 + $0x8] sm:$0xff] }
 0x2ba   : > { %1616 = vmatpush.msrb.mxu0 %v1587_v23 }
 0x2bb   : > { %v1305_v38 = vmul.f32 1.442695, %v1304_v37 }
 0x2bc   : > { %v3776_v39 = vpop.eup %3775  ;;  %1617 = vmatpush.msrb.mxu0 %v1586_v25 }
 0x2bd   : > { %3777 = vpow2.f32 %v1305_v38  ;;  %v1373_v40 = vsel %vm1209_vm2, %v3776_v39, 0.0  ;;  %v1561_v38 = vld [vmem:[%s4490_s3 + $0x18] sm:$0xff] }
 0x2bf   : > { %1374 = vadd.xlane.f32.xlu1 %v1373_v40  ;;  %v1559_v40 = vld [vmem:[%s4490_s3 + $0x8] sm:$0xff] }
 0x2c0   : > { %v1435_v41 = vpop.xlane.xlu2 %1434 }
 0x2c1   : > { %v1436_v42 = vsub.f32 %v1432_v26, %v1435_v41  ;;  %v1174_v26 = vld [vmem:[%s5155_s15] sm:$0xff]  ;;  %s5157_s15 = sld [smem:[#allocation22_spill]] }
 0x2c2   : > { %3556 = vmatmul.msk.f32.vlgmr.msrb.gmra.mxu0 %vm1182_vm1, %v1174_v26  ;;  %v1558_v41 = vld [vmem:[%s4490_s3] sm:$0xff] }
 0x2c3   : > { %v3778_v43 = vpop.eup %3777  ;;  %v1437_v44 = vmul.f32 1.442695, %v1436_v42  ;;  %v1590_v42 = vld [vmem:[%s4442_s26] sm:$0xff] }
 0x2c4   : > { %v1307_v45 = vsel %vm1209_vm2, %v3778_v43, 0.0  ;;  %v1247_v46 = vpop.permute.xlu0 %1246 }
 0x2c5   : > { %3779 = vpow2.f32 %v1437_v44  ;;  %1308 = vadd.xlane.f32.xlu2 %v1307_v45  ;;  %1267 = vmatpush.msra.mxu2 %v1247_v46 }
 0x2ca   : > { %3557 = vmatmul.msk.f32.gmra.mxu0 %vm1182_vm1, %v1175_v28 }
 0x2cb   : > { %v3780_v47 = vpop.eup %3779 }
 0x2cc   : > { %v1439_v48 = vsel %vm1209_vm2, %v3780_v47, 0.0  ;;  %v1445_v61 = vpop.permute.xlu0 %1444 }
 0x2cd   : > { %1440 = vadd.xlane.f32.xlu2 %v1439_v48 }
 0x2d2   : > { %3558 = vmatmul.msk.f32.gmra.mxu0 %vm1182_vm1, %v1176_v31 }
 0x2d8   : > { %1312 = vrot.lane.b32.xlu1 %v4553_v8, %s5081_s20  ;;  %s5159_s20 = sld [smem:[#allocation23_spill]] }
 0x2e5   : > { %1378 = vrot.lane.b32.xlu2 %v4553_v8, %s5080_s6  ;;  %v1487_v8 = vld [vmem:[%s4435_s4] sm:$0xff]  ;;  %s5160_s6 = sld [smem:[#allocation25_spill]] }
 0x2e6   : > { %1513 = vmatpush.msrb.mxu1 %v1487_v8 }
 0x32a   : > { %v1243_v49 = vpop.xlane.xlu1 %1242 }
 0x32b   : > { %3781 = vrcp.f32 %v1243_v49 }
 0x331   : > { %v3782_v50 = vpop.eup %3781 }
 0x332   : > { %v1245_v51 = vmul.f32 %v3782_v50, %v3774_v34  ;;  %v1375_v53 = vpop.xlane.xlu1 %1374  ;;  %v1592_v50 = vld [vmem:[%s4442_s26 + $0x10] sm:$0x7] }
 0x333   : > { %3783 = vrcp.f32 %v1375_v53 }
 0x334   : > { %3544 = vmatmul.msk.f32.vlgmr.msra.gmra.mxu2 %vm1209_vm2, %v1245_v51 }
 0x338   : > { %v1309_v52 = vpop.xlane.xlu2 %1308 }
 0x339   : > { %3785 = vrcp.f32 %v1309_v52  ;;  %v3784_v55 = vpop.eup %3783 }
 0x33a   : > { %v1377_v58 = vmul.f32 %v3784_v55, %v3776_v39  ;;  %v1560_v39 = vld [vmem:[%s4490_s3 + $0x10] sm:$0xff] }
 0x33b   : > { %v1591_v55 = vld [vmem:[%s4442_s26 + $0x8] sm:$0xff] }
 0x33f   : > { %v3786_v56 = vpop.eup %3785 }
 0x340   : > { %v1441_v54 = vpop.xlane.xlu2 %1440  ;;  %v1311_v60 = vmul.f32 %v3786_v56, %v3778_v43  ;;  %v1619_v43 = vpop.f32.mrf.mxu0 }
 0x341   : > { %3787 = vrcp.f32 %v1441_v54  ;;  %v4637_v44 = vadd.f32 %v1619_v43, %v1590_v42 }
 0x342   : > { %3789 = vrcp.f32 %v4139_v20 }
 0x347   : > { %v3788_v62 = vpop.eup %3787 }
 0x348   : > { %v1379_v57 = vpop.permute.xlu2 %1378  ;;  %v1443_v63 = vmul.f32 %v3788_v62, %v3780_v47  ;;  %v3790_v24 = vpop.eup %3789 }
 0x349   : > { %1399 = vmatpush.msrb.mxu3 %v1379_v57  ;;  %v1525_v27 = vmul.f32 32.0, %v3790_v24  ;;  %vm1529_vm5 = vweird.f32 %v3790_v24  ;;  %v1622_v48 = vpop.f32.mrf.mxu0 }
 0x34a   : > { %3550 = vmatmul.msk.f32.vlgmr.msrb.gmra.mxu3 %vm1209_vm2, %v1377_v58  ;;  %v1313_v59 = vpop.permute.xlu1 %1312  ;;  %v4652_v58 = vadd.f32 %v1622_v48, %v1591_v55 }
 0x34b   : > { %1333 = vmatpush.msrb.mxu2 %v1313_v59  ;;  %1578 = vmatpush.msra.mxu3 %v1561_v38 }
 0x34c   : > { %3547 = vmatmul.msk.f32.vlgmr.msrb.gmra.mxu2 %vm1209_vm2, %v1311_v60  ;;  %v3764_v60 = vld [vmem:[%s5156_s29] ss:$0 sm:$0xff] }
 0x34d   : > { %1465 = vmatpush.msra.mxu2 %v1445_v61  ;;  %1579 = vmatpush.msra.mxu3 %v1560_v39 }
 0x34f   : > { %1580 = vmatpush.msra.mxu3 %v1559_v40 }
 0x351   : > { %1581 = vmatpush.msra.mxu3 %v1558_v41  ;;  %v1625_v52 = vpop.f32.mrf.mxu0 }
 0x352   : > { %v4645_v54 = vadd.f32 %v1625_v52, %v1592_v50 }
 0x354   : > { %3553 = vmatmul.msk.f32.vlgmr.msra.gmra.mxu2 %vm1209_vm2, %v1443_v63  ;;  %v3765_v63 = vld [vmem:[%s4485_s21] ss:$0 sm:$0xff] }
 0x355   : > { %3559 = vmatpush.xpose.msk.msrb.mxu2 %vm1209_vm2, %v4645_v54 }
 0x359   : > { %3560 = vmatpush.xpose.msk.msrb.mxu2 %vm1209_vm2, %v4652_v58 }
 0x35d   : > { %3561 = vmatpush.xpose.msk.msrb.mxu2 %vm1209_vm2, %v4637_v44 }
 0x3b7   : > { %v1269_v0 = vpop.f32.mrf.mxu2 }
 0x3cd   : > { %v1401_v1 = vpop.f32.mrf.mxu3 }
 0x3ce   : > { %1475 = vrot.lane.b32.xlu1 %v1401_v1, %s5084_s19  ;;  %s5158_s19 = smov 16  }
 0x3cf   : > { %v1335_v2 = vpop.f32.mrf.mxu2 }
 0x3d0   : > { %1471 = vrot.lane.b32.xlu0 %v1335_v2, %s5088_s9 }
 0x3d7   : > { %v1467_v3 = vpop.f32.mrf.mxu2 }
 0x3d8   : > { %1479 = vrot.lane.b32.xlu0 %v1467_v3, %s5086_s28 }
 0x3e0   : > { %1713 = vrot.lane.b32.xlu0 %v4645_v54, %s4126_s18 }
 0x3e8   : > { %1794 = vrot.lane.b32.xlu0 %v4645_v54, %s4128_s22 }
 0x3f0   : > { %1711 = vrot.lane.b32.xlu0 %v4652_v58, %s4126_s18 }
 0x3f8   : > { %1792 = vrot.lane.b32.xlu0 %v4652_v58, %s4128_s22 }
 0x400   : > { %1709 = vrot.lane.b32.xlu0 %v4637_v44, %s4126_s18 }
 0x408   : > { %1875 = vrot.lane.b32.xlu0 %v4645_v54, %s5090_s10 }
 0x440   : > { %v1476_v11 = vpop.permute.xlu1 %1475 }
 0x442   : > { %v1472_v9 = vpop.permute.xlu0 %1471 }
 0x443   : > { %v1482_v10 = vsel %vm1209_vm2, %v1269_v0, %v1472_v9 }
 0x444   : > { %v1484_v12 = vsel %vm1483_vm3, %v1482_v10, %v1476_v11 }
 0x44a   : > { %v1480_v13 = vpop.permute.xlu0 %1479 }
 0x44b   : > { %v1486_v14 = vsel %vm1485_vm4, %v1484_v12, %v1480_v13 }
 0x44c   : > { %3554 = vmatmul.msk.f32.vlgmr.msrb.gmra.mxu1 %vm1182_vm1, %v1486_v14 }
 0x452   : > { %v1714_v2 = vpop.permute.xlu0 %1713 }
 0x453   : > { %3565 = vmatpush.xpose.msk.msrb.mxu3 %vm1209_vm2, %v1714_v2 }
 0x45a   : > { %v1795_v3 = vpop.permute.xlu0 %1794 }
 0x45b   : > { %3571 = vmatpush.xpose.msk.msra.mxu2 %vm1209_vm2, %v1795_v3 }
 0x462   : > { %v1712_v4 = vpop.permute.xlu0 %1711 }
 0x463   : > { %3566 = vmatpush.xpose.msk.msrb.mxu3 %vm1209_vm2, %v1712_v4 }
 0x46a   : > { %v1793_v6 = vpop.permute.xlu0 %1792 }
 0x46b   : > { %3572 = vmatpush.xpose.msk.msra.mxu2 %vm1209_vm2, %v1793_v6 }
 0x472   : > { %v1710_v11 = vpop.permute.xlu0 %1709 }
 0x473   : > { %3567 = vmatpush.xpose.msk.msrb.mxu3 %vm1209_vm2, %v1710_v11 }
 0x47a   : > { %v1876_v12 = vpop.permute.xlu0 %1875 }
 0x47b   : > { %3577 = vmatpush.xpose.msk.msra.mxu0 %vm1209_vm2, %v1876_v12 }
 0x4c9   : > { %v1515_v16 = vpop.f32.mrf.mxu1 }
 0x4ca   : > { %v1516_v17 = vadd.f32 %v3763_v15, %v1515_v16 }
 0x4cc   : > { %v1518_v18 = vadd.f32 %v1516_v17, %v4548_v5  ;;  %v1526_v5 = vsub.f32 1.0, %v1525_v27 }
 0x4ce   : > { %v1521_v19 = vsel %vm1182_vm1, %v1518_v18, 0.0  ;;  %v1527_v29 = vmul.f32 %v3790_v24, %v1526_v5 }
 0x4cf   : > { %1522 = vadd.xlane.f32.xlu2 %v1521_v19 }
 0x4d0   : > { %v1528_v30 = vadd.f32 %v3790_v24, %v1527_v29  ;;  %v3743_v29 = vpack.i.bf16 %v4637_v44, %v4652_v58 }
 0x4d2   : > { %v4627_v32 = vsel %vm1529_vm5, %v3790_v24, %v1528_v30 }
 0x4e7   : > { %1790 = vrot.lane.b32.xlu2 %v4637_v44, %s4128_s22 }
 0x4ef   : > { %1871 = vrot.lane.b32.xlu2 %v4637_v44, %s5090_s10 }
 0x542   : > { %v1523_v33 = vpop.xlane.xlu2 %1522 }
 0x543   : > { %v1531_v34 = vmul.f32 %v4627_v32, %v1523_v33 }
 0x545   : > { %v1532_v35 = vsub.f32 %v1518_v18, %v1531_v34 }
 0x547   : > { %v1533_v36 = vmul.f32 %v1532_v35, %v1532_v35 }
 0x549   : > { %v1534_v37 = vsel %vm1182_vm1, %v1533_v36, 0.0 }
 0x54a   : > { %1535 = vadd.xlane.f32.xlu1 %v1534_v37  ;;  %v1791_v8 = vpop.permute.xlu2 %1790 }
 0x54b   : > { %3573 = vmatpush.xpose.msk.msra.mxu2 %vm1209_vm2, %v1791_v8 }
 0x552   : > { %v1872_v16 = vpop.permute.xlu2 %1871 }
 0x5bd   : > { %v1536_v45 = vpop.xlane.xlu1 %1535 }
 0x5be   : > { %v1537_v46 = vmul.f32 %v1536_v45, %v4627_v32 }
 0x5c0   : > { %v1538_v47 = vadd.f32 1e-05, %v1537_v46 }
 0x5c2   : > { %3791 = vrsqrt.f32 %v1538_v47  ;;  %vm1545_vm7 = vweird.f32 %v1538_v47 }
 0x5c8   : > { %v3792_v49 = vpop.eup %3791 }
 0x5c9   : > { %v1540_v51 = vmul.f32 %v3792_v49, %v1538_v47  ;;  %vm1546_vm6 = vweird.f32 %v3792_v49 }
 0x5ca   : > { %vm1547_vm8 = vmor %vm1545_vm7, %vm1546_vm6 }
 0x5cb   : > { %v1541_v53 = vmul.f32 %v3792_v49, %v1540_v51 }
 0x5cd   : > { %v1542_v56 = vmul.f32 0.5, %v1541_v53 }
 0x5cf   : > { %v1543_v57 = vsub.f32 1.5, %v1542_v56 }
 0x5d1   : > { %v1544_v59 = vmul.f32 %v3792_v49, %v1543_v57 }
 0x5d3   : > { %v1548_v61 = vsel %vm1547_vm8, %v3792_v49, %v1544_v59 }
 0x5d4   : > { %v1549_v62 = vmul.f32 %v1548_v61, %v1532_v35 }
 0x5d6   : > { %v1553_v0 = vmul.f32 %v3764_v60, %v1549_v62 }
 0x5d8   : > { %v4662_v1 = vadd.f32 %v3765_v63, %v1553_v0 }
 0x5da   : > { %3555 = vmatmul.msk.f32.vlgmr.msra.gmra.mxu3 %vm1182_vm1, %v4662_v1 }
 0x65d   : > { %v1583_v9 = vpop.f32.mrf.mxu3 }
 0x65e   : > { %v1584_v10 = vadd.f32 %v1583_v9, %v1562_v7 }
 0x660   : > { %1788 = vrot.lane.b32.xlu0 %v1584_v10, %s4128_s22  ;;  %1707 = vrot.lane.b32.xlu1 %v1584_v10, %s4126_s18 }
 0x661   : > { %3562 = vmatmul.msk.f32.vlgmr.msrb.gmra.mxu2 %vm1209_vm2, %v1584_v10 }
 0x668   : > { %1873 = vrot.lane.b32.xlu0 %v4652_v58, %s5090_s10 }
 0x670   : > { %1869 = vrot.lane.b32.xlu0 %v1584_v10, %s5090_s10 }
 0x6d2   : > { %v1708_v13 = vpop.permute.xlu1 %1707  ;;  %v1789_v14 = vpop.permute.xlu0 %1788 }
 0x6d3   : > { %3568 = vmatmul.msk.f32.vlgmr.msrb.gmra.mxu3 %vm1209_vm2, %v1708_v13  ;;  %3574 = vmatmul.msk.f32.vlgmr.msra.gmra.mxu2 %vm1209_vm2, %v1789_v14 }
 0x6da   : > { %v1874_v15 = vpop.permute.xlu0 %1873 }
 0x6db   : > { %3578 = vmatpush.xpose.msk.msra.mxu0 %vm1209_vm2, %v1874_v15 }
 0x6df   : > { %3579 = vmatpush.xpose.msk.msra.mxu0 %vm1209_vm2, %v1872_v16 }
 0x6e2   : > { %v1870_v17 = vpop.permute.xlu0 %1869 }
 0x6e3   : > { %3580 = vmatmul.msk.f32.vlgmr.msra.gmra.mxu0 %vm1209_vm2, %v1870_v17 }
 0x6e4   : > { %v1657_v18 = vpop.f32.mrf.mxu2 }
 0x6e5   : > { %v1660_v19 = vmul.f32 0.35355338, %v1657_v18 }
 0x6e7   : > { %v1662_v20 = vsel %vm1661_vm9, %v1660_v19, -inf }
 0x6e8   : > { %1663 = vmax.xlane.f32.xlu1 %v1662_v20 }
 0x756   : > { %v1740_v21 = vpop.f32.mrf.mxu3  ;;  %v1821_v22 = vpop.f32.mrf.mxu2 }
 0x757   : > { %v1743_v23 = vmul.f32 0.35355338, %v1740_v21  ;;  %v1824_v24 = vmul.f32 0.35355338, %v1821_v22  ;;  %v1968_v21 = vld [vmem:[%s5157_s15 + $0x18] sm:$0xff]  ;;  %v1967_v22 = vld [vmem:[%s5157_s15 + $0x10] sm:$0xff] }
 0x759   : > { %v1744_v25 = vsel %vm1661_vm9, %v1743_v23, -inf  ;;  %v1825_v26 = vsel %vm1661_vm9, %v1824_v24, -inf }
 0x75a   : > { %1745 = vmax.xlane.f32.xlu2 %v1744_v25  ;;  %1826 = vmax.xlane.f32.xlu0 %v1825_v26 }
 0x75b   : > { %v1664_v30 = vpop.xlane.xlu1 %1663 }
 0x75c   : > { %v1665_v31 = vsub.f32 %v1660_v19, %v1664_v30  ;;  %v3766_v30 = vld [vmem:[%s4505_s11] ss:$0 sm:$0xff] }
 0x75e   : > { %v1666_v33 = vmul.f32 1.442695, %v1665_v31 }
 0x760   : > { %v1902_v27 = vpop.f32.mrf.mxu0  ;;  %3793 = vpow2.f32 %v1666_v33 }
 0x761   : > { %v1905_v5 = vmul.f32 0.35355338, %v1902_v27 }
 0x763   : > { %v1906_v28 = vsel %vm1661_vm9, %v1905_v5, -inf }
 0x764   : > { %1907 = vmax.xlane.f32.xlu1 %v1906_v28 }
 0x766   : > { %v3794_v34 = vpop.eup %3793 }
 0x767   : > { %v1668_v35 = vsel %vm1661_vm9, %v3794_v34, 0.0 }
 0x76e   : > { %1677 = vrot.lane.b32.xlu0 %v4645_v54, %s4127_s17 }
 0x772   : > { %1759 = vrot.lane.b32.xlu2 %v4645_v54, %s5092_s5 }
 0x776   : > { %1840 = vrot.lane.b32.xlu0 %v4645_v54, %s4129_s30 }
 0x77d   : > { %3744 = vrot.lane.b32.xlu1 %v3743_v29, %s4127_s17 }
 0x77e   : > { %3754 = vrot.lane.b32.xlu0 %v3743_v29, %s4129_s30 }
 0x785   : > { %3749 = vrot.lane.b32.xlu1 %v3743_v29, %s5092_s5  ;;  %s5163_s5 = sld [smem:[#allocation50_spill]] (!%p3586_p1) }
 0x786   : > { %1921 = vrot.lane.b32.xlu0 %v4645_v54, %s4125_s13 }
 0x79b   : > { %1669 = vadd.xlane.f32.xlu2 %v1668_v35 }
 0x7cd   : > { %v1746_v36 = vpop.xlane.xlu2 %1745  ;;  %v1827_v37 = vpop.xlane.xlu0 %1826 }
 0x7ce   : > { %v1747_v38 = vsub.f32 %v1743_v23, %v1746_v36  ;;  %v1828_v40 = vsub.f32 %v1824_v24, %v1827_v37  ;;  %v1966_v23 = vld [vmem:[%s5157_s15 + $0x8] sm:$0xff]  ;;  %v1965_v24 = vld [vmem:[%s5157_s15] sm:$0xff] }
 0x7d0   : > { %v1748_v39 = vmul.f32 1.442695, %v1747_v38  ;;  %v1829_v41 = vmul.f32 1.442695, %v1828_v40 }
 0x7d2   : > { %3795 = vpow2.f32 %v1748_v39 }
 0x7d3   : > { %3797 = vpow2.f32 %v1829_v41  ;;  %v2032_v41 = vld [vmem:[%s5159_s20 + $0x18] sm:$0xff] }
 0x7d4   : > { %2052 = vmatpush.msrb.mxu2 %v2032_v41 }
 0x7d5   : > { %v1760_v59 = vpop.permute.xlu2 %1759 }
 0x7d7   : > { %v1908_v42 = vpop.xlane.xlu1 %1907 }
 0x7d8   : > { %v3796_v43 = vpop.eup %3795  ;;  %v1909_v44 = vsub.f32 %v1905_v5, %v1908_v42  ;;  %v2031_v42 = vld [vmem:[%s5159_s20 + $0x10] sm:$0xff] }
 0x7d9   : > { %v1750_v45 = vsel %vm1661_vm9, %v3796_v43, 0.0  ;;  %v3798_v47 = vpop.eup %3797  ;;  %2053 = vmatpush.msrb.mxu2 %v2031_v42 }
 0x7da   : > { %v1910_v46 = vmul.f32 1.442695, %v1909_v44  ;;  %1751 = vadd.xlane.f32.xlu2 %v1750_v45  ;;  %v1831_v49 = vsel %vm1661_vm9, %v3798_v47, 0.0  ;;  %v2068_v44 = vld [vmem:[%s4530_s12 + $0x38] sm:$0xff]  ;;  %v2067_v45 = vld [vmem:[%s4530_s12 + $0x30] sm:$0xff] }
 0x7dc   : > { %3799 = vpow2.f32 %v1910_v46  ;;  %v2066_v46 = vld [vmem:[%s4530_s12 + $0x28] sm:$0xff] }
 0x7e0   : > { %v1678_v48 = vpop.permute.xlu0 %1677 }
 0x7e1   : > { %3563 = vmatpush.msk.msra.mxu1 %vm1684_vm10, %v1678_v48 }
 0x7e2   : > { %v3800_v50 = vpop.eup %3799  ;;  %1832 = vadd.xlane.f32.xlu2 %v1831_v49  ;;  %v2065_v49 = vld [vmem:[%s4530_s12 + $0x20] sm:$0xff] }
 0x7e3   : > { %v1912_v51 = vsel %vm1661_vm9, %v3800_v50, 0.0 }
 0x7e4   : > { %1913 = vadd.xlane.f32.xlu1 %v1912_v51  ;;  %v2064_v51 = vld [vmem:[%s4530_s12 + $0x18] sm:$0xff] }
 0x7e8   : > { %v1841_v52 = vpop.permute.xlu0 %1840 }
 0x7e9   : > { %3575 = vmatpush.msk.msra.mxu3 %vm1684_vm10, %v1841_v52 }
 0x7ef   : > { %v3745_v53 = vpop.permute.xlu1 %3744 }
 0x7f0   : > { %v3746_v54 = vunpack.i.l.bf16 %v3745_v53  ;;  %v3755_v55 = vpop.permute.xlu0 %3754  ;;  %v3747_v57 = vunpack.i.h.bf16 %v3745_v53 }
 0x7f1   : > { %v3756_v56 = vunpack.i.l.bf16 %v3755_v55  ;;  %v3757_v58 = vunpack.i.h.bf16 %v3755_v55 }
 0x7f2   : > { %1701 = vmatpush.msra.mxu1 %v3746_v54 }
 0x7f3   : > { %1863 = vmatpush.msra.mxu3 %v3756_v56 }
 0x7f4   : > { %1702 = vmatpush.msra.mxu1 %v3747_v57 }
 0x7f5   : > { %1864 = vmatpush.msra.mxu3 %v3757_v58  ;;  %v3767_v58 = vld [vmem:[%s4510_s2] ss:$0 sm:$0xff] }
 0x7f6   : > { %3569 = vmatpush.msk.msrb.mxu1 %vm1684_vm10, %v1760_v59 }
 0x7f7   : > { %v3750_v60 = vpop.permute.xlu1 %3749  ;;  %1988 = vmatpush.msrb.mxu3 %v1968_v21 }
 0x7f8   : > { %v3751_v61 = vunpack.i.l.bf16 %v3750_v60  ;;  %v3752_v62 = vunpack.i.h.bf16 %v3750_v60  ;;  %v1922_v3 = vpop.permute.xlu0 %1921 }
 0x7f9   : > { %1989 = vmatpush.msrb.mxu3 %v1967_v22 }
 0x7fa   : > { %3759 = vrot.lane.b32.xlu2 %v3743_v29, %s4125_s13  ;;  %1782 = vmatpush.msrb.mxu1 %v3751_v61  ;;  %v3768_v61 = vld [vmem:[%s5160_s6] ss:$0 sm:$0xff] }
 0x7fb   : > { %1990 = vmatpush.msrb.mxu3 %v1966_v23 }
 0x7fc   : > { %1783 = vmatpush.msrb.mxu1 %v3752_v62 }
 0x7fd   : > { %1991 = vmatpush.msrb.mxu3 %v1965_v24 }
 0x80e   : > { %v1670_v63 = vpop.xlane.xlu2 %1669 }
 0x80f   : > { %3801 = vrcp.f32 %v1670_v63 }
 0x815   : > { %v3802_v0 = vpop.eup %3801 }
 0x816   : > { %v1672_v2 = vmul.f32 %v3802_v0, %v3794_v34  ;;  %v2063_v0 = vld [vmem:[%s4530_s12 + $0x10] sm:$0xff] }
 0x818   : > { %3564 = vmatmul.msk.f32.vlgmr.msra.gmra.mxu1 %vm1661_vm9, %v1672_v2  ;;  %v2062_v2 = vld [vmem:[%s4530_s12 + $0x8] sm:$0xff] }
 0x819   : > { %3581 = vmatpush.msk.msra.mxu1 %vm1684_vm10, %v1922_v3  ;;  %v2061_v3 = vld [vmem:[%s4530_s12] sm:$0xff] }
 0x84d   : > { %v1752_v4 = vpop.xlane.xlu2 %1751 }
 0x84e   : > { %3803 = vrcp.f32 %v1752_v4  ;;  %v3769_v4 = vld [vmem:[%s4520_s27] ss:$0 sm:$0xff] }
 0x854   : > { %v3804_v6 = vpop.eup %3803 }
 0x855   : > { %v1754_v7 = vmul.f32 %v3804_v6, %v3796_v43  ;;  %v1833_v8 = vpop.xlane.xlu2 %1832  ;;  %v2029_v43 = vld [vmem:[%s5159_s20] sm:$0xff] }
 0x856   : > { %3805 = vrcp.f32 %v1833_v8 }
 0x857   : > { %v1914_v9 = vpop.xlane.xlu1 %1913  ;;  %3570 = vmatmul.msk.f32.vlgmr.msrb.gmra.mxu1 %vm1661_vm9, %v1754_v7 }
 0x858   : > { %3807 = vrcp.f32 %v1914_v9  ;;  %v3770_v9 = vld [vmem:[%s4525_s0] ss:$0 sm:$0xff] }
 0x85c   : > { %v3806_v10 = vpop.eup %3805 }
 0x85d   : > { %v1835_v11 = vmul.f32 %v3806_v10, %v3798_v47  ;;  %v3760_v12 = vpop.permute.xlu2 %3759 }
 0x85e   : > { %v3808_v13 = vpop.eup %3807  ;;  %v3761_v14 = vunpack.i.l.bf16 %v3760_v12  ;;  %v3762_v15 = vunpack.i.h.bf16 %v3760_v12 }
 0x85f   : > { %3576 = vmatmul.msk.f32.vlgmr.msra.gmra.mxu3 %vm1661_vm9, %v1835_v11  ;;  %v1916_v16 = vmul.f32 %v3808_v13, %v3800_v50 }
 0x860   : > { %1944 = vmatpush.msra.mxu1 %v3761_v14 }
 0x862   : > { %1945 = vmatpush.msra.mxu1 %v3762_v15 }
 0x863   : > { %3582 = vmatmul.msk.f32.vlgmr.msra.gmra.mxu1 %vm1661_vm9, %v1916_v16 }
 0x864   : > { %2085 = vmatpush.msrb.mxu1 %v2068_v44 }
 0x866   : > { %2086 = vmatpush.msrb.mxu1 %v2067_v45 }
 0x868   : > { %2087 = vmatpush.msrb.mxu1 %v2066_v46 }
 0x86a   : > { %2088 = vmatpush.msrb.mxu1 %v2065_v49 }
 0x86c   : > { %2089 = vmatpush.msrb.mxu1 %v2064_v51 }
 0x86e   : > { %2090 = vmatpush.msrb.mxu1 %v2063_v0 }
 0x870   : > { %2091 = vmatpush.msrb.mxu1 %v2062_v2 }
 0x872   : > { %2092 = vmatpush.msrb.mxu1 %v2061_v3 }
 0x895   : > { %v1704_v17 = vpop.f32.mrf.mxu1 }
 0x8d4   : > { %v1785_v18 = vpop.f32.mrf.mxu1 }
 0x8d5   : > { %1951 = vrot.lane.b32.xlu0 %v1785_v18, %s5088_s9 }
 0x8e0   : > { %v1947_v19 = vpop.f32.mrf.mxu1 }
 0x8e1   : > { %1959 = vrot.lane.b32.xlu0 %v1947_v19, %s5086_s28  ;;  %s5162_s28 = sld [smem:[#allocation48_spill]] (!%p3586_p1) }
 0x8e2   : > { %v1866_v20 = vpop.f32.mrf.mxu3 }
 0x8e3   : > { %1955 = vrot.lane.b32.xlu2 %v1866_v20, %s5158_s19  ;;  %s5161_s19 = sld [smem:[#allocation47_spill]] (!%p3586_p1) }
 0x93d   : > { %v1956_v27 = vpop.permute.xlu2 %1955 }
 0x947   : > { %v1952_v25 = vpop.permute.xlu0 %1951 }
 0x948   : > { %v1962_v26 = vsel %vm1209_vm2, %v1704_v17, %v1952_v25 }
 0x949   : > { %v1963_v28 = vsel %vm1483_vm3, %v1962_v26, %v1956_v27 }
 0x953   : > { %v1960_v5 = vpop.permute.xlu0 %1959 }
 0x954   : > { %v1964_v29 = vsel %vm1485_vm4, %v1963_v28, %v1960_v5  ;;  %v3771_v5 = vld [vmem:[%s4535_s14] ss:$0 sm:$0xff] }
 0x955   : > { %3583 = vmatmul.msk.f32.vlgmr.msrb.gmra.mxu3 %vm1182_vm1, %v1964_v29  ;;  %v3772_v29 = vld [vmem:[%s4540_s16] ss:$0 sm:$0xff] }
 0x9d8   : > { %v1993_v31 = vpop.f32.mrf.mxu3 }
 0x9d9   : > { %v1994_v33 = vadd.f32 %v3766_v30, %v1993_v31 }
 0x9db   : > { %v1996_v34 = vadd.f32 %v1994_v33, %v4662_v1  ;;  %v2030_v1 = vld [vmem:[%s5159_s20 + $0x8] sm:$0xff] }
 0x9dc   : > { %2054 = vmatpush.msrb.mxu2 %v2030_v1 }
 0x9dd   : > { %v1999_v35 = vsel %vm1182_vm1, %v1996_v34, 0.0 }
 0x9de   : > { %2000 = vadd.xlane.f32.xlu2 %v1999_v35  ;;  %2055 = vmatpush.msrb.mxu2 %v2029_v43 }
 0xa51   : > { %v2001_v36 = vpop.xlane.xlu2 %2000 }
 0xa52   : > { %v2002_v37 = vmul.f32 %v2001_v36, %v4627_v32 }
 0xa54   : > { %v2003_v38 = vsub.f32 %v1996_v34, %v2002_v37 }
 0xa56   : > { %v2004_v39 = vmul.f32 %v2003_v38, %v2003_v38 }
 0xa58   : > { %v2005_v40 = vsel %vm1182_vm1, %v2004_v39, 0.0 }
 0xa59   : > { %2006 = vadd.xlane.f32.xlu0 %v2005_v40 }
 0xacc   : > { %v2007_v47 = vpop.xlane.xlu0 %2006 }
 0xacd   : > { %v2008_v48 = vmul.f32 %v2007_v47, %v4627_v32 }
 0xacf   : > { %v2009_v50 = vadd.f32 1e-05, %v2008_v48 }
 0xad1   : > { %3809 = vrsqrt.f32 %v2009_v50  ;;  %vm2016_vm12 = vweird.f32 %v2009_v50 }
 0xad7   : > { %v3810_v52 = vpop.eup %3809 }
 0xad8   : > { %v2011_v53 = vmul.f32 %v3810_v52, %v2009_v50  ;;  %vm2017_vm11 = vweird.f32 %v3810_v52 }
 0xad9   : > { %vm2018_vm13 = vmor %vm2016_vm12, %vm2017_vm11 }
 0xada   : > { %v2012_v54 = vmul.f32 %v3810_v52, %v2011_v53 }
 0xadc   : > { %v2013_v55 = vmul.f32 0.5, %v2012_v54 }
 0xade   : > { %v2014_v56 = vsub.f32 1.5, %v2013_v55 }
 0xae0   : > { %v2015_v57 = vmul.f32 %v3810_v52, %v2014_v56 }
 0xae2   : > { %v2019_v59 = vsel %vm2018_vm13, %v3810_v52, %v2015_v57 }
 0xae3   : > { %v2020_v60 = vmul.f32 %v2019_v59, %v2003_v38 }
 0xae5   : > { %v2024_v62 = vmul.f32 %v3767_v58, %v2020_v60 }
 0xae7   : > { %v2028_v63 = vadd.f32 %v3768_v61, %v2024_v62 }
 0xae9   : > { %3584 = vmatmul.msk.f32.vlgmr.msrb.gmra.mxu2 %vm1182_vm1, %v2028_v63 }
 0xb6c   : > { %v2057_v6 = vpop.f32.mrf.mxu2 }
 0xb6d   : > { %v2058_v7 = vadd.f32 %v3769_v4, %v2057_v6 }
 0xb6f   : > { %v2060_v8 = vmax.f32 %v2058_v7, 0.0 }
 0xb71   : > { %3585 = vmatmul.msk.f32.vlgmr.msrb.gmra.mxu1 %vm2073_vm14, %v2060_v8 }
 0xbee   : > { %v2094_v10 = vpop.f32.mrf.mxu1 }
 0xbef   : > { %v2095_v11 = vadd.f32 %v3770_v9, %v2094_v10 }
 0xbf1   : > { %v2097_v12 = vadd.f32 %v2095_v11, %v2028_v63 }
 0xbf3   : > { %v2100_v13 = vsel %vm1182_vm1, %v2097_v12, 0.0 }
 0xbf4   : > { %2101 = vadd.xlane.f32.xlu1 %v2100_v13 }
 0xc67   : > { %v2102_v14 = vpop.xlane.xlu1 %2101 }
 0xc68   : > { %v2103_v15 = vmul.f32 %v2102_v14, %v4627_v32 }
 0xc6a   : > { %v2104_v16 = vsub.f32 %v2097_v12, %v2103_v15 }
 0xc6c   : > { %v2105_v17 = vmul.f32 %v2104_v16, %v2104_v16 }
 0xc6e   : > { %v2106_v18 = vsel %vm1182_vm1, %v2105_v17, 0.0 }
 0xc6f   : > { %2107 = vadd.xlane.f32.xlu1 %v2106_v18 }
 0xce2   : > { %v2108_v19 = vpop.xlane.xlu1 %2107 }
 0xce3   : > { %v2109_v20 = vmul.f32 %v2108_v19, %v4627_v32 }
 0xce5   : > { %v2110_v21 = vadd.f32 1e-05, %v2109_v20 }
 0xce7   : > { %3811 = vrsqrt.f32 %v2110_v21  ;;  %vm2117_vm0 = vweird.f32 %v2110_v21 }
 0xced   : > { %v3812_v22 = vpop.eup %3811 }
 0xcee   : > { %v2112_v23 = vmul.f32 %v3812_v22, %v2110_v21  ;;  %vm2118_vm15 = vweird.f32 %v3812_v22 }
 0xcef   : > { %vm2119_vm5 = vmor %vm2117_vm0, %vm2118_vm15 }
 0xcf0   : > { %v2113_v24 = vmul.f32 %v3812_v22, %v2112_v23 }
 0xcf2   : > { %v2114_v25 = vmul.f32 0.5, %v2113_v24 }
 0xcf4   : > { %v2115_v26 = vsub.f32 1.5, %v2114_v25 }
 0xcf6   : > { %v2116_v27 = vmul.f32 %v3812_v22, %v2115_v26 }
 0xcf8   : > { %v2120_v28 = vsel %vm2119_vm5, %v3812_v22, %v2116_v27 }
 0xcf9   : > { %v2121_v30 = vmul.f32 %v2120_v28, %v2104_v16 }
 0xcfb   : > { %v2125_v31 = vmul.f32 %v3771_v5, %v2121_v30  ;;  %2134 = sbr.rel (%p3586_p1) target bundleno = 3725 (0xe8d), region = 148 }
 0xcfd   : > { %v2129_v33 = vadd.f32 %v3772_v29, %v2125_v31 }
 0xcff   : > { %2130 = vst.msk [vmem:[#allocation2] sm:$0xff] %vm1182_vm1, %v2129_v33 }
 0xd00   : > { %v2137_v34 = vsel %vm1182_vm1, %v2129_v33, 0.0  ;;  %v2170_v40 = vld [vmem:[#allocation11 + $0x18] sm:$0xff]  ;;  %v2169_v41 = vld [vmem:[#allocation11 + $0x10] sm:$0xff]  ;;  %v2168_v42 = vld [vmem:[#allocation11 + $0x8] sm:$0xff] }
 0xd01   : > { %2138 = vadd.xlane.f32.xlu0 %v2137_v34  ;;  %2190 = vmatpush.msra.mxu0 %v2170_v40  ;;  %v2167_v1 = vld [vmem:[#allocation11] sm:$0xff] }
 0xd02   : > { %v3813_v52 = vld [vmem:[%s5161_s19] ss:$0 sm:$0xff] }
 0xd03   : > { %2191 = vmatpush.msra.mxu0 %v2169_v41  ;;  %v3814_v55 = vld [vmem:[%s5162_s28] ss:$0 sm:$0xff] }
 0xd04   : > { %v3815_v58 = vld [vmem:[%s5163_s5] ss:$0 sm:$0xff] }
 0xd05   : > { %2192 = vmatpush.msra.mxu0 %v2168_v42 }
 0xd07   : > { %2193 = vmatpush.msra.mxu0 %v2167_v1 }
 0xd74   : > { %v2139_v35 = vpop.xlane.xlu0 %2138 }
 0xd75   : > { %v2140_v36 = vmul.f32 %v2139_v35, %v4627_v32 }
 0xd77   : > { %v2141_v37 = vsub.f32 %v2129_v33, %v2140_v36 }
 0xd79   : > { %v2142_v38 = vmul.f32 %v2141_v37, %v2141_v37 }
 0xd7b   : > { %v2143_v39 = vsel %vm1182_vm1, %v2142_v38, 0.0 }
 0xd7c   : > { %2144 = vadd.xlane.f32.xlu0 %v2143_v39 }
 0xdef   : > { %v2145_v43 = vpop.xlane.xlu0 %2144 }
 0xdf0   : > { %v2146_v44 = vmul.f32 %v2145_v43, %v4627_v32 }
 0xdf2   : > { %v2147_v45 = vadd.f32 1e-05, %v2146_v44 }
 0xdf4   : > { %3816 = vrsqrt.f32 %v2147_v45  ;;  %vm2154_vm7 = vweird.f32 %v2147_v45 }
 0xdfa   : > { %v3817_v46 = vpop.eup %3816 }
 0xdfb   : > { %v2149_v47 = vmul.f32 %v3817_v46, %v2147_v45  ;;  %vm2155_vm6 = vweird.f32 %v3817_v46 }
 0xdfc   : > { %vm2156_vm8 = vmor %vm2154_vm7, %vm2155_vm6 }
 0xdfd   : > { %v2150_v48 = vmul.f32 %v3817_v46, %v2149_v47 }
 0xdff   : > { %v2151_v49 = vmul.f32 0.5, %v2150_v48 }
 0xe01   : > { %v2152_v50 = vsub.f32 1.5, %v2151_v49 }
 0xe03   : > { %v2153_v51 = vmul.f32 %v3817_v46, %v2152_v50 }
 0xe05   : > { %v2157_v53 = vsel %vm2156_vm8, %v3817_v46, %v2153_v51 }
 0xe06   : > { %v2158_v54 = vmul.f32 %v2157_v53, %v2141_v37 }
 0xe08   : > { %v2162_v56 = vmul.f32 %v3813_v52, %v2158_v54 }
 0xe0a   : > { %v2166_v57 = vadd.f32 %v3814_v55, %v2162_v56 }
 0xe0c   : > { %3587 = vmatmul.msk.f32.vlgmr.msra.gmra.mxu0 %vm1182_vm1, %v2166_v57 }
 0xe89   : > { %v2195_v59 = vpop.f32.mrf.mxu0 }
 0xe8a   : > { %v2196_v60 = vadd.f32 %v3815_v58, %v2195_v59 }
 0xe8c   : > { %2198 = vst.msk [vmem:[#allocation12] sm:$0xff] %vm1209_vm2, %v2196_v60 }
 0xe8d PF: > { %v2208_v61 = vld [vmem:[%s4465_s1 + $0x18] sm:$0xff]  ;;  %v2207_v62 = vld [vmem:[%s4465_s1 + $0x10] sm:$0xff]  ;;  %v2206_v63 = vld [vmem:[%s4465_s1 + $0x8] sm:$0xff]  ;;  %s5166_s5 = smov 64   ;;  %s5167_s10 = smov 40  }
 0xe8e   : > { %2225 = vmatpush.msra.mxu0 %v2208_v61  ;;  %v2205_v0 = vld [vmem:[%s4465_s1] sm:$0xff]  ;;  %v4787_v2 = vld [vmem:[#allocation2 + $0x8] sm:$0xff]  ;;  %s5164_s1 = smov 88   ;;  %s5168_s9 = smov 56  }
 0xe8f   : > { %v2209_v3 = vld [vmem:[%s4470_s8] sm:$0xff]  ;;  %s5165_s8 = smov 104   ;;  %s5169_s28 = smov 48  }
 0xe90   : > { %2226 = vmatpush.msra.mxu0 %v2207_v62  ;;  %s5170_s29 = smov 16   ;;  %s5171_s15 = smov 8  }
 0xe91   : > { %s5172_s19 = smov 24   ;;  %s5173_s6 = sld [smem:[#allocation26_spill]] }
 0xe92   : > { %2227 = vmatpush.msra.mxu0 %v2206_v63 }
 0xe94   : > { %2228 = vmatpush.msra.mxu0 %v2205_v0 }
 0xe95   : > { %3591 = vmatmul.msk.f32.vlgmr.msra.gmra.mxu0 %vm1182_vm1, %v4787_v2 }
 0xf12   : > { %v2230_v4 = vpop.f32.mrf.mxu0 }
 0xf13   : > { %v4792_v6 = vadd.f32 %v2230_v4, %v2209_v3  ;;  %v2514_v3 = vld [vmem:[%s4435_s4 + $0x18] sm:$0xff]  ;;  %v2513_v4 = vld [vmem:[%s4435_s4 + $0x10] sm:$0xff] }
 0xf15   : > { %2432 = vrot.lane.b32.xlu2 %v4792_v6, %s4125_s13  ;;  %2298 = vrot.lane.b32.xlu1 %v4792_v6, %s4126_s18 }
 0xf16   : > { %2234 = vrot.lane.b32.xlu0 %v4792_v6, %s4127_s17 }
 0xf1d   : > { %2364 = vrot.lane.b32.xlu2 %v4792_v6, %s4128_s22  ;;  %2366 = vrot.lane.b32.xlu1 %v4792_v6, %s4129_s30 }
 0xf1e   : > { %2300 = vrot.lane.b32.xlu0 %v4792_v6, %s5164_s1 }
 0xf26   : > { %2430 = vrot.lane.b32.xlu0 %v4792_v6, %s5165_s8 }
 0xf6f   : > { %v2433_v8 = vpop.permute.xlu2 %2432 }
 0xf77   : > { %v2365_v12 = vpop.permute.xlu2 %2364 }
 0xf87   : > { %v2299_v7 = vpop.permute.xlu1 %2298 }
 0xf88   : > { %v2235_v9 = vpop.permute.xlu0 %2234 }
 0xf89   : > { %3592 = vmatpush.xpose.msk.msrb.mxu0 %vm1209_vm2, %v2235_v9 }
 0xf8c   : > { %3593 = vmatmul.msk.f32.vlgmr.msrb.gmra.mxu0 %vm1209_vm2, %v4792_v6 }
 0xf8d   : > { %3601 = vmatpush.xpose.msk.msra.mxu0 %vm1209_vm2, %v2433_v8 }
 0xf8f   : > { %v2367_v10 = vpop.permute.xlu1 %2366 }
 0xf90   : > { %v2301_v11 = vpop.permute.xlu0 %2300  ;;  %3598 = vmatpush.xpose.msk.msra.mxu1 %vm1209_vm2, %v2367_v10 }
 0xf91   : > { %3595 = vmatpush.xpose.msk.msra.mxu3 %vm1209_vm2, %v2301_v11 }
 0xf93   : > { %3599 = vmatmul.msk.f32.vlgmr.msra.gmra.mxu1 %vm1209_vm2, %v2365_v12 }
 0xf94   : > { %3596 = vmatmul.msk.f32.vlgmr.msra.gmra.mxu3 %vm1209_vm2, %v2299_v7  ;;  %2534 = vmatpush.msrb.mxu1 %v2514_v3  ;;  %v2511_v7 = vld [vmem:[%s4435_s4] sm:$0xff] }
 0xf96   : > { %2535 = vmatpush.msrb.mxu1 %v2513_v4 }
 0xf98   : > { %v2431_v13 = vpop.permute.xlu0 %2430 }
 0xf99   : > { %3602 = vmatmul.msk.f32.vlgmr.msra.gmra.mxu0 %vm1209_vm2, %v2431_v13 }
0x1009   : > { %v2257_v14 = vpop.f32.mrf.mxu0 }
0x100a   : > { %v2260_v15 = vmul.f32 0.35355338, %v2257_v14  ;;  %v3838_v14 = vld [vmem:[%s4475_s24] ss:$0 sm:$0xff] }
0x100c   : > { %v2261_v16 = vsel %vm1209_vm2, %v2260_v15, -inf }
0x100d   : > { %2262 = vmax.xlane.f32.xlu1 %v2261_v16 }
0x1010   : > { %v2389_v17 = vpop.f32.mrf.mxu1 }
0x1011   : > { %v2392_v18 = vmul.f32 0.35355338, %v2389_v17 }
0x1013   : > { %v2393_v19 = vsel %vm1209_vm2, %v2392_v18, -inf }
0x1014   : > { %2394 = vmax.xlane.f32.xlu0 %v2393_v19  ;;  %v2606_v19 = vld [vmem:[%s4500_s23 + $0x18] sm:$0xff] }
0x1015   : > { %2631 = vmatpush.msrb.mxu0 %v2606_v19 }
0x1016   : > { %v2455_v23 = vpop.f32.mrf.mxu0 }
0x1017   : > { %v2323_v20 = vpop.f32.mrf.mxu3  ;;  %v2458_v24 = vmul.f32 0.35355338, %v2455_v23  ;;  %v3588_v23 = vld [vmem:[%s5173_s6 + $0x18] sm:$0xff] }
0x1018   : > { %v2326_v21 = vmul.f32 0.35355338, %v2323_v20  ;;  %v2605_v20 = vld [vmem:[%s4500_s23 + $0x10] sm:$0xff] }
0x1019   : > { %v2459_v25 = vsel %vm1209_vm2, %v2458_v24, -inf  ;;  %2632 = vmatpush.msrb.mxu0 %v2605_v20 }
0x101a   : > { %v2327_v22 = vsel %vm1209_vm2, %v2326_v21, -inf }
0x101b   : > { %2328 = vmax.xlane.f32.xlu2 %v2327_v22  ;;  %v2603_v22 = vld [vmem:[%s4500_s23] sm:$0xff] }
0x1023   : > { %2460 = vmax.xlane.f32.xlu2 %v2459_v25 }
0x1028   : > { %2272 = vrot.lane.b32.xlu0 %v4792_v6, %s5166_s5 }
0x1030   : > { %2470 = vrot.lane.b32.xlu0 %v4792_v6, %s5167_s10 }
0x1080   : > { %v2263_v26 = vpop.xlane.xlu1 %2262 }
0x1081   : > { %v2264_v27 = vsub.f32 %v2260_v15, %v2263_v26 }
0x1083   : > { %v2265_v5 = vmul.f32 1.442695, %v2264_v27 }
0x1085   : > { %3848 = vpow2.f32 %v2265_v5 }
0x1087   : > { %v2395_v28 = vpop.xlane.xlu0 %2394 }
0x1088   : > { %v2396_v29 = vsub.f32 %v2392_v18, %v2395_v28 }
0x108a   : > { %v2397_v30 = vmul.f32 1.442695, %v2396_v29  ;;  %v2578_v29 = vld [vmem:[%s4490_s3 + $0x18] sm:$0xff] }
0x108b   : > { %v3849_v31 = vpop.eup %3848 }
0x108c   : > { %3850 = vpow2.f32 %v2397_v30  ;;  %v2267_v33 = vsel %vm1209_vm2, %v3849_v31, 0.0  ;;  %v2577_v30 = vld [vmem:[%s4490_s3 + $0x10] sm:$0xff] }
0x108d   : > { %2268 = vadd.xlane.f32.xlu1 %v2267_v33  ;;  %v2575_v33 = vld [vmem:[%s4490_s3] sm:$0xff] }
0x108e   : > { %v2329_v34 = vpop.xlane.xlu2 %2328 }
0x108f   : > { %v2330_v35 = vsub.f32 %v2326_v21, %v2329_v34  ;;  %v2604_v21 = vld [vmem:[%s4500_s23 + $0x8] sm:$0xff] }
0x1090   : > { %2633 = vmatpush.msrb.mxu0 %v2604_v21  ;;  %v2607_v34 = vld [vmem:[%s4442_s26] sm:$0xff] }
0x1091   : > { %v2331_v36 = vmul.f32 1.442695, %v2330_v35 }
0x1092   : > { %v3851_v37 = vpop.eup %3850  ;;  %2634 = vmatpush.msrb.mxu0 %v2603_v22 }
0x1093   : > { %3852 = vpow2.f32 %v2331_v36  ;;  %v2399_v38 = vsel %vm1209_vm2, %v3851_v37, 0.0  ;;  %3606 = vmatmul.msk.f32.vlgmr.msrb.gmra.mxu0 %vm1182_vm1, %v3588_v23 }
0x1095   : > { %2400 = vadd.xlane.f32.xlu1 %v2399_v38 }
0x1096   : > { %v2461_v39 = vpop.xlane.xlu2 %2460 }
0x1097   : > { %v2462_v40 = vsub.f32 %v2458_v24, %v2461_v39  ;;  %v3590_v24 = vld [vmem:[%s5173_s6 + $0x28] sm:$0x7] }
0x1099   : > { %v3853_v41 = vpop.eup %3852  ;;  %v2463_v42 = vmul.f32 1.442695, %v2462_v40 }
0x109a   : > { %v2333_v1 = vsel %vm1209_vm2, %v3853_v41, 0.0  ;;  %v2273_v43 = vpop.permute.xlu0 %2272 }
0x109b   : > { %3854 = vpow2.f32 %v2463_v42  ;;  %2334 = vadd.xlane.f32.xlu2 %v2333_v1  ;;  %2293 = vmatpush.msra.mxu2 %v2273_v43  ;;  %v2609_v42 = vld [vmem:[%s4442_s26 + $0x10] sm:$0x7] }
0x10a1   : > { %v3855_v44 = vpop.eup %3854 }
0x10a2   : > { %v2465_v45 = vsel %vm1209_vm2, %v3855_v44, 0.0  ;;  %v2471_v58 = vpop.permute.xlu0 %2470 }
0x10a3   : > { %2466 = vadd.xlane.f32.xlu2 %v2465_v45 }
0x10ae   : > { %2338 = vrot.lane.b32.xlu1 %v4792_v6, %s5168_s9 }
0x10bb   : > { %2404 = vrot.lane.b32.xlu2 %v4792_v6, %s5169_s28  ;;  %v2512_v6 = vld [vmem:[%s4435_s4 + $0x8] sm:$0xff] }
0x10bc   : > { %2536 = vmatpush.msrb.mxu1 %v2512_v6 }
0x10be   : > { %2537 = vmatpush.msrb.mxu1 %v2511_v7 }
0x1100   : > { %v2269_v46 = vpop.xlane.xlu1 %2268 }
0x1101   : > { %3856 = vrcp.f32 %v2269_v46  ;;  %v2608_v46 = vld [vmem:[%s4442_s26 + $0x8] sm:$0xff]  ;;  %s5175_s26 = sld [smem:[#allocation22_spill]] }
0x1107   : > { %v3857_v47 = vpop.eup %3856 }
0x1108   : > { %v2271_v48 = vmul.f32 %v3857_v47, %v3849_v31  ;;  %v2401_v50 = vpop.xlane.xlu1 %2400  ;;  %v2576_v31 = vld [vmem:[%s4490_s3 + $0x8] sm:$0xff]  ;;  %s5174_s3 = sld [smem:[#allocation24_spill]] }
0x1109   : > { %3858 = vrcp.f32 %v2401_v50 }
0x110a   : > { %3594 = vmatmul.msk.f32.vlgmr.msra.gmra.mxu2 %vm1209_vm2, %v2271_v48 }
0x110e   : > { %v2335_v49 = vpop.xlane.xlu2 %2334 }
0x110f   : > { %3860 = vrcp.f32 %v2335_v49  ;;  %v3859_v52 = vpop.eup %3858 }
0x1110   : > { %v2403_v55 = vmul.f32 %v3859_v52, %v3851_v37  ;;  %v2636_v35 = vpop.f32.mrf.mxu0 }
0x1111   : > { %v4874_v36 = vadd.f32 %v2636_v35, %v2607_v34 }
0x1115   : > { %v3861_v53 = vpop.eup %3860 }
0x1116   : > { %v2467_v51 = vpop.xlane.xlu2 %2466  ;;  %v2337_v57 = vmul.f32 %v3861_v53, %v3853_v41 }
0x1117   : > { %3862 = vrcp.f32 %v2467_v51  ;;  %v3839_v51 = vld [vmem:[%s5174_s3] ss:$0 sm:$0xff] }
0x111d   : > { %v3863_v59 = vpop.eup %3862 }
0x111e   : > { %v2405_v54 = vpop.permute.xlu2 %2404  ;;  %v2469_v60 = vmul.f32 %v3863_v59, %v3855_v44 }
0x111f   : > { %2425 = vmatpush.msrb.mxu3 %v2405_v54  ;;  %v3840_v54 = vld [vmem:[%s4485_s21] ss:$0 sm:$0xff]  ;;  %s5176_s21 = sld [smem:[#allocation23_spill]] }
0x1120   : > { %3600 = vmatmul.msk.f32.vlgmr.msrb.gmra.mxu3 %vm1209_vm2, %v2403_v55  ;;  %v2339_v56 = vpop.permute.xlu1 %2338 }
0x1121   : > { %2359 = vmatpush.msrb.mxu2 %v2339_v56  ;;  %2595 = vmatpush.msra.mxu3 %v2578_v29 }
0x1122   : > { %3597 = vmatmul.msk.f32.vlgmr.msrb.gmra.mxu2 %vm1209_vm2, %v2337_v57 }
0x1123   : > { %2491 = vmatpush.msra.mxu2 %v2471_v58  ;;  %2596 = vmatpush.msra.mxu3 %v2577_v30 }
0x1125   : > { %2597 = vmatpush.msra.mxu3 %v2576_v31 }
0x1127   : > { %2598 = vmatpush.msra.mxu3 %v2575_v33 }
0x112a   : > { %3603 = vmatmul.msk.f32.vlgmr.msra.gmra.mxu2 %vm1209_vm2, %v2469_v60 }
0x118d   : > { %v2295_v61 = vpop.f32.mrf.mxu2 }
0x11a3   : > { %v2427_v62 = vpop.f32.mrf.mxu3 }
0x11a4   : > { %2501 = vrot.lane.b32.xlu1 %v2427_v62, %s5170_s29 }
0x11a5   : > { %v2361_v63 = vpop.f32.mrf.mxu2 }
0x11a6   : > { %2497 = vrot.lane.b32.xlu0 %v2361_v63, %s5171_s15 }
0x11ad   : > { %v2493_v0 = vpop.f32.mrf.mxu2 }
0x11ae   : > { %2505 = vrot.lane.b32.xlu0 %v2493_v0, %s5172_s19 }
0x1216   : > { %v2502_v10 = vpop.permute.xlu1 %2501 }
0x1218   : > { %v2498_v8 = vpop.permute.xlu0 %2497 }
0x1219   : > { %v2508_v9 = vsel %vm1209_vm2, %v2295_v61, %v2498_v8  ;;  %v2579_v61 = vld [vmem:[%s4495_s25] sm:$0xff]  ;;  %s5177_s25 = sld [smem:[#allocation25_spill]] }
0x121a   : > { %v2509_v11 = vsel %vm1483_vm3, %v2508_v9, %v2502_v10 }
0x1220   : > { %v2506_v12 = vpop.permute.xlu0 %2505 }
0x1221   : > { %v2510_v13 = vsel %vm1485_vm4, %v2509_v11, %v2506_v12 }
0x1222   : > { %3604 = vmatmul.msk.f32.vlgmr.msrb.gmra.mxu1 %vm1182_vm1, %v2510_v13 }
0x129f   : > { %v2539_v15 = vpop.f32.mrf.mxu1 }
0x12a0   : > { %v2540_v16 = vadd.f32 %v3838_v14, %v2539_v15 }
0x12a2   : > { %v2542_v17 = vadd.f32 %v2540_v16, %v4787_v2  ;;  %v3589_v2 = vld [vmem:[%s5173_s6 + $0x20] sm:$0xff] }
0x12a3   : > { %3607 = vmatmul.msk.f32.gmra.mxu0 %vm1182_vm1, %v3589_v2 }
0x12a4   : > { %v2545_v18 = vsel %vm1182_vm1, %v2542_v17, 0.0 }
0x12a5   : > { %2546 = vadd.xlane.f32.xlu2 %v2545_v18 }
0x12ab   : > { %3608 = vmatmul.msk.f32.gmra.mxu0 %vm1182_vm1, %v3590_v24 }
0x12bd   : > { %2805 = vrot.lane.b32.xlu2 %v4874_v36, %s4128_s22 }
0x12c5   : > { %2886 = vrot.lane.b32.xlu2 %v4874_v36, %s5165_s8 }
0x1318   : > { %v2547_v25 = vpop.xlane.xlu2 %2546 }
0x1319   : > { %v2548_v26 = vmul.f32 %v2547_v25, %v4627_v32 }
0x131b   : > { %v2549_v27 = vsub.f32 %v2542_v17, %v2548_v26 }
0x131d   : > { %v2550_v5 = vmul.f32 %v2549_v27, %v2549_v27 }
0x131f   : > { %v2551_v28 = vsel %vm1182_vm1, %v2550_v5, 0.0 }
0x1320   : > { %2552 = vadd.xlane.f32.xlu1 %v2551_v28  ;;  %v2639_v40 = vpop.f32.mrf.mxu0  ;;  %v2806_v62 = vpop.permute.xlu2 %2805 }
0x1321   : > { %v4889_v49 = vadd.f32 %v2639_v40, %v2608_v46 }
0x1323   : > { %v3818_v23 = vpack.i.bf16 %v4874_v36, %v4889_v49 }
0x1328   : > { %v2642_v43 = vpop.f32.mrf.mxu0  ;;  %v2887_v9 = vpop.permute.xlu2 %2886 }
0x1329   : > { %v4882_v45 = vadd.f32 %v2642_v43, %v2609_v42 }
0x132b   : > { %2728 = vrot.lane.b32.xlu0 %v4882_v45, %s4126_s18  ;;  %3609 = vmatpush.xpose.msk.msrb.mxu2 %vm1209_vm2, %v4882_v45 }
0x132f   : > { %3610 = vmatpush.xpose.msk.msrb.mxu2 %vm1209_vm2, %v4889_v49 }
0x1333   : > { %2809 = vrot.lane.b32.xlu0 %v4882_v45, %s4128_s22  ;;  %3611 = vmatpush.xpose.msk.msrb.mxu2 %vm1209_vm2, %v4874_v36 }
0x133b   : > { %2726 = vrot.lane.b32.xlu0 %v4889_v49, %s4126_s18 }
0x1343   : > { %2807 = vrot.lane.b32.xlu0 %v4889_v49, %s4128_s22 }
0x134b   : > { %2724 = vrot.lane.b32.xlu0 %v4874_v36, %s4126_s18 }
0x1353   : > { %2890 = vrot.lane.b32.xlu0 %v4882_v45, %s5165_s8 }
0x1393   : > { %v2553_v37 = vpop.xlane.xlu1 %2552 }
0x1394   : > { %v2554_v38 = vmul.f32 %v2553_v37, %v4627_v32 }
0x1396   : > { %v2555_v39 = vadd.f32 1e-05, %v2554_v38 }
0x1398   : > { %3864 = vrsqrt.f32 %v2555_v39  ;;  %vm2562_vm12 = vweird.f32 %v2555_v39 }
0x139d   : > { %v2729_v57 = vpop.permute.xlu0 %2728 }
0x139e   : > { %v3865_v41 = vpop.eup %3864  ;;  %3615 = vmatpush.xpose.msk.msrb.mxu3 %vm1209_vm2, %v2729_v57 }
0x139f   : > { %v2557_v1 = vmul.f32 %v3865_v41, %v2555_v39  ;;  %vm2563_vm11 = vweird.f32 %v3865_v41 }
0x13a0   : > { %vm2564_vm13 = vmor %vm2562_vm12, %vm2563_vm11 }
0x13a1   : > { %v2558_v44 = vmul.f32 %v3865_v41, %v2557_v1 }
0x13a3   : > { %v2559_v47 = vmul.f32 0.5, %v2558_v44 }
0x13a5   : > { %v2560_v48 = vsub.f32 1.5, %v2559_v47  ;;  %v2810_v58 = vpop.permute.xlu0 %2809 }
0x13a6   : > { %3621 = vmatpush.xpose.msk.msra.mxu2 %vm1209_vm2, %v2810_v58 }
0x13a7   : > { %v2561_v50 = vmul.f32 %v3865_v41, %v2560_v48 }
0x13a9   : > { %v2565_v52 = vsel %vm2564_vm13, %v3865_v41, %v2561_v50 }
0x13aa   : > { %v2566_v53 = vmul.f32 %v2565_v52, %v2549_v27 }
0x13ac   : > { %v2570_v55 = vmul.f32 %v3839_v51, %v2566_v53 }
0x13ad   : > { %v2727_v59 = vpop.permute.xlu0 %2726 }
0x13ae   : > { %v4899_v56 = vadd.f32 %v3840_v54, %v2570_v55  ;;  %3616 = vmatpush.xpose.msk.msrb.mxu3 %vm1209_vm2, %v2727_v59 }
0x13b0   : > { %3605 = vmatmul.msk.f32.vlgmr.msra.gmra.mxu3 %vm1182_vm1, %v4899_v56 }
0x13b5   : > { %v2808_v60 = vpop.permute.xlu0 %2807 }
0x13b6   : > { %3622 = vmatpush.xpose.msk.msra.mxu2 %vm1209_vm2, %v2808_v60 }
0x13ba   : > { %3623 = vmatpush.xpose.msk.msra.mxu2 %vm1209_vm2, %v2806_v62 }
0x13bd   : > { %v2725_v3 = vpop.permute.xlu0 %2724 }
0x13be   : > { %3617 = vmatpush.xpose.msk.msrb.mxu3 %vm1209_vm2, %v2725_v3 }
0x13c5   : > { %v2891_v4 = vpop.permute.xlu0 %2890 }
0x13c6   : > { %3627 = vmatpush.xpose.msk.msra.mxu0 %vm1209_vm2, %v2891_v4 }
0x1433   : > { %v2600_v63 = vpop.f32.mrf.mxu3 }
0x1434   : > { %v2601_v0 = vadd.f32 %v2600_v63, %v2579_v61 }
0x1436   : > { %2803 = vrot.lane.b32.xlu0 %v2601_v0, %s4128_s22  ;;  %2722 = vrot.lane.b32.xlu1 %v2601_v0, %s4126_s18 }
0x1437   : > { %3612 = vmatmul.msk.f32.vlgmr.msrb.gmra.mxu2 %vm1209_vm2, %v2601_v0 }
0x143e   : > { %2888 = vrot.lane.b32.xlu0 %v4889_v49, %s5165_s8 }
0x1446   : > { %2884 = vrot.lane.b32.xlu0 %v2601_v0, %s5165_s8 }
0x14a8   : > { %v2723_v6 = vpop.permute.xlu1 %2722  ;;  %v2804_v7 = vpop.permute.xlu0 %2803 }
0x14a9   : > { %3618 = vmatmul.msk.f32.vlgmr.msrb.gmra.mxu3 %vm1209_vm2, %v2723_v6  ;;  %3624 = vmatmul.msk.f32.vlgmr.msra.gmra.mxu2 %vm1209_vm2, %v2804_v7 }
0x14b0   : > { %v2889_v8 = vpop.permute.xlu0 %2888 }
0x14b1   : > { %3628 = vmatpush.xpose.msk.msra.mxu0 %vm1209_vm2, %v2889_v8 }
0x14b5   : > { %3629 = vmatpush.xpose.msk.msra.mxu0 %vm1209_vm2, %v2887_v9 }
0x14b8   : > { %v2885_v10 = vpop.permute.xlu0 %2884 }
0x14b9   : > { %3630 = vmatmul.msk.f32.vlgmr.msra.gmra.mxu0 %vm1209_vm2, %v2885_v10 }
0x14ba   : > { %v2674_v11 = vpop.f32.mrf.mxu2 }
0x14bb   : > { %v2677_v12 = vmul.f32 0.35355338, %v2674_v11 }
0x14bd   : > { %v2678_v13 = vsel %vm1661_vm9, %v2677_v12, -inf }
0x14be   : > { %2679 = vmax.xlane.f32.xlu1 %v2678_v13 }
0x152c   : > { %v2755_v14 = vpop.f32.mrf.mxu3  ;;  %v2836_v15 = vpop.f32.mrf.mxu2 }
0x152d   : > { %v2758_v16 = vmul.f32 0.35355338, %v2755_v14  ;;  %v2839_v17 = vmul.f32 0.35355338, %v2836_v15  ;;  %v2983_v14 = vld [vmem:[%s5175_s26 + $0x18] sm:$0xff]  ;;  %v2982_v15 = vld [vmem:[%s5175_s26 + $0x10] sm:$0xff] }
0x152f   : > { %v2759_v18 = vsel %vm1661_vm9, %v2758_v16, -inf  ;;  %v2840_v19 = vsel %vm1661_vm9, %v2839_v17, -inf }
0x1530   : > { %2760 = vmax.xlane.f32.xlu2 %v2759_v18  ;;  %2841 = vmax.xlane.f32.xlu0 %v2840_v19 }
0x1531   : > { %v2680_v2 = vpop.xlane.xlu1 %2679 }
0x1532   : > { %v2681_v24 = vsub.f32 %v2677_v12, %v2680_v2  ;;  %v3841_v2 = vld [vmem:[%s4505_s11] ss:$0 sm:$0xff] }
0x1534   : > { %v2682_v25 = vmul.f32 1.442695, %v2681_v24 }
0x1536   : > { %v2917_v20 = vpop.f32.mrf.mxu0  ;;  %3866 = vpow2.f32 %v2682_v25 }
0x1537   : > { %v2920_v21 = vmul.f32 0.35355338, %v2917_v20 }
0x1539   : > { %v2921_v22 = vsel %vm1661_vm9, %v2920_v21, -inf }
0x153a   : > { %2922 = vmax.xlane.f32.xlu1 %v2921_v22 }
0x153c   : > { %v3867_v26 = vpop.eup %3866 }
0x153d   : > { %v2684_v27 = vsel %vm1661_vm9, %v3867_v26, 0.0 }
0x1544   : > { %2693 = vrot.lane.b32.xlu0 %v4882_v45, %s4127_s17 }
0x1548   : > { %2774 = vrot.lane.b32.xlu2 %v4882_v45, %s5164_s1 }
0x154c   : > { %2855 = vrot.lane.b32.xlu0 %v4882_v45, %s4129_s30 }
0x1553   : > { %3819 = vrot.lane.b32.xlu1 %v3818_v23, %s4127_s17 }
0x1554   : > { %3829 = vrot.lane.b32.xlu0 %v3818_v23, %s4129_s30 }
0x155b   : > { %3824 = vrot.lane.b32.xlu1 %v3818_v23, %s5164_s1 }
0x155c   : > { %2936 = vrot.lane.b32.xlu0 %v4882_v45, %s4125_s13 }
0x1571   : > { %2685 = vadd.xlane.f32.xlu2 %v2684_v27 }
0x15a3   : > { %v2761_v5 = vpop.xlane.xlu2 %2760  ;;  %v2842_v28 = vpop.xlane.xlu0 %2841 }
0x15a4   : > { %v2762_v29 = vsub.f32 %v2758_v16, %v2761_v5  ;;  %v2843_v31 = vsub.f32 %v2839_v17, %v2842_v28  ;;  %v2981_v16 = vld [vmem:[%s5175_s26 + $0x8] sm:$0xff]  ;;  %v2980_v17 = vld [vmem:[%s5175_s26] sm:$0xff] }
0x15a6   : > { %v2763_v30 = vmul.f32 1.442695, %v2762_v29  ;;  %v2844_v33 = vmul.f32 1.442695, %v2843_v31 }
0x15a8   : > { %3868 = vpow2.f32 %v2763_v30 }
0x15a9   : > { %3870 = vpow2.f32 %v2844_v33  ;;  %v3047_v33 = vld [vmem:[%s5176_s21 + $0x18] sm:$0xff] }
0x15aa   : > { %3067 = vmatpush.msrb.mxu2 %v3047_v33 }
0x15ab   : > { %v2775_v50 = vpop.permute.xlu2 %2774 }
0x15ad   : > { %v2923_v34 = vpop.xlane.xlu1 %2922 }
0x15ae   : > { %v3869_v35 = vpop.eup %3868  ;;  %v2924_v36 = vsub.f32 %v2920_v21, %v2923_v34  ;;  %v3046_v34 = vld [vmem:[%s5176_s21 + $0x10] sm:$0xff] }
0x15af   : > { %v2765_v37 = vsel %vm1661_vm9, %v3869_v35, 0.0  ;;  %v3871_v39 = vpop.eup %3870  ;;  %3068 = vmatpush.msrb.mxu2 %v3046_v34 }
0x15b0   : > { %v2925_v38 = vmul.f32 1.442695, %v2924_v36  ;;  %2766 = vadd.xlane.f32.xlu2 %v2765_v37  ;;  %v2846_v41 = vsel %vm1661_vm9, %v3871_v39, 0.0  ;;  %v3083_v36 = vld [vmem:[%s4530_s12 + $0x38] sm:$0xff]  ;;  %v3082_v37 = vld [vmem:[%s4530_s12 + $0x30] sm:$0xff] }
0x15b2   : > { %3872 = vpow2.f32 %v2925_v38  ;;  %v3081_v38 = vld [vmem:[%s4530_s12 + $0x28] sm:$0xff] }
0x15b6   : > { %v2694_v40 = vpop.permute.xlu0 %2693 }
0x15b7   : > { %3613 = vmatpush.msk.msra.mxu1 %vm1684_vm10, %v2694_v40 }
0x15b8   : > { %v3873_v42 = vpop.eup %3872  ;;  %2847 = vadd.xlane.f32.xlu2 %v2846_v41  ;;  %v3080_v41 = vld [vmem:[%s4530_s12 + $0x20] sm:$0xff] }
0x15b9   : > { %v2927_v1 = vsel %vm1661_vm9, %v3873_v42, 0.0 }
0x15ba   : > { %2928 = vadd.xlane.f32.xlu1 %v2927_v1  ;;  %v3079_v1 = vld [vmem:[%s4530_s12 + $0x18] sm:$0xff] }
0x15be   : > { %v2856_v43 = vpop.permute.xlu0 %2855 }
0x15bf   : > { %3625 = vmatpush.msk.msra.mxu3 %vm1684_vm10, %v2856_v43 }
0x15c5   : > { %v3820_v44 = vpop.permute.xlu1 %3819 }
0x15c6   : > { %v3821_v45 = vunpack.i.l.bf16 %v3820_v44  ;;  %v3830_v46 = vpop.permute.xlu0 %3829  ;;  %v3822_v48 = vunpack.i.h.bf16 %v3820_v44 }
0x15c7   : > { %v3831_v47 = vunpack.i.l.bf16 %v3830_v46  ;;  %v3832_v49 = vunpack.i.h.bf16 %v3830_v46 }
0x15c8   : > { %2716 = vmatpush.msra.mxu1 %v3821_v45 }
0x15c9   : > { %2878 = vmatpush.msra.mxu3 %v3831_v47 }
0x15ca   : > { %2717 = vmatpush.msra.mxu1 %v3822_v48 }
0x15cb   : > { %2879 = vmatpush.msra.mxu3 %v3832_v49  ;;  %v3842_v49 = vld [vmem:[%s4510_s2] ss:$0 sm:$0xff]  ;;  %s5179_s2 = sld [smem:[#allocation48_spill]] (!%p3586_p1) }
0x15cc   : > { %3619 = vmatpush.msk.msrb.mxu1 %vm1684_vm10, %v2775_v50 }
0x15cd   : > { %v3825_v51 = vpop.permute.xlu1 %3824  ;;  %3003 = vmatpush.msrb.mxu3 %v2983_v14 }
0x15ce   : > { %v3826_v52 = vunpack.i.l.bf16 %v3825_v51  ;;  %v3827_v53 = vunpack.i.h.bf16 %v3825_v51  ;;  %v2937_v58 = vpop.permute.xlu0 %2936 }
0x15cf   : > { %3004 = vmatpush.msrb.mxu3 %v2982_v15 }
0x15d0   : > { %3834 = vrot.lane.b32.xlu2 %v3818_v23, %s4125_s13  ;;  %2797 = vmatpush.msrb.mxu1 %v3826_v52  ;;  %v3843_v52 = vld [vmem:[%s5177_s25] ss:$0 sm:$0xff]  ;;  %s5180_s13 = sld [smem:[#allocation50_spill]] (!%p3586_p1) }
0x15d1   : > { %3005 = vmatpush.msrb.mxu3 %v2981_v16 }
0x15d2   : > { %2798 = vmatpush.msrb.mxu1 %v3827_v53 }
0x15d3   : > { %3006 = vmatpush.msrb.mxu3 %v2980_v17 }
0x15e4   : > { %v2686_v54 = vpop.xlane.xlu2 %2685 }
0x15e5   : > { %3874 = vrcp.f32 %v2686_v54 }
0x15eb   : > { %v3875_v55 = vpop.eup %3874 }
0x15ec   : > { %v2688_v57 = vmul.f32 %v3875_v55, %v3867_v26  ;;  %v3078_v55 = vld [vmem:[%s4530_s12 + $0x10] sm:$0xff] }
0x15ee   : > { %3614 = vmatmul.msk.f32.vlgmr.msra.gmra.mxu1 %vm1661_vm9, %v2688_v57  ;;  %v3077_v57 = vld [vmem:[%s4530_s12 + $0x8] sm:$0xff] }
0x15ef   : > { %3631 = vmatpush.msk.msra.mxu1 %vm1684_vm10, %v2937_v58  ;;  %v3076_v58 = vld [vmem:[%s4530_s12] sm:$0xff] }
0x1623   : > { %v2767_v59 = vpop.xlane.xlu2 %2766 }
0x1624   : > { %3876 = vrcp.f32 %v2767_v59  ;;  %v3844_v59 = vld [vmem:[%s4520_s27] ss:$0 sm:$0xff] }
0x162a   : > { %v3877_v60 = vpop.eup %3876 }
0x162b   : > { %v2848_v61 = vpop.xlane.xlu2 %2847  ;;  %v2769_v62 = vmul.f32 %v3877_v60, %v3869_v35  ;;  %v3044_v35 = vld [vmem:[%s5176_s21] sm:$0xff] }
0x162c   : > { %3878 = vrcp.f32 %v2848_v61 }
0x162d   : > { %v2929_v63 = vpop.xlane.xlu1 %2928  ;;  %3620 = vmatmul.msk.f32.vlgmr.msrb.gmra.mxu1 %vm1661_vm9, %v2769_v62 }
0x162e   : > { %3880 = vrcp.f32 %v2929_v63  ;;  %v3845_v63 = vld [vmem:[%s4525_s0] ss:$0 sm:$0xff] }
0x1632   : > { %v3879_v0 = vpop.eup %3878 }
0x1633   : > { %v3835_v3 = vpop.permute.xlu2 %3834  ;;  %v2850_v4 = vmul.f32 %v3879_v0, %v3871_v39 }
0x1634   : > { %v3881_v6 = vpop.eup %3880  ;;  %v3836_v7 = vunpack.i.l.bf16 %v3835_v3  ;;  %v3837_v8 = vunpack.i.h.bf16 %v3835_v3 }
0x1635   : > { %3626 = vmatmul.msk.f32.vlgmr.msra.gmra.mxu3 %vm1661_vm9, %v2850_v4  ;;  %v2931_v9 = vmul.f32 %v3881_v6, %v3873_v42 }
0x1636   : > { %2959 = vmatpush.msra.mxu1 %v3836_v7 }
0x1638   : > { %2960 = vmatpush.msra.mxu1 %v3837_v8 }
0x1639   : > { %3632 = vmatmul.msk.f32.vlgmr.msra.gmra.mxu1 %vm1661_vm9, %v2931_v9 }
0x163a   : > { %3099 = vmatpush.msrb.mxu1 %v3083_v36 }
0x163c   : > { %3100 = vmatpush.msrb.mxu1 %v3082_v37 }
0x163e   : > { %3101 = vmatpush.msrb.mxu1 %v3081_v38 }
0x1640   : > { %3102 = vmatpush.msrb.mxu1 %v3080_v41 }
0x1642   : > { %3103 = vmatpush.msrb.mxu1 %v3079_v1 }
0x1644   : > { %3104 = vmatpush.msrb.mxu1 %v3078_v55 }
0x1646   : > { %3105 = vmatpush.msrb.mxu1 %v3077_v57 }
0x1648   : > { %3106 = vmatpush.msrb.mxu1 %v3076_v58 }
0x166b   : > { %v2719_v10 = vpop.f32.mrf.mxu1 }
0x16aa   : > { %v2800_v11 = vpop.f32.mrf.mxu1 }
0x16ab   : > { %2966 = vrot.lane.b32.xlu0 %v2800_v11, %s5171_s15 }
0x16b6   : > { %v2962_v12 = vpop.f32.mrf.mxu1 }
0x16b7   : > { %2974 = vrot.lane.b32.xlu0 %v2962_v12, %s5172_s19 }
0x16b8   : > { %v2881_v13 = vpop.f32.mrf.mxu3 }
0x16b9   : > { %2970 = vrot.lane.b32.xlu2 %v2881_v13, %s5170_s29 }
0x1713   : > { %v2971_v20 = vpop.permute.xlu2 %2970 }
0x171d   : > { %v2967_v18 = vpop.permute.xlu0 %2966 }
0x171e   : > { %v2977_v19 = vsel %vm1209_vm2, %v2719_v10, %v2967_v18 }
0x171f   : > { %v2978_v22 = vsel %vm1483_vm3, %v2977_v19, %v2971_v20 }
0x1729   : > { %v2975_v21 = vpop.permute.xlu0 %2974 }
0x172a   : > { %v2979_v23 = vsel %vm1485_vm4, %v2978_v22, %v2975_v21  ;;  %v3846_v21 = vld [vmem:[%s4535_s14] ss:$0 sm:$0xff] }
0x172b   : > { %3633 = vmatmul.msk.f32.vlgmr.msrb.gmra.mxu3 %vm1182_vm1, %v2979_v23  ;;  %v3847_v23 = vld [vmem:[%s4540_s16] ss:$0 sm:$0xff]  ;;  %s5178_s16 = sld [smem:[#allocation47_spill]] (!%p3586_p1) }
0x17ae   : > { %v3008_v24 = vpop.f32.mrf.mxu3 }
0x17af   : > { %v3009_v25 = vadd.f32 %v3841_v2, %v3008_v24 }
0x17b1   : > { %v3011_v26 = vadd.f32 %v3009_v25, %v4899_v56  ;;  %v3045_v56 = vld [vmem:[%s5176_s21 + $0x8] sm:$0xff] }
0x17b2   : > { %3069 = vmatpush.msrb.mxu2 %v3045_v56 }
0x17b3   : > { %v3014_v27 = vsel %vm1182_vm1, %v3011_v26, 0.0 }
0x17b4   : > { %3015 = vadd.xlane.f32.xlu2 %v3014_v27  ;;  %3070 = vmatpush.msrb.mxu2 %v3044_v35 }
0x1827   : > { %v3016_v5 = vpop.xlane.xlu2 %3015 }
0x1828   : > { %v3017_v28 = vmul.f32 %v3016_v5, %v4627_v32 }
0x182a   : > { %v3018_v29 = vsub.f32 %v3011_v26, %v3017_v28 }
0x182c   : > { %v3019_v30 = vmul.f32 %v3018_v29, %v3018_v29 }
0x182e   : > { %v3020_v31 = vsel %vm1182_vm1, %v3019_v30, 0.0 }
0x182f   : > { %3021 = vadd.xlane.f32.xlu0 %v3020_v31 }
0x18a2   : > { %v3022_v39 = vpop.xlane.xlu0 %3021 }
0x18a3   : > { %v3023_v40 = vmul.f32 %v3022_v39, %v4627_v32 }
0x18a5   : > { %v3024_v42 = vadd.f32 1e-05, %v3023_v40 }
0x18a7   : > { %3882 = vrsqrt.f32 %v3024_v42  ;;  %vm3031_vm4 = vweird.f32 %v3024_v42 }
0x18ad   : > { %v3883_v43 = vpop.eup %3882 }
0x18ae   : > { %v3026_v44 = vmul.f32 %v3883_v43, %v3024_v42  ;;  %vm3032_vm3 = vweird.f32 %v3883_v43 }
0x18af   : > { %vm3033_vm9 = vmor %vm3031_vm4, %vm3032_vm3 }
0x18b0   : > { %v3027_v45 = vmul.f32 %v3883_v43, %v3026_v44 }
0x18b2   : > { %v3028_v46 = vmul.f32 0.5, %v3027_v45 }
0x18b4   : > { %v3029_v47 = vsub.f32 1.5, %v3028_v46 }
0x18b6   : > { %v3030_v48 = vmul.f32 %v3883_v43, %v3029_v47 }
0x18b8   : > { %v3034_v50 = vsel %vm3033_vm9, %v3883_v43, %v3030_v48 }
0x18b9   : > { %v3035_v51 = vmul.f32 %v3034_v50, %v3018_v29 }
0x18bb   : > { %v3039_v53 = vmul.f32 %v3842_v49, %v3035_v51 }
0x18bd   : > { %v3043_v54 = vadd.f32 %v3843_v52, %v3039_v53 }
0x18bf   : > { %3634 = vmatmul.msk.f32.vlgmr.msrb.gmra.mxu2 %vm1182_vm1, %v3043_v54 }
0x1942   : > { %v3072_v60 = vpop.f32.mrf.mxu2 }
0x1943   : > { %v3073_v61 = vadd.f32 %v3844_v59, %v3072_v60 }
0x1945   : > { %v3075_v62 = vmax.f32 %v3073_v61, 0.0 }
0x1947   : > { %3635 = vmatmul.msk.f32.vlgmr.msrb.gmra.mxu1 %vm2073_vm14, %v3075_v62 }
0x19c4   : > { %v3108_v0 = vpop.f32.mrf.mxu1 }
0x19c5   : > { %v3109_v3 = vadd.f32 %v3845_v63, %v3108_v0 }
0x19c7   : > { %v3111_v4 = vadd.f32 %v3109_v3, %v3043_v54 }
0x19c9   : > { %v3114_v6 = vsel %vm1182_vm1, %v3111_v4, 0.0 }
0x19ca   : > { %3115 = vadd.xlane.f32.xlu1 %v3114_v6 }
0x1a3d   : > { %v3116_v7 = vpop.xlane.xlu1 %3115 }
0x1a3e   : > { %v3117_v8 = vmul.f32 %v3116_v7, %v4627_v32 }
0x1a40   : > { %v3118_v9 = vsub.f32 %v3111_v4, %v3117_v8 }
0x1a42   : > { %v3119_v10 = vmul.f32 %v3118_v9, %v3118_v9 }
0x1a44   : > { %v3120_v11 = vsel %vm1182_vm1, %v3119_v10, 0.0 }
0x1a45   : > { %3121 = vadd.xlane.f32.xlu1 %v3120_v11 }
0x1ab8   : > { %v3122_v12 = vpop.xlane.xlu1 %3121 }
0x1ab9   : > { %v3123_v13 = vmul.f32 %v3122_v12, %v4627_v32 }
0x1abb   : > { %v3124_v14 = vadd.f32 1e-05, %v3123_v13 }
0x1abd   : > { %3884 = vrsqrt.f32 %v3124_v14  ;;  %vm3131_vm14 = vweird.f32 %v3124_v14 }
0x1ac3   : > { %v3885_v15 = vpop.eup %3884 }
0x1ac4   : > { %v3126_v16 = vmul.f32 %v3885_v15, %v3124_v14  ;;  %vm3132_vm10 = vweird.f32 %v3885_v15 }
0x1ac5   : > { %vm3133_vm15 = vmor %vm3131_vm14, %vm3132_vm10 }
0x1ac6   : > { %v3127_v17 = vmul.f32 %v3885_v15, %v3126_v16 }
0x1ac8   : > { %v3128_v18 = vmul.f32 0.5, %v3127_v17 }
0x1aca   : > { %v3129_v19 = vsub.f32 1.5, %v3128_v18 }
0x1acc   : > { %v3130_v20 = vmul.f32 %v3885_v15, %v3129_v19 }
0x1ace   : > { %v3134_v22 = vsel %vm3133_vm15, %v3885_v15, %v3130_v20 }
0x1acf   : > { %v3135_v2 = vmul.f32 %v3134_v22, %v3118_v9 }
0x1ad1   : > { %v3139_v24 = vmul.f32 %v3846_v21, %v3135_v2  ;;  %3147 = sbr.rel (%p3586_p1) target bundleno = 7267 (0x1c63), region = 152 }
0x1ad3   : > { %v3143_v25 = vadd.f32 %v3847_v23, %v3139_v24 }
0x1ad5   : > { %3144 = vst.msk [vmem:[#allocation2 + $0x8] sm:$0xff] %vm1182_vm1, %v3143_v25 }
0x1ad6   : > { %v3150_v26 = vsel %vm1182_vm1, %v3143_v25, 0.0  ;;  %v3183_v31 = vld [vmem:[#allocation11 + $0x18] sm:$0xff]  ;;  %v3182_v33 = vld [vmem:[#allocation11 + $0x10] sm:$0xff]  ;;  %v3181_v34 = vld [vmem:[#allocation11 + $0x8] sm:$0xff] }
0x1ad7   : > { %3151 = vadd.xlane.f32.xlu0 %v3150_v26  ;;  %3203 = vmatpush.msra.mxu0 %v3183_v31  ;;  %v3180_v56 = vld [vmem:[#allocation11] sm:$0xff] }
0x1ad8   : > { %v3886_v43 = vld [vmem:[%s5178_s16] ss:$0 sm:$0xff] }
0x1ad9   : > { %3204 = vmatpush.msra.mxu0 %v3182_v33  ;;  %v3888_v48 = vld [vmem:[%s5180_s13] ss:$0 sm:$0xff] }
0x1adb   : > { %3205 = vmatpush.msra.mxu0 %v3181_v34 }
0x1add   : > { %3206 = vmatpush.msra.mxu0 %v3180_v56 }
0x1b4a   : > { %v3152_v27 = vpop.xlane.xlu0 %3151 }
0x1b4b   : > { %v3153_v5 = vmul.f32 %v3152_v27, %v4627_v32 }
0x1b4d   : > { %v3154_v28 = vsub.f32 %v3143_v25, %v3153_v5 }
0x1b4f   : > { %v3155_v29 = vmul.f32 %v3154_v28, %v3154_v28 }
0x1b51   : > { %v3156_v30 = vsel %vm1182_vm1, %v3155_v29, 0.0 }
0x1b52   : > { %3157 = vadd.xlane.f32.xlu0 %v3156_v30 }
0x1bc5   : > { %v3158_v35 = vpop.xlane.xlu0 %3157 }
0x1bc6   : > { %v3159_v36 = vmul.f32 %v3158_v35, %v4627_v32  ;;  %v3887_v32 = vld [vmem:[%s5179_s2] ss:$0 sm:$0xff] }
0x1bc8   : > { %v3160_v37 = vadd.f32 1e-05, %v3159_v36 }
0x1bca   : > { %3889 = vrsqrt.f32 %v3160_v37  ;;  %vm3167_vm5 = vweird.f32 %v3160_v37 }
0x1bd0   : > { %v3890_v38 = vpop.eup %3889 }
0x1bd1   : > { %v3162_v39 = vmul.f32 %v3890_v38, %v3160_v37  ;;  %vm3168_vm0 = vweird.f32 %v3890_v38 }
0x1bd2   : > { %vm3169_vm6 = vmor %vm3167_vm5, %vm3168_vm0 }
0x1bd3   : > { %v3163_v40 = vmul.f32 %v3890_v38, %v3162_v39 }
0x1bd5   : > { %v3164_v41 = vmul.f32 0.5, %v3163_v40 }
0x1bd7   : > { %v3165_v42 = vsub.f32 1.5, %v3164_v41 }
0x1bd9   : > { %v3166_v1 = vmul.f32 %v3890_v38, %v3165_v42 }
0x1bdb   : > { %v3170_v44 = vsel %vm3169_vm6, %v3890_v38, %v3166_v1 }
0x1bdc   : > { %v3171_v45 = vmul.f32 %v3170_v44, %v3154_v28 }
0x1bde   : > { %v3175_v46 = vmul.f32 %v3886_v43, %v3171_v45 }
0x1be0   : > { %v3179_v47 = vadd.f32 %v3887_v32, %v3175_v46 }
0x1be2   : > { %3637 = vmatmul.msk.f32.vlgmr.msra.gmra.mxu0 %vm1182_vm1, %v3179_v47 }
0x1c5f   : > { %v3208_v49 = vpop.f32.mrf.mxu0 }
0x1c60   : > { %v3209_v50 = vadd.f32 %v3888_v48, %v3208_v49 }
0x1c62   : > { %3212 = vst.msk [vmem:[#allocation12 + $0x8] sm:$0xff] %vm1209_vm2, %v3209_v50 }
0x1c63 PF: > { %p3688_p4 = scmp.eq.s32.totalorder %s4291_s7, 1  ;;  %s4140_s18 = smov [#allocation12]  }
0x1c64   : > { %s3218_s17 = sshll.u32 %s4140_s18, 4  ;;  %s5181_s1 = sld [smem:[#allocation51_spill]]  ;;  %s3219_s17 = int_to_ptr.vmem [resolvable:$true] %s3218_s17 }
0x1c65   : > { %s4141_s28 = smov 128   ;;  %s5182_s29 = smov 8  }
0x1c6a   : > { %s3220_s8 = sshll.u32 %s5181_s1, 4  ;;  %s3221_s8 = int_to_ptr.hbm [resolvable:$true] %s3220_s8 }
0x1c6b   : > { %3665 = dma.vmem_to_hbm [thread:$0]  (%p3688_p4), %s3219_s17, 256, %s3221_s8, [#allocation5], %s4141_s28, %s4141_s28, %s5182_s29  }
0x1c6c   : > { %4102 = dma.done.wait (%p3688_p4), [#allocation5], 256  }
0x1c6d   : > { %4104 = vsyncadd (%p3688_p4), [#allocation5], 4294967040 }
0x1c6e PF: > { %s5183_s30 = sld [smem:[#allocation20_spill]] }
0x1c6f   : > { %s5184_s29 = sld [smem:[#allocation18_spill]] }
0x1c70   : > { %s5185_s2 = sld [smem:[#allocation19_spill]] }
0x1c71   : > { %s5186_s6 = sld [smem:[#allocation21_spill]] }
0x1c74   : > { %p42_p5 = scmp.ge.s32.totalorder %s5183_s30, 4  }
0x1c76   :  { %44 = sbr.rel (!%p42_p5) target bundleno = 35 (0x23), region = 261 }
0x1c7b   :  { %3237 = vsyncpa [#allocation4], 1 }
0x1c7c   :  { %3239 = vsyncpa [#allocation4 + $0x1], 1 }
0x1c7d   :  { %3240 = vsyncpa [#allocation7], 1 }
0x1c7e   :  { %3242 = vsyncpa [#allocation7 + $0x1], 1 }
0x1c7f   :  { %3243 = vsyncpa [#allocation10], 1 }
0x1c80   :  { %3245 = vsyncpa [#allocation10 + $0x1], 1 }
0x1c81   :  { %3246 = vsyncpa [#allocation5], 1 }
0x1c82   :  { %3248 = vsyncpa [#allocation5 + $0x1], 1 }

</bundles_post_ra>
